<compile_context>
chip_gen: v6e
topology: v6e:2x2x1
jax: 0.10.0
libtpu: 0.0.40
codegen_flags: <defaults>
</compile_context>

<pallas_src>
import jax
import jax.numpy as jnp
import numpy as np
from jax.experimental import pallas as pl
from jax.experimental.pallas import tpu as pltpu


# -----------------------------------------------------------------------------
# Wrapper-side layout plumbing (no FLOPs here).
# -----------------------------------------------------------------------------
def _l1_patches(img):
    """(N, C, H, W) -> (N*OH*OW, 9*C) im2col patches for the FIRST conv only.

    Row order: (n, oy, ox) raster.  Column order: (ky*3+kx)*C + c, matching
    `_flatten_conv_w`.  Only the raw input is inflated 9x.
    """
    N, C, H, W = img.shape
    OH, OW = H // 2, W // 2
    xp = jnp.pad(img, ((0, 0), (0, 0), (1, 1), (1, 1)))
    cols = []
    for ky in range(3):
        for kx in range(3):
            cols.append(xp[:, :, ky:ky + 2 * OH - 1:2, kx:kx + 2 * OW - 1:2])
    pat = jnp.stack(cols, axis=1)              # (N, 9, C, OH, OW)
    pat = pat.transpose(0, 3, 4, 1, 2)         # (N, OH, OW, 9, C)
    return pat.reshape(N * OH * OW, 9 * C)


def _flatten_conv_w(w):
    """(Cout, Cin, 3, 3) -> (9*Cin, Cout), row = (ky*3+kx)*Cin + c."""
    cout, cin = w.shape[0], w.shape[1]
    return jnp.transpose(w, (2, 3, 1, 0)).reshape(9 * cin, cout)


# -----------------------------------------------------------------------------
# Fused Discriminator forward (single pallas_call).
# -----------------------------------------------------------------------------
def discriminator_forward(img, params):
    N, C, H, W = img.shape
    assert H % 16 == 0 and W % 16 == 0, "img_size must be divisible by 16"
    h1, w1 = H // 2, W // 2
    h2, w2 = h1 // 2, w1 // 2
    h3, w3 = h2 // 2, w2 // 2
    h4, w4 = h3 // 2, w3 // 2
    P1 = h1 * w1

    NB = N if N <= 8 else 8          # images per grid step (whole batch if small)
    assert N % NB == 0

    f32 = jnp.float32
    patches = _l1_patches(img.astype(f32))                 # (N*P1, 9*C)

    (w1_, b1_), (w2_, b2_), (w3_, b3_), (w4_, b4_) = params["convs"]
    w1f = _flatten_conv_w(w1_.astype(f32))                 # (9*C,  16)
    w2f = _flatten_conv_w(w2_.astype(f32))                 # (144,  32)
    w3f = _flatten_conv_w(w3_.astype(f32))                 # (288,  64)
    w4f = _flatten_conv_w(w4_.astype(f32))                 # (576, 128)
    b1r = b1_.reshape(1, -1).astype(f32)
    b2r = b2_.reshape(1, -1).astype(f32)
    b3r = b3_.reshape(1, -1).astype(f32)
    b4r = b4_.reshape(1, -1).astype(f32)

    # FC weight: torch flattens (N, 128, h4, w4) channel-major; the kernel's
    # conv4 activation is (H, W, C)-major, so permute fc_w to match.
    fcw = params["fc_w"].astype(f32).reshape(128, h4, w4)
    fcw = jnp.transpose(fcw, (1, 2, 0)).reshape(h4 * w4, 128)
    fcb = params["fc_b"].reshape(1, 1).astype(f32)

    def kernel(p1_ref, w1_ref, b1_ref, w2_ref, b2_ref, w3_ref, b3_ref,
               w4_ref, b4_ref, fcw_ref, fcb_ref, o_ref, pad1, pad2, pad3):

        def leaky(x):
            return jnp.where(x > 0, x, 0.2 * x)

        def scatter(pad_ref, out2d, oh, ow, k):
            # out2d: (NB*oh*ow, k), rows (n, oy, ox) raster ordered.  Store into
            # the next conv's zero-padded stride-2 parity-decomposed frame:
            #   pad[py, px, n, i, j, c] == xpad[n, 2*i + py, 2*j + px, c]
            # with xpad the (oh+2, ow+2) zero-padded activation.
            hh, ww = oh // 2, ow // 2
            out_r = out2d.reshape(NB, hh, 2, ww, 2, k)
            pad_ref[...] = jnp.zeros_like(pad_ref)         # zero border (and all)
            for py in range(2):
                for px in range(2):
                    a, b = 1 - py, 1 - px
                    pad_ref[py, px, :, a:a + hh, b:b + ww, :] = \
                        out_r[:, :, a, :, b, :]

        def conv(pad_ref, w_ref, b_ref, cin, cout, oh, ow):
            # 3x3 / stride-2 / pad-1 conv + LeakyReLU: 9 tap matmuls, each tap a
            # contiguous window of the parity-decomposed padded input.  Output
            # channels sit on the lane axis, all images' pixels on the row axis.
            rows = NB * oh * ow
            acc = jnp.zeros((rows, cout), jnp.float32) + b_ref[...]   # bias in init
            for ky in range(3):
                for kx in range(3):
                    tap = ky * 3 + kx
                    s = pad_ref[ky % 2, kx % 2, :,
                                ky // 2:ky // 2 + oh, kx // 2:kx // 2 + ow, :]
                    acc = acc + jnp.dot(s.reshape(rows, cin),
                                        w_ref[tap * cin:(tap + 1) * cin, :],
                                        preferred_element_type=jnp.float32)
            return leaky(acc)

        # ---- conv1 (wrapper-side im2col of the raw input): one matmul --------
        acc1 = jnp.zeros((NB * P1, 16), jnp.float32) + b1_ref[...]
        acc1 = acc1 + jnp.dot(p1_ref[...], w1_ref[...],
                              preferred_element_type=jnp.float32)
        scatter(pad1, leaky(acc1), h1, w1, 16)

        # ---- conv2..conv4, activations never leave VMEM ----------------------
        scatter(pad2, conv(pad1, w2_ref, b2_ref, 16, 32, h2, w2), h2, w2, 32)
        scatter(pad3, conv(pad2, w3_ref, b3_ref, 32, 64, h3, w3), h3, w3, 64)
        out4 = conv(pad3, w4_ref, b4_ref, 64, 128, h4, w4)     # (NB*h4*w4, 128)

        # ---- adv_layer (Linear -> 1), fused: VPU multiply + reduce -----------
        a4 = out4.reshape(NB, h4 * w4, 128)
        prod = a4 * fcw_ref[...][None, :, :]
        val = jnp.sum(jnp.sum(prod, axis=2), axis=1, keepdims=True) + fcb_ref[...]
        o_ref[...] = val.astype(o_ref.dtype)

    out = pl.pallas_call(
        kernel,
        out_shape=jax.ShapeDtypeStruct((N, 1), f32),
        grid=(N // NB,),
        in_specs=[
            pl.BlockSpec((NB * P1, 9 * C), lambda g: (g, 0)),   # conv1 patches
            pl.BlockSpec((9 * C, 16), lambda g: (0, 0)),        # w1 (resident)
            pl.BlockSpec((1, 16), lambda g: (0, 0)),            # b1
            pl.BlockSpec((9 * 16, 32), lambda g: (0, 0)),       # w2
            pl.BlockSpec((1, 32), lambda g: (0, 0)),            # b2
            pl.BlockSpec((9 * 32, 64), lambda g: (0, 0)),       # w3
            pl.BlockSpec((1, 64), lambda g: (0, 0)),            # b3
            pl.BlockSpec((9 * 64, 128), lambda g: (0, 0)),      # w4
            pl.BlockSpec((1, 128), lambda g: (0, 0)),           # b4
            pl.BlockSpec((h4 * w4, 128), lambda g: (0, 0)),     # fc_w (permuted)
            pl.BlockSpec((1, 1), lambda g: (0, 0)),             # fc_b
        ],
        out_specs=pl.BlockSpec((NB, 1), lambda g: (g, 0)),
        scratch_shapes=[
            pltpu.VMEM((2, 2, NB, h2 + 1, w2 + 1, 16), f32),    # conv1 output (padded)
            pltpu.VMEM((2, 2, NB, h3 + 1, w3 + 1, 32), f32),    # conv2 output (padded)
            pltpu.VMEM((2, 2, NB, h4 + 1, w4 + 1, 64), f32),    # conv3 output (padded)
        ],
        compiler_params=pltpu.CompilerParams(
            dimension_semantics=("parallel",)),
    )(patches, w1f, b1r, w2f, b2r, w3f, b3r, w4f, b4r, fcw, fcb)
    return out


# -----------------------------------------------------------------------------
# Parameters (spectral-normalized, like nn.utils.spectral_norm at inference).
# -----------------------------------------------------------------------------
def _spectral_normalize(w):
    w_np = np.asarray(w, dtype=np.float64)
    sigma = np.linalg.svd(w_np.reshape(w_np.shape[0], -1), compute_uv=False)[0]
    return jnp.asarray((w_np / max(sigma, 1e-12)).astype(np.float32))


def make_params(key, channels, img_size):
    ds = img_size // 2 ** 4
    plan = [(16, channels), (32, 16), (64, 32), (128, 64)]
    keys = jax.random.split(key, 2 * len(plan) + 2)
    convs = []
    for i, (cout, cin) in enumerate(plan):
        w = jax.random.normal(keys[2 * i], (cout, cin, 3, 3), jnp.float32)
        w = w * (2.0 / (cin * 9)) ** 0.5
        b = 0.05 * jax.random.normal(keys[2 * i + 1], (cout,), jnp.float32)
        convs.append((_spectral_normalize(w), b))
    fc_w = jax.random.normal(keys[-2], (1, 128 * ds * ds), jnp.float32)
    fc_w = _spectral_normalize(fc_w * (1.0 / (128 * ds * ds)) ** 0.5)
    fc_b = 0.05 * jax.random.normal(keys[-1], (1,), jnp.float32)
    return {"convs": convs, "fc_w": fc_w, "fc_b": fc_b}


# -----------------------------------------------------------------------------
# Pure-JAX reference (high precision) mirroring the PyTorch forward.
# -----------------------------------------------------------------------------
def _ref_conv_block(x, w, b):
    y = jax.lax.conv_general_dilated(
        x, w, window_strides=(2, 2), padding=((1, 1), (1, 1)),
        dimension_numbers=("NCHW", "OIHW", "NCHW"),
        precision=jax.lax.Precision.HIGHEST)
    y = y + b[None, :, None, None]
    return jnp.where(y > 0, y, 0.2 * y)


def _ref_forward(img, params):
    x = img
    for (w, b) in params["convs"]:
        x = _ref_conv_block(x, w, b)
    flat = x.reshape(x.shape[0], -1)
    return jnp.dot(flat, params["fc_w"].T,
                   precision=jax.lax.Precision.HIGHEST) + params["fc_b"][None, :]


if __name__ == "__main__":
    key = jax.random.PRNGKey(0)
    k_img, k_par = jax.random.split(key)

    # MNIST-style Discriminator: opt.channels = 1, opt.img_size = 32 -> ds = 2.
    N, C, IMG = 2, 1, 32
    img = jax.random.normal(k_img, (N, C, IMG, IMG), jnp.float32)
    params = make_params(k_par, channels=C, img_size=IMG)

    fwd = jax.jit(discriminator_forward)
    validity = jax.block_until_ready(fwd(img, params))
    assert validity.shape == (N, 1)

    # End-to-end correctness against the high-precision pure-JAX reference
    # (kernel matmuls run DEFAULT MXU precision with f32 accumulation).
    ref_validity = _ref_forward(img, params)
    np.testing.assert_allclose(np.asarray(validity), np.asarray(ref_validity),
                               rtol=5e-2, atol=1e-2)
    print("KERNEL_OK")
</pallas_src>

<mosaic_0001>
module attributes {stable_mosaic.version = 11 : i64} {
  func.func @kernel(%arg0: i32, %arg1: memref<512x9xf32, #tpu.memory_space<vmem>>, %arg2: memref<9x16xf32, #tpu.memory_space<vmem>>, %arg3: memref<1x16xf32, #tpu.memory_space<vmem>>, %arg4: memref<144x32xf32, #tpu.memory_space<vmem>>, %arg5: memref<1x32xf32, #tpu.memory_space<vmem>>, %arg6: memref<288x64xf32, #tpu.memory_space<vmem>>, %arg7: memref<1x64xf32, #tpu.memory_space<vmem>>, %arg8: memref<576x128xf32, #tpu.memory_space<vmem>>, %arg9: memref<1x128xf32, #tpu.memory_space<vmem>>, %arg10: memref<4x128xf32, #tpu.memory_space<vmem>>, %arg11: memref<1x1xf32, #tpu.memory_space<vmem>>, %arg12: memref<2x1xf32, #tpu.memory_space<vmem>>, %arg13: memref<2x2x2x9x9x16xf32, #tpu.memory_space<vmem>>, %arg14: memref<2x2x2x5x5x32xf32, #tpu.memory_space<vmem>>, %arg15: memref<2x2x2x3x3x64xf32, #tpu.memory_space<vmem>>) attributes {dimension_semantics = [#tpu.dimension_semantics<parallel>], iteration_bounds = array<i64: 1>, scalar_prefetch = 0 : i64, scratch_operands = 3 : i64, tpu.core_type = #tpu.core_type<tc>, window_params = [{transform_indices = @transform_0, window_bounds = array<i64: 512, 9>}, {pipeline_mode = #tpu.pipeline_mode<synchronous>, transform_indices = @transform_1, window_bounds = array<i64: 9, 16>}, {pipeline_mode = #tpu.pipeline_mode<synchronous>, transform_indices = @transform_2, window_bounds = array<i64: 1, 16>}, {pipeline_mode = #tpu.pipeline_mode<synchronous>, transform_indices = @transform_3, window_bounds = array<i64: 144, 32>}, {pipeline_mode = #tpu.pipeline_mode<synchronous>, transform_indices = @transform_4, window_bounds = array<i64: 1, 32>}, {pipeline_mode = #tpu.pipeline_mode<synchronous>, transform_indices = @transform_5, window_bounds = array<i64: 288, 64>}, {pipeline_mode = #tpu.pipeline_mode<synchronous>, transform_indices = @transform_6, window_bounds = array<i64: 1, 64>}, {pipeline_mode = #tpu.pipeline_mode<synchronous>, transform_indices = @transform_7, window_bounds = array<i64: 576, 128>}, {pipeline_mode = #tpu.pipeline_mode<synchronous>, transform_indices = @transform_8, window_bounds = array<i64: 1, 128>}, {pipeline_mode = #tpu.pipeline_mode<synchronous>, transform_indices = @transform_9, window_bounds = array<i64: 4, 128>}, {pipeline_mode = #tpu.pipeline_mode<synchronous>, transform_indices = @transform_10, window_bounds = array<i64: 1, 1>}, {transform_indices = @transform_11, window_bounds = array<i64: 2, 1>}]} {
    %cst = arith.constant 0.000000e+00 : f32
    %0 = vector.broadcast %cst : f32 to vector<512x16xf32>
    %c0 = arith.constant 0 : index
    %c0_0 = arith.constant 0 : index
    %1 = vector.load %arg3[%c0, %c0_0] : memref<1x16xf32, #tpu.memory_space<vmem>>, vector<1x16xf32>
    %2 = vector.broadcast %1 : vector<1x16xf32> to vector<512x16xf32>
    %3 = arith.addf %0, %2 : vector<512x16xf32>
    %c0_1 = arith.constant 0 : index
    %c0_2 = arith.constant 0 : index
    %4 = vector.load %arg1[%c0_1, %c0_2] : memref<512x9xf32, #tpu.memory_space<vmem>>, vector<512x9xf32>
    %c0_3 = arith.constant 0 : index
    %c0_4 = arith.constant 0 : index
    %5 = vector.load %arg2[%c0_3, %c0_4] : memref<9x16xf32, #tpu.memory_space<vmem>>, vector<9x16xf32>
    %cst_5 = arith.constant dense<0.000000e+00> : vector<512x16xf32>
    %6 = tpu.matmul %4, %5, %cst_5 {dimension_numbers = #tpu.dot_dimension_numbers<[1], [0], [0], [1], [0, 0, 1, 1], [], []>} : vector<512x9xf32>, vector<9x16xf32>, vector<512x16xf32> -> vector<512x16xf32>
    %7 = arith.addf %3, %6 : vector<512x16xf32>
    %cst_6 = arith.constant 0.000000e+00 : f32
    %8 = vector.broadcast %cst_6 : f32 to vector<512x16xf32>
    %9 = arith.cmpf ogt, %7, %8 : vector<512x16xf32>
    %cst_7 = arith.constant 2.000000e-01 : f32
    %10 = vector.broadcast %cst_7 : f32 to vector<512x16xf32>
    %11 = arith.mulf %10, %7 : vector<512x16xf32>
    %12 = arith.select %9, %7, %11 : vector<512x16xi1>, vector<512x16xf32>
    %13 = vector.shape_cast %12 : vector<512x16xf32> to vector<2x8x2x8x2x16xf32>
    %cst_8 = arith.constant 0.000000e+00 : f32
    %14 = vector.broadcast %cst_8 : f32 to vector<2x2x2x9x9x16xf32>
    %c0_9 = arith.constant 0 : index
    %c0_10 = arith.constant 0 : index
    %c0_11 = arith.constant 0 : index
    %c0_12 = arith.constant 0 : index
    %c0_13 = arith.constant 0 : index
    %c0_14 = arith.constant 0 : index
    %15 = vector.load %arg13[%c0_9, %c0_10, %c0_11, %c0_12, %c0_13, %c0_14] : memref<2x2x2x9x9x16xf32, #tpu.memory_space<vmem>>, vector<2x2x2x9x9x16xf32>
    tpu.vector_store %arg13[%c0_9, %c0_10, %c0_11, %c0_12, %c0_13, %c0_14], %14 {strides = array<i32>} : memref<2x2x2x9x9x16xf32, #tpu.memory_space<vmem>>, vector<2x2x2x9x9x16xf32>,
    %16 = vector.extract_strided_slice %13 {offsets = [0, 0, 1, 0, 1, 0], sizes = [2, 8, 1, 8, 1, 16], strides = [1, 1, 1, 1, 1, 1]} : vector<2x8x2x8x2x16xf32> to vector<2x8x1x8x1x16xf32>
    %17 = vector.shape_cast %16 : vector<2x8x1x8x1x16xf32> to vector<2x8x8x16xf32>
    %c0_15 = arith.constant 0 : index
    %c0_16 = arith.constant 0 : index
    %c0_17 = arith.constant 0 : index
    %c1 = arith.constant 1 : index
    %c1_18 = arith.constant 1 : index
    %c0_19 = arith.constant 0 : index
    %18 = vector.load %arg13[%c0_15, %c0_16, %c0_17, %c1, %c1_18, %c0_19] : memref<2x2x2x9x9x16xf32, #tpu.memory_space<vmem>>, vector<1x1x2x8x8x16xf32>
    %19 = vector.shape_cast %18 : vector<1x1x2x8x8x16xf32> to vector<2x8x8x16xf32>
    %20 = vector.shape_cast %17 : vector<2x8x8x16xf32> to vector<1x1x2x8x8x16xf32>
    tpu.vector_store %arg13[%c0_15, %c0_16, %c0_17, %c1, %c1_18, %c0_19], %20 {strides = array<i32>} : memref<2x2x2x9x9x16xf32, #tpu.memory_space<vmem>>, vector<1x1x2x8x8x16xf32>,
    %21 = vector.extract_strided_slice %13 {offsets = [0, 0, 1, 0, 0, 0], sizes = [2, 8, 1, 8, 1, 16], strides = [1, 1, 1, 1, 1, 1]} : vector<2x8x2x8x2x16xf32> to vector<2x8x1x8x1x16xf32>
    %22 = vector.shape_cast %21 : vector<2x8x1x8x1x16xf32> to vector<2x8x8x16xf32>
    %c0_20 = arith.constant 0 : index
    %c1_21 = arith.constant 1 : index
    %c0_22 = arith.constant 0 : index
    %c1_23 = arith.constant 1 : index
    %c0_24 = arith.constant 0 : index
    %c0_25 = arith.constant 0 : index
    %23 = vector.load %arg13[%c0_20, %c1_21, %c0_22, %c1_23, %c0_24, %c0_25] : memref<2x2x2x9x9x16xf32, #tpu.memory_space<vmem>>, vector<1x1x2x8x8x16xf32>
    %24 = vector.shape_cast %23 : vector<1x1x2x8x8x16xf32> to vector<2x8x8x16xf32>
    %25 = vector.shape_cast %22 : vector<2x8x8x16xf32> to vector<1x1x2x8x8x16xf32>
    tpu.vector_store %arg13[%c0_20, %c1_21, %c0_22, %c1_23, %c0_24, %c0_25], %25 {strides = array<i32>} : memref<2x2x2x9x9x16xf32, #tpu.memory_space<vmem>>, vector<1x1x2x8x8x16xf32>,
    %26 = vector.extract_strided_slice %13 {offsets = [0, 0, 0, 0, 1, 0], sizes = [2, 8, 1, 8, 1, 16], strides = [1, 1, 1, 1, 1, 1]} : vector<2x8x2x8x2x16xf32> to vector<2x8x1x8x1x16xf32>
    %27 = vector.shape_cast %26 : vector<2x8x1x8x1x16xf32> to vector<2x8x8x16xf32>
    %c1_26 = arith.constant 1 : index
    %c0_27 = arith.constant 0 : index
    %c0_28 = arith.constant 0 : index
    %c0_29 = arith.constant 0 : index
    %c1_30 = arith.constant 1 : index
    %c0_31 = arith.constant 0 : index
    %28 = vector.load %arg13[%c1_26, %c0_27, %c0_28, %c0_29, %c1_30, %c0_31] : memref<2x2x2x9x9x16xf32, #tpu.memory_space<vmem>>, vector<1x1x2x8x8x16xf32>
    %29 = vector.shape_cast %28 : vector<1x1x2x8x8x16xf32> to vector<2x8x8x16xf32>
    %30 = vector.shape_cast %27 : vector<2x8x8x16xf32> to vector<1x1x2x8x8x16xf32>
    tpu.vector_store %arg13[%c1_26, %c0_27, %c0_28, %c0_29, %c1_30, %c0_31], %30 {strides = array<i32>} : memref<2x2x2x9x9x16xf32, #tpu.memory_space<vmem>>, vector<1x1x2x8x8x16xf32>,
    %31 = vector.extract_strided_slice %13 {offsets = [0, 0, 0, 0, 0, 0], sizes = [2, 8, 1, 8, 1, 16], strides = [1, 1, 1, 1, 1, 1]} : vector<2x8x2x8x2x16xf32> to vector<2x8x1x8x1x16xf32>
    %32 = vector.shape_cast %31 : vector<2x8x1x8x1x16xf32> to vector<2x8x8x16xf32>
    %c1_32 = arith.constant 1 : index
    %c1_33 = arith.constant 1 : index
    %c0_34 = arith.constant 0 : index
    %c0_35 = arith.constant 0 : index
    %c0_36 = arith.constant 0 : index
    %c0_37 = arith.constant 0 : index
    %33 = vector.load %arg13[%c1_32, %c1_33, %c0_34, %c0_35, %c0_36, %c0_37] : memref<2x2x2x9x9x16xf32, #tpu.memory_space<vmem>>, vector<1x1x2x8x8x16xf32>
    %34 = vector.shape_cast %33 : vector<1x1x2x8x8x16xf32> to vector<2x8x8x16xf32>
    %35 = vector.shape_cast %32 : vector<2x8x8x16xf32> to vector<1x1x2x8x8x16xf32>
    tpu.vector_store %arg13[%c1_32, %c1_33, %c0_34, %c0_35, %c0_36, %c0_37], %35 {strides = array<i32>} : memref<2x2x2x9x9x16xf32, #tpu.memory_space<vmem>>, vector<1x1x2x8x8x16xf32>,
    %cst_38 = arith.constant 0.000000e+00 : f32
    %36 = vector.broadcast %cst_38 : f32 to vector<128x32xf32>
    %c0_39 = arith.constant 0 : index
    %c0_40 = arith.constant 0 : index
    %37 = vector.load %arg5[%c0_39, %c0_40] : memref<1x32xf32, #tpu.memory_space<vmem>>, vector<1x32xf32>
    %38 = vector.broadcast %37 : vector<1x32xf32> to vector<128x32xf32>
    %39 = arith.addf %36, %38 : vector<128x32xf32>
    %c0_41 = arith.constant 0 : index
    %c0_42 = arith.constant 0 : index
    %c0_43 = arith.constant 0 : index
    %c0_44 = arith.constant 0 : index
    %c0_45 = arith.constant 0 : index
    %c0_46 = arith.constant 0 : index
    %40 = vector.load %arg13[%c0_41, %c0_42, %c0_43, %c0_44, %c0_45, %c0_46] : memref<2x2x2x9x9x16xf32, #tpu.memory_space<vmem>>, vector<1x1x2x8x8x16xf32>
    %41 = vector.shape_cast %40 : vector<1x1x2x8x8x16xf32> to vector<2x8x8x16xf32>
    %42 = vector.shape_cast %41 : vector<2x8x8x16xf32> to vector<128x16xf32>
    %c0_47 = arith.constant 0 : index
    %c0_48 = arith.constant 0 : index
    %43 = vector.load %arg4[%c0_47, %c0_48] : memref<144x32xf32, #tpu.memory_space<vmem>>, vector<16x32xf32>
    %cst_49 = arith.constant dense<0.000000e+00> : vector<128x32xf32>
    %44 = tpu.matmul %42, %43, %cst_49 {dimension_numbers = #tpu.dot_dimension_numbers<[1], [0], [0], [1], [0, 0, 1, 1], [], []>} : vector<128x16xf32>, vector<16x32xf32>, vector<128x32xf32> -> vector<128x32xf32>
    %45 = arith.addf %39, %44 : vector<128x32xf32>
    %c0_50 = arith.constant 0 : index
    %c1_51 = arith.constant 1 : index
    %c0_52 = arith.constant 0 : index
    %c0_53 = arith.constant 0 : index
    %c0_54 = arith.constant 0 : index
    %c0_55 = arith.constant 0 : index
    %46 = vector.load %arg13[%c0_50, %c1_51, %c0_52, %c0_53, %c0_54, %c0_55] : memref<2x2x2x9x9x16xf32, #tpu.memory_space<vmem>>, vector<1x1x2x8x8x16xf32>
    %47 = vector.shape_cast %46 : vector<1x1x2x8x8x16xf32> to vector<2x8x8x16xf32>
    %48 = vector.shape_cast %47 : vector<2x8x8x16xf32> to vector<128x16xf32>
    %c16 = arith.constant 16 : index
    %c0_56 = arith.constant 0 : index
    %49 = vector.load %arg4[%c16, %c0_56] : memref<144x32xf32, #tpu.memory_space<vmem>>, vector<16x32xf32>
    %cst_57 = arith.constant dense<0.000000e+00> : vector<128x32xf32>
    %50 = tpu.matmul %48, %49, %cst_57 {dimension_numbers = #tpu.dot_dimension_numbers<[1], [0], [0], [1], [0, 0, 1, 1], [], []>} : vector<128x16xf32>, vector<16x32xf32>, vector<128x32xf32> -> vector<128x32xf32>
    %51 = arith.addf %45, %50 : vector<128x32xf32>
    %c0_58 = arith.constant 0 : index
    %c0_59 = arith.constant 0 : index
    %c0_60 = arith.constant 0 : index
    %c0_61 = arith.constant 0 : index
    %c1_62 = arith.constant 1 : index
    %c0_63 = arith.constant 0 : index
    %52 = vector.load %arg13[%c0_58, %c0_59, %c0_60, %c0_61, %c1_62, %c0_63] : memref<2x2x2x9x9x16xf32, #tpu.memory_space<vmem>>, vector<1x1x2x8x8x16xf32>
    %53 = vector.shape_cast %52 : vector<1x1x2x8x8x16xf32> to vector<2x8x8x16xf32>
    %54 = vector.shape_cast %53 : vector<2x8x8x16xf32> to vector<128x16xf32>
    %c32 = arith.constant 32 : index
    %c0_64 = arith.constant 0 : index
    %55 = vector.load %arg4[%c32, %c0_64] : memref<144x32xf32, #tpu.memory_space<vmem>>, vector<16x32xf32>
    %cst_65 = arith.constant dense<0.000000e+00> : vector<128x32xf32>
    %56 = tpu.matmul %54, %55, %cst_65 {dimension_numbers = #tpu.dot_dimension_numbers<[1], [0], [0], [1], [0, 0, 1, 1], [], []>} : vector<128x16xf32>, vector<16x32xf32>, vector<128x32xf32> -> vector<128x32xf32>
    %57 = arith.addf %51, %56 : vector<128x32xf32>
    %c1_66 = arith.constant 1 : index
    %c0_67 = arith.constant 0 : index
    %c0_68 = arith.constant 0 : index
    %c0_69 = arith.constant 0 : index
    %c0_70 = arith.constant 0 : index
    %c0_71 = arith.constant 0 : index
    %58 = vector.load %arg13[%c1_66, %c0_67, %c0_68, %c0_69, %c0_70, %c0_71] : memref<2x2x2x9x9x16xf32, #tpu.memory_space<vmem>>, vector<1x1x2x8x8x16xf32>
    %59 = vector.shape_cast %58 : vector<1x1x2x8x8x16xf32> to vector<2x8x8x16xf32>
    %60 = vector.shape_cast %59 : vector<2x8x8x16xf32> to vector<128x16xf32>
    %c48 = arith.constant 48 : index
    %c0_72 = arith.constant 0 : index
    %61 = vector.load %arg4[%c48, %c0_72] : memref<144x32xf32, #tpu.memory_space<vmem>>, vector<16x32xf32>
    %cst_73 = arith.constant dense<0.000000e+00> : vector<128x32xf32>
    %62 = tpu.matmul %60, %61, %cst_73 {dimension_numbers = #tpu.dot_dimension_numbers<[1], [0], [0], [1], [0, 0, 1, 1], [], []>} : vector<128x16xf32>, vector<16x32xf32>, vector<128x32xf32> -> vector<128x32xf32>
    %63 = arith.addf %57, %62 : vector<128x32xf32>
    %c1_74 = arith.constant 1 : index
    %c1_75 = arith.constant 1 : index
    %c0_76 = arith.constant 0 : index
    %c0_77 = arith.constant 0 : index
    %c0_78 = arith.constant 0 : index
    %c0_79 = arith.constant 0 : index
    %64 = vector.load %arg13[%c1_74, %c1_75, %c0_76, %c0_77, %c0_78, %c0_79] : memref<2x2x2x9x9x16xf32, #tpu.memory_space<vmem>>, vector<1x1x2x8x8x16xf32>
    %65 = vector.shape_cast %64 : vector<1x1x2x8x8x16xf32> to vector<2x8x8x16xf32>
    %66 = vector.shape_cast %65 : vector<2x8x8x16xf32> to vector<128x16xf32>
    %c64 = arith.constant 64 : index
    %c0_80 = arith.constant 0 : index
    %67 = vector.load %arg4[%c64, %c0_80] : memref<144x32xf32, #tpu.memory_space<vmem>>, vector<16x32xf32>
    %cst_81 = arith.constant dense<0.000000e+00> : vector<128x32xf32>
    %68 = tpu.matmul %66, %67, %cst_81 {dimension_numbers = #tpu.dot_dimension_numbers<[1], [0], [0], [1], [0, 0, 1, 1], [], []>} : vector<128x16xf32>, vector<16x32xf32>, vector<128x32xf32> -> vector<128x32xf32>
    %69 = arith.addf %63, %68 : vector<128x32xf32>
    %c1_82 = arith.constant 1 : index
    %c0_83 = arith.constant 0 : index
    %c0_84 = arith.constant 0 : index
    %c0_85 = arith.constant 0 : index
    %c1_86 = arith.constant 1 : index
    %c0_87 = arith.constant 0 : index
    %70 = vector.load %arg13[%c1_82, %c0_83, %c0_84, %c0_85, %c1_86, %c0_87] : memref<2x2x2x9x9x16xf32, #tpu.memory_space<vmem>>, vector<1x1x2x8x8x16xf32>
    %71 = vector.shape_cast %70 : vector<1x1x2x8x8x16xf32> to vector<2x8x8x16xf32>
    %72 = vector.shape_cast %71 : vector<2x8x8x16xf32> to vector<128x16xf32>
    %c80 = arith.constant 80 : index
    %c0_88 = arith.constant 0 : index
    %73 = vector.load %arg4[%c80, %c0_88] : memref<144x32xf32, #tpu.memory_space<vmem>>, vector<16x32xf32>
    %cst_89 = arith.constant dense<0.000000e+00> : vector<128x32xf32>
    %74 = tpu.matmul %72, %73, %cst_89 {dimension_numbers = #tpu.dot_dimension_numbers<[1], [0], [0], [1], [0, 0, 1, 1], [], []>} : vector<128x16xf32>, vector<16x32xf32>, vector<128x32xf32> -> vector<128x32xf32>
    %75 = arith.addf %69, %74 : vector<128x32xf32>
    %c0_90 = arith.constant 0 : index
    %c0_91 = arith.constant 0 : index
    %c0_92 = arith.constant 0 : index
    %c1_93 = arith.constant 1 : index
    %c0_94 = arith.constant 0 : index
    %c0_95 = arith.constant 0 : index
    %76 = vector.load %arg13[%c0_90, %c0_91, %c0_92, %c1_93, %c0_94, %c0_95] : memref<2x2x2x9x9x16xf32, #tpu.memory_space<vmem>>, vector<1x1x2x8x8x16xf32>
    %77 = vector.shape_cast %76 : vector<1x1x2x8x8x16xf32> to vector<2x8x8x16xf32>
    %78 = vector.shape_cast %77 : vector<2x8x8x16xf32> to vector<128x16xf32>
    %c96 = arith.constant 96 : index
    %c0_96 = arith.constant 0 : index
    %79 = vector.load %arg4[%c96, %c0_96] : memref<144x32xf32, #tpu.memory_space<vmem>>, vector<16x32xf32>
    %cst_97 = arith.constant dense<0.000000e+00> : vector<128x32xf32>
    %80 = tpu.matmul %78, %79, %cst_97 {dimension_numbers = #tpu.dot_dimension_numbers<[1], [0], [0], [1], [0, 0, 1, 1], [], []>} : vector<128x16xf32>, vector<16x32xf32>, vector<128x32xf32> -> vector<128x32xf32>
    %81 = arith.addf %75, %80 : vector<128x32xf32>
    %c0_98 = arith.constant 0 : index
    %c1_99 = arith.constant 1 : index
    %c0_100 = arith.constant 0 : index
    %c1_101 = arith.constant 1 : index
    %c0_102 = arith.constant 0 : index
    %c0_103 = arith.constant 0 : index
    %82 = vector.load %arg13[%c0_98, %c1_99, %c0_100, %c1_101, %c0_102, %c0_103] : memref<2x2x2x9x9x16xf32, #tpu.memory_space<vmem>>, vector<1x1x2x8x8x16xf32>
    %83 = vector.shape_cast %82 : vector<1x1x2x8x8x16xf32> to vector<2x8x8x16xf32>
    %84 = vector.shape_cast %83 : vector<2x8x8x16xf32> to vector<128x16xf32>
    %c112 = arith.constant 112 : index
    %c0_104 = arith.constant 0 : index
    %85 = vector.load %arg4[%c112, %c0_104] : memref<144x32xf32, #tpu.memory_space<vmem>>, vector<16x32xf32>
    %cst_105 = arith.constant dense<0.000000e+00> : vector<128x32xf32>
    %86 = tpu.matmul %84, %85, %cst_105 {dimension_numbers = #tpu.dot_dimension_numbers<[1], [0], [0], [1], [0, 0, 1, 1], [], []>} : vector<128x16xf32>, vector<16x32xf32>, vector<128x32xf32> -> vector<128x32xf32>
    %87 = arith.addf %81, %86 : vector<128x32xf32>
    %c0_106 = arith.constant 0 : index
    %c0_107 = arith.constant 0 : index
    %c0_108 = arith.constant 0 : index
    %c1_109 = arith.constant 1 : index
    %c1_110 = arith.constant 1 : index
    %c0_111 = arith.constant 0 : index
    %88 = vector.load %arg13[%c0_106, %c0_107, %c0_108, %c1_109, %c1_110, %c0_111] : memref<2x2x2x9x9x16xf32, #tpu.memory_space<vmem>>, vector<1x1x2x8x8x16xf32>
    %89 = vector.shape_cast %88 : vector<1x1x2x8x8x16xf32> to vector<2x8x8x16xf32>
    %90 = vector.shape_cast %89 : vector<2x8x8x16xf32> to vector<128x16xf32>
    %c128 = arith.constant 128 : index
    %c0_112 = arith.constant 0 : index
    %91 = vector.load %arg4[%c128, %c0_112] : memref<144x32xf32, #tpu.memory_space<vmem>>, vector<16x32xf32>
    %cst_113 = arith.constant dense<0.000000e+00> : vector<128x32xf32>
    %92 = tpu.matmul %90, %91, %cst_113 {dimension_numbers = #tpu.dot_dimension_numbers<[1], [0], [0], [1], [0, 0, 1, 1], [], []>} : vector<128x16xf32>, vector<16x32xf32>, vector<128x32xf32> -> vector<128x32xf32>
    %93 = arith.addf %87, %92 : vector<128x32xf32>
    %cst_114 = arith.constant 0.000000e+00 : f32
    %94 = vector.broadcast %cst_114 : f32 to vector<128x32xf32>
    %95 = arith.cmpf ogt, %93, %94 : vector<128x32xf32>
    %cst_115 = arith.constant 2.000000e-01 : f32
    %96 = vector.broadcast %cst_115 : f32 to vector<128x32xf32>
    %97 = arith.mulf %96, %93 : vector<128x32xf32>
    %98 = arith.select %95, %93, %97 : vector<128x32xi1>, vector<128x32xf32>
    %99 = vector.shape_cast %98 : vector<128x32xf32> to vector<2x4x2x4x2x32xf32>
    %cst_116 = arith.constant 0.000000e+00 : f32
    %100 = vector.broadcast %cst_116 : f32 to vector<2x2x2x5x5x32xf32>
    %c0_117 = arith.constant 0 : index
    %c0_118 = arith.constant 0 : index
    %c0_119 = arith.constant 0 : index
    %c0_120 = arith.constant 0 : index
    %c0_121 = arith.constant 0 : index
    %c0_122 = arith.constant 0 : index
    %101 = vector.load %arg14[%c0_117, %c0_118, %c0_119, %c0_120, %c0_121, %c0_122] : memref<2x2x2x5x5x32xf32, #tpu.memory_space<vmem>>, vector<2x2x2x5x5x32xf32>
    tpu.vector_store %arg14[%c0_117, %c0_118, %c0_119, %c0_120, %c0_121, %c0_122], %100 {strides = array<i32>} : memref<2x2x2x5x5x32xf32, #tpu.memory_space<vmem>>, vector<2x2x2x5x5x32xf32>,
    %102 = vector.extract_strided_slice %99 {offsets = [0, 0, 1, 0, 1, 0], sizes = [2, 4, 1, 4, 1, 32], strides = [1, 1, 1, 1, 1, 1]} : vector<2x4x2x4x2x32xf32> to vector<2x4x1x4x1x32xf32>
    %103 = vector.shape_cast %102 : vector<2x4x1x4x1x32xf32> to vector<2x4x4x32xf32>
    %c0_123 = arith.constant 0 : index
    %c0_124 = arith.constant 0 : index
    %c0_125 = arith.constant 0 : index
    %c1_126 = arith.constant 1 : index
    %c1_127 = arith.constant 1 : index
    %c0_128 = arith.constant 0 : index
    %104 = vector.load %arg14[%c0_123, %c0_124, %c0_125, %c1_126, %c1_127, %c0_128] : memref<2x2x2x5x5x32xf32, #tpu.memory_space<vmem>>, vector<1x1x2x4x4x32xf32>
    %105 = vector.shape_cast %104 : vector<1x1x2x4x4x32xf32> to vector<2x4x4x32xf32>
    %106 = vector.shape_cast %103 : vector<2x4x4x32xf32> to vector<1x1x2x4x4x32xf32>
    tpu.vector_store %arg14[%c0_123, %c0_124, %c0_125, %c1_126, %c1_127, %c0_128], %106 {strides = array<i32>} : memref<2x2x2x5x5x32xf32, #tpu.memory_space<vmem>>, vector<1x1x2x4x4x32xf32>,
    %107 = vector.extract_strided_slice %99 {offsets = [0, 0, 1, 0, 0, 0], sizes = [2, 4, 1, 4, 1, 32], strides = [1, 1, 1, 1, 1, 1]} : vector<2x4x2x4x2x32xf32> to vector<2x4x1x4x1x32xf32>
    %108 = vector.shape_cast %107 : vector<2x4x1x4x1x32xf32> to vector<2x4x4x32xf32>
    %c0_129 = arith.constant 0 : index
    %c1_130 = arith.constant 1 : index
    %c0_131 = arith.constant 0 : index
    %c1_132 = arith.constant 1 : index
    %c0_133 = arith.constant 0 : index
    %c0_134 = arith.constant 0 : index
    %109 = vector.load %arg14[%c0_129, %c1_130, %c0_131, %c1_132, %c0_133, %c0_134] : memref<2x2x2x5x5x32xf32, #tpu.memory_space<vmem>>, vector<1x1x2x4x4x32xf32>
    %110 = vector.shape_cast %109 : vector<1x1x2x4x4x32xf32> to vector<2x4x4x32xf32>
    %111 = vector.shape_cast %108 : vector<2x4x4x32xf32> to vector<1x1x2x4x4x32xf32>
    tpu.vector_store %arg14[%c0_129, %c1_130, %c0_131, %c1_132, %c0_133, %c0_134], %111 {strides = array<i32>} : memref<2x2x2x5x5x32xf32, #tpu.memory_space<vmem>>, vector<1x1x2x4x4x32xf32>,
    %112 = vector.extract_strided_slice %99 {offsets = [0, 0, 0, 0, 1, 0], sizes = [2, 4, 1, 4, 1, 32], strides = [1, 1, 1, 1, 1, 1]} : vector<2x4x2x4x2x32xf32> to vector<2x4x1x4x1x32xf32>
    %113 = vector.shape_cast %112 : vector<2x4x1x4x1x32xf32> to vector<2x4x4x32xf32>
    %c1_135 = arith.constant 1 : index
    %c0_136 = arith.constant 0 : index
    %c0_137 = arith.constant 0 : index
    %c0_138 = arith.constant 0 : index
    %c1_139 = arith.constant 1 : index
    %c0_140 = arith.constant 0 : index
    %114 = vector.load %arg14[%c1_135, %c0_136, %c0_137, %c0_138, %c1_139, %c0_140] : memref<2x2x2x5x5x32xf32, #tpu.memory_space<vmem>>, vector<1x1x2x4x4x32xf32>
    %115 = vector.shape_cast %114 : vector<1x1x2x4x4x32xf32> to vector<2x4x4x32xf32>
    %116 = vector.shape_cast %113 : vector<2x4x4x32xf32> to vector<1x1x2x4x4x32xf32>
    tpu.vector_store %arg14[%c1_135, %c0_136, %c0_137, %c0_138, %c1_139, %c0_140], %116 {strides = array<i32>} : memref<2x2x2x5x5x32xf32, #tpu.memory_space<vmem>>, vector<1x1x2x4x4x32xf32>,
    %117 = vector.extract_strided_slice %99 {offsets = [0, 0, 0, 0, 0, 0], sizes = [2, 4, 1, 4, 1, 32], strides = [1, 1, 1, 1, 1, 1]} : vector<2x4x2x4x2x32xf32> to vector<2x4x1x4x1x32xf32>
    %118 = vector.shape_cast %117 : vector<2x4x1x4x1x32xf32> to vector<2x4x4x32xf32>
    %c1_141 = arith.constant 1 : index
    %c1_142 = arith.constant 1 : index
    %c0_143 = arith.constant 0 : index
    %c0_144 = arith.constant 0 : index
    %c0_145 = arith.constant 0 : index
    %c0_146 = arith.constant 0 : index
    %119 = vector.load %arg14[%c1_141, %c1_142, %c0_143, %c0_144, %c0_145, %c0_146] : memref<2x2x2x5x5x32xf32, #tpu.memory_space<vmem>>, vector<1x1x2x4x4x32xf32>
    %120 = vector.shape_cast %119 : vector<1x1x2x4x4x32xf32> to vector<2x4x4x32xf32>
    %121 = vector.shape_cast %118 : vector<2x4x4x32xf32> to vector<1x1x2x4x4x32xf32>
    tpu.vector_store %arg14[%c1_141, %c1_142, %c0_143, %c0_144, %c0_145, %c0_146], %121 {strides = array<i32>} : memref<2x2x2x5x5x32xf32, #tpu.memory_space<vmem>>, vector<1x1x2x4x4x32xf32>,
    %cst_147 = arith.constant 0.000000e+00 : f32
    %122 = vector.broadcast %cst_147 : f32 to vector<32x64xf32>
    %c0_148 = arith.constant 0 : index
    %c0_149 = arith.constant 0 : index
    %123 = vector.load %arg7[%c0_148, %c0_149] : memref<1x64xf32, #tpu.memory_space<vmem>>, vector<1x64xf32>
    %124 = vector.broadcast %123 : vector<1x64xf32> to vector<32x64xf32>
    %125 = arith.addf %122, %124 : vector<32x64xf32>
    %c0_150 = arith.constant 0 : index
    %c0_151 = arith.constant 0 : index
    %c0_152 = arith.constant 0 : index
    %c0_153 = arith.constant 0 : index
    %c0_154 = arith.constant 0 : index
    %c0_155 = arith.constant 0 : index
    %126 = vector.load %arg14[%c0_150, %c0_151, %c0_152, %c0_153, %c0_154, %c0_155] : memref<2x2x2x5x5x32xf32, #tpu.memory_space<vmem>>, vector<1x1x2x4x4x32xf32>
    %127 = vector.shape_cast %126 : vector<1x1x2x4x4x32xf32> to vector<2x4x4x32xf32>
    %128 = vector.shape_cast %127 : vector<2x4x4x32xf32> to vector<32x32xf32>
    %c0_156 = arith.constant 0 : index
    %c0_157 = arith.constant 0 : index
    %129 = vector.load %arg6[%c0_156, %c0_157] : memref<288x64xf32, #tpu.memory_space<vmem>>, vector<32x64xf32>
    %cst_158 = arith.constant dense<0.000000e+00> : vector<32x64xf32>
    %130 = tpu.matmul %128, %129, %cst_158 {dimension_numbers = #tpu.dot_dimension_numbers<[1], [0], [0], [1], [0, 0, 1, 1], [], []>} : vector<32x32xf32>, vector<32x64xf32>, vector<32x64xf32> -> vector<32x64xf32>
    %131 = arith.addf %125, %130 : vector<32x64xf32>
    %c0_159 = arith.constant 0 : index
    %c1_160 = arith.constant 1 : index
    %c0_161 = arith.constant 0 : index
    %c0_162 = arith.constant 0 : index
    %c0_163 = arith.constant 0 : index
    %c0_164 = arith.constant 0 : index
    %132 = vector.load %arg14[%c0_159, %c1_160, %c0_161, %c0_162, %c0_163, %c0_164] : memref<2x2x2x5x5x32xf32, #tpu.memory_space<vmem>>, vector<1x1x2x4x4x32xf32>
    %133 = vector.shape_cast %132 : vector<1x1x2x4x4x32xf32> to vector<2x4x4x32xf32>
    %134 = vector.shape_cast %133 : vector<2x4x4x32xf32> to vector<32x32xf32>
    %c32_165 = arith.constant 32 : index
    %c0_166 = arith.constant 0 : index
    %135 = vector.load %arg6[%c32_165, %c0_166] : memref<288x64xf32, #tpu.memory_space<vmem>>, vector<32x64xf32>
    %cst_167 = arith.constant dense<0.000000e+00> : vector<32x64xf32>
    %136 = tpu.matmul %134, %135, %cst_167 {dimension_numbers = #tpu.dot_dimension_numbers<[1], [0], [0], [1], [0, 0, 1, 1], [], []>} : vector<32x32xf32>, vector<32x64xf32>, vector<32x64xf32> -> vector<32x64xf32>
    %137 = arith.addf %131, %136 : vector<32x64xf32>
    %c0_168 = arith.constant 0 : index
    %c0_169 = arith.constant 0 : index
    %c0_170 = arith.constant 0 : index
    %c0_171 = arith.constant 0 : index
    %c1_172 = arith.constant 1 : index
    %c0_173 = arith.constant 0 : index
    %138 = vector.load %arg14[%c0_168, %c0_169, %c0_170, %c0_171, %c1_172, %c0_173] : memref<2x2x2x5x5x32xf32, #tpu.memory_space<vmem>>, vector<1x1x2x4x4x32xf32>
    %139 = vector.shape_cast %138 : vector<1x1x2x4x4x32xf32> to vector<2x4x4x32xf32>
    %140 = vector.shape_cast %139 : vector<2x4x4x32xf32> to vector<32x32xf32>
    %c64_174 = arith.constant 64 : index
    %c0_175 = arith.constant 0 : index
    %141 = vector.load %arg6[%c64_174, %c0_175] : memref<288x64xf32, #tpu.memory_space<vmem>>, vector<32x64xf32>
    %cst_176 = arith.constant dense<0.000000e+00> : vector<32x64xf32>
    %142 = tpu.matmul %140, %141, %cst_176 {dimension_numbers = #tpu.dot_dimension_numbers<[1], [0], [0], [1], [0, 0, 1, 1], [], []>} : vector<32x32xf32>, vector<32x64xf32>, vector<32x64xf32> -> vector<32x64xf32>
    %143 = arith.addf %137, %142 : vector<32x64xf32>
    %c1_177 = arith.constant 1 : index
    %c0_178 = arith.constant 0 : index
    %c0_179 = arith.constant 0 : index
    %c0_180 = arith.constant 0 : index
    %c0_181 = arith.constant 0 : index
    %c0_182 = arith.constant 0 : index
    %144 = vector.load %arg14[%c1_177, %c0_178, %c0_179, %c0_180, %c0_181, %c0_182] : memref<2x2x2x5x5x32xf32, #tpu.memory_space<vmem>>, vector<1x1x2x4x4x32xf32>
    %145 = vector.shape_cast %144 : vector<1x1x2x4x4x32xf32> to vector<2x4x4x32xf32>
    %146 = vector.shape_cast %145 : vector<2x4x4x32xf32> to vector<32x32xf32>
    %c96_183 = arith.constant 96 : index
    %c0_184 = arith.constant 0 : index
    %147 = vector.load %arg6[%c96_183, %c0_184] : memref<288x64xf32, #tpu.memory_space<vmem>>, vector<32x64xf32>
    %cst_185 = arith.constant dense<0.000000e+00> : vector<32x64xf32>
    %148 = tpu.matmul %146, %147, %cst_185 {dimension_numbers = #tpu.dot_dimension_numbers<[1], [0], [0], [1], [0, 0, 1, 1], [], []>} : vector<32x32xf32>, vector<32x64xf32>, vector<32x64xf32> -> vector<32x64xf32>
    %149 = arith.addf %143, %148 : vector<32x64xf32>
    %c1_186 = arith.constant 1 : index
    %c1_187 = arith.constant 1 : index
    %c0_188 = arith.constant 0 : index
    %c0_189 = arith.constant 0 : index
    %c0_190 = arith.constant 0 : index
    %c0_191 = arith.constant 0 : index
    %150 = vector.load %arg14[%c1_186, %c1_187, %c0_188, %c0_189, %c0_190, %c0_191] : memref<2x2x2x5x5x32xf32, #tpu.memory_space<vmem>>, vector<1x1x2x4x4x32xf32>
    %151 = vector.shape_cast %150 : vector<1x1x2x4x4x32xf32> to vector<2x4x4x32xf32>
    %152 = vector.shape_cast %151 : vector<2x4x4x32xf32> to vector<32x32xf32>
    %c128_192 = arith.constant 128 : index
    %c0_193 = arith.constant 0 : index
    %153 = vector.load %arg6[%c128_192, %c0_193] : memref<288x64xf32, #tpu.memory_space<vmem>>, vector<32x64xf32>
    %cst_194 = arith.constant dense<0.000000e+00> : vector<32x64xf32>
    %154 = tpu.matmul %152, %153, %cst_194 {dimension_numbers = #tpu.dot_dimension_numbers<[1], [0], [0], [1], [0, 0, 1, 1], [], []>} : vector<32x32xf32>, vector<32x64xf32>, vector<32x64xf32> -> vector<32x64xf32>
    %155 = arith.addf %149, %154 : vector<32x64xf32>
    %c1_195 = arith.constant 1 : index
    %c0_196 = arith.constant 0 : index
    %c0_197 = arith.constant 0 : index
    %c0_198 = arith.constant 0 : index
    %c1_199 = arith.constant 1 : index
    %c0_200 = arith.constant 0 : index
    %156 = vector.load %arg14[%c1_195, %c0_196, %c0_197, %c0_198, %c1_199, %c0_200] : memref<2x2x2x5x5x32xf32, #tpu.memory_space<vmem>>, vector<1x1x2x4x4x32xf32>
    %157 = vector.shape_cast %156 : vector<1x1x2x4x4x32xf32> to vector<2x4x4x32xf32>
    %158 = vector.shape_cast %157 : vector<2x4x4x32xf32> to vector<32x32xf32>
    %c160 = arith.constant 160 : index
    %c0_201 = arith.constant 0 : index
    %159 = vector.load %arg6[%c160, %c0_201] : memref<288x64xf32, #tpu.memory_space<vmem>>, vector<32x64xf32>
    %cst_202 = arith.constant dense<0.000000e+00> : vector<32x64xf32>
    %160 = tpu.matmul %158, %159, %cst_202 {dimension_numbers = #tpu.dot_dimension_numbers<[1], [0], [0], [1], [0, 0, 1, 1], [], []>} : vector<32x32xf32>, vector<32x64xf32>, vector<32x64xf32> -> vector<32x64xf32>
    %161 = arith.addf %155, %160 : vector<32x64xf32>
    %c0_203 = arith.constant 0 : index
    %c0_204 = arith.constant 0 : index
    %c0_205 = arith.constant 0 : index
    %c1_206 = arith.constant 1 : index
    %c0_207 = arith.constant 0 : index
    %c0_208 = arith.constant 0 : index
    %162 = vector.load %arg14[%c0_203, %c0_204, %c0_205, %c1_206, %c0_207, %c0_208] : memref<2x2x2x5x5x32xf32, #tpu.memory_space<vmem>>, vector<1x1x2x4x4x32xf32>
    %163 = vector.shape_cast %162 : vector<1x1x2x4x4x32xf32> to vector<2x4x4x32xf32>
    %164 = vector.shape_cast %163 : vector<2x4x4x32xf32> to vector<32x32xf32>
    %c192 = arith.constant 192 : index
    %c0_209 = arith.constant 0 : index
    %165 = vector.load %arg6[%c192, %c0_209] : memref<288x64xf32, #tpu.memory_space<vmem>>, vector<32x64xf32>
    %cst_210 = arith.constant dense<0.000000e+00> : vector<32x64xf32>
    %166 = tpu.matmul %164, %165, %cst_210 {dimension_numbers = #tpu.dot_dimension_numbers<[1], [0], [0], [1], [0, 0, 1, 1], [], []>} : vector<32x32xf32>, vector<32x64xf32>, vector<32x64xf32> -> vector<32x64xf32>
    %167 = arith.addf %161, %166 : vector<32x64xf32>
    %c0_211 = arith.constant 0 : index
    %c1_212 = arith.constant 1 : index
    %c0_213 = arith.constant 0 : index
    %c1_214 = arith.constant 1 : index
    %c0_215 = arith.constant 0 : index
    %c0_216 = arith.constant 0 : index
    %168 = vector.load %arg14[%c0_211, %c1_212, %c0_213, %c1_214, %c0_215, %c0_216] : memref<2x2x2x5x5x32xf32, #tpu.memory_space<vmem>>, vector<1x1x2x4x4x32xf32>
    %169 = vector.shape_cast %168 : vector<1x1x2x4x4x32xf32> to vector<2x4x4x32xf32>
    %170 = vector.shape_cast %169 : vector<2x4x4x32xf32> to vector<32x32xf32>
    %c224 = arith.constant 224 : index
    %c0_217 = arith.constant 0 : index
    %171 = vector.load %arg6[%c224, %c0_217] : memref<288x64xf32, #tpu.memory_space<vmem>>, vector<32x64xf32>
    %cst_218 = arith.constant dense<0.000000e+00> : vector<32x64xf32>
    %172 = tpu.matmul %170, %171, %cst_218 {dimension_numbers = #tpu.dot_dimension_numbers<[1], [0], [0], [1], [0, 0, 1, 1], [], []>} : vector<32x32xf32>, vector<32x64xf32>, vector<32x64xf32> -> vector<32x64xf32>
    %173 = arith.addf %167, %172 : vector<32x64xf32>
    %c0_219 = arith.constant 0 : index
    %c0_220 = arith.constant 0 : index
    %c0_221 = arith.constant 0 : index
    %c1_222 = arith.constant 1 : index
    %c1_223 = arith.constant 1 : index
    %c0_224 = arith.constant 0 : index
    %174 = vector.load %arg14[%c0_219, %c0_220, %c0_221, %c1_222, %c1_223, %c0_224] : memref<2x2x2x5x5x32xf32, #tpu.memory_space<vmem>>, vector<1x1x2x4x4x32xf32>
    %175 = vector.shape_cast %174 : vector<1x1x2x4x4x32xf32> to vector<2x4x4x32xf32>
    %176 = vector.shape_cast %175 : vector<2x4x4x32xf32> to vector<32x32xf32>
    %c256 = arith.constant 256 : index
    %c0_225 = arith.constant 0 : index
    %177 = vector.load %arg6[%c256, %c0_225] : memref<288x64xf32, #tpu.memory_space<vmem>>, vector<32x64xf32>
    %cst_226 = arith.constant dense<0.000000e+00> : vector<32x64xf32>
    %178 = tpu.matmul %176, %177, %cst_226 {dimension_numbers = #tpu.dot_dimension_numbers<[1], [0], [0], [1], [0, 0, 1, 1], [], []>} : vector<32x32xf32>, vector<32x64xf32>, vector<32x64xf32> -> vector<32x64xf32>
    %179 = arith.addf %173, %178 : vector<32x64xf32>
    %cst_227 = arith.constant 0.000000e+00 : f32
    %180 = vector.broadcast %cst_227 : f32 to vector<32x64xf32>
    %181 = arith.cmpf ogt, %179, %180 : vector<32x64xf32>
    %cst_228 = arith.constant 2.000000e-01 : f32
    %182 = vector.broadcast %cst_228 : f32 to vector<32x64xf32>
    %183 = arith.mulf %182, %179 : vector<32x64xf32>
    %184 = arith.select %181, %179, %183 : vector<32x64xi1>, vector<32x64xf32>
    %185 = vector.shape_cast %184 : vector<32x64xf32> to vector<2x2x2x2x2x64xf32>
    %cst_229 = arith.constant 0.000000e+00 : f32
    %186 = vector.broadcast %cst_229 : f32 to vector<2x2x2x3x3x64xf32>
    %c0_230 = arith.constant 0 : index
    %c0_231 = arith.constant 0 : index
    %c0_232 = arith.constant 0 : index
    %c0_233 = arith.constant 0 : index
    %c0_234 = arith.constant 0 : index
    %c0_235 = arith.constant 0 : index
    %187 = vector.load %arg15[%c0_230, %c0_231, %c0_232, %c0_233, %c0_234, %c0_235] : memref<2x2x2x3x3x64xf32, #tpu.memory_space<vmem>>, vector<2x2x2x3x3x64xf32>
    tpu.vector_store %arg15[%c0_230, %c0_231, %c0_232, %c0_233, %c0_234, %c0_235], %186 {strides = array<i32>} : memref<2x2x2x3x3x64xf32, #tpu.memory_space<vmem>>, vector<2x2x2x3x3x64xf32>,
    %188 = vector.extract_strided_slice %185 {offsets = [0, 0, 1, 0, 1, 0], sizes = [2, 2, 1, 2, 1, 64], strides = [1, 1, 1, 1, 1, 1]} : vector<2x2x2x2x2x64xf32> to vector<2x2x1x2x1x64xf32>
    %189 = vector.shape_cast %188 : vector<2x2x1x2x1x64xf32> to vector<2x2x2x64xf32>
    %c0_236 = arith.constant 0 : index
    %c0_237 = arith.constant 0 : index
    %c0_238 = arith.constant 0 : index
    %c1_239 = arith.constant 1 : index
    %c1_240 = arith.constant 1 : index
    %c0_241 = arith.constant 0 : index
    %190 = vector.load %arg15[%c0_236, %c0_237, %c0_238, %c1_239, %c1_240, %c0_241] : memref<2x2x2x3x3x64xf32, #tpu.memory_space<vmem>>, vector<1x1x2x2x2x64xf32>
    %191 = vector.shape_cast %190 : vector<1x1x2x2x2x64xf32> to vector<2x2x2x64xf32>
    %192 = vector.shape_cast %189 : vector<2x2x2x64xf32> to vector<1x1x2x2x2x64xf32>
    tpu.vector_store %arg15[%c0_236, %c0_237, %c0_238, %c1_239, %c1_240, %c0_241], %192 {strides = array<i32>} : memref<2x2x2x3x3x64xf32, #tpu.memory_space<vmem>>, vector<1x1x2x2x2x64xf32>,
    %193 = vector.extract_strided_slice %185 {offsets = [0, 0, 1, 0, 0, 0], sizes = [2, 2, 1, 2, 1, 64], strides = [1, 1, 1, 1, 1, 1]} : vector<2x2x2x2x2x64xf32> to vector<2x2x1x2x1x64xf32>
    %194 = vector.shape_cast %193 : vector<2x2x1x2x1x64xf32> to vector<2x2x2x64xf32>
    %c0_242 = arith.constant 0 : index
    %c1_243 = arith.constant 1 : index
    %c0_244 = arith.constant 0 : index
    %c1_245 = arith.constant 1 : index
    %c0_246 = arith.constant 0 : index
    %c0_247 = arith.constant 0 : index
    %195 = vector.load %arg15[%c0_242, %c1_243, %c0_244, %c1_245, %c0_246, %c0_247] : memref<2x2x2x3x3x64xf32, #tpu.memory_space<vmem>>, vector<1x1x2x2x2x64xf32>
    %196 = vector.shape_cast %195 : vector<1x1x2x2x2x64xf32> to vector<2x2x2x64xf32>
    %197 = vector.shape_cast %194 : vector<2x2x2x64xf32> to vector<1x1x2x2x2x64xf32>
    tpu.vector_store %arg15[%c0_242, %c1_243, %c0_244, %c1_245, %c0_246, %c0_247], %197 {strides = array<i32>} : memref<2x2x2x3x3x64xf32, #tpu.memory_space<vmem>>, vector<1x1x2x2x2x64xf32>,
    %198 = vector.extract_strided_slice %185 {offsets = [0, 0, 0, 0, 1, 0], sizes = [2, 2, 1, 2, 1, 64], strides = [1, 1, 1, 1, 1, 1]} : vector<2x2x2x2x2x64xf32> to vector<2x2x1x2x1x64xf32>
    %199 = vector.shape_cast %198 : vector<2x2x1x2x1x64xf32> to vector<2x2x2x64xf32>
    %c1_248 = arith.constant 1 : index
    %c0_249 = arith.constant 0 : index
    %c0_250 = arith.constant 0 : index
    %c0_251 = arith.constant 0 : index
    %c1_252 = arith.constant 1 : index
    %c0_253 = arith.constant 0 : index
    %200 = vector.load %arg15[%c1_248, %c0_249, %c0_250, %c0_251, %c1_252, %c0_253] : memref<2x2x2x3x3x64xf32, #tpu.memory_space<vmem>>, vector<1x1x2x2x2x64xf32>
    %201 = vector.shape_cast %200 : vector<1x1x2x2x2x64xf32> to vector<2x2x2x64xf32>
    %202 = vector.shape_cast %199 : vector<2x2x2x64xf32> to vector<1x1x2x2x2x64xf32>
    tpu.vector_store %arg15[%c1_248, %c0_249, %c0_250, %c0_251, %c1_252, %c0_253], %202 {strides = array<i32>} : memref<2x2x2x3x3x64xf32, #tpu.memory_space<vmem>>, vector<1x1x2x2x2x64xf32>,
    %203 = vector.extract_strided_slice %185 {offsets = [0, 0, 0, 0, 0, 0], sizes = [2, 2, 1, 2, 1, 64], strides = [1, 1, 1, 1, 1, 1]} : vector<2x2x2x2x2x64xf32> to vector<2x2x1x2x1x64xf32>
    %204 = vector.shape_cast %203 : vector<2x2x1x2x1x64xf32> to vector<2x2x2x64xf32>
    %c1_254 = arith.constant 1 : index
    %c1_255 = arith.constant 1 : index
    %c0_256 = arith.constant 0 : index
    %c0_257 = arith.constant 0 : index
    %c0_258 = arith.constant 0 : index
    %c0_259 = arith.constant 0 : index
    %205 = vector.load %arg15[%c1_254, %c1_255, %c0_256, %c0_257, %c0_258, %c0_259] : memref<2x2x2x3x3x64xf32, #tpu.memory_space<vmem>>, vector<1x1x2x2x2x64xf32>
    %206 = vector.shape_cast %205 : vector<1x1x2x2x2x64xf32> to vector<2x2x2x64xf32>
    %207 = vector.shape_cast %204 : vector<2x2x2x64xf32> to vector<1x1x2x2x2x64xf32>
    tpu.vector_store %arg15[%c1_254, %c1_255, %c0_256, %c0_257, %c0_258, %c0_259], %207 {strides = array<i32>} : memref<2x2x2x3x3x64xf32, #tpu.memory_space<vmem>>, vector<1x1x2x2x2x64xf32>,
    %cst_260 = arith.constant 0.000000e+00 : f32
    %208 = vector.broadcast %cst_260 : f32 to vector<8x128xf32>
    %c0_261 = arith.constant 0 : index
    %c0_262 = arith.constant 0 : index
    %209 = vector.load %arg9[%c0_261, %c0_262] : memref<1x128xf32, #tpu.memory_space<vmem>>, vector<1x128xf32>
    %210 = vector.broadcast %209 : vector<1x128xf32> to vector<8x128xf32>
    %211 = arith.addf %208, %210 : vector<8x128xf32>
    %c0_263 = arith.constant 0 : index
    %c0_264 = arith.constant 0 : index
    %c0_265 = arith.constant 0 : index
    %c0_266 = arith.constant 0 : index
    %c0_267 = arith.constant 0 : index
    %c0_268 = arith.constant 0 : index
    %212 = vector.load %arg15[%c0_263, %c0_264, %c0_265, %c0_266, %c0_267, %c0_268] : memref<2x2x2x3x3x64xf32, #tpu.memory_space<vmem>>, vector<1x1x2x2x2x64xf32>
    %213 = vector.shape_cast %212 : vector<1x1x2x2x2x64xf32> to vector<2x2x2x64xf32>
    %214 = vector.shape_cast %213 : vector<2x2x2x64xf32> to vector<8x64xf32>
    %c0_269 = arith.constant 0 : index
    %c0_270 = arith.constant 0 : index
    %215 = vector.load %arg8[%c0_269, %c0_270] : memref<576x128xf32, #tpu.memory_space<vmem>>, vector<64x128xf32>
    %cst_271 = arith.constant dense<0.000000e+00> : vector<8x128xf32>
    %216 = tpu.matmul %214, %215, %cst_271 {dimension_numbers = #tpu.dot_dimension_numbers<[1], [0], [0], [1], [0, 0, 1, 1], [], []>} : vector<8x64xf32>, vector<64x128xf32>, vector<8x128xf32> -> vector<8x128xf32>
    %217 = arith.addf %211, %216 : vector<8x128xf32>
    %c0_272 = arith.constant 0 : index
    %c1_273 = arith.constant 1 : index
    %c0_274 = arith.constant 0 : index
    %c0_275 = arith.constant 0 : index
    %c0_276 = arith.constant 0 : index
    %c0_277 = arith.constant 0 : index
    %218 = vector.load %arg15[%c0_272, %c1_273, %c0_274, %c0_275, %c0_276, %c0_277] : memref<2x2x2x3x3x64xf32, #tpu.memory_space<vmem>>, vector<1x1x2x2x2x64xf32>
    %219 = vector.shape_cast %218 : vector<1x1x2x2x2x64xf32> to vector<2x2x2x64xf32>
    %220 = vector.shape_cast %219 : vector<2x2x2x64xf32> to vector<8x64xf32>
    %c64_278 = arith.constant 64 : index
    %c0_279 = arith.constant 0 : index
    %221 = vector.load %arg8[%c64_278, %c0_279] : memref<576x128xf32, #tpu.memory_space<vmem>>, vector<64x128xf32>
    %cst_280 = arith.constant dense<0.000000e+00> : vector<8x128xf32>
    %222 = tpu.matmul %220, %221, %cst_280 {dimension_numbers = #tpu.dot_dimension_numbers<[1], [0], [0], [1], [0, 0, 1, 1], [], []>} : vector<8x64xf32>, vector<64x128xf32>, vector<8x128xf32> -> vector<8x128xf32>
    %223 = arith.addf %217, %222 : vector<8x128xf32>
    %c0_281 = arith.constant 0 : index
    %c0_282 = arith.constant 0 : index
    %c0_283 = arith.constant 0 : index
    %c0_284 = arith.constant 0 : index
    %c1_285 = arith.constant 1 : index
    %c0_286 = arith.constant 0 : index
    %224 = vector.load %arg15[%c0_281, %c0_282, %c0_283, %c0_284, %c1_285, %c0_286] : memref<2x2x2x3x3x64xf32, #tpu.memory_space<vmem>>, vector<1x1x2x2x2x64xf32>
    %225 = vector.shape_cast %224 : vector<1x1x2x2x2x64xf32> to vector<2x2x2x64xf32>
    %226 = vector.shape_cast %225 : vector<2x2x2x64xf32> to vector<8x64xf32>
    %c128_287 = arith.constant 128 : index
    %c0_288 = arith.constant 0 : index
    %227 = vector.load %arg8[%c128_287, %c0_288] : memref<576x128xf32, #tpu.memory_space<vmem>>, vector<64x128xf32>
    %cst_289 = arith.constant dense<0.000000e+00> : vector<8x128xf32>
    %228 = tpu.matmul %226, %227, %cst_289 {dimension_numbers = #tpu.dot_dimension_numbers<[1], [0], [0], [1], [0, 0, 1, 1], [], []>} : vector<8x64xf32>, vector<64x128xf32>, vector<8x128xf32> -> vector<8x128xf32>
    %229 = arith.addf %223, %228 : vector<8x128xf32>
    %c1_290 = arith.constant 1 : index
    %c0_291 = arith.constant 0 : index
    %c0_292 = arith.constant 0 : index
    %c0_293 = arith.constant 0 : index
    %c0_294 = arith.constant 0 : index
    %c0_295 = arith.constant 0 : index
    %230 = vector.load %arg15[%c1_290, %c0_291, %c0_292, %c0_293, %c0_294, %c0_295] : memref<2x2x2x3x3x64xf32, #tpu.memory_space<vmem>>, vector<1x1x2x2x2x64xf32>
    %231 = vector.shape_cast %230 : vector<1x1x2x2x2x64xf32> to vector<2x2x2x64xf32>
    %232 = vector.shape_cast %231 : vector<2x2x2x64xf32> to vector<8x64xf32>
    %c192_296 = arith.constant 192 : index
    %c0_297 = arith.constant 0 : index
    %233 = vector.load %arg8[%c192_296, %c0_297] : memref<576x128xf32, #tpu.memory_space<vmem>>, vector<64x128xf32>
    %cst_298 = arith.constant dense<0.000000e+00> : vector<8x128xf32>
    %234 = tpu.matmul %232, %233, %cst_298 {dimension_numbers = #tpu.dot_dimension_numbers<[1], [0], [0], [1], [0, 0, 1, 1], [], []>} : vector<8x64xf32>, vector<64x128xf32>, vector<8x128xf32> -> vector<8x128xf32>
    %235 = arith.addf %229, %234 : vector<8x128xf32>
    %c1_299 = arith.constant 1 : index
    %c1_300 = arith.constant 1 : index
    %c0_301 = arith.constant 0 : index
    %c0_302 = arith.constant 0 : index
    %c0_303 = arith.constant 0 : index
    %c0_304 = arith.constant 0 : index
    %236 = vector.load %arg15[%c1_299, %c1_300, %c0_301, %c0_302, %c0_303, %c0_304] : memref<2x2x2x3x3x64xf32, #tpu.memory_space<vmem>>, vector<1x1x2x2x2x64xf32>
    %237 = vector.shape_cast %236 : vector<1x1x2x2x2x64xf32> to vector<2x2x2x64xf32>
    %238 = vector.shape_cast %237 : vector<2x2x2x64xf32> to vector<8x64xf32>
    %c256_305 = arith.constant 256 : index
    %c0_306 = arith.constant 0 : index
    %239 = vector.load %arg8[%c256_305, %c0_306] : memref<576x128xf32, #tpu.memory_space<vmem>>, vector<64x128xf32>
    %cst_307 = arith.constant dense<0.000000e+00> : vector<8x128xf32>
    %240 = tpu.matmul %238, %239, %cst_307 {dimension_numbers = #tpu.dot_dimension_numbers<[1], [0], [0], [1], [0, 0, 1, 1], [], []>} : vector<8x64xf32>, vector<64x128xf32>, vector<8x128xf32> -> vector<8x128xf32>
    %241 = arith.addf %235, %240 : vector<8x128xf32>
    %c1_308 = arith.constant 1 : index
    %c0_309 = arith.constant 0 : index
    %c0_310 = arith.constant 0 : index
    %c0_311 = arith.constant 0 : index
    %c1_312 = arith.constant 1 : index
    %c0_313 = arith.constant 0 : index
    %242 = vector.load %arg15[%c1_308, %c0_309, %c0_310, %c0_311, %c1_312, %c0_313] : memref<2x2x2x3x3x64xf32, #tpu.memory_space<vmem>>, vector<1x1x2x2x2x64xf32>
    %243 = vector.shape_cast %242 : vector<1x1x2x2x2x64xf32> to vector<2x2x2x64xf32>
    %244 = vector.shape_cast %243 : vector<2x2x2x64xf32> to vector<8x64xf32>
    %c320 = arith.constant 320 : index
    %c0_314 = arith.constant 0 : index
    %245 = vector.load %arg8[%c320, %c0_314] : memref<576x128xf32, #tpu.memory_space<vmem>>, vector<64x128xf32>
    %cst_315 = arith.constant dense<0.000000e+00> : vector<8x128xf32>
    %246 = tpu.matmul %244, %245, %cst_315 {dimension_numbers = #tpu.dot_dimension_numbers<[1], [0], [0], [1], [0, 0, 1, 1], [], []>} : vector<8x64xf32>, vector<64x128xf32>, vector<8x128xf32> -> vector<8x128xf32>
    %247 = arith.addf %241, %246 : vector<8x128xf32>
    %c0_316 = arith.constant 0 : index
    %c0_317 = arith.constant 0 : index
    %c0_318 = arith.constant 0 : index
    %c1_319 = arith.constant 1 : index
    %c0_320 = arith.constant 0 : index
    %c0_321 = arith.constant 0 : index
    %248 = vector.load %arg15[%c0_316, %c0_317, %c0_318, %c1_319, %c0_320, %c0_321] : memref<2x2x2x3x3x64xf32, #tpu.memory_space<vmem>>, vector<1x1x2x2x2x64xf32>
    %249 = vector.shape_cast %248 : vector<1x1x2x2x2x64xf32> to vector<2x2x2x64xf32>
    %250 = vector.shape_cast %249 : vector<2x2x2x64xf32> to vector<8x64xf32>
    %c384 = arith.constant 384 : index
    %c0_322 = arith.constant 0 : index
    %251 = vector.load %arg8[%c384, %c0_322] : memref<576x128xf32, #tpu.memory_space<vmem>>, vector<64x128xf32>
    %cst_323 = arith.constant dense<0.000000e+00> : vector<8x128xf32>
    %252 = tpu.matmul %250, %251, %cst_323 {dimension_numbers = #tpu.dot_dimension_numbers<[1], [0], [0], [1], [0, 0, 1, 1], [], []>} : vector<8x64xf32>, vector<64x128xf32>, vector<8x128xf32> -> vector<8x128xf32>
    %253 = arith.addf %247, %252 : vector<8x128xf32>
    %c0_324 = arith.constant 0 : index
    %c1_325 = arith.constant 1 : index
    %c0_326 = arith.constant 0 : index
    %c1_327 = arith.constant 1 : index
    %c0_328 = arith.constant 0 : index
    %c0_329 = arith.constant 0 : index
    %254 = vector.load %arg15[%c0_324, %c1_325, %c0_326, %c1_327, %c0_328, %c0_329] : memref<2x2x2x3x3x64xf32, #tpu.memory_space<vmem>>, vector<1x1x2x2x2x64xf32>
    %255 = vector.shape_cast %254 : vector<1x1x2x2x2x64xf32> to vector<2x2x2x64xf32>
    %256 = vector.shape_cast %255 : vector<2x2x2x64xf32> to vector<8x64xf32>
    %c448 = arith.constant 448 : index
    %c0_330 = arith.constant 0 : index
    %257 = vector.load %arg8[%c448, %c0_330] : memref<576x128xf32, #tpu.memory_space<vmem>>, vector<64x128xf32>
    %cst_331 = arith.constant dense<0.000000e+00> : vector<8x128xf32>
    %258 = tpu.matmul %256, %257, %cst_331 {dimension_numbers = #tpu.dot_dimension_numbers<[1], [0], [0], [1], [0, 0, 1, 1], [], []>} : vector<8x64xf32>, vector<64x128xf32>, vector<8x128xf32> -> vector<8x128xf32>
    %259 = arith.addf %253, %258 : vector<8x128xf32>
    %c0_332 = arith.constant 0 : index
    %c0_333 = arith.constant 0 : index
    %c0_334 = arith.constant 0 : index
    %c1_335 = arith.constant 1 : index
    %c1_336 = arith.constant 1 : index
    %c0_337 = arith.constant 0 : index
    %260 = vector.load %arg15[%c0_332, %c0_333, %c0_334, %c1_335, %c1_336, %c0_337] : memref<2x2x2x3x3x64xf32, #tpu.memory_space<vmem>>, vector<1x1x2x2x2x64xf32>
    %261 = vector.shape_cast %260 : vector<1x1x2x2x2x64xf32> to vector<2x2x2x64xf32>
    %262 = vector.shape_cast %261 : vector<2x2x2x64xf32> to vector<8x64xf32>
    %c512 = arith.constant 512 : index
    %c0_338 = arith.constant 0 : index
    %263 = vector.load %arg8[%c512, %c0_338] : memref<576x128xf32, #tpu.memory_space<vmem>>, vector<64x128xf32>
    %cst_339 = arith.constant dense<0.000000e+00> : vector<8x128xf32>
    %264 = tpu.matmul %262, %263, %cst_339 {dimension_numbers = #tpu.dot_dimension_numbers<[1], [0], [0], [1], [0, 0, 1, 1], [], []>} : vector<8x64xf32>, vector<64x128xf32>, vector<8x128xf32> -> vector<8x128xf32>
    %265 = arith.addf %259, %264 : vector<8x128xf32>
    %cst_340 = arith.constant 0.000000e+00 : f32
    %266 = vector.broadcast %cst_340 : f32 to vector<8x128xf32>
    %267 = arith.cmpf ogt, %265, %266 : vector<8x128xf32>
    %cst_341 = arith.constant 2.000000e-01 : f32
    %268 = vector.broadcast %cst_341 : f32 to vector<8x128xf32>
    %269 = arith.mulf %268, %265 : vector<8x128xf32>
    %270 = arith.select %267, %265, %269 : vector<8x128xi1>, vector<8x128xf32>
    %271 = vector.shape_cast %270 : vector<8x128xf32> to vector<2x4x128xf32>
    %c0_342 = arith.constant 0 : index
    %c0_343 = arith.constant 0 : index
    %272 = vector.load %arg10[%c0_342, %c0_343] : memref<4x128xf32, #tpu.memory_space<vmem>>, vector<4x128xf32>
    %273 = vector.shape_cast %272 : vector<4x128xf32> to vector<1x4x128xf32>
    %274 = vector.broadcast %273 : vector<1x4x128xf32> to vector<2x4x128xf32>
    %275 = arith.mulf %271, %274 : vector<2x4x128xf32>
    %cst_344 = arith.constant dense<0.000000e+00> : vector<2x4xf32>
    %276 = vector.multi_reduction <add>, %275, %cst_344 [2] : vector<2x4x128xf32> to vector<2x4xf32>
    %cst_345 = arith.constant dense<0.000000e+00> : vector<2xf32>
    %277 = vector.multi_reduction <add>, %276, %cst_345 [1] : vector<2x4xf32> to vector<2xf32>
    %278 = vector.shape_cast %277 : vector<2xf32> to vector<2x1xf32>
    %c0_346 = arith.constant 0 : index
    %c0_347 = arith.constant 0 : index
    %279 = vector.load %arg11[%c0_346, %c0_347] : memref<1x1xf32, #tpu.memory_space<vmem>>, vector<1x1xf32>
    %280 = vector.broadcast %279 : vector<1x1xf32> to vector<2x1xf32>
    %281 = arith.addf %278, %280 : vector<2x1xf32>
    %c0_348 = arith.constant 0 : index
    %c0_349 = arith.constant 0 : index
    %282 = vector.load %arg12[%c0_348, %c0_349] : memref<2x1xf32, #tpu.memory_space<vmem>>, vector<2x1xf32>
    tpu.vector_store %arg12[%c0_348, %c0_349], %281 {strides = array<i32>} : memref<2x1xf32, #tpu.memory_space<vmem>>, vector<2x1xf32>,
    return
  }
  func.func @transform_0(%arg0: i32) -> (i32, i32) {
    %c0_i32 = arith.constant 0 : i32
    %c0_i32_0 = arith.constant 0 : i32
    return %arg0, %c0_i32 : i32, i32
  }
  func.func @transform_1(%arg0: i32) -> (i32, i32) {
    %c0_i32 = arith.constant 0 : i32
    %c0_i32_0 = arith.constant 0 : i32
    %c0_i32_1 = arith.constant 0 : i32
    return %c0_i32, %c0_i32_0 : i32, i32
  }
  func.func @transform_2(%arg0: i32) -> (i32, i32) {
    %c0_i32 = arith.constant 0 : i32
    %c0_i32_0 = arith.constant 0 : i32
    %c0_i32_1 = arith.constant 0 : i32
    return %c0_i32, %c0_i32_0 : i32, i32
  }
  func.func @transform_3(%arg0: i32) -> (i32, i32) {
    %c0_i32 = arith.constant 0 : i32
    %c0_i32_0 = arith.constant 0 : i32
    %c0_i32_1 = arith.constant 0 : i32
    return %c0_i32, %c0_i32_0 : i32, i32
  }
  func.func @transform_4(%arg0: i32) -> (i32, i32) {
    %c0_i32 = arith.constant 0 : i32
    %c0_i32_0 = arith.constant 0 : i32
    %c0_i32_1 = arith.constant 0 : i32
    return %c0_i32, %c0_i32_0 : i32, i32
  }
  func.func @transform_5(%arg0: i32) -> (i32, i32) {
    %c0_i32 = arith.constant 0 : i32
    %c0_i32_0 = arith.constant 0 : i32
    %c0_i32_1 = arith.constant 0 : i32
    return %c0_i32, %c0_i32_0 : i32, i32
  }
  func.func @transform_6(%arg0: i32) -> (i32, i32) {
    %c0_i32 = arith.constant 0 : i32
    %c0_i32_0 = arith.constant 0 : i32
    %c0_i32_1 = arith.constant 0 : i32
    return %c0_i32, %c0_i32_0 : i32, i32
  }
  func.func @transform_7(%arg0: i32) -> (i32, i32) {
    %c0_i32 = arith.constant 0 : i32
    %c0_i32_0 = arith.constant 0 : i32
    %c0_i32_1 = arith.constant 0 : i32
    return %c0_i32, %c0_i32_0 : i32, i32
  }
  func.func @transform_8(%arg0: i32) -> (i32, i32) {
    %c0_i32 = arith.constant 0 : i32
    %c0_i32_0 = arith.constant 0 : i32
    %c0_i32_1 = arith.constant 0 : i32
    return %c0_i32, %c0_i32_0 : i32, i32
  }
  func.func @transform_9(%arg0: i32) -> (i32, i32) {
    %c0_i32 = arith.constant 0 : i32
    %c0_i32_0 = arith.constant 0 : i32
    %c0_i32_1 = arith.constant 0 : i32
    return %c0_i32, %c0_i32_0 : i32, i32
  }
  func.func @transform_10(%arg0: i32) -> (i32, i32) {
    %c0_i32 = arith.constant 0 : i32
    %c0_i32_0 = arith.constant 0 : i32
    %c0_i32_1 = arith.constant 0 : i32
    return %c0_i32, %c0_i32_0 : i32, i32
  }
  func.func @transform_11(%arg0: i32) -> (i32, i32) {
    %c0_i32 = arith.constant 0 : i32
    %c0_i32_0 = arith.constant 0 : i32
    return %arg0, %c0_i32 : i32, i32
  }
}

</mosaic_0001>

<bundles_post_ra>
// kernel: discriminator_forward.1
= control target key start
LH: loop header
LB: loop body
LE: loop exit
PB: predicated region body
PF: predicated region fallthrough
CT: control target
= control target key end

     0   :  { %vm307_vm0 = vcmask 1040384   ;;  %vm114_vm1 = vcmask 72704   ;;  %vm2106_vm2 = vcmask 122880   ;;  %v15702_v43 = vmov 0.0   ;;  %s15689_s1 = inlined_call_operand.vmem [shape: f32[9,16], index: 1, kind: input, shape index: {}]   ;;  %s15690_s0 = inlined_call_operand.vmem [shape: f32[512,9], index: 0, kind: input, shape index: {}]   ;;  %s15691_s3 = inlined_call_operand.vmem [shape: f32[144,32], index: 3, kind: input, shape index: {}]   ;;  %s15692_s2 = inlined_call_operand.vmem [shape: f32[1,16], index: 2, kind: input, shape index: {}]   ;;  %s15693_s4 = inlined_call_operand.vmem [shape: f32[1,32], index: 4, kind: input, shape index: {}]   ;;  %s15694_s5 = inlined_call_operand.vmem [shape: f32[288,64], index: 5, kind: input, shape index: {}]   ;;  %s15695_s7 = inlined_call_operand.vmem [shape: f32[576,128], index: 7, kind: input, shape index: {}]   ;;  %s15696_s6 = inlined_call_operand.vmem [shape: f32[1,64], index: 6, kind: input, shape index: {}]   ;;  %s15697_s8 = inlined_call_operand.vmem [shape: f32[1,128], index: 8, kind: input, shape index: {}]   ;;  %s15698_s9 = inlined_call_operand.vmem [shape: f32[4,128], index: 9, kind: input, shape index: {}]   ;;  %s15699_s10 = inlined_call_operand.<no memory space> [shape: f32[1,1], index: 10, kind: input, shape index: {}]   ;;  %s15700_s11 = inlined_call_operand.vmem [shape: f32[2,1], index: 11, kind: output, shape index: {}]  }
   0x1   :  { %v113_v0 = vld [vmem:[%s15689_s1 + $0x8] sm:$0x1]  ;;  %v112_v1 = vld [vmem:[%s15689_s1] sm:$0xff]  ;;  %v50_v4 = vld [vmem:[%s15690_s0 + $0x10] sm:$0xff]  ;;  %2179 = vst.msk [vmem:[#allocation2 + $0x248] sm:$0x1] %vm2106_vm2, %v15702_v43 }
   0x2   :  { %v48_v2 = vld [vmem:[%s15690_s0] sm:$0xff]  ;;  %11067 = vmatprep.subr.msk.mxu0 %vm307_vm0, %v113_v0  ;;  %v49_v3 = vld [vmem:[%s15690_s0 + $0x8] sm:$0xff]  ;;  %v51_v5 = vld [vmem:[%s15690_s0 + $0x18] sm:$0xff]  ;;  %2107 = vst.msk [vmem:[#allocation2 + $0x8] sm:$0x1] %vm2106_vm2, %v15702_v43  ;;  %vm2104_vm3 = vcmask 130048  }
   0x3   :  { %11071 = vmatprep.mubr.msk.f32.mxu0 %vm114_vm1, %v48_v2  ;;  %11068 = vmatpush3.msk.msra.mxu0 %vm307_vm0, %v113_v0  ;;  %v52_v6 = vld [vmem:[%s15690_s0 + $0x20] sm:$0xff]  ;;  %v53_v7 = vld [vmem:[%s15690_s0 + $0x28] sm:$0xff]  ;;  %v54_v8 = vld [vmem:[%s15690_s0 + $0x30] sm:$0xff]  ;;  %2109 = vst.msk [vmem:[#allocation2 + $0x18] sm:$0x1] %vm2106_vm2, %v15702_v43  ;;  %vm2762_vm5 = vcmask 1042434  }
   0x4   :  { %11069 = vmatprep.subr.mxu0 %v112_v1  ;;  %v55_v9 = vld [vmem:[%s15690_s0 + $0x38] sm:$0xff]  ;;  %v56_v10 = vld [vmem:[%s15690_s0 + $0x40] sm:$0xff]  ;;  %v57_v11 = vld [vmem:[%s15690_s0 + $0x48] sm:$0xff]  ;;  %2111 = vst.msk [vmem:[#allocation2 + $0x28] sm:$0x1] %vm2106_vm2, %v15702_v43  ;;  %vm2764_vm7 = vcmask 1043459  }
   0x5   :  { %11070 = vmatpush3.msra.mxu0 %v112_v1  ;;  %v58_v12 = vld [vmem:[%s15690_s0 + $0x50] sm:$0xff]  ;;  %v59_v13 = vld [vmem:[%s15690_s0 + $0x58] sm:$0xff]  ;;  %v60_v14 = vld [vmem:[%s15690_s0 + $0x60] sm:$0xff]  ;;  %2113 = vst.msk [vmem:[#allocation2 + $0x38] sm:$0x1] %vm2106_vm2, %v15702_v43  ;;  %vm2766_vm8 = vcmask 1044484  }
   0x6   :  { %11072 = vmatmul.mubr.msk.f32.vlgmr.msra.gmra.mxu0 %vm114_vm1, %v49_v3  ;;  %v61_v15 = vld [vmem:[%s15690_s0 + $0x68] sm:$0xff]  ;;  %v62_v16 = vld [vmem:[%s15690_s0 + $0x70] sm:$0xff]  ;;  %v63_v17 = vld [vmem:[%s15690_s0 + $0x78] sm:$0xff]  ;;  %2115 = vst.msk [vmem:[#allocation2 + $0x48] sm:$0x1] %vm2106_vm2, %v15702_v43  ;;  %vm2768_vm10 = vcmask 1045509  }
   0x7   :  { %11074 = vmatprep.mubr.msk.f32.mxu0 %vm114_vm1, %v50_v4  ;;  %v64_v18 = vld [vmem:[%s15690_s0 + $0x80] sm:$0xff]  ;;  %v65_v19 = vld [vmem:[%s15690_s0 + $0x88] sm:$0xff]  ;;  %v66_v20 = vld [vmem:[%s15690_s0 + $0x90] sm:$0xff]  ;;  %2117 = vst.msk [vmem:[#allocation2 + $0x58] sm:$0x1] %vm2106_vm2, %v15702_v43  ;;  %vm2770_vm11 = vcmask 1046534  }
   0x8   :  { %v67_v21 = vld [vmem:[%s15690_s0 + $0x98] sm:$0xff]  ;;  %v68_v22 = vld [vmem:[%s15690_s0 + $0xa0] sm:$0xff]  ;;  %v69_v23 = vld [vmem:[%s15690_s0 + $0xa8] sm:$0xff]  ;;  %2119 = vst.msk [vmem:[#allocation2 + $0x68] sm:$0x1] %vm2106_vm2, %v15702_v43  ;;  %vm2772_vm12 = vcmask 1047559  }
   0x9   :  { %v70_v24 = vld [vmem:[%s15690_s0 + $0xb0] sm:$0xff]  ;;  %v71_v25 = vld [vmem:[%s15690_s0 + $0xb8] sm:$0xff]  ;;  %v72_v26 = vld [vmem:[%s15690_s0 + $0xc0] sm:$0xff]  ;;  %2121 = vst.msk [vmem:[#allocation2 + $0x78] sm:$0x1] %vm2106_vm2, %v15702_v43  ;;  %vm2897_vm13 = vcmask 130049  }
   0xa   :  { %11075 = vmatmul.mubr.msk.f32.gmra.mxu0 %vm114_vm1, %v51_v5  ;;  %v73_v27 = vld [vmem:[%s15690_s0 + $0xc8] sm:$0xff]  ;;  %v74_v28 = vld [vmem:[%s15690_s0 + $0xd0] sm:$0xff]  ;;  %v75_v29 = vld [vmem:[%s15690_s0 + $0xd8] sm:$0xff]  ;;  %2123 = vst.msk [vmem:[#allocation2 + $0x88] sm:$0x1] %vm2106_vm2, %v15702_v43  ;;  %vm3442_vm14 = vcmask 1041409  }
   0xb   :  { %11077 = vmatprep.mubr.msk.f32.mxu0 %vm114_vm1, %v52_v6  ;;  %v76_v30 = vld [vmem:[%s15690_s0 + $0xe0] sm:$0xff]  ;;  %v77_v31 = vld [vmem:[%s15690_s0 + $0xe8] sm:$0xff]  ;;  %v78_v32 = vld [vmem:[%s15690_s0 + $0xf0] sm:$0xff]  ;;  %2125 = vst.msk [vmem:[#allocation2 + $0x98] sm:$0x1] %vm2106_vm2, %v15702_v43 }
   0xc   :  { %v79_v33 = vld [vmem:[%s15690_s0 + $0xf8] sm:$0xff]  ;;  %v80_v34 = vld [vmem:[%s15690_s0 + $0x100] sm:$0xff]  ;;  %v81_v35 = vld [vmem:[%s15690_s0 + $0x108] sm:$0xff]  ;;  %2127 = vst.msk [vmem:[#allocation2 + $0xa8] sm:$0x1] %vm2106_vm2, %v15702_v43 }
   0xd   :  { %v82_v36 = vld [vmem:[%s15690_s0 + $0x110] sm:$0xff]  ;;  %v83_v37 = vld [vmem:[%s15690_s0 + $0x118] sm:$0xff]  ;;  %v84_v38 = vld [vmem:[%s15690_s0 + $0x120] sm:$0xff]  ;;  %2129 = vst.msk [vmem:[#allocation2 + $0xb8] sm:$0x1] %vm2106_vm2, %v15702_v43 }
   0xe   :  { %11078 = vmatmul.mubr.msk.f32.gmra.mxu0 %vm114_vm1, %v53_v7  ;;  %v85_v39 = vld [vmem:[%s15690_s0 + $0x128] sm:$0xff]  ;;  %v86_v40 = vld [vmem:[%s15690_s0 + $0x130] sm:$0xff]  ;;  %v87_v41 = vld [vmem:[%s15690_s0 + $0x138] sm:$0xff]  ;;  %2131 = vst.msk [vmem:[#allocation2 + $0xc8] sm:$0x1] %vm2106_vm2, %v15702_v43 }
   0xf   :  { %11080 = vmatprep.mubr.msk.f32.mxu0 %vm114_vm1, %v54_v8  ;;  %v88_v42 = vld [vmem:[%s15690_s0 + $0x140] sm:$0xff]  ;;  %2133 = vst.msk [vmem:[#allocation2 + $0xd8] sm:$0x1] %vm2106_vm2, %v15702_v43  ;;  %2135 = vst.msk [vmem:[#allocation2 + $0xe8] sm:$0x1] %vm2106_vm2, %v15702_v43  ;;  %v12106_v44 = vld [vmem:[%s15690_s0 + $0x148] sm:$0xff] }
  0x10   :  { %2137 = vst.msk [vmem:[#allocation2 + $0xf8] sm:$0x1] %vm2106_vm2, %v15702_v43  ;;  %2139 = vst.msk [vmem:[#allocation2 + $0x108] sm:$0x1] %vm2106_vm2, %v15702_v43  ;;  %v12111_v45 = vld [vmem:[%s15690_s0 + $0x150] sm:$0xff]  ;;  %v91_v46 = vld [vmem:[%s15690_s0 + $0x158] sm:$0xff] }
  0x11   :  { %2141 = vst.msk [vmem:[#allocation2 + $0x118] sm:$0x1] %vm2106_vm2, %v15702_v43  ;;  %2181 = vst.msk [vmem:[#allocation2 + $0x258] sm:$0x1] %vm2106_vm2, %v15702_v43  ;;  %v92_v47 = vld [vmem:[%s15690_s0 + $0x160] sm:$0xff]  ;;  %v93_v48 = vld [vmem:[%s15690_s0 + $0x168] sm:$0xff] }
  0x12   :  { %11081 = vmatmul.mubr.msk.f32.gmra.mxu0 %vm114_vm1, %v55_v9  ;;  %2183 = vst.msk [vmem:[#allocation2 + $0x268] sm:$0x1] %vm2106_vm2, %v15702_v43  ;;  %2185 = vst.msk [vmem:[#allocation2 + $0x278] sm:$0x1] %vm2106_vm2, %v15702_v43  ;;  %v94_v49 = vld [vmem:[%s15690_s0 + $0x170] sm:$0xff]  ;;  %v95_v50 = vld [vmem:[%s15690_s0 + $0x178] sm:$0xff]  ;;  %v15701_v9 = vlaneseq }
  0x13   :  { %11083 = vmatprep.mubr.msk.f32.mxu0 %vm114_vm1, %v56_v10  ;;  %2187 = vst.msk [vmem:[#allocation2 + $0x288] sm:$0x1] %vm2106_vm2, %v15702_v43  ;;  %2189 = vst.msk [vmem:[#allocation2 + $0x298] sm:$0x1] %vm2106_vm2, %v15702_v43  ;;  %v96_v51 = vld [vmem:[%s15690_s0 + $0x180] sm:$0xff]  ;;  %v97_v52 = vld [vmem:[%s15690_s0 + $0x188] sm:$0xff] }
  0x14   :  { %2191 = vst.msk [vmem:[#allocation2 + $0x2a8] sm:$0x1] %vm2106_vm2, %v15702_v43  ;;  %2193 = vst.msk [vmem:[#allocation2 + $0x2b8] sm:$0x1] %vm2106_vm2, %v15702_v43  ;;  %v98_v53 = vld [vmem:[%s15690_s0 + $0x190] sm:$0xff]  ;;  %v99_v54 = vld [vmem:[%s15690_s0 + $0x198] sm:$0xff] }
  0x15   :  { %2197 = vst.msk [vmem:[#allocation2 + $0x2d8] sm:$0x1] %vm2106_vm2, %v15702_v43  ;;  %2199 = vst.msk [vmem:[#allocation2 + $0x2e8] sm:$0x1] %vm2106_vm2, %v15702_v43  ;;  %v100_v55 = vld [vmem:[%s15690_s0 + $0x1a0] sm:$0xff]  ;;  %v101_v56 = vld [vmem:[%s15690_s0 + $0x1a8] sm:$0xff] }
  0x16   :  { %11084 = vmatmul.mubr.msk.f32.gmra.mxu0 %vm114_vm1, %v57_v11  ;;  %2201 = vst.msk [vmem:[#allocation2 + $0x2f8] sm:$0x1] %vm2106_vm2, %v15702_v43  ;;  %2203 = vst.msk [vmem:[#allocation2 + $0x308] sm:$0x1] %vm2106_vm2, %v15702_v43  ;;  %v102_v57 = vld [vmem:[%s15690_s0 + $0x1b0] sm:$0xff]  ;;  %v103_v58 = vld [vmem:[%s15690_s0 + $0x1b8] sm:$0xff] }
  0x17   :  { %11086 = vmatprep.mubr.msk.f32.mxu0 %vm114_vm1, %v58_v12  ;;  %2205 = vst.msk [vmem:[#allocation2 + $0x318] sm:$0x1] %vm2106_vm2, %v15702_v43  ;;  %2207 = vst.msk [vmem:[#allocation2 + $0x328] sm:$0x1] %vm2106_vm2, %v15702_v43  ;;  %v104_v59 = vld [vmem:[%s15690_s0 + $0x1c0] sm:$0xff]  ;;  %v105_v60 = vld [vmem:[%s15690_s0 + $0x1c8] sm:$0xff] }
  0x18   :  { %2209 = vst.msk [vmem:[#allocation2 + $0x338] sm:$0x1] %vm2106_vm2, %v15702_v43  ;;  %2211 = vst.msk [vmem:[#allocation2 + $0x348] sm:$0x1] %vm2106_vm2, %v15702_v43  ;;  %v106_v61 = vld [vmem:[%s15690_s0 + $0x1d0] sm:$0xff]  ;;  %v107_v62 = vld [vmem:[%s15690_s0 + $0x1d8] sm:$0xff] }
  0x19   :  { %2178 = vst.msk [vmem:[#allocation2 + $0x240] sm:$0xff] %vm2104_vm3, %v15702_v43  ;;  %2214 = vst.msk [vmem:[#allocation2 + $0x360] sm:$0xff] %vm2104_vm3, %v15702_v43  ;;  %v108_v63 = vld [vmem:[%s15690_s0 + $0x1e0] sm:$0xff]  ;;  %v109_v0 = vld [vmem:[%s15690_s0 + $0x1e8] sm:$0xff]  ;;  %v11803_v7 = vmov 1983009808  }
  0x1a   :  { %11087 = vmatmul.mubr.msk.f32.gmra.mxu0 %vm114_vm1, %v59_v13  ;;  %2105 = vst.msk [vmem:[#allocation2] sm:$0xff] %vm2104_vm3, %v15702_v43  ;;  %2108 = vst.msk [vmem:[#allocation2 + $0x10] sm:$0xff] %vm2104_vm3, %v15702_v43  ;;  %v110_v1 = vld [vmem:[%s15690_s0 + $0x1f0] sm:$0xff]  ;;  %v111_v2 = vld [vmem:[%s15690_s0 + $0x1f8] sm:$0xff]  ;;  %v1018_v8 = vunpack.c.l.s4 %v11803_v7  ;;  %v12356_v12 = vshrl.u32 %v15701_v9, 7 }
  0x1b   :  { %11089 = vmatprep.mubr.msk.f32.mxu0 %vm114_vm1, %v60_v14  ;;  %2110 = vst.msk [vmem:[#allocation2 + $0x20] sm:$0xff] %vm2104_vm3, %v15702_v43  ;;  %2112 = vst.msk [vmem:[#allocation2 + $0x30] sm:$0xff] %vm2104_vm3, %v15702_v43  ;;  %v4943_v3 = vld [vmem:[%s15691_s3 + $0x8] sm:$0xff]  ;;  %v4942_v4 = vld [vmem:[%s15691_s3] sm:$0xff] }
  0x1c   :  { %2114 = vst.msk [vmem:[#allocation2 + $0x40] sm:$0xff] %vm2104_vm3, %v15702_v43  ;;  %2116 = vst.msk [vmem:[#allocation2 + $0x50] sm:$0xff] %vm2104_vm3, %v15702_v43  ;;  %11167 = vmatprep.subr.mxu0 %v4943_v3  ;;  %11716 = vmatprep.subr.mxu1 %v4943_v3  ;;  %v12347_v6 = vld [vmem:[%s15691_s3 + $0x48] sm:$0xff]  ;;  %v12353_v10 = vld [vmem:[%s15692_s2] ss:$0 sm:$0xff]  ;;  %v1019_v11 = vunpack.c.0.s8 %v1018_v8 }
  0x1d   :  { %2118 = vst.msk [vmem:[#allocation2 + $0x60] sm:$0xff] %vm2104_vm3, %v15702_v43  ;;  %2120 = vst.msk [vmem:[#allocation2 + $0x70] sm:$0xff] %vm2104_vm3, %v15702_v43  ;;  %11168 = vmatpush3.msra.mxu0 %v4943_v3  ;;  %11718 = vmatpush3.msra.mxu1 %v4943_v3 }
  0x1e   :  { %11090 = vmatmul.mubr.msk.f32.gmra.mxu0 %vm114_vm1, %v61_v15  ;;  %2122 = vst.msk [vmem:[#allocation2 + $0x80] sm:$0xff] %vm2104_vm3, %v15702_v43  ;;  %2124 = vst.msk [vmem:[#allocation2 + $0x90] sm:$0xff] %vm2104_vm3, %v15702_v43  ;;  %11169 = vmatprep.subr.mxu0 %v4942_v4  ;;  %v12360_v15 = vsub.s32 %v1019_v11, %v12356_v12 }
  0x1f   :  { %11092 = vmatprep.mubr.msk.f32.mxu0 %vm114_vm1, %v62_v16  ;;  %2126 = vst.msk [vmem:[#allocation2 + $0xa0] sm:$0xff] %vm2104_vm3, %v15702_v43  ;;  %2128 = vst.msk [vmem:[#allocation2 + $0xb0] sm:$0xff] %vm2104_vm3, %v15702_v43  ;;  %11717 = vmatprep.subr.mxu1 %v4942_v4 }
  0x20   :  { %2130 = vst.msk [vmem:[#allocation2 + $0xc0] sm:$0xff] %vm2104_vm3, %v15702_v43  ;;  %2132 = vst.msk [vmem:[#allocation2 + $0xd0] sm:$0xff] %vm2104_vm3, %v15702_v43  ;;  %11170 = vmatpush3.msra.mxu0 %v4942_v4  ;;  %11719 = vmatpush3.msra.mxu1 %v4942_v4 }
  0x21   :  { %2134 = vst.msk [vmem:[#allocation2 + $0xe0] sm:$0xff] %vm2104_vm3, %v15702_v43  ;;  %2136 = vst.msk [vmem:[#allocation2 + $0xf0] sm:$0xff] %vm2104_vm3, %v15702_v43  ;;  %v4926_v5 = vld [vmem:[#allocation2] sm:$0xff]  ;;  %11279 = vmatprep.subr.mxu0 %v12347_v6 }
  0x22   :  { %11093 = vmatmul.mubr.msk.f32.gmra.mxu0 %vm114_vm1, %v63_v17  ;;  %2138 = vst.msk [vmem:[#allocation2 + $0x100] sm:$0xff] %vm2104_vm3, %v15702_v43  ;;  %2140 = vst.msk [vmem:[#allocation2 + $0x110] sm:$0xff] %vm2104_vm3, %v15702_v43 }
  0x23   :  { %11095 = vmatprep.mubr.msk.f32.mxu0 %vm114_vm1, %v64_v18  ;;  %2142 = vst.msk [vmem:[#allocation2 + $0x120] sm:$0xff] %vm2104_vm3, %v15702_v43  ;;  %2144 = vst.msk [vmem:[#allocation2 + $0x130] sm:$0xff] %vm2104_vm3, %v15702_v43 }
  0x24   :  { %2146 = vst.msk [vmem:[#allocation2 + $0x140] sm:$0xff] %vm2104_vm3, %v15702_v43  ;;  %2148 = vst.msk [vmem:[#allocation2 + $0x150] sm:$0xff] %vm2104_vm3, %v15702_v43 }
  0x25   :  { %2150 = vst.msk [vmem:[#allocation2 + $0x160] sm:$0xff] %vm2104_vm3, %v15702_v43  ;;  %2152 = vst.msk [vmem:[#allocation2 + $0x170] sm:$0xff] %vm2104_vm3, %v15702_v43 }
  0x26   :  { %11096 = vmatmul.mubr.msk.f32.gmra.mxu0 %vm114_vm1, %v65_v19  ;;  %2154 = vst.msk [vmem:[#allocation2 + $0x180] sm:$0xff] %vm2104_vm3, %v15702_v43  ;;  %2156 = vst.msk [vmem:[#allocation2 + $0x190] sm:$0xff] %vm2104_vm3, %v15702_v43  ;;  %v12364_v19 = vsub.s32 1, %v12356_v12 }
  0x27   :  { %11098 = vmatprep.mubr.msk.f32.mxu0 %vm114_vm1, %v66_v20  ;;  %2158 = vst.msk [vmem:[#allocation2 + $0x1a0] sm:$0xff] %vm2104_vm3, %v15702_v43  ;;  %2160 = vst.msk [vmem:[#allocation2 + $0x1b0] sm:$0xff] %vm2104_vm3, %v15702_v43  ;;  %v12367_v20 = vsub.s32 0, %v12356_v12 }
  0x28   :  { %2162 = vst.msk [vmem:[#allocation2 + $0x1c0] sm:$0xff] %vm2104_vm3, %v15702_v43  ;;  %2164 = vst.msk [vmem:[#allocation2 + $0x1d0] sm:$0xff] %vm2104_vm3, %v15702_v43 }
  0x29   :  { %2166 = vst.msk [vmem:[#allocation2 + $0x1e0] sm:$0xff] %vm2104_vm3, %v15702_v43  ;;  %2168 = vst.msk [vmem:[#allocation2 + $0x1f0] sm:$0xff] %vm2104_vm3, %v15702_v43 }
  0x2a   :  { %11099 = vmatmul.mubr.msk.f32.gmra.mxu0 %vm114_vm1, %v67_v21  ;;  %2170 = vst.msk [vmem:[#allocation2 + $0x200] sm:$0xff] %vm2104_vm3, %v15702_v43  ;;  %2172 = vst.msk [vmem:[#allocation2 + $0x210] sm:$0xff] %vm2104_vm3, %v15702_v43 }
  0x2b   :  { %11101 = vmatprep.mubr.msk.f32.mxu0 %vm114_vm1, %v68_v22  ;;  %2174 = vst.msk [vmem:[#allocation2 + $0x220] sm:$0xff] %vm2104_vm3, %v15702_v43  ;;  %2176 = vst.msk [vmem:[#allocation2 + $0x230] sm:$0xff] %vm2104_vm3, %v15702_v43 }
  0x2c   :  { %2180 = vst.msk [vmem:[#allocation2 + $0x250] sm:$0xff] %vm2104_vm3, %v15702_v43  ;;  %2182 = vst.msk [vmem:[#allocation2 + $0x260] sm:$0xff] %vm2104_vm3, %v15702_v43 }
  0x2d   :  { %2184 = vst.msk [vmem:[#allocation2 + $0x270] sm:$0xff] %vm2104_vm3, %v15702_v43  ;;  %2186 = vst.msk [vmem:[#allocation2 + $0x280] sm:$0xff] %vm2104_vm3, %v15702_v43 }
  0x2e   :  { %11102 = vmatmul.mubr.msk.f32.gmra.mxu0 %vm114_vm1, %v69_v23  ;;  %2188 = vst.msk [vmem:[#allocation2 + $0x290] sm:$0xff] %vm2104_vm3, %v15702_v43  ;;  %2190 = vst.msk [vmem:[#allocation2 + $0x2a0] sm:$0xff] %vm2104_vm3, %v15702_v43 }
  0x2f   :  { %11104 = vmatprep.mubr.msk.f32.mxu0 %vm114_vm1, %v70_v24  ;;  %2192 = vst.msk [vmem:[#allocation2 + $0x2b0] sm:$0xff] %vm2104_vm3, %v15702_v43  ;;  %2196 = vst.msk [vmem:[#allocation2 + $0x2d0] sm:$0xff] %vm2104_vm3, %v15702_v43 }
  0x30   :  { %2198 = vst.msk [vmem:[#allocation2 + $0x2e0] sm:$0xff] %vm2104_vm3, %v15702_v43  ;;  %2200 = vst.msk [vmem:[#allocation2 + $0x2f0] sm:$0xff] %vm2104_vm3, %v15702_v43 }
  0x31   :  { %2202 = vst.msk [vmem:[#allocation2 + $0x300] sm:$0xff] %vm2104_vm3, %v15702_v43  ;;  %2204 = vst.msk [vmem:[#allocation2 + $0x310] sm:$0xff] %vm2104_vm3, %v15702_v43 }
  0x32   :  { %11105 = vmatmul.mubr.msk.f32.gmra.mxu0 %vm114_vm1, %v71_v25  ;;  %2206 = vst.msk [vmem:[#allocation2 + $0x320] sm:$0xff] %vm2104_vm3, %v15702_v43  ;;  %2208 = vst.msk [vmem:[#allocation2 + $0x330] sm:$0xff] %vm2104_vm3, %v15702_v43 }
  0x33   :  { %11107 = vmatprep.mubr.msk.f32.mxu0 %vm114_vm1, %v72_v26  ;;  %2210 = vst.msk [vmem:[#allocation2 + $0x340] sm:$0xff] %vm2104_vm3, %v15702_v43  ;;  %2216 = vst.msk [vmem:[#allocation2 + $0x370] sm:$0xff] %vm2104_vm3, %v15702_v43 }
  0x34   :  { %2218 = vst.msk [vmem:[#allocation2 + $0x380] sm:$0xff] %vm2104_vm3, %v15702_v43  ;;  %2220 = vst.msk [vmem:[#allocation2 + $0x390] sm:$0xff] %vm2104_vm3, %v15702_v43 }
  0x35   :  { %2222 = vst.msk [vmem:[#allocation2 + $0x3a0] sm:$0xff] %vm2104_vm3, %v15702_v43  ;;  %2224 = vst.msk [vmem:[#allocation2 + $0x3b0] sm:$0xff] %vm2104_vm3, %v15702_v43 }
  0x36   :  { %11108 = vmatmul.mubr.msk.f32.gmra.mxu0 %vm114_vm1, %v73_v27  ;;  %2226 = vst.msk [vmem:[#allocation2 + $0x3c0] sm:$0xff] %vm2104_vm3, %v15702_v43  ;;  %2228 = vst.msk [vmem:[#allocation2 + $0x3d0] sm:$0xff] %vm2104_vm3, %v15702_v43 }
  0x37   :  { %11110 = vmatprep.mubr.msk.f32.mxu0 %vm114_vm1, %v74_v28  ;;  %2232 = vst.msk [vmem:[#allocation2 + $0x3f0] sm:$0xff] %vm2104_vm3, %v15702_v43  ;;  %2234 = vst.msk [vmem:[#allocation2 + $0x400] sm:$0xff] %vm2104_vm3, %v15702_v43 }
  0x38   :  { %2236 = vst.msk [vmem:[#allocation2 + $0x410] sm:$0xff] %vm2104_vm3, %v15702_v43  ;;  %2238 = vst.msk [vmem:[#allocation2 + $0x420] sm:$0xff] %vm2104_vm3, %v15702_v43 }
  0x39   :  { %2240 = vst.msk [vmem:[#allocation2 + $0x430] sm:$0xff] %vm2104_vm3, %v15702_v43  ;;  %2242 = vst.msk [vmem:[#allocation2 + $0x440] sm:$0xff] %vm2104_vm3, %v15702_v43 }
  0x3a   :  { %11111 = vmatmul.mubr.msk.f32.gmra.mxu0 %vm114_vm1, %v75_v29  ;;  %2244 = vst.msk [vmem:[#allocation2 + $0x450] sm:$0xff] %vm2104_vm3, %v15702_v43  ;;  %2246 = vst.msk [vmem:[#allocation2 + $0x460] sm:$0xff] %vm2104_vm3, %v15702_v43 }
  0x3b   :  { %11113 = vmatprep.mubr.msk.f32.mxu0 %vm114_vm1, %v76_v30  ;;  %15713 = vst [vmem:[#allocation6_spill] sm:$0xff] %v12356_v12  ;;  %15714 = vst [vmem:[#allocation7_spill] sm:$0xff] %v12360_v15 }
  0x3c   :  { %15715 = vst [vmem:[#allocation8_spill] sm:$0xff] %v12364_v19  ;;  %15716 = vst [vmem:[#allocation9_spill] sm:$0xff] %v12367_v20 }
  0x3e   :  { %11114 = vmatmul.mubr.msk.f32.gmra.mxu0 %vm114_vm1, %v77_v31 }
  0x3f   :  { %11116 = vmatprep.mubr.msk.f32.mxu0 %vm114_vm1, %v78_v32 }
  0x42   :  { %11117 = vmatmul.mubr.msk.f32.gmra.mxu0 %vm114_vm1, %v79_v33 }
  0x43   :  { %11119 = vmatprep.mubr.msk.f32.mxu0 %vm114_vm1, %v80_v34 }
  0x46   :  { %11120 = vmatmul.mubr.msk.f32.gmra.mxu0 %vm114_vm1, %v81_v35 }
  0x47   :  { %11122 = vmatprep.mubr.msk.f32.mxu0 %vm114_vm1, %v82_v36 }
  0x4a   :  { %11123 = vmatmul.mubr.msk.f32.gmra.mxu0 %vm114_vm1, %v83_v37 }
  0x4b   :  { %11125 = vmatprep.mubr.msk.f32.mxu0 %vm114_vm1, %v84_v38 }
  0x4e   :  { %11126 = vmatmul.mubr.msk.f32.gmra.mxu0 %vm114_vm1, %v85_v39 }
  0x4f   :  { %11128 = vmatprep.mubr.msk.f32.mxu0 %vm114_vm1, %v86_v40 }
  0x52   :  { %11129 = vmatmul.mubr.msk.f32.gmra.mxu0 %vm114_vm1, %v87_v41 }
  0x53   :  { %11131 = vmatprep.mubr.msk.f32.mxu0 %vm114_vm1, %v88_v42 }
  0x56   :  { %11132 = vmatmul.mubr.msk.f32.gmra.mxu0 %vm114_vm1, %v12106_v44 }
  0x57   :  { %11134 = vmatprep.mubr.msk.f32.mxu0 %vm114_vm1, %v12111_v45 }
  0x5a   :  { %11135 = vmatmul.mubr.msk.f32.gmra.mxu0 %vm114_vm1, %v91_v46 }
  0x5b   :  { %11137 = vmatprep.mubr.msk.f32.mxu0 %vm114_vm1, %v92_v47 }
  0x5e   :  { %11138 = vmatmul.mubr.msk.f32.gmra.mxu0 %vm114_vm1, %v93_v48 }
  0x5f   :  { %11140 = vmatprep.mubr.msk.f32.mxu0 %vm114_vm1, %v94_v49 }
  0x62   :  { %11141 = vmatmul.mubr.msk.f32.gmra.mxu0 %vm114_vm1, %v95_v50 }
  0x63   :  { %11143 = vmatprep.mubr.msk.f32.mxu0 %vm114_vm1, %v96_v51 }
  0x66   :  { %11144 = vmatmul.mubr.msk.f32.gmra.mxu0 %vm114_vm1, %v97_v52 }
  0x67   :  { %11146 = vmatprep.mubr.msk.f32.mxu0 %vm114_vm1, %v98_v53 }
  0x6a   :  { %11147 = vmatmul.mubr.msk.f32.gmra.mxu0 %vm114_vm1, %v99_v54 }
  0x6b   :  { %11149 = vmatprep.mubr.msk.f32.mxu0 %vm114_vm1, %v100_v55 }
  0x6e   :  { %11150 = vmatmul.mubr.msk.f32.gmra.mxu0 %vm114_vm1, %v101_v56 }
  0x6f   :  { %11152 = vmatprep.mubr.msk.f32.mxu0 %vm114_vm1, %v102_v57 }
  0x72   :  { %11153 = vmatmul.mubr.msk.f32.gmra.mxu0 %vm114_vm1, %v103_v58 }
  0x73   :  { %11155 = vmatprep.mubr.msk.f32.mxu0 %vm114_vm1, %v104_v59 }
  0x76   :  { %11156 = vmatmul.mubr.msk.f32.gmra.mxu0 %vm114_vm1, %v105_v60 }
  0x77   :  { %11158 = vmatprep.mubr.msk.f32.mxu0 %vm114_vm1, %v106_v61 }
  0x7a   :  { %11159 = vmatmul.mubr.msk.f32.gmra.mxu0 %vm114_vm1, %v107_v62 }
  0x7b   :  { %11161 = vmatprep.mubr.msk.f32.mxu0 %vm114_vm1, %v108_v63 }
  0x7e   :  { %11162 = vmatmul.mubr.msk.f32.gmra.mxu0 %vm114_vm1, %v109_v0 }
  0x7f   :  { %11164 = vmatprep.mubr.msk.f32.mxu0 %vm114_vm1, %v110_v1 }
  0x82   :  { %11165 = vmatmul.mubr.msk.f32.gmra.mxu0 %vm114_vm1, %v111_v2 }
  0x83   :  { %11171 = vmatprep.mubr.msk.f32.mxu0 %vm2104_vm3, %v4926_v5 }
  0xc6   :  { %v11073_v13 = vpop.f32.mrf.mxu0 }
  0xc7   :  { %v697_v14 = vadd.f32 %v11073_v13, %v12353_v10 }
  0xc8   :  { %v377_v16 = vpop.f32.mrf.mxu0 }
  0xc9   :  { %vm761_vm4 = vcmp.gt.f32.partialorder %v697_v14, 0.0  ;;  %v825_v17 = vmul.f32 0.2, %v697_v14  ;;  %v696_v18 = vadd.f32 %v12353_v10, %v377_v16 }
  0xca   :  { %v11076_v21 = vpop.f32.mrf.mxu0 }
  0xcb   :  { %v889_v22 = vsel %vm761_vm4, %v697_v14, %v825_v17  ;;  %vm760_vm6 = vcmp.gt.f32.partialorder %v696_v18, 0.0  ;;  %v824_v23 = vmul.f32 0.2, %v696_v18  ;;  %v699_v24 = vadd.f32 %v11076_v21, %v12353_v10 }
  0xcc   :  { %v1033_v25 = vcombine.high %v889_v22, %v889_v22  ;;  %v1040_v26 = vrot.slane %v889_v22, %v12360_v15  ;;  %v387_v27 = vpop.f32.mrf.mxu0 }
  0xcd   :  { %v888_v28 = vsel %vm760_vm6, %v696_v18, %v824_v23  ;;  %vm763_vm9 = vcmp.gt.f32.partialorder %v699_v24, 0.0  ;;  %v827_v29 = vmul.f32 0.2, %v699_v24  ;;  %v698_v30 = vadd.f32 %v12353_v10, %v387_v27 }
  0xce   :  { %v1047_v31 = vrot.slane %v1033_v25, %v12360_v15  ;;  %v1048_v32 = vcombine.high %v1040_v26, %v1040_v26  ;;  %v1016_v33 = vcombine.high %v888_v28, %v888_v28  ;;  %v1023_v34 = vrot.slane %v888_v28, %v12360_v15  ;;  %v11079_v55 = vpop.f32.mrf.mxu0 }
  0xcf   :  { %v891_v35 = vsel %vm763_vm9, %v699_v24, %v827_v29  ;;  %v3607_v37 = vrot.slane %v1040_v26, %v12364_v19  ;;  %v4280_v38 = vrot.slane %v1040_v26, %v12367_v20  ;;  %vm762_vm15 = vcmp.gt.f32.partialorder %v698_v30, 0.0 }
  0xd0   :  { %v1049_v36 = vcombine.high %v1047_v31, %v1047_v31  ;;  %v3611_v39 = vrot.slane %v1048_v32, %v12364_v19  ;;  %v1030_v40 = vrot.slane %v1016_v33, %v12360_v15  ;;  %v1031_v41 = vcombine.high %v1023_v34, %v1023_v34  ;;  %v397_v11 = vpop.f32.mrf.mxu0 }
  0xd1   :  { %v3591_v44 = vrot.slane %v1023_v34, %v12364_v19  ;;  %v4264_v45 = vrot.slane %v1023_v34, %v12367_v20  ;;  %v1067_v46 = vcombine.high %v891_v35, %v891_v35  ;;  %v3615_v51 = vrot.slane %v1047_v31, %v12364_v19 }
  0xd2   :  { %v3619_v42 = vrot.slane %v1049_v36, %v12364_v19  ;;  %v1032_v47 = vcombine.high %v1030_v40, %v1030_v40  ;;  %v3595_v48 = vrot.slane %v1031_v41, %v12364_v19  ;;  %v3599_v49 = vrot.slane %v1030_v40, %v12364_v19  ;;  %v11082_v33 = vpop.f32.mrf.mxu0 }
  0xd3   :  { %v4268_v50 = vrot.slane %v1031_v41, %v12367_v20  ;;  %v4272_v52 = vrot.slane %v1030_v40, %v12367_v20  ;;  %v12388_v53 = vrot.slane %v891_v35, %v12360_v15  ;;  %v12391_v54 = vrot.slane %v1067_v46, %v12360_v15 }
  0xd4   :  { %4230 = vst.msk [vmem:[#allocation2 + $0x248] sm:$0x1] %vm2106_vm2, %v3619_v42  ;;  %v3603_v56 = vrot.slane %v1032_v47, %v12364_v19  ;;  %v4100_v57 = vsel %vm2762_vm5, %v3595_v48, %v3591_v44  ;;  %v4276_v58 = vrot.slane %v1032_v47, %v12367_v20  ;;  %v4284_v60 = vrot.slane %v1048_v32, %v12367_v20 }
  0xd5   :  { %v4773_v59 = vsel %vm3442_vm14, %v4268_v50, %v4264_v45  ;;  %v4101_v61 = vsel %vm2764_vm7, %v3599_v49, %v4100_v57  ;;  %v12402_v63 = vcombine.high %v12391_v54, %v12391_v54  ;;  %v4288_v0 = vrot.slane %v1047_v31, %v12367_v20  ;;  %v407_v50 = vpop.f32.mrf.mxu0 }
  0xd6   :  { %v4774_v62 = vsel %vm2762_vm5, %v4272_v52, %v4773_v59  ;;  %v4102_v1 = vsel %vm2766_vm8, %v3603_v56, %v4101_v61  ;;  %v826_v3 = vmul.f32 0.2, %v698_v30  ;;  %v1082_v7 = vcombine.high %v12388_v53, %v12388_v53 }
  0xd7   :  { %v4775_v2 = vsel %vm2764_vm7, %v4276_v58, %v4774_v62  ;;  %v4103_v4 = vsel %vm2768_vm10, %v3607_v37, %v4102_v1  ;;  %v2281_v8 = vrot.slane %v12402_v63, %v12364_v19  ;;  %v4292_v13 = vrot.slane %v1049_v36, %v12367_v20 }
  0xd8   :  { %v4776_v5 = vsel %vm2766_vm8, %v4280_v38, %v4775_v2  ;;  %v4104_v14 = vsel %vm2770_vm11, %v3611_v39, %v4103_v4  ;;  %v2269_v21 = vrot.slane %v12388_v53, %v12364_v19  ;;  %v890_v23 = vsel %vm762_vm15, %v698_v30, %v826_v3 }
  0xd9   :  { %v4777_v16 = vsel %vm2768_vm10, %v4284_v60, %v4776_v5  ;;  %v4105_v17 = vsel %vm2772_vm12, %v3615_v51, %v4104_v14  ;;  %2899 = vst.msk [vmem:[#allocation2 + $0x18] sm:$0x1] %vm2106_vm2, %v2281_v8  ;;  %v701_v24 = vadd.f32 %v11079_v55, %v12353_v10  ;;  %v700_v25 = vadd.f32 %v12353_v10, %v397_v11 }
  0xda   :  { %v4778_v18 = vsel %vm2770_vm11, %v4288_v0, %v4777_v16  ;;  %4229 = vst.msk [vmem:[#allocation2 + $0x240] sm:$0xfe] %vm2897_vm13, %v4105_v17  ;;  %v2273_v26 = vrot.slane %v1082_v7, %v12364_v19  ;;  %v2277_v27 = vrot.slane %v12391_v54, %v12364_v19  ;;  %v1050_v28 = vcombine.high %v890_v23, %v890_v23 }
  0xdb   :  { %v4779_v22 = vsel %vm2772_vm12, %v4292_v13, %v4778_v18  ;;  %v1057_v29 = vrot.slane %v890_v23, %v12360_v15  ;;  %v2949_v31 = vrot.slane %v12388_v53, %v12367_v20  ;;  %vm765_vm0 = vcmp.gt.f32.partialorder %v701_v24, 0.0 }
  0xdc   :  { %4902 = vst.msk [vmem:[#allocation2 + $0x360] sm:$0xff] %vm2104_vm3, %v4779_v22  ;;  %v829_v32 = vmul.f32 0.2, %v701_v24  ;;  %v828_v30 = vmul.f32 0.2, %v700_v25  ;;  %v2953_v34 = vrot.slane %v1082_v7, %v12367_v20  ;;  %v1064_v35 = vrot.slane %v1050_v28, %v12360_v15 }
  0xdd   :  { %v1065_v36 = vcombine.high %v1057_v29, %v1057_v29  ;;  %vm764_vm1 = vcmp.gt.f32.partialorder %v700_v25, 0.0  ;;  %v2957_v37 = vrot.slane %v12391_v54, %v12367_v20  ;;  %v2253_v38 = vrot.slane %v1057_v29, %v12364_v19 }
  0xde   :  { %v2933_v39 = vrot.slane %v1057_v29, %v12367_v20  ;;  %v893_v40 = vsel %vm765_vm0, %v701_v24, %v829_v32  ;;  %v1066_v41 = vcombine.high %v1064_v35, %v1064_v35  ;;  %v2261_v44 = vrot.slane %v1064_v35, %v12364_v19 }
  0xdf   :  { %v2257_v42 = vrot.slane %v1065_v36, %v12364_v19  ;;  %v2937_v45 = vrot.slane %v1065_v36, %v12367_v20  ;;  %v2941_v46 = vrot.slane %v1064_v35, %v12367_v20  ;;  %v1101_v47 = vcombine.high %v893_v40, %v893_v40 }
  0xe0   :  { %v892_v48 = vsel %vm764_vm1, %v700_v25, %v828_v30  ;;  %v703_v49 = vadd.f32 %v11082_v33, %v12353_v10  ;;  %v2265_v51 = vrot.slane %v1066_v41, %v12364_v19  ;;  %v2945_v53 = vrot.slane %v1066_v41, %v12367_v20  ;;  %v11085_v30 = vpop.f32.mrf.mxu0 }
  0xe1   :  { %v2763_v52 = vsel %vm2762_vm5, %v2257_v42, %v2253_v38  ;;  %v3443_v54 = vsel %vm3442_vm14, %v2937_v45, %v2933_v39  ;;  %v12451_v57 = vrot.slane %v893_v40, %v12360_v15  ;;  %v12454_v58 = vrot.slane %v1101_v47, %v12360_v15 }
  0xe2   :  { %v2765_v55 = vsel %vm2764_vm7, %v2261_v44, %v2763_v52  ;;  %v3444_v56 = vsel %vm2762_vm5, %v2941_v46, %v3443_v54  ;;  %v1084_v61 = vcombine.high %v892_v48, %v892_v48  ;;  %v702_v62 = vadd.f32 %v12353_v10, %v407_v50 }
  0xe3   :  { %v2767_v59 = vsel %vm2766_vm8, %v2265_v51, %v2765_v55  ;;  %v3445_v60 = vsel %vm2764_vm7, %v2945_v53, %v3444_v56  ;;  %v12463_v2 = vcombine.high %v12454_v58, %v12454_v58  ;;  %v831_v3 = vmul.f32 0.2, %v703_v49  ;;  %v5835_v55 = vld [vmem:[#allocation2 + $0x360] sm:$0xff] }
  0xe4   :  { %v2769_v0 = vsel %vm2768_vm10, %v2269_v21, %v2767_v59  ;;  %v3446_v1 = vsel %vm2766_vm8, %v2949_v31, %v3445_v60  ;;  %v2961_v4 = vrot.slane %v12402_v63, %v12367_v20  ;;  %vm767_vm4 = vcmp.gt.f32.partialorder %v703_v49, 0.0  ;;  %v5851_v56 = vld [vmem:[%s15691_s3 + $0x40] sm:$0xff] }
  0xe5   :  { %v2771_v5 = vsel %vm2770_vm11, %v2273_v26, %v2769_v0  ;;  %v3447_v7 = vsel %vm2768_vm10, %v2953_v34, %v3446_v1  ;;  %v1116_v13 = vcombine.high %v12451_v57, %v12451_v57  ;;  %v3651_v14 = vrot.slane %v12463_v2, %v12364_v19  ;;  %v417_v1 = vpop.f32.mrf.mxu0 }
  0xe6   :  { %v2773_v8 = vsel %vm2772_vm12, %v2277_v27, %v2771_v5  ;;  %v3448_v11 = vsel %vm2770_vm11, %v2957_v37, %v3447_v7  ;;  %v3639_v63 = vrot.slane %v12451_v57, %v12364_v19  ;;  %v1091_v17 = vrot.slane %v892_v48, %v12360_v15 }
  0xe7   :  { %2898 = vst.msk [vmem:[#allocation2 + $0x10] sm:$0xfe] %vm2897_vm13, %v2773_v8  ;;  %v3449_v16 = vsel %vm2772_vm12, %v2961_v4, %v3448_v11  ;;  %v1098_v18 = vrot.slane %v1084_v61, %v12360_v15  ;;  %v4312_v21 = vrot.slane %v12451_v57, %v12367_v20  ;;  %v895_v22 = vsel %vm767_vm4, %v703_v49, %v831_v3 }
  0xe8   :  { %3572 = vst.msk [vmem:[#allocation2 + $0x130] sm:$0xff] %vm2104_vm3, %v3449_v16  ;;  %vm766_vm6 = vcmp.gt.f32.partialorder %v702_v62, 0.0  ;;  %v830_v23 = vmul.f32 0.2, %v702_v62  ;;  %v1099_v24 = vcombine.high %v1091_v17, %v1091_v17  ;;  %v3623_v26 = vrot.slane %v1091_v17, %v12364_v19 }
  0xe9   :  { %4232 = vst.msk [vmem:[#allocation2 + $0x258] sm:$0x1] %vm2106_vm2, %v3651_v14  ;;  %v1100_v25 = vcombine.high %v1098_v18, %v1098_v18  ;;  %v3631_v27 = vrot.slane %v1098_v18, %v12364_v19  ;;  %v4296_v28 = vrot.slane %v1091_v17, %v12367_v20  ;;  %v4304_v29 = vrot.slane %v1098_v18, %v12367_v20 }
  0xea   :  { %v1135_v31 = vcombine.high %v895_v22, %v895_v22  ;;  %v12490_v32 = vrot.slane %v895_v22, %v12360_v15  ;;  %v3627_v33 = vrot.slane %v1099_v24, %v12364_v19  ;;  %v4300_v35 = vrot.slane %v1099_v24, %v12367_v20 }
  0xeb   :  { %v3635_v34 = vrot.slane %v1100_v25, %v12364_v19  ;;  %v4308_v36 = vrot.slane %v1100_v25, %v12367_v20  ;;  %v3643_v37 = vrot.slane %v1116_v13, %v12364_v19  ;;  %v3647_v38 = vrot.slane %v12454_v58, %v12364_v19 }
  0xec   :  { %v4316_v39 = vrot.slane %v1116_v13, %v12367_v20  ;;  %v12501_v40 = vrot.slane %v1135_v31, %v12360_v15  ;;  %v4320_v41 = vrot.slane %v12454_v58, %v12367_v20  ;;  %v4106_v42 = vsel %vm2762_vm5, %v3627_v33, %v3623_v26 }
  0xed   :  { %v4780_v44 = vsel %vm3442_vm14, %v4300_v35, %v4296_v28  ;;  %v705_v45 = vadd.f32 %v11085_v30, %v12353_v10  ;;  %v4107_v46 = vsel %vm2764_vm7, %v3631_v27, %v4106_v42  ;;  %v894_v49 = vsel %vm766_vm6, %v702_v62, %v830_v23  ;;  %v11088_v23 = vpop.f32.mrf.mxu0 }
  0xee   :  { %v4781_v47 = vsel %vm2762_vm5, %v4304_v29, %v4780_v44  ;;  %v12512_v48 = vcombine.high %v12501_v40, %v12501_v40  ;;  %v4927_v50 = vld [vmem:[#allocation2 + $0x10] sm:$0xff]  ;;  %v4324_v51 = vrot.slane %v12463_v2, %v12367_v20  ;;  %v4108_v52 = vsel %vm2766_vm8, %v3635_v34, %v4107_v46 }
  0xef   :  { %v4782_v53 = vsel %vm2764_vm7, %v4308_v36, %v4781_v47  ;;  %v12521_v54 = vcombine.high %v12490_v32, %v12490_v32  ;;  %11172 = vmatmul.mubr.msk.f32.vlgmr.msra.gmra.mxu0 %vm2104_vm3, %v4927_v50  ;;  %v4109_v57 = vsel %vm2768_vm10, %v3639_v63, %v4108_v52  ;;  %v2301_v59 = vrot.slane %v12490_v32, %v12364_v19 }
  0xf0   :  { %v4783_v58 = vsel %vm2766_vm8, %v4312_v21, %v4782_v53  ;;  %v2313_v60 = vrot.slane %v12512_v48, %v12364_v19  ;;  %11283 = vmatprep.mubr.msk.f32.mxu0 %vm2104_vm3, %v5835_v55  ;;  %v4110_v61 = vsel %vm2770_vm11, %v3643_v37, %v4109_v57  ;;  %v1118_v0 = vcombine.high %v894_v49, %v894_v49 }
  0xf1   :  { %v4784_v62 = vsel %vm2768_vm10, %v4316_v39, %v4783_v58  ;;  %vm769_vm9 = vcmp.gt.f32.partialorder %v705_v45, 0.0  ;;  %11280 = vmatpush3.msra.mxu0 %v12347_v6  ;;  %v4111_v2 = vsel %vm2772_vm12, %v3647_v38, %v4110_v61  ;;  %v1125_v4 = vrot.slane %v894_v49, %v12360_v15 }
  0xf2   :  { %v4785_v3 = vsel %vm2770_vm11, %v4320_v41, %v4784_v62  ;;  %2901 = vst.msk [vmem:[#allocation2 + $0x28] sm:$0x1] %vm2106_vm2, %v2313_v60  ;;  %v833_v5 = vmul.f32 0.2, %v705_v45  ;;  %11281 = vmatprep.subr.mxu0 %v5851_v56  ;;  %v2305_v8 = vrot.slane %v12521_v54, %v12364_v19  ;;  %v2981_v6 = vrot.slane %v12490_v32, %v12367_v20  ;;  %v427_v41 = vpop.f32.mrf.mxu0 }
  0xf3   :  { %4231 = vst.msk [vmem:[#allocation2 + $0x250] sm:$0xfe] %vm2897_vm13, %v4111_v2  ;;  %v4786_v7 = vsel %vm2772_vm12, %v4324_v51, %v4785_v3  ;;  %v1132_v11 = vrot.slane %v1118_v0, %v12360_v15  ;;  %11282 = vmatpush3.msra.mxu0 %v5851_v56  ;;  %v2309_v13 = vrot.slane %v12501_v40, %v12364_v19 }
  0xf4   :  { %4903 = vst.msk [vmem:[#allocation2 + $0x370] sm:$0xff] %vm2104_vm3, %v4786_v7  ;;  %v1133_v14 = vcombine.high %v1125_v4, %v1125_v4  ;;  %v897_v16 = vsel %vm769_vm9, %v705_v45, %v833_v5  ;;  %v704_v63 = vadd.f32 %v12353_v10, %v417_v1  ;;  %v2285_v24 = vrot.slane %v1125_v4, %v12364_v19  ;;  %v11091_v58 = vpop.f32.mrf.mxu0 }
  0xf5   :  { %v1134_v17 = vcombine.high %v1132_v11, %v1132_v11  ;;  %v2293_v18 = vrot.slane %v1132_v11, %v12364_v19  ;;  %v2973_v21 = vrot.slane %v1132_v11, %v12367_v20  ;;  %v1169_v22 = vcombine.high %v897_v16, %v897_v16 }
  0xf6   :  { %v2289_v25 = vrot.slane %v1133_v14, %v12364_v19  ;;  %v2965_v26 = vrot.slane %v1125_v4, %v12367_v20  ;;  %v2969_v27 = vrot.slane %v1133_v14, %v12367_v20  ;;  %v12562_v31 = vrot.slane %v897_v16, %v12360_v15  ;;  %v437_v14 = vpop.f32.mrf.mxu0 }
  0xf7   :  { %v2297_v28 = vrot.slane %v1134_v17, %v12364_v19  ;;  %v2977_v29 = vrot.slane %v1134_v17, %v12367_v20  ;;  %v12565_v32 = vrot.slane %v1169_v22, %v12360_v15  ;;  %v2985_v30 = vrot.slane %v12521_v54, %v12367_v20 }
  0xf8   :  { %v2774_v33 = vsel %vm2762_vm5, %v2289_v25, %v2285_v24  ;;  %v3450_v34 = vsel %vm3442_vm14, %v2969_v27, %v2965_v26  ;;  %v707_v35 = vadd.f32 %v11088_v23, %v12353_v10  ;;  %v832_v39 = vmul.f32 0.2, %v704_v63 }
  0xf9   :  { %v2775_v36 = vsel %vm2764_vm7, %v2293_v18, %v2774_v33  ;;  %v3451_v37 = vsel %vm2762_vm5, %v2973_v21, %v3450_v34  ;;  %v12576_v38 = vcombine.high %v12565_v32, %v12565_v32  ;;  %v2989_v42 = vrot.slane %v12501_v40, %v12367_v20 }
  0xfa   :  { %v2776_v44 = vsel %vm2766_vm8, %v2297_v28, %v2775_v36  ;;  %v3452_v45 = vsel %vm2764_vm7, %v2977_v29, %v3451_v37  ;;  %vm768_vm15 = vcmp.gt.f32.partialorder %v704_v63, 0.0  ;;  %v12586_v49 = vcombine.high %v12562_v31, %v12562_v31 }
  0xfb   :  { %v2777_v46 = vsel %vm2768_vm10, %v2301_v59, %v2776_v44  ;;  %v3453_v47 = vsel %vm2766_vm8, %v2981_v6, %v3452_v45  ;;  %v3683_v50 = vrot.slane %v12576_v38, %v12364_v19  ;;  %v5836_v51 = vld [vmem:[#allocation2 + $0x370] sm:$0xff]  ;;  %v2993_v40 = vrot.slane %v12512_v48, %v12367_v20 }
  0xfc   :  { %v2778_v52 = vsel %vm2770_vm11, %v2305_v8, %v2777_v46  ;;  %v3454_v53 = vsel %vm2768_vm10, %v2985_v30, %v3453_v47  ;;  %v3671_v54 = vrot.slane %v12562_v31, %v12364_v19  ;;  %11284 = vmatmul.mubr.msk.f32.vlgmr.msra.gmra.mxu0 %vm2104_vm3, %v5836_v51  ;;  %v896_v57 = vsel %vm768_vm15, %v704_v63, %v832_v39  ;;  %v11094_v30 = vpop.f32.mrf.mxu0 }
  0xfd   :  { %v2779_v55 = vsel %vm2772_vm12, %v2309_v13, %v2778_v52  ;;  %v3455_v56 = vsel %vm2770_vm11, %v2989_v42, %v3454_v53  ;;  %4234 = vst.msk [vmem:[#allocation2 + $0x268] sm:$0x1] %vm2106_vm2, %v3683_v50  ;;  %vm771_vm0 = vcmp.gt.f32.partialorder %v707_v35, 0.0  ;;  %v1152_v59 = vcombine.high %v896_v57, %v896_v57 }
  0xfe   :  { %2900 = vst.msk [vmem:[#allocation2 + $0x20] sm:$0xfe] %vm2897_vm13, %v2779_v55  ;;  %v3456_v48 = vsel %vm2772_vm12, %v2993_v40, %v3455_v56  ;;  %v1159_v60 = vrot.slane %v896_v57, %v12360_v15  ;;  %v835_v61 = vmul.f32 0.2, %v707_v35  ;;  %v3675_v62 = vrot.slane %v12586_v49, %v12364_v19 }
  0xff   :  { %3573 = vst.msk [vmem:[#allocation2 + $0x140] sm:$0xff] %vm2104_vm3, %v3456_v48  ;;  %v3679_v0 = vrot.slane %v12565_v32, %v12364_v19  ;;  %v4344_v1 = vrot.slane %v12562_v31, %v12367_v20  ;;  %v706_v2 = vadd.f32 %v12353_v10, %v427_v41  ;;  %v4348_v3 = vrot.slane %v12586_v49, %v12367_v20 }
 0x100   :  { %v4352_v4 = vrot.slane %v12565_v32, %v12367_v20  ;;  %v1166_v5 = vrot.slane %v1152_v59, %v12360_v15  ;;  %v1167_v7 = vcombine.high %v1159_v60, %v1159_v60  ;;  %v3655_v8 = vrot.slane %v1159_v60, %v12364_v19 }
 0x101   :  { %v4328_v6 = vrot.slane %v1159_v60, %v12367_v20  ;;  %v899_v11 = vsel %vm771_vm0, %v707_v35, %v835_v61  ;;  %v834_v13 = vmul.f32 0.2, %v706_v2  ;;  %vm770_vm1 = vcmp.gt.f32.partialorder %v706_v2, 0.0 }
 0x102   :  { %v1168_v16 = vcombine.high %v1166_v5, %v1166_v5  ;;  %v3659_v63 = vrot.slane %v1167_v7, %v12364_v19  ;;  %v3663_v17 = vrot.slane %v1166_v5, %v12364_v19  ;;  %v4332_v18 = vrot.slane %v1167_v7, %v12367_v20 }
 0x103   :  { %v4336_v21 = vrot.slane %v1166_v5, %v12367_v20  ;;  %v1203_v22 = vcombine.high %v899_v11, %v899_v11  ;;  %v12624_v23 = vrot.slane %v899_v11, %v12360_v15  ;;  %v709_v32 = vadd.f32 %v11091_v58, %v12353_v10 }
 0x104   :  { %v3667_v24 = vrot.slane %v1168_v16, %v12364_v19  ;;  %v4112_v25 = vsel %vm2762_vm5, %v3659_v63, %v3655_v8  ;;  %v4340_v26 = vrot.slane %v1168_v16, %v12367_v20  ;;  %v4787_v27 = vsel %vm3442_vm14, %v4332_v18, %v4328_v6 }
 0x105   :  { %v4113_v28 = vsel %vm2764_vm7, %v3663_v17, %v4112_v25  ;;  %v4788_v29 = vsel %vm2762_vm5, %v4336_v21, %v4787_v27  ;;  %v12633_v31 = vrot.slane %v1203_v22, %v12360_v15  ;;  %v4928_v33 = vld [vmem:[#allocation2 + $0x20] sm:$0xff]  ;;  %v898_v36 = vsel %vm770_vm1, %v706_v2, %v834_v13  ;;  %v447_v17 = vpop.f32.mrf.mxu0 }
 0x106   :  { %v4114_v34 = vsel %vm2766_vm8, %v3667_v24, %v4113_v28  ;;  %v4789_v35 = vsel %vm2764_vm7, %v4340_v26, %v4788_v29  ;;  %v708_v37 = vadd.f32 %v12353_v10, %v437_v14  ;;  %11174 = vmatprep.mubr.msk.f32.mxu1 %vm2104_vm3, %v4928_v33  ;;  %v1218_v42 = vcombine.high %v12624_v23, %v12624_v23 }
 0x107   :  { %v4115_v39 = vsel %vm2768_vm10, %v3671_v54, %v4114_v34  ;;  %v4790_v41 = vsel %vm2766_vm8, %v4344_v1, %v4789_v35  ;;  %v12646_v44 = vcombine.high %v12633_v31, %v12633_v31  ;;  %v4356_v45 = vrot.slane %v12576_v38, %v12367_v20 }
 0x108   :  { %v4116_v46 = vsel %vm2770_vm11, %v3675_v62, %v4115_v39  ;;  %v4791_v47 = vsel %vm2768_vm10, %v4348_v3, %v4790_v41  ;;  %v12653_v49 = vadd.f32 %v11094_v30, %v12353_v10  ;;  %vm773_vm4 = vcmp.gt.f32.partialorder %v709_v32, 0.0 }
 0x109   :  { %v4117_v50 = vsel %vm2772_vm12, %v3679_v0, %v4116_v46  ;;  %v4792_v51 = vsel %vm2770_vm11, %v4352_v4, %v4791_v47  ;;  %v2345_v40 = vrot.slane %v12646_v44, %v12364_v19  ;;  %v2333_v38 = vrot.slane %v12624_v23, %v12364_v19 }
 0x10a   :  { %4233 = vst.msk [vmem:[#allocation2 + $0x260] sm:$0xfe] %vm2897_vm13, %v4117_v50  ;;  %v4793_v52 = vsel %vm2772_vm12, %v4356_v45, %v4792_v51  ;;  %v1186_v53 = vcombine.high %v898_v36, %v898_v36  ;;  %v1193_v54 = vrot.slane %v898_v36, %v12360_v15  ;;  %v2337_v55 = vrot.slane %v1218_v42, %v12364_v19 }
 0x10b   :  { %4904 = vst.msk [vmem:[#allocation2 + $0x380] sm:$0xff] %vm2104_vm3, %v4793_v52  ;;  %v3013_v56 = vrot.slane %v12624_v23, %v12367_v20  ;;  %v837_v57 = vmul.f32 0.2, %v709_v32  ;;  %v836_v58 = vmul.f32 0.2, %v708_v37  ;;  %v2341_v48 = vrot.slane %v12633_v31, %v12364_v19 }
 0x10c   :  { %2903 = vst.msk [vmem:[#allocation2 + $0x38] sm:$0x1] %vm2106_vm2, %v2345_v40  ;;  %v1200_v59 = vrot.slane %v1186_v53, %v12360_v15  ;;  %v1201_v60 = vcombine.high %v1193_v54, %v1193_v54  ;;  %vm772_vm6 = vcmp.gt.f32.partialorder %v708_v37, 0.0  ;;  %v3017_v61 = vrot.slane %v1218_v42, %v12367_v20 }
 0x10d   :  { %v2317_v62 = vrot.slane %v1193_v54, %v12364_v19  ;;  %v2997_v0 = vrot.slane %v1193_v54, %v12367_v20  ;;  %v901_v1 = vsel %vm773_vm4, %v709_v32, %v837_v57  ;;  %v3021_v7 = vrot.slane %v12633_v31, %v12367_v20 }
 0x10e   :  { %v1202_v2 = vcombine.high %v1200_v59, %v1200_v59  ;;  %v2321_v3 = vrot.slane %v1201_v60, %v12364_v19  ;;  %v2325_v4 = vrot.slane %v1200_v59, %v12364_v19  ;;  %v3001_v5 = vrot.slane %v1201_v60, %v12367_v20 }
 0x10f   :  { %v3005_v8 = vrot.slane %v1200_v59, %v12367_v20  ;;  %v1237_v6 = vcombine.high %v901_v1, %v901_v1  ;;  %v900_v11 = vsel %vm772_vm6, %v708_v37, %v836_v58  ;;  %v12689_v22 = vrot.slane %v901_v1, %v12360_v15  ;;  %v11097_v58 = vpop.f32.mrf.mxu0 }
 0x110   :  { %v2329_v13 = vrot.slane %v1202_v2, %v12364_v19  ;;  %v2780_v14 = vsel %vm2762_vm5, %v2321_v3, %v2317_v62  ;;  %v3009_v16 = vrot.slane %v1202_v2, %v12367_v20  ;;  %v3457_v63 = vsel %vm3442_vm14, %v3001_v5, %v2997_v0 }
 0x111   :  { %v2781_v18 = vsel %vm2764_vm7, %v2325_v4, %v2780_v14  ;;  %v3458_v21 = vsel %vm2762_vm5, %v3005_v8, %v3457_v63  ;;  %v12692_v23 = vrot.slane %v1237_v6, %v12360_v15  ;;  %v1220_v26 = vcombine.high %v900_v11, %v900_v11 }
 0x112   :  { %v2782_v24 = vsel %vm2766_vm8, %v2329_v13, %v2781_v18  ;;  %v3459_v25 = vsel %vm2764_vm7, %v3009_v16, %v3458_v21  ;;  %v839_v27 = vmul.f32 0.2, %v12653_v49  ;;  %v5837_v28 = vld [vmem:[#allocation2 + $0x380] sm:$0xff]  ;;  %v710_v30 = vadd.f32 %v12353_v10, %v447_v17 }
 0x113   :  { %v2783_v29 = vsel %vm2768_vm10, %v2333_v38, %v2782_v24  ;;  %v3460_v31 = vsel %vm2766_vm8, %v3013_v56, %v3459_v25  ;;  %v12701_v32 = vcombine.high %v12692_v23, %v12692_v23  ;;  %11286 = vmatprep.mubr.msk.f32.mxu0 %vm2104_vm3, %v5837_v28  ;;  %v3025_v33 = vrot.slane %v12646_v44, %v12367_v20 }
 0x114   :  { %v2784_v34 = vsel %vm2770_vm11, %v2337_v55, %v2783_v29  ;;  %v3461_v35 = vsel %vm2768_vm10, %v3017_v61, %v3460_v31  ;;  %vm775_vm9 = vcmp.gt.f32.partialorder %v12653_v49, 0.0  ;;  %v1252_v39 = vcombine.high %v12689_v22, %v12689_v22 }
 0x115   :  { %v2785_v36 = vsel %vm2772_vm12, %v2341_v48, %v2784_v34  ;;  %v3462_v37 = vsel %vm2770_vm11, %v3021_v7, %v3461_v35  ;;  %v3715_v41 = vrot.slane %v12701_v32, %v12364_v19  ;;  %v3703_v44 = vrot.slane %v12689_v22, %v12364_v19 }
 0x116   :  { %2902 = vst.msk [vmem:[#allocation2 + $0x30] sm:$0xfe] %vm2897_vm13, %v2785_v36  ;;  %v3463_v42 = vsel %vm2772_vm12, %v3025_v33, %v3462_v37  ;;  %v1227_v45 = vrot.slane %v900_v11, %v12360_v15  ;;  %v1234_v46 = vrot.slane %v1220_v26, %v12360_v15  ;;  %v4376_v47 = vrot.slane %v12689_v22, %v12367_v20 }
 0x117   :  { %3574 = vst.msk [vmem:[#allocation2 + $0x150] sm:$0xff] %vm2104_vm3, %v3463_v42  ;;  %v903_v50 = vsel %vm775_vm9, %v12653_v49, %v839_v27  ;;  %vm774_vm15 = vcmp.gt.f32.partialorder %v710_v30, 0.0  ;;  %v838_v51 = vmul.f32 0.2, %v710_v30  ;;  %v3707_v61 = vrot.slane %v1252_v39, %v12364_v19  ;;  %v457_v27 = vpop.f32.mrf.mxu0 }
 0x118   :  { %4236 = vst.msk [vmem:[#allocation2 + $0x278] sm:$0x1] %vm2106_vm2, %v3715_v41  ;;  %v1235_v40 = vcombine.high %v1227_v45, %v1227_v45  ;;  %v1236_v52 = vcombine.high %v1234_v46, %v1234_v46  ;;  %v3687_v38 = vrot.slane %v1227_v45, %v12364_v19  ;;  %v3695_v53 = vrot.slane %v1234_v46, %v12364_v19 }
 0x119   :  { %v4360_v54 = vrot.slane %v1227_v45, %v12367_v20  ;;  %v4368_v55 = vrot.slane %v1234_v46, %v12367_v20  ;;  %v1271_v56 = vcombine.high %v903_v50, %v903_v50  ;;  %v12732_v57 = vrot.slane %v903_v50, %v12360_v15 }
 0x11a   :  { %v3691_v48 = vrot.slane %v1235_v40, %v12364_v19  ;;  %v3699_v49 = vrot.slane %v1236_v52, %v12364_v19  ;;  %v4364_v59 = vrot.slane %v1235_v40, %v12367_v20  ;;  %v4372_v60 = vrot.slane %v1236_v52, %v12367_v20 }
 0x11b   :  { %v3711_v62 = vrot.slane %v12692_v23, %v12364_v19  ;;  %v4380_v0 = vrot.slane %v1252_v39, %v12367_v20  ;;  %v12743_v1 = vrot.slane %v1271_v56, %v12360_v15  ;;  %v4384_v2 = vrot.slane %v12692_v23, %v12367_v20 }
 0x11c   :  { %v4118_v3 = vsel %vm2762_vm5, %v3691_v48, %v3687_v38  ;;  %v4794_v4 = vsel %vm3442_vm14, %v4364_v59, %v4360_v54  ;;  %v713_v5 = vadd.f32 %v11097_v58, %v12353_v10  ;;  %v902_v11 = vsel %vm774_vm15, %v710_v30, %v838_v51 }
 0x11d   :  { %v4119_v7 = vsel %vm2764_vm7, %v3695_v53, %v4118_v3  ;;  %v4795_v8 = vsel %vm2762_vm5, %v4368_v55, %v4794_v4  ;;  %v12754_v6 = vcombine.high %v12743_v1, %v12743_v1  ;;  %v4929_v13 = vld [vmem:[#allocation2 + $0x30] sm:$0xff]  ;;  %v4388_v14 = vrot.slane %v12701_v32, %v12367_v20 }
 0x11e   :  { %v4120_v16 = vsel %vm2766_vm8, %v3699_v49, %v4119_v7  ;;  %v4796_v63 = vsel %vm2764_vm7, %v4372_v60, %v4795_v8  ;;  %v1286_v17 = vcombine.high %v12732_v57, %v12732_v57  ;;  %11175 = vmatmul.mubr.msk.f32.vlgmr.msra.gmra.mxu1 %vm2104_vm3, %v4929_v13  ;;  %v2365_v22 = vrot.slane %v12732_v57, %v12364_v19 }
 0x11f   :  { %v4121_v18 = vsel %vm2768_vm10, %v3703_v44, %v4120_v16  ;;  %v4797_v21 = vsel %vm2766_vm8, %v4376_v47, %v4796_v63  ;;  %v2377_v23 = vrot.slane %v12754_v6, %v12364_v19  ;;  %v1254_v26 = vcombine.high %v902_v11, %v902_v11  ;;  %v11100_v47 = vpop.f32.mrf.mxu0 }
 0x120   :  { %v4122_v24 = vsel %vm2770_vm11, %v3707_v61, %v4121_v18  ;;  %v4798_v25 = vsel %vm2768_vm10, %v4380_v0, %v4797_v21  ;;  %vm777_vm0 = vcmp.gt.f32.partialorder %v713_v5, 0.0  ;;  %v1261_v31 = vrot.slane %v902_v11, %v12360_v15 }
 0x121   :  { %v4123_v28 = vsel %vm2772_vm12, %v3711_v62, %v4122_v24  ;;  %v4799_v29 = vsel %vm2770_vm11, %v4384_v2, %v4798_v25  ;;  %2905 = vst.msk [vmem:[#allocation2 + $0x48] sm:$0x1] %vm2106_vm2, %v2377_v23  ;;  %v841_v32 = vmul.f32 0.2, %v713_v5  ;;  %v2369_v33 = vrot.slane %v1286_v17, %v12364_v19  ;;  %v467_v62 = vpop.f32.mrf.mxu0 }
 0x122   :  { %4235 = vst.msk [vmem:[#allocation2 + $0x270] sm:$0xfe] %vm2897_vm13, %v4123_v28  ;;  %v4800_v30 = vsel %vm2772_vm12, %v4388_v14, %v4799_v29  ;;  %v3045_v34 = vrot.slane %v12732_v57, %v12367_v20  ;;  %v1268_v35 = vrot.slane %v1254_v26, %v12360_v15  ;;  %v2373_v36 = vrot.slane %v12743_v1, %v12364_v19 }
 0x123   :  { %4905 = vst.msk [vmem:[#allocation2 + $0x390] sm:$0xff] %vm2104_vm3, %v4800_v30  ;;  %v1269_v37 = vcombine.high %v1261_v31, %v1261_v31  ;;  %v905_v39 = vsel %vm777_vm0, %v713_v5, %v841_v32  ;;  %v712_v41 = vadd.f32 %v12353_v10, %v457_v27  ;;  %v2349_v50 = vrot.slane %v1261_v31, %v12364_v19  ;;  %v11103_v21 = vpop.f32.mrf.mxu0 }
 0x124   :  { %v1270_v42 = vcombine.high %v1268_v35, %v1268_v35  ;;  %v2357_v44 = vrot.slane %v1268_v35, %v12364_v19  ;;  %v3037_v45 = vrot.slane %v1268_v35, %v12367_v20  ;;  %v1305_v46 = vcombine.high %v905_v39, %v905_v39 }
 0x125   :  { %v2353_v51 = vrot.slane %v1269_v37, %v12364_v19  ;;  %v3029_v40 = vrot.slane %v1261_v31, %v12367_v20  ;;  %v3033_v52 = vrot.slane %v1269_v37, %v12367_v20  ;;  %v12795_v54 = vrot.slane %v905_v39, %v12360_v15  ;;  %v477_v37 = vpop.f32.mrf.mxu0 }
 0x126   :  { %v2361_v38 = vrot.slane %v1270_v42, %v12364_v19  ;;  %v3041_v53 = vrot.slane %v1270_v42, %v12367_v20  ;;  %v12798_v55 = vrot.slane %v1305_v46, %v12360_v15  ;;  %v3049_v56 = vrot.slane %v1286_v17, %v12367_v20 }
 0x127   :  { %v2786_v57 = vsel %vm2762_vm5, %v2353_v51, %v2349_v50  ;;  %v3464_v58 = vsel %vm3442_vm14, %v3033_v52, %v3029_v40  ;;  %v715_v48 = vadd.f32 %v11100_v47, %v12353_v10  ;;  %v840_v61 = vmul.f32 0.2, %v712_v41 }
 0x128   :  { %v2787_v49 = vsel %vm2764_vm7, %v2357_v44, %v2786_v57  ;;  %v3465_v59 = vsel %vm2762_vm5, %v3037_v45, %v3464_v58  ;;  %v12808_v60 = vcombine.high %v12798_v55, %v12798_v55  ;;  %v3053_v0 = vrot.slane %v12743_v1, %v12367_v20 }
 0x129   :  { %v2788_v2 = vsel %vm2766_vm8, %v2361_v38, %v2787_v49  ;;  %v3466_v3 = vsel %vm2764_vm7, %v3041_v53, %v3465_v59  ;;  %vm776_vm1 = vcmp.gt.f32.partialorder %v712_v41, 0.0  ;;  %v12818_v7 = vcombine.high %v12795_v54, %v12795_v54 }
 0x12a   :  { %v2789_v4 = vsel %vm2768_vm10, %v2365_v22, %v2788_v2  ;;  %v3467_v5 = vsel %vm2766_vm8, %v3045_v34, %v3466_v3  ;;  %v3747_v8 = vrot.slane %v12808_v60, %v12364_v19  ;;  %v5838_v11 = vld [vmem:[#allocation2 + $0x390] sm:$0xff]  ;;  %v3057_v1 = vrot.slane %v12754_v6, %v12367_v20 }
 0x12b   :  { %v2790_v13 = vsel %vm2770_vm11, %v2369_v33, %v2789_v4  ;;  %v3468_v14 = vsel %vm2768_vm10, %v3049_v56, %v3467_v5  ;;  %v3735_v16 = vrot.slane %v12795_v54, %v12364_v19  ;;  %11287 = vmatmul.mubr.msk.f32.gmra.mxu0 %vm2104_vm3, %v5838_v11  ;;  %v904_v18 = vsel %vm776_vm1, %v712_v41, %v840_v61  ;;  %v11106_v56 = vpop.f32.mrf.mxu0  ;;  %v12887_v5 = vld [vmem:[%s15692_s2] ss:$0 sm:$0xff] }
 0x12c   :  { %v2791_v63 = vsel %vm2772_vm12, %v2373_v36, %v2790_v13  ;;  %v3469_v17 = vsel %vm2770_vm11, %v3053_v0, %v3468_v14  ;;  %4238 = vst.msk [vmem:[#allocation2 + $0x288] sm:$0x1] %vm2106_vm2, %v3747_v8  ;;  %vm779_vm4 = vcmp.gt.f32.partialorder %v715_v48, 0.0  ;;  %v1288_v22 = vcombine.high %v904_v18, %v904_v18 }
 0x12d   :  { %2904 = vst.msk [vmem:[#allocation2 + $0x40] sm:$0xfe] %vm2897_vm13, %v2791_v63  ;;  %v3470_v6 = vsel %vm2772_vm12, %v3057_v1, %v3469_v17  ;;  %v1295_v23 = vrot.slane %v904_v18, %v12360_v15  ;;  %v843_v24 = vmul.f32 0.2, %v715_v48  ;;  %v3739_v25 = vrot.slane %v12818_v7, %v12364_v19 }
 0x12e   :  { %3575 = vst.msk [vmem:[#allocation2 + $0x160] sm:$0xff] %vm2104_vm3, %v3470_v6  ;;  %v3743_v26 = vrot.slane %v12798_v55, %v12364_v19  ;;  %v4408_v27 = vrot.slane %v12795_v54, %v12367_v20  ;;  %v714_v28 = vadd.f32 %v12353_v10, %v467_v62  ;;  %v4412_v29 = vrot.slane %v12818_v7, %v12367_v20 }
 0x12f   :  { %v4416_v31 = vrot.slane %v12798_v55, %v12367_v20  ;;  %v1302_v32 = vrot.slane %v1288_v22, %v12360_v15  ;;  %v1303_v30 = vcombine.high %v1295_v23, %v1295_v23  ;;  %v3719_v33 = vrot.slane %v1295_v23, %v12364_v19 }
 0x130   :  { %v4392_v34 = vrot.slane %v1295_v23, %v12367_v20  ;;  %v907_v35 = vsel %vm779_vm4, %v715_v48, %v843_v24  ;;  %v842_v36 = vmul.f32 0.2, %v714_v28  ;;  %vm778_vm6 = vcmp.gt.f32.partialorder %v714_v28, 0.0 }
 0x131   :  { %v1304_v39 = vcombine.high %v1302_v32, %v1302_v32  ;;  %v3723_v41 = vrot.slane %v1303_v30, %v12364_v19  ;;  %v3727_v42 = vrot.slane %v1302_v32, %v12364_v19  ;;  %v4396_v44 = vrot.slane %v1303_v30, %v12367_v20 }
 0x132   :  { %v4400_v45 = vrot.slane %v1302_v32, %v12367_v20  ;;  %v1339_v46 = vcombine.high %v907_v35, %v907_v35  ;;  %v12856_v47 = vrot.slane %v907_v35, %v12360_v15  ;;  %v717_v55 = vadd.f32 %v11103_v21, %v12353_v10 }
 0x133   :  { %v3731_v50 = vrot.slane %v1304_v39, %v12364_v19  ;;  %v4124_v51 = vsel %vm2762_vm5, %v3723_v41, %v3719_v33  ;;  %v4404_v40 = vrot.slane %v1304_v39, %v12367_v20  ;;  %v4801_v52 = vsel %vm3442_vm14, %v4396_v44, %v4392_v34 }
 0x134   :  { %v4125_v38 = vsel %vm2764_vm7, %v3727_v42, %v4124_v51  ;;  %v4802_v53 = vsel %vm2762_vm5, %v4400_v45, %v4801_v52  ;;  %v12865_v54 = vrot.slane %v1339_v46, %v12360_v15  ;;  %v4930_v57 = vld [vmem:[#allocation2 + $0x40] sm:$0xff]  ;;  %v906_v49 = vsel %vm778_vm6, %v714_v28, %v842_v36  ;;  %v487_v42 = vpop.f32.mrf.mxu0 }
 0x135   :  { %v4126_v58 = vsel %vm2766_vm8, %v3731_v50, %v4125_v38  ;;  %v4803_v48 = vsel %vm2764_vm7, %v4404_v40, %v4802_v53  ;;  %v716_v59 = vadd.f32 %v12353_v10, %v477_v37  ;;  %11177 = vmatprep.mubr.msk.f32.mxu1 %vm2104_vm3, %v4930_v57  ;;  %v1354_v0 = vcombine.high %v12856_v47, %v12856_v47 }
 0x136   :  { %v4127_v61 = vsel %vm2768_vm10, %v3735_v16, %v4126_v58  ;;  %v4804_v62 = vsel %vm2766_vm8, %v4408_v27, %v4803_v48  ;;  %v12878_v2 = vcombine.high %v12865_v54, %v12865_v54  ;;  %v4420_v3 = vrot.slane %v12808_v60, %v12367_v20 }
 0x137   :  { %v4128_v4 = vsel %vm2770_vm11, %v3739_v25, %v4127_v61  ;;  %v4805_v10 = vsel %vm2768_vm10, %v4412_v29, %v4804_v62  ;;  %v12890_v7 = vadd.f32 %v12887_v5, %v11106_v56  ;;  %vm781_vm9 = vcmp.gt.f32.partialorder %v717_v55, 0.0 }
 0x138   :  { %v4129_v8 = vsel %vm2772_vm12, %v3743_v26, %v4128_v4  ;;  %v4806_v11 = vsel %vm2770_vm11, %v4416_v31, %v4805_v10  ;;  %v2409_v1 = vrot.slane %v12878_v2, %v12364_v19  ;;  %v2397_v13 = vrot.slane %v12856_v47, %v12364_v19 }
 0x139   :  { %4237 = vst.msk [vmem:[#allocation2 + $0x280] sm:$0xfe] %vm2897_vm13, %v4129_v8  ;;  %v4807_v60 = vsel %vm2772_vm12, %v4420_v3, %v4806_v11  ;;  %v1322_v14 = vcombine.high %v906_v49, %v906_v49  ;;  %v1329_v16 = vrot.slane %v906_v49, %v12360_v15  ;;  %v2401_v63 = vrot.slane %v1354_v0, %v12364_v19 }
 0x13a   :  { %4906 = vst.msk [vmem:[#allocation2 + $0x3a0] sm:$0xff] %vm2104_vm3, %v4807_v60  ;;  %v3077_v17 = vrot.slane %v12856_v47, %v12367_v20  ;;  %v845_v18 = vmul.f32 0.2, %v717_v55  ;;  %v844_v21 = vmul.f32 0.2, %v716_v59  ;;  %v2405_v6 = vrot.slane %v12865_v54, %v12364_v19 }
 0x13b   :  { %2907 = vst.msk [vmem:[#allocation2 + $0x58] sm:$0x1] %vm2106_vm2, %v2409_v1  ;;  %v1336_v22 = vrot.slane %v1322_v14, %v12360_v15  ;;  %v1337_v23 = vcombine.high %v1329_v16, %v1329_v16  ;;  %vm780_vm15 = vcmp.gt.f32.partialorder %v716_v59, 0.0  ;;  %v3081_v24 = vrot.slane %v1354_v0, %v12367_v20 }
 0x13c   :  { %v2381_v25 = vrot.slane %v1329_v16, %v12364_v19  ;;  %v3061_v26 = vrot.slane %v1329_v16, %v12367_v20  ;;  %v909_v27 = vsel %vm781_vm9, %v717_v55, %v845_v18  ;;  %v3085_v30 = vrot.slane %v12865_v54, %v12367_v20 }
 0x13d   :  { %v1338_v28 = vcombine.high %v1336_v22, %v1336_v22  ;;  %v2385_v29 = vrot.slane %v1337_v23, %v12364_v19  ;;  %v2389_v31 = vrot.slane %v1336_v22, %v12364_v19  ;;  %v3065_v32 = vrot.slane %v1337_v23, %v12367_v20 }
 0x13e   :  { %v3069_v33 = vrot.slane %v1336_v22, %v12367_v20  ;;  %v1373_v34 = vcombine.high %v909_v27, %v909_v27  ;;  %v908_v35 = vsel %vm780_vm15, %v716_v59, %v844_v21  ;;  %v12926_v46 = vrot.slane %v909_v27, %v12360_v15  ;;  %v11109_v21 = vpop.f32.mrf.mxu0 }
 0x13f   :  { %v2393_v36 = vrot.slane %v1338_v28, %v12364_v19  ;;  %v2792_v37 = vsel %vm2762_vm5, %v2385_v29, %v2381_v25  ;;  %v3073_v39 = vrot.slane %v1338_v28, %v12367_v20  ;;  %v3471_v41 = vsel %vm3442_vm14, %v3065_v32, %v3061_v26 }
 0x140   :  { %v2793_v44 = vsel %vm2764_vm7, %v2389_v31, %v2792_v37  ;;  %v3472_v45 = vsel %vm2762_vm5, %v3069_v33, %v3471_v41  ;;  %v12929_v47 = vrot.slane %v1373_v34, %v12360_v15  ;;  %v1356_v40 = vcombine.high %v908_v35, %v908_v35 }
 0x141   :  { %v2794_v50 = vsel %vm2766_vm8, %v2393_v36, %v2793_v44  ;;  %v3473_v51 = vsel %vm2764_vm7, %v3073_v39, %v3472_v45  ;;  %v847_v52 = vmul.f32 0.2, %v12890_v7  ;;  %v5839_v38 = vld [vmem:[#allocation2 + $0x3a0] sm:$0xff]  ;;  %v718_v56 = vadd.f32 %v12887_v5, %v487_v42 }
 0x142   :  { %v2795_v53 = vsel %vm2768_vm10, %v2397_v13, %v2794_v50  ;;  %v3474_v54 = vsel %vm2766_vm8, %v3077_v17, %v3473_v51  ;;  %v12938_v55 = vcombine.high %v12929_v47, %v12929_v47  ;;  %11289 = vmatprep.mubr.msk.f32.mxu0 %vm2104_vm3, %v5839_v38  ;;  %v3089_v57 = vrot.slane %v12878_v2, %v12367_v20 }
 0x143   :  { %v2796_v58 = vsel %vm2770_vm11, %v2401_v63, %v2795_v53  ;;  %v3475_v48 = vsel %vm2768_vm10, %v3081_v24, %v3474_v54  ;;  %vm783_vm0 = vcmp.gt.f32.partialorder %v12890_v7, 0.0  ;;  %v1388_v61 = vcombine.high %v12926_v46, %v12926_v46 }
 0x144   :  { %v2797_v49 = vsel %vm2772_vm12, %v2405_v6, %v2796_v58  ;;  %v3476_v59 = vsel %vm2770_vm11, %v3085_v30, %v3475_v48  ;;  %v3779_v62 = vrot.slane %v12938_v55, %v12364_v19  ;;  %v3767_v2 = vrot.slane %v12926_v46, %v12364_v19 }
 0x145   :  { %2906 = vst.msk [vmem:[#allocation2 + $0x50] sm:$0xfe] %vm2897_vm13, %v2797_v49  ;;  %v3477_v0 = vsel %vm2772_vm12, %v3089_v57, %v3476_v59  ;;  %v1363_v3 = vrot.slane %v908_v35, %v12360_v15  ;;  %v1370_v4 = vrot.slane %v1356_v40, %v12360_v15  ;;  %v4440_v10 = vrot.slane %v12926_v46, %v12367_v20 }
 0x146   :  { %3576 = vst.msk [vmem:[#allocation2 + $0x170] sm:$0xff] %vm2104_vm3, %v3477_v0  ;;  %v911_v8 = vsel %vm783_vm0, %v12890_v7, %v847_v52  ;;  %vm782_vm1 = vcmp.gt.f32.partialorder %v718_v56, 0.0  ;;  %v846_v11 = vmul.f32 0.2, %v718_v56  ;;  %v3771_v24 = vrot.slane %v1388_v61, %v12364_v19  ;;  %v497_v52 = vpop.f32.mrf.mxu0 }
 0x147   :  { %4240 = vst.msk [vmem:[#allocation2 + $0x298] sm:$0x1] %vm2106_vm2, %v3779_v62  ;;  %v1371_v1 = vcombine.high %v1363_v3, %v1363_v3  ;;  %v1372_v60 = vcombine.high %v1370_v4, %v1370_v4  ;;  %v3751_v13 = vrot.slane %v1363_v3, %v12364_v19  ;;  %v3759_v14 = vrot.slane %v1370_v4, %v12364_v19 }
 0x148   :  { %v4424_v16 = vrot.slane %v1363_v3, %v12367_v20  ;;  %v4432_v63 = vrot.slane %v1370_v4, %v12367_v20  ;;  %v1407_v17 = vcombine.high %v911_v8, %v911_v8  ;;  %v12969_v18 = vrot.slane %v911_v8, %v12360_v15 }
 0x149   :  { %v3755_v6 = vrot.slane %v1371_v1, %v12364_v19  ;;  %v3763_v7 = vrot.slane %v1372_v60, %v12364_v19  ;;  %v4428_v22 = vrot.slane %v1371_v1, %v12367_v20  ;;  %v4436_v23 = vrot.slane %v1372_v60, %v12367_v20 }
 0x14a   :  { %v3775_v25 = vrot.slane %v12929_v47, %v12364_v19  ;;  %v4444_v26 = vrot.slane %v1388_v61, %v12367_v20  ;;  %v12980_v27 = vrot.slane %v1407_v17, %v12360_v15  ;;  %v4448_v28 = vrot.slane %v12929_v47, %v12367_v20 }
 0x14b   :  { %v4130_v29 = vsel %vm2762_vm5, %v3755_v6, %v3751_v13  ;;  %v4808_v31 = vsel %vm3442_vm14, %v4428_v22, %v4424_v16  ;;  %v721_v32 = vadd.f32 %v12887_v5, %v11109_v21  ;;  %v910_v35 = vsel %vm782_vm1, %v718_v56, %v846_v11 }
 0x14c   :  { %v4131_v30 = vsel %vm2764_vm7, %v3759_v14, %v4130_v29  ;;  %v4809_v33 = vsel %vm2762_vm5, %v4432_v63, %v4808_v31  ;;  %v12991_v34 = vcombine.high %v12980_v27, %v12980_v27  ;;  %v4931_v36 = vld [vmem:[#allocation2 + $0x50] sm:$0xff]  ;;  %v4452_v37 = vrot.slane %v12938_v55, %v12367_v20 }
 0x14d   :  { %v4132_v39 = vsel %vm2766_vm8, %v3763_v7, %v4131_v30  ;;  %v4810_v41 = vsel %vm2764_vm7, %v4436_v23, %v4809_v33  ;;  %v1422_v42 = vcombine.high %v12969_v18, %v12969_v18  ;;  %11178 = vmatmul.mubr.msk.f32.gmra.mxu1 %vm2104_vm3, %v4931_v36  ;;  %v2429_v46 = vrot.slane %v12969_v18, %v12364_v19 }
 0x14e   :  { %v4133_v44 = vsel %vm2768_vm10, %v3767_v2, %v4132_v39  ;;  %v4811_v45 = vsel %vm2766_vm8, %v4440_v10, %v4810_v41  ;;  %v2441_v47 = vrot.slane %v12991_v34, %v12364_v19  ;;  %v1390_v40 = vcombine.high %v910_v35, %v910_v35  ;;  %v11112_v10 = vpop.f32.mrf.mxu0 }
 0x14f   :  { %v4134_v50 = vsel %vm2770_vm11, %v3771_v24, %v4133_v44  ;;  %v4812_v51 = vsel %vm2768_vm10, %v4444_v26, %v4811_v45  ;;  %vm785_vm4 = vcmp.gt.f32.partialorder %v721_v32, 0.0  ;;  %v1397_v54 = vrot.slane %v910_v35, %v12360_v15 }
 0x150   :  { %v4135_v38 = vsel %vm2772_vm12, %v3775_v25, %v4134_v50  ;;  %v4813_v53 = vsel %vm2770_vm11, %v4448_v28, %v4812_v51  ;;  %2909 = vst.msk [vmem:[#allocation2 + $0x68] sm:$0x1] %vm2106_vm2, %v2441_v47  ;;  %v849_v55 = vmul.f32 0.2, %v721_v32  ;;  %v2433_v57 = vrot.slane %v1422_v42, %v12364_v19  ;;  %v507_v25 = vpop.f32.mrf.mxu0 }
 0x151   :  { %4239 = vst.msk [vmem:[#allocation2 + $0x290] sm:$0xfe] %vm2897_vm13, %v4135_v38  ;;  %v4814_v56 = vsel %vm2772_vm12, %v4452_v37, %v4813_v53  ;;  %v3109_v58 = vrot.slane %v12969_v18, %v12367_v20  ;;  %v1404_v48 = vrot.slane %v1390_v40, %v12360_v15  ;;  %v2437_v49 = vrot.slane %v12980_v27, %v12364_v19 }
 0x152   :  { %4907 = vst.msk [vmem:[#allocation2 + $0x3b0] sm:$0xff] %vm2104_vm3, %v4814_v56  ;;  %v1405_v59 = vcombine.high %v1397_v54, %v1397_v54  ;;  %v913_v61 = vsel %vm785_vm4, %v721_v32, %v849_v55  ;;  %v720_v62 = vadd.f32 %v12887_v5, %v497_v52  ;;  %v2413_v8 = vrot.slane %v1397_v54, %v12364_v19  ;;  %v11115_v45 = vpop.f32.mrf.mxu0 }
 0x153   :  { %v1406_v0 = vcombine.high %v1404_v48, %v1404_v48  ;;  %v2421_v2 = vrot.slane %v1404_v48, %v12364_v19  ;;  %v3101_v3 = vrot.slane %v1404_v48, %v12367_v20  ;;  %v1441_v4 = vcombine.high %v913_v61, %v913_v61 }
 0x154   :  { %v2417_v11 = vrot.slane %v1405_v59, %v12364_v19  ;;  %v3093_v1 = vrot.slane %v1397_v54, %v12367_v20  ;;  %v3097_v60 = vrot.slane %v1405_v59, %v12367_v20  ;;  %v13032_v16 = vrot.slane %v913_v61, %v12360_v15  ;;  %v517_v59 = vpop.f32.mrf.mxu0 }
 0x155   :  { %v2425_v13 = vrot.slane %v1406_v0, %v12364_v19  ;;  %v3105_v14 = vrot.slane %v1406_v0, %v12367_v20  ;;  %v13035_v63 = vrot.slane %v1441_v4, %v12360_v15  ;;  %v3113_v17 = vrot.slane %v1422_v42, %v12367_v20 }
 0x156   :  { %v2798_v18 = vsel %vm2762_vm5, %v2417_v11, %v2413_v8  ;;  %v3478_v21 = vsel %vm3442_vm14, %v3097_v60, %v3093_v1  ;;  %v723_v6 = vadd.f32 %v12887_v5, %v11112_v10  ;;  %v848_v24 = vmul.f32 0.2, %v720_v62 }
 0x157   :  { %v2799_v7 = vsel %vm2764_vm7, %v2421_v2, %v2798_v18  ;;  %v3479_v22 = vsel %vm2762_vm5, %v3101_v3, %v3478_v21  ;;  %v13045_v23 = vcombine.high %v13035_v63, %v13035_v63  ;;  %v3117_v26 = vrot.slane %v12980_v27, %v12367_v20 }
 0x158   :  { %v2800_v28 = vsel %vm2766_vm8, %v2425_v13, %v2799_v7  ;;  %v3480_v29 = vsel %vm2764_vm7, %v3105_v14, %v3479_v22  ;;  %vm784_vm6 = vcmp.gt.f32.partialorder %v720_v62, 0.0  ;;  %v13055_v30 = vcombine.high %v13032_v16, %v13032_v16 }
 0x159   :  { %v2801_v31 = vsel %vm2768_vm10, %v2429_v46, %v2800_v28  ;;  %v3481_v32 = vsel %vm2766_vm8, %v3109_v58, %v3480_v29  ;;  %v3811_v33 = vrot.slane %v13045_v23, %v12364_v19  ;;  %v5840_v35 = vld [vmem:[#allocation2 + $0x3b0] sm:$0xff]  ;;  %v3121_v27 = vrot.slane %v12991_v34, %v12367_v20 }
 0x15a   :  { %v2802_v36 = vsel %vm2770_vm11, %v2433_v57, %v2801_v31  ;;  %v3482_v37 = vsel %vm2768_vm10, %v3113_v17, %v3481_v32  ;;  %v3799_v39 = vrot.slane %v13032_v16, %v12364_v19  ;;  %11290 = vmatmul.mubr.msk.f32.gmra.mxu0 %vm2104_vm3, %v5840_v35  ;;  %v912_v44 = vsel %vm784_vm6, %v720_v62, %v848_v24  ;;  %v11118_v17 = vpop.f32.mrf.mxu0 }
 0x15b   :  { %v2803_v41 = vsel %vm2772_vm12, %v2437_v49, %v2802_v36  ;;  %v3483_v42 = vsel %vm2770_vm11, %v3117_v26, %v3482_v37  ;;  %4242 = vst.msk [vmem:[#allocation2 + $0x2a8] sm:$0x1] %vm2106_vm2, %v3811_v33  ;;  %vm787_vm9 = vcmp.gt.f32.partialorder %v723_v6, 0.0  ;;  %v1424_v46 = vcombine.high %v912_v44, %v912_v44 }
 0x15c   :  { %2908 = vst.msk [vmem:[#allocation2 + $0x60] sm:$0xfe] %vm2897_vm13, %v2803_v41  ;;  %v3484_v34 = vsel %vm2772_vm12, %v3121_v27, %v3483_v42  ;;  %v1431_v47 = vrot.slane %v912_v44, %v12360_v15  ;;  %v851_v50 = vmul.f32 0.2, %v723_v6  ;;  %v3803_v51 = vrot.slane %v13055_v30, %v12364_v19 }
 0x15d   :  { %3577 = vst.msk [vmem:[#allocation2 + $0x180] sm:$0xff] %vm2104_vm3, %v3484_v34  ;;  %v3807_v40 = vrot.slane %v13035_v63, %v12364_v19  ;;  %v4472_v52 = vrot.slane %v13032_v16, %v12367_v20  ;;  %v722_v38 = vadd.f32 %v12887_v5, %v507_v25  ;;  %v4476_v53 = vrot.slane %v13055_v30, %v12367_v20 }
 0x15e   :  { %v4480_v54 = vrot.slane %v13035_v63, %v12367_v20  ;;  %v1438_v55 = vrot.slane %v1424_v46, %v12360_v15  ;;  %v1439_v56 = vcombine.high %v1431_v47, %v1431_v47  ;;  %v3783_v57 = vrot.slane %v1431_v47, %v12364_v19 }
 0x15f   :  { %v4456_v58 = vrot.slane %v1431_v47, %v12367_v20  ;;  %v915_v48 = vsel %vm787_vm9, %v723_v6, %v851_v50  ;;  %v850_v49 = vmul.f32 0.2, %v722_v38  ;;  %vm786_vm15 = vcmp.gt.f32.partialorder %v722_v38, 0.0 }
 0x160   :  { %v1440_v61 = vcombine.high %v1438_v55, %v1438_v55  ;;  %v3787_v62 = vrot.slane %v1439_v56, %v12364_v19  ;;  %v3791_v0 = vrot.slane %v1438_v55, %v12364_v19  ;;  %v4460_v2 = vrot.slane %v1439_v56, %v12367_v20 }
 0x161   :  { %v4464_v3 = vrot.slane %v1438_v55, %v12367_v20  ;;  %v1475_v4 = vcombine.high %v915_v48, %v915_v48  ;;  %v13093_v10 = vrot.slane %v915_v48, %v12360_v15  ;;  %v725_v63 = vadd.f32 %v12887_v5, %v11115_v45 }
 0x162   :  { %v3795_v8 = vrot.slane %v1440_v61, %v12364_v19  ;;  %v4136_v11 = vsel %vm2762_vm5, %v3787_v62, %v3783_v57  ;;  %v4468_v1 = vrot.slane %v1440_v61, %v12367_v20  ;;  %v4815_v60 = vsel %vm3442_vm14, %v4460_v2, %v4456_v58 }
 0x163   :  { %v4137_v13 = vsel %vm2764_vm7, %v3791_v0, %v4136_v11  ;;  %v4816_v14 = vsel %vm2762_vm5, %v4464_v3, %v4815_v60  ;;  %v13102_v16 = vrot.slane %v1475_v4, %v12360_v15  ;;  %v4932_v18 = vld [vmem:[#allocation2 + $0x60] sm:$0xff]  ;;  %v914_v7 = vsel %vm786_vm15, %v722_v38, %v850_v49  ;;  %v527_v0 = vpop.f32.mrf.mxu0 }
 0x164   :  { %v4138_v21 = vsel %vm2766_vm8, %v3795_v8, %v4137_v13  ;;  %v4817_v6 = vsel %vm2764_vm7, %v4468_v1, %v4816_v14  ;;  %v724_v22 = vadd.f32 %v12887_v5, %v517_v59  ;;  %11180 = vmatprep.mubr.msk.f32.mxu1 %vm2104_vm3, %v4932_v18  ;;  %v1490_v26 = vcombine.high %v13093_v10, %v13093_v10 }
 0x165   :  { %v4139_v24 = vsel %vm2768_vm10, %v3799_v39, %v4138_v21  ;;  %v4818_v25 = vsel %vm2766_vm8, %v4472_v52, %v4817_v6  ;;  %v13115_v28 = vcombine.high %v13102_v16, %v13102_v16  ;;  %v4484_v29 = vrot.slane %v13045_v23, %v12367_v20 }
 0x166   :  { %v4140_v31 = vsel %vm2770_vm11, %v3803_v51, %v4139_v24  ;;  %v4819_v32 = vsel %vm2768_vm10, %v4476_v53, %v4818_v25  ;;  %v13122_v30 = vadd.f32 %v12887_v5, %v11118_v17  ;;  %vm789_vm0 = vcmp.gt.f32.partialorder %v725_v63, 0.0 }
 0x167   :  { %v4141_v33 = vsel %vm2772_vm12, %v3807_v40, %v4140_v31  ;;  %v4820_v35 = vsel %vm2770_vm11, %v4480_v54, %v4819_v32  ;;  %v2473_v27 = vrot.slane %v13115_v28, %v12364_v19  ;;  %v2461_v23 = vrot.slane %v13093_v10, %v12364_v19 }
 0x168   :  { %4241 = vst.msk [vmem:[#allocation2 + $0x2a0] sm:$0xfe] %vm2897_vm13, %v4141_v33  ;;  %v4821_v36 = vsel %vm2772_vm12, %v4484_v29, %v4820_v35  ;;  %v1458_v37 = vcombine.high %v914_v7, %v914_v7  ;;  %v1465_v39 = vrot.slane %v914_v7, %v12360_v15  ;;  %v2465_v41 = vrot.slane %v1490_v26, %v12364_v19 }
 0x169   :  { %4908 = vst.msk [vmem:[#allocation2 + $0x3c0] sm:$0xff] %vm2104_vm3, %v4821_v36  ;;  %v3141_v42 = vrot.slane %v13093_v10, %v12367_v20  ;;  %v853_v44 = vmul.f32 0.2, %v725_v63  ;;  %v852_v45 = vmul.f32 0.2, %v724_v22  ;;  %v2469_v34 = vrot.slane %v13102_v16, %v12364_v19 }
 0x16a   :  { %2911 = vst.msk [vmem:[#allocation2 + $0x78] sm:$0x1] %vm2106_vm2, %v2473_v27  ;;  %v1472_v46 = vrot.slane %v1458_v37, %v12360_v15  ;;  %v1473_v47 = vcombine.high %v1465_v39, %v1465_v39  ;;  %vm788_vm1 = vcmp.gt.f32.partialorder %v724_v22, 0.0  ;;  %v3145_v50 = vrot.slane %v1490_v26, %v12367_v20 }
 0x16b   :  { %v2445_v51 = vrot.slane %v1465_v39, %v12364_v19  ;;  %v3125_v40 = vrot.slane %v1465_v39, %v12367_v20  ;;  %v917_v52 = vsel %vm789_vm0, %v725_v63, %v853_v44  ;;  %v3149_v56 = vrot.slane %v13102_v16, %v12367_v20 }
 0x16c   :  { %v1474_v38 = vcombine.high %v1472_v46, %v1472_v46  ;;  %v2449_v53 = vrot.slane %v1473_v47, %v12364_v19  ;;  %v2453_v54 = vrot.slane %v1472_v46, %v12364_v19  ;;  %v3129_v55 = vrot.slane %v1473_v47, %v12367_v20 }
 0x16d   :  { %v3133_v57 = vrot.slane %v1472_v46, %v12367_v20  ;;  %v1509_v58 = vcombine.high %v917_v52, %v917_v52  ;;  %v916_v48 = vsel %vm788_vm1, %v724_v22, %v852_v45  ;;  %v13158_v4 = vrot.slane %v917_v52, %v12360_v15  ;;  %v11121_v45 = vpop.f32.mrf.mxu0 }
 0x16e   :  { %v2457_v49 = vrot.slane %v1474_v38, %v12364_v19  ;;  %v2804_v59 = vsel %vm2762_vm5, %v2449_v53, %v2445_v51  ;;  %v3137_v61 = vrot.slane %v1474_v38, %v12367_v20  ;;  %v3485_v62 = vsel %vm3442_vm14, %v3129_v55, %v3125_v40 }
 0x16f   :  { %v2805_v2 = vsel %vm2764_vm7, %v2453_v54, %v2804_v59  ;;  %v3486_v3 = vsel %vm2762_vm5, %v3133_v57, %v3485_v62  ;;  %v13161_v10 = vrot.slane %v1509_v58, %v12360_v15  ;;  %v1492_v1 = vcombine.high %v916_v48, %v916_v48 }
 0x170   :  { %v2806_v8 = vsel %vm2766_vm8, %v2457_v49, %v2805_v2  ;;  %v3487_v11 = vsel %vm2764_vm7, %v3137_v61, %v3486_v3  ;;  %v855_v60 = vmul.f32 0.2, %v13122_v30  ;;  %v5841_v13 = vld [vmem:[#allocation2 + $0x3c0] sm:$0xff]  ;;  %v726_v17 = vadd.f32 %v12887_v5, %v527_v0 }
 0x171   :  { %v2807_v14 = vsel %vm2768_vm10, %v2461_v23, %v2806_v8  ;;  %v3488_v16 = vsel %vm2766_vm8, %v3141_v42, %v3487_v11  ;;  %v13170_v63 = vcombine.high %v13161_v10, %v13161_v10  ;;  %11292 = vmatprep.mubr.msk.f32.mxu0 %vm2104_vm3, %v5841_v13  ;;  %v3153_v18 = vrot.slane %v13115_v28, %v12367_v20  ;;  %v537_v13 = vpop.f32.mrf.mxu0 }
 0x172   :  { %v2808_v21 = vsel %vm2770_vm11, %v2465_v41, %v2807_v14  ;;  %v3489_v6 = vsel %vm2768_vm10, %v3145_v50, %v3488_v16  ;;  %vm791_vm4 = vcmp.gt.f32.partialorder %v13122_v30, 0.0  ;;  %v1524_v24 = vcombine.high %v13158_v4, %v13158_v4 }
 0x173   :  { %v2809_v7 = vsel %vm2772_vm12, %v2469_v34, %v2808_v21  ;;  %v3490_v22 = vsel %vm2770_vm11, %v3149_v56, %v3489_v6  ;;  %v3843_v25 = vrot.slane %v13170_v63, %v12364_v19  ;;  %v3831_v28 = vrot.slane %v13158_v4, %v12364_v19  ;;  %v4934_v56 = vld [vmem:[#allocation2 + $0x90] sm:$0xff] }
 0x174   :  { %2910 = vst.msk [vmem:[#allocation2 + $0x70] sm:$0xfe] %vm2897_vm13, %v2809_v7  ;;  %v3491_v26 = vsel %vm2772_vm12, %v3153_v18, %v3490_v22  ;;  %v1499_v29 = vrot.slane %v916_v48, %v12360_v15  ;;  %v1506_v31 = vrot.slane %v1492_v1, %v12360_v15  ;;  %v4504_v32 = vrot.slane %v13158_v4, %v12367_v20 }
 0x175   :  { %3578 = vst.msk [vmem:[#allocation2 + $0x190] sm:$0xff] %vm2104_vm3, %v3491_v26  ;;  %v919_v33 = vsel %vm791_vm4, %v13122_v30, %v855_v60  ;;  %vm790_vm6 = vcmp.gt.f32.partialorder %v726_v17, 0.0  ;;  %v854_v35 = vmul.f32 0.2, %v726_v17  ;;  %v3835_v50 = vrot.slane %v1524_v24, %v12364_v19 }
 0x176   :  { %4244 = vst.msk [vmem:[#allocation2 + $0x2b8] sm:$0x1] %vm2106_vm2, %v3843_v25  ;;  %v1507_v27 = vcombine.high %v1499_v29, %v1499_v29  ;;  %v1508_v36 = vcombine.high %v1506_v31, %v1506_v31  ;;  %v3815_v23 = vrot.slane %v1499_v29, %v12364_v19  ;;  %v3823_v37 = vrot.slane %v1506_v31, %v12364_v19 }
 0x177   :  { %v4488_v39 = vrot.slane %v1499_v29, %v12367_v20  ;;  %v4496_v41 = vrot.slane %v1506_v31, %v12367_v20  ;;  %v1543_v42 = vcombine.high %v919_v33, %v919_v33  ;;  %v13201_v44 = vrot.slane %v919_v33, %v12360_v15  ;;  %v11124_v33 = vpop.f32.mrf.mxu0 }
 0x178   :  { %v3819_v34 = vrot.slane %v1507_v27, %v12364_v19  ;;  %v3827_v30 = vrot.slane %v1508_v36, %v12364_v19  ;;  %v4492_v46 = vrot.slane %v1507_v27, %v12367_v20  ;;  %v4500_v47 = vrot.slane %v1508_v36, %v12367_v20 }
 0x179   :  { %v3839_v51 = vrot.slane %v13161_v10, %v12364_v19  ;;  %v4508_v40 = vrot.slane %v1524_v24, %v12367_v20  ;;  %v13212_v52 = vrot.slane %v1543_v42, %v12360_v15  ;;  %v4512_v38 = vrot.slane %v13161_v10, %v12367_v20 }
 0x17a   :  { %v4142_v53 = vsel %vm2762_vm5, %v3819_v34, %v3815_v23  ;;  %v4822_v54 = vsel %vm3442_vm14, %v4492_v46, %v4488_v39  ;;  %v729_v55 = vadd.f32 %v12887_v5, %v11121_v45  ;;  %v918_v49 = vsel %vm790_vm6, %v726_v17, %v854_v35 }
 0x17b   :  { %v4143_v57 = vsel %vm2764_vm7, %v3823_v37, %v4142_v53  ;;  %v4823_v58 = vsel %vm2762_vm5, %v4496_v41, %v4822_v54  ;;  %v13223_v48 = vcombine.high %v13212_v52, %v13212_v52  ;;  %v4933_v59 = vld [vmem:[#allocation2 + $0x70] sm:$0xff]  ;;  %v4516_v61 = vrot.slane %v13170_v63, %v12367_v20 }
 0x17c   :  { %v4144_v62 = vsel %vm2766_vm8, %v3827_v30, %v4143_v57  ;;  %v4824_v0 = vsel %vm2764_vm7, %v4500_v47, %v4823_v58  ;;  %v1558_v2 = vcombine.high %v13201_v44, %v13201_v44  ;;  %11181 = vmatmul.mubr.msk.f32.gmra.mxu1 %vm2104_vm3, %v4933_v59  ;;  %v2493_v10 = vrot.slane %v13201_v44, %v12364_v19 }
 0x17d   :  { %v4145_v3 = vsel %vm2768_vm10, %v3831_v28, %v4144_v62  ;;  %v4825_v4 = vsel %vm2766_vm8, %v4504_v32, %v4824_v0  ;;  %v2505_v8 = vrot.slane %v13223_v48, %v12364_v19  ;;  %11183 = vmatprep.mubr.msk.f32.mxu1 %vm2104_vm3, %v4934_v56  ;;  %v1526_v60 = vcombine.high %v918_v49, %v918_v49 }
 0x17e   :  { %v4146_v11 = vsel %vm2770_vm11, %v3835_v50, %v4145_v3  ;;  %v4826_v1 = vsel %vm2768_vm10, %v4508_v40, %v4825_v4  ;;  %vm793_vm9 = vcmp.gt.f32.partialorder %v729_v55, 0.0  ;;  %v1533_v63 = vrot.slane %v918_v49, %v12360_v15  ;;  %v547_v40 = vpop.f32.mrf.mxu0 }
 0x17f   :  { %v4147_v14 = vsel %vm2772_vm12, %v3839_v51, %v4146_v11  ;;  %v4827_v16 = vsel %vm2770_vm11, %v4512_v38, %v4826_v1  ;;  %2913 = vst.msk [vmem:[#allocation2 + $0x88] sm:$0x1] %vm2106_vm2, %v2505_v8  ;;  %v857_v17 = vmul.f32 0.2, %v729_v55  ;;  %v2497_v21 = vrot.slane %v1558_v2, %v12364_v19 }
 0x180   :  { %4243 = vst.msk [vmem:[#allocation2 + $0x2b0] sm:$0xfe] %vm2897_vm13, %v4147_v14  ;;  %v4828_v18 = vsel %vm2772_vm12, %v4516_v61, %v4827_v16  ;;  %v3173_v6 = vrot.slane %v13201_v44, %v12367_v20  ;;  %v1540_v7 = vrot.slane %v1526_v60, %v12360_v15  ;;  %v2501_v22 = vrot.slane %v13212_v52, %v12364_v19  ;;  %v11127_v4 = vpop.f32.mrf.mxu0 }
 0x181   :  { %4909 = vst.msk [vmem:[#allocation2 + $0x3d0] sm:$0xff] %vm2104_vm3, %v4828_v18  ;;  %v1541_v24 = vcombine.high %v1533_v63, %v1533_v63  ;;  %v921_v25 = vsel %vm793_vm9, %v729_v55, %v857_v17  ;;  %v728_v26 = vadd.f32 %v12887_v5, %v537_v13  ;;  %v2477_v35 = vrot.slane %v1533_v63, %v12364_v19 }
 0x182   :  { %v1542_v28 = vcombine.high %v1540_v7, %v1540_v7  ;;  %v2485_v29 = vrot.slane %v1540_v7, %v12364_v19  ;;  %v3165_v31 = vrot.slane %v1540_v7, %v12367_v20  ;;  %v1577_v32 = vcombine.high %v921_v25, %v921_v25 }
 0x183   :  { %v2481_v27 = vrot.slane %v1541_v24, %v12364_v19  ;;  %v3157_v36 = vrot.slane %v1533_v63, %v12367_v20  ;;  %v3161_v23 = vrot.slane %v1541_v24, %v12367_v20  ;;  %v13265_v41 = vrot.slane %v921_v25, %v12360_v15  ;;  %v557_v24 = vpop.f32.mrf.mxu0 }
 0x184   :  { %v2489_v37 = vrot.slane %v1542_v28, %v12364_v19  ;;  %v3169_v39 = vrot.slane %v1542_v28, %v12367_v20  ;;  %v13268_v42 = vrot.slane %v1577_v32, %v12360_v15  ;;  %v3177_v44 = vrot.slane %v1558_v2, %v12367_v20 }
 0x185   :  { %v2810_v45 = vsel %vm2762_vm5, %v2481_v27, %v2477_v35  ;;  %v3492_v34 = vsel %vm3442_vm14, %v3161_v23, %v3157_v36  ;;  %v731_v30 = vadd.f32 %v12887_v5, %v11124_v33  ;;  %v856_v51 = vmul.f32 0.2, %v728_v26 }
 0x186   :  { %v2811_v46 = vsel %vm2764_vm7, %v2485_v29, %v2810_v45  ;;  %v3493_v47 = vsel %vm2762_vm5, %v3165_v31, %v3492_v34  ;;  %v13278_v50 = vcombine.high %v13268_v42, %v13268_v42  ;;  %v3181_v38 = vrot.slane %v13212_v52, %v12367_v20 }
 0x187   :  { %v2812_v53 = vsel %vm2766_vm8, %v2489_v37, %v2811_v46  ;;  %v3494_v54 = vsel %vm2764_vm7, %v3169_v39, %v3493_v47  ;;  %vm792_vm15 = vcmp.gt.f32.partialorder %v728_v26, 0.0  ;;  %v1592_v57 = vcombine.high %v13265_v41, %v13265_v41 }
 0x188   :  { %v2813_v55 = vsel %vm2768_vm10, %v2493_v10, %v2812_v53  ;;  %v3495_v56 = vsel %vm2766_vm8, %v3173_v6, %v3494_v54  ;;  %v3875_v58 = vrot.slane %v13278_v50, %v12364_v19  ;;  %v5842_v49 = vld [vmem:[#allocation2 + $0x3d0] sm:$0xff]  ;;  %v3185_v59 = vrot.slane %v13223_v48, %v12367_v20 }
 0x189   :  { %v2814_v52 = vsel %vm2770_vm11, %v2497_v21, %v2813_v55  ;;  %v3496_v61 = vsel %vm2768_vm10, %v3177_v44, %v3495_v56  ;;  %v3863_v62 = vrot.slane %v13265_v41, %v12364_v19  ;;  %11293 = vmatmul.mubr.msk.f32.gmra.mxu0 %vm2104_vm3, %v5842_v49  ;;  %v920_v3 = vsel %vm792_vm15, %v728_v26, %v856_v51  ;;  %v11130_v44 = vpop.f32.mrf.mxu0 }
 0x18a   :  { %v2815_v0 = vsel %vm2772_vm12, %v2501_v22, %v2814_v52  ;;  %v3497_v2 = vsel %vm2770_vm11, %v3181_v38, %v3496_v61  ;;  %4246 = vst.msk [vmem:[#allocation2 + $0x2d8] sm:$0x1] %vm2106_vm2, %v3875_v58  ;;  %vm795_vm0 = vcmp.gt.f32.partialorder %v731_v30, 0.0  ;;  %v1560_v10 = vcombine.high %v920_v3, %v920_v3 }
 0x18b   :  { %2912 = vst.msk [vmem:[#allocation2 + $0x80] sm:$0xfe] %vm2897_vm13, %v2815_v0  ;;  %v3498_v48 = vsel %vm2772_vm12, %v3185_v59, %v3497_v2  ;;  %v1567_v8 = vrot.slane %v920_v3, %v12360_v15  ;;  %v859_v11 = vmul.f32 0.2, %v731_v30  ;;  %v3867_v1 = vrot.slane %v1592_v57, %v12364_v19 }
 0x18c   :  { %3579 = vst.msk [vmem:[#allocation2 + $0x1a0] sm:$0xff] %vm2104_vm3, %v3498_v48  ;;  %v3871_v60 = vrot.slane %v13268_v42, %v12364_v19  ;;  %v4536_v13 = vrot.slane %v13265_v41, %v12367_v20  ;;  %v730_v14 = vadd.f32 %v12887_v5, %v547_v40  ;;  %v4540_v16 = vrot.slane %v1592_v57, %v12367_v20 }
 0x18d   :  { %v4544_v63 = vrot.slane %v13268_v42, %v12367_v20  ;;  %v1574_v17 = vrot.slane %v1560_v10, %v12360_v15  ;;  %v1575_v18 = vcombine.high %v1567_v8, %v1567_v8  ;;  %v3847_v21 = vrot.slane %v1567_v8, %v12364_v19 }
 0x18e   :  { %v4520_v6 = vrot.slane %v1567_v8, %v12367_v20  ;;  %v923_v7 = vsel %vm795_vm0, %v731_v30, %v859_v11  ;;  %v858_v22 = vmul.f32 0.2, %v730_v14  ;;  %vm794_vm1 = vcmp.gt.f32.partialorder %v730_v14, 0.0 }
 0x18f   :  { %v1576_v25 = vcombine.high %v1574_v17, %v1574_v17  ;;  %v3851_v26 = vrot.slane %v1575_v18, %v12364_v19  ;;  %v3855_v28 = vrot.slane %v1574_v17, %v12364_v19  ;;  %v4524_v29 = vrot.slane %v1575_v18, %v12367_v20 }
 0x190   :  { %v4528_v31 = vrot.slane %v1574_v17, %v12367_v20  ;;  %v1611_v32 = vcombine.high %v923_v7, %v923_v7  ;;  %v13322_v33 = vrot.slane %v923_v7, %v12360_v15  ;;  %v733_v42 = vadd.f32 %v12887_v5, %v11127_v4 }
 0x191   :  { %v3859_v35 = vrot.slane %v1576_v25, %v12364_v19  ;;  %v4148_v27 = vsel %vm2762_vm5, %v3851_v26, %v3847_v21  ;;  %v4532_v36 = vrot.slane %v1576_v25, %v12367_v20  ;;  %v4829_v23 = vsel %vm3442_vm14, %v4524_v29, %v4520_v6  ;;  %v567_v26 = vpop.f32.mrf.mxu0 }
 0x192   :  { %v4149_v37 = vsel %vm2764_vm7, %v3855_v28, %v4148_v27  ;;  %v4830_v39 = vsel %vm2762_vm5, %v4528_v31, %v4829_v23  ;;  %v13331_v41 = vrot.slane %v1611_v32, %v12360_v15  ;;  %v922_v30 = vsel %vm794_vm1, %v730_v14, %v858_v22 }
 0x193   :  { %v4150_v45 = vsel %vm2766_vm8, %v3859_v35, %v4149_v37  ;;  %v4831_v34 = vsel %vm2764_vm7, %v4532_v36, %v4830_v39  ;;  %v732_v46 = vadd.f32 %v12887_v5, %v557_v24  ;;  %v1626_v40 = vcombine.high %v13322_v33, %v13322_v33 }
 0x194   :  { %v4151_v47 = vsel %vm2768_vm10, %v3863_v62, %v4150_v45  ;;  %v4832_v51 = vsel %vm2766_vm8, %v4536_v13, %v4831_v34  ;;  %v13343_v38 = vcombine.high %v13331_v41, %v13331_v41  ;;  %v4548_v53 = vrot.slane %v13278_v50, %v12367_v20 }
 0x195   :  { %v4152_v54 = vsel %vm2770_vm11, %v3867_v1, %v4151_v47  ;;  %v4833_v55 = vsel %vm2768_vm10, %v4540_v16, %v4832_v51  ;;  %v13350_v56 = vadd.f32 %v12887_v5, %v11130_v44  ;;  %vm797_vm4 = vcmp.gt.f32.partialorder %v733_v42, 0.0 }
 0x196   :  { %v4153_v57 = vsel %vm2772_vm12, %v3871_v60, %v4152_v54  ;;  %v4834_v58 = vsel %vm2770_vm11, %v4544_v63, %v4833_v55  ;;  %v2537_v49 = vrot.slane %v13343_v38, %v12364_v19  ;;  %v2525_v50 = vrot.slane %v13322_v33, %v12364_v19 }
 0x197   :  { %4245 = vst.msk [vmem:[#allocation2 + $0x2d0] sm:$0xfe] %vm2897_vm13, %v4153_v57  ;;  %v4835_v59 = vsel %vm2772_vm12, %v4548_v53, %v4834_v58  ;;  %v1594_v52 = vcombine.high %v922_v30, %v922_v30  ;;  %v1601_v61 = vrot.slane %v922_v30, %v12360_v15  ;;  %v2529_v62 = vrot.slane %v1626_v40, %v12364_v19 }
 0x198   :  { %4910 = vst.msk [vmem:[#allocation2 + $0x3f0] sm:$0xff] %vm2104_vm3, %v4835_v59  ;;  %v3205_v0 = vrot.slane %v13322_v33, %v12367_v20  ;;  %v861_v2 = vmul.f32 0.2, %v733_v42  ;;  %v860_v3 = vmul.f32 0.2, %v732_v46  ;;  %v2533_v4 = vrot.slane %v13331_v41, %v12364_v19 }
 0x199   :  { %2915 = vst.msk [vmem:[#allocation2 + $0xa8] sm:$0x1] %vm2106_vm2, %v2537_v49  ;;  %v1608_v48 = vrot.slane %v1594_v52, %v12360_v15  ;;  %v1609_v10 = vcombine.high %v1601_v61, %v1601_v61  ;;  %vm796_vm6 = vcmp.gt.f32.partialorder %v732_v46, 0.0  ;;  %v3209_v8 = vrot.slane %v1626_v40, %v12367_v20 }
 0x19a   :  { %v2509_v11 = vrot.slane %v1601_v61, %v12364_v19  ;;  %v3189_v1 = vrot.slane %v1601_v61, %v12367_v20  ;;  %v925_v60 = vsel %vm797_vm4, %v733_v42, %v861_v2  ;;  %v3213_v17 = vrot.slane %v13331_v41, %v12367_v20  ;;  %v11133_v2 = vpop.f32.mrf.mxu0 }
 0x19b   :  { %v1610_v13 = vcombine.high %v1608_v48, %v1608_v48  ;;  %v2513_v14 = vrot.slane %v1609_v10, %v12364_v19  ;;  %v2517_v16 = vrot.slane %v1608_v48, %v12364_v19  ;;  %v3193_v63 = vrot.slane %v1609_v10, %v12367_v20 }
 0x19c   :  { %v3197_v18 = vrot.slane %v1608_v48, %v12367_v20  ;;  %v1645_v21 = vcombine.high %v925_v60, %v925_v60  ;;  %v924_v6 = vsel %vm796_vm6, %v732_v46, %v860_v3  ;;  %v13386_v31 = vrot.slane %v925_v60, %v12360_v15 }
 0x19d   :  { %v2521_v7 = vrot.slane %v1610_v13, %v12364_v19  ;;  %v2816_v22 = vsel %vm2762_vm5, %v2513_v14, %v2509_v11  ;;  %v3201_v24 = vrot.slane %v1610_v13, %v12367_v20  ;;  %v3499_v25 = vsel %vm3442_vm14, %v3193_v63, %v3189_v1 }
 0x19e   :  { %v2817_v28 = vsel %vm2764_vm7, %v2517_v16, %v2816_v22  ;;  %v3500_v29 = vsel %vm2762_vm5, %v3197_v18, %v3499_v25  ;;  %v13389_v32 = vrot.slane %v1645_v21, %v12360_v15  ;;  %v1628_v27 = vcombine.high %v924_v6, %v924_v6  ;;  %v13449_v16 = vld [vmem:[%s15692_s2] ss:$0 sm:$0xff] }
 0x19f   :  { %v2818_v33 = vsel %vm2766_vm8, %v2521_v7, %v2817_v28  ;;  %v3501_v35 = vsel %vm2764_vm7, %v3201_v24, %v3500_v29  ;;  %v863_v36 = vmul.f32 0.2, %v13350_v56  ;;  %v5843_v23 = vld [vmem:[#allocation2 + $0x3f0] sm:$0xff]  ;;  %v734_v42 = vadd.f32 %v12887_v5, %v567_v26 }
 0x1a0   :  { %v2819_v37 = vsel %vm2768_vm10, %v2525_v50, %v2818_v33  ;;  %v3502_v39 = vsel %vm2766_vm8, %v3205_v0, %v3501_v35  ;;  %v13398_v41 = vcombine.high %v13389_v32, %v13389_v32  ;;  %11295 = vmatprep.mubr.msk.f32.mxu0 %vm2104_vm3, %v5843_v23  ;;  %v3217_v44 = vrot.slane %v13343_v38, %v12367_v20 }
 0x1a1   :  { %v2820_v45 = vsel %vm2770_vm11, %v2529_v62, %v2819_v37  ;;  %v3503_v34 = vsel %vm2768_vm10, %v3209_v8, %v3502_v39  ;;  %vm799_vm9 = vcmp.gt.f32.partialorder %v13350_v56, 0.0  ;;  %v1660_v47 = vcombine.high %v13386_v31, %v13386_v31 }
 0x1a2   :  { %v2821_v30 = vsel %vm2772_vm12, %v2533_v4, %v2820_v45  ;;  %v3504_v46 = vsel %vm2770_vm11, %v3213_v17, %v3503_v34  ;;  %v3907_v5 = vrot.slane %v13398_v41, %v12364_v19  ;;  %v3895_v40 = vrot.slane %v13386_v31, %v12364_v19 }
 0x1a3   :  { %2914 = vst.msk [vmem:[#allocation2 + $0xa0] sm:$0xfe] %vm2897_vm13, %v2821_v30  ;;  %v3505_v51 = vsel %vm2772_vm12, %v3217_v44, %v3504_v46  ;;  %v1635_v38 = vrot.slane %v924_v6, %v12360_v15  ;;  %v1642_v53 = vrot.slane %v1628_v27, %v12360_v15  ;;  %v4568_v54 = vrot.slane %v13386_v31, %v12367_v20 }
 0x1a4   :  { %3580 = vst.msk [vmem:[#allocation2 + $0x1c0] sm:$0xff] %vm2104_vm3, %v3505_v51  ;;  %v927_v55 = vsel %vm799_vm9, %v13350_v56, %v863_v36  ;;  %vm798_vm15 = vcmp.gt.f32.partialorder %v734_v42, 0.0  ;;  %v862_v57 = vmul.f32 0.2, %v734_v42  ;;  %v3899_v10 = vrot.slane %v1660_v47, %v12364_v19  ;;  %v577_v36 = vpop.f32.mrf.mxu0 }
 0x1a5   :  { %4248 = vst.msk [vmem:[#allocation2 + $0x2e8] sm:$0x1] %vm2106_vm2, %v3907_v5  ;;  %v1643_v58 = vcombine.high %v1635_v38, %v1635_v38  ;;  %v1644_v49 = vcombine.high %v1642_v53, %v1642_v53  ;;  %v3879_v59 = vrot.slane %v1635_v38, %v12364_v19  ;;  %v3887_v50 = vrot.slane %v1642_v53, %v12364_v19 }
 0x1a6   :  { %v4552_v52 = vrot.slane %v1635_v38, %v12367_v20  ;;  %v4560_v61 = vrot.slane %v1642_v53, %v12367_v20  ;;  %v1679_v62 = vcombine.high %v927_v55, %v927_v55  ;;  %v13429_v0 = vrot.slane %v927_v55, %v12360_v15  ;;  %v5171_v55 = vld [vmem:[%s15691_s3 + $0x18] sm:$0xff] }
 0x1a7   :  { %v3883_v3 = vrot.slane %v1643_v58, %v12364_v19  ;;  %v3891_v56 = vrot.slane %v1644_v49, %v12364_v19  ;;  %v4556_v4 = vrot.slane %v1643_v58, %v12367_v20  ;;  %v4564_v48 = vrot.slane %v1644_v49, %v12367_v20  ;;  %11195 = vmatprep.subr.mxu1 %v5171_v55 }
 0x1a8   :  { %v3903_v8 = vrot.slane %v13389_v32, %v12364_v19  ;;  %v4572_v11 = vrot.slane %v1660_v47, %v12367_v20  ;;  %v13440_v1 = vrot.slane %v1679_v62, %v12360_v15  ;;  %v4576_v60 = vrot.slane %v13389_v32, %v12367_v20  ;;  %11196 = vmatpush3.msra.mxu1 %v5171_v55 }
 0x1a9   :  { %v4154_v13 = vsel %vm2762_vm5, %v3883_v3, %v3879_v59  ;;  %v4836_v14 = vsel %vm3442_vm14, %v4556_v4, %v4552_v52  ;;  %v737_v63 = vadd.f32 %v13449_v16, %v11133_v2  ;;  %v926_v6 = vsel %vm798_vm15, %v734_v42, %v862_v57 }
 0x1aa   :  { %v4155_v17 = vsel %vm2764_vm7, %v3887_v50, %v4154_v13  ;;  %v4837_v18 = vsel %vm2762_vm5, %v4560_v61, %v4836_v14  ;;  %v13456_v21 = vcombine.high %v13440_v1, %v13440_v1  ;;  %v4935_v7 = vld [vmem:[#allocation2 + $0xa0] sm:$0xff]  ;;  %v4580_v22 = vrot.slane %v13398_v41, %v12367_v20 }
 0x1ab   :  { %v4156_v24 = vsel %vm2766_vm8, %v3891_v56, %v4155_v17  ;;  %v4838_v25 = vsel %vm2764_vm7, %v4564_v48, %v4837_v18  ;;  %v13465_v26 = vcombine.high %v13429_v0, %v13429_v0  ;;  %11184 = vmatmul.mubr.msk.f32.gmra.mxu1 %vm2104_vm3, %v4935_v7  ;;  %v2557_v31 = vrot.slane %v13429_v0, %v12364_v19 }
 0x1ac   :  { %v4157_v28 = vsel %vm2768_vm10, %v3895_v40, %v4156_v24  ;;  %v4839_v29 = vsel %vm2766_vm8, %v4568_v54, %v4838_v25  ;;  %v2569_v32 = vrot.slane %v13456_v21, %v12364_v19  ;;  %v1662_v27 = vcombine.high %v926_v6, %v926_v6  ;;  %v11136_v54 = vpop.f32.mrf.mxu0 }
 0x1ad   :  { %v4158_v33 = vsel %vm2770_vm11, %v3899_v10, %v4157_v28  ;;  %v4840_v35 = vsel %vm2768_vm10, %v4572_v11, %v4839_v29  ;;  %vm801_vm0 = vcmp.gt.f32.partialorder %v737_v63, 0.0  ;;  %v1669_v39 = vrot.slane %v926_v6, %v12360_v15 }
 0x1ae   :  { %v4159_v23 = vsel %vm2772_vm12, %v3903_v8, %v4158_v33  ;;  %v4841_v37 = vsel %vm2770_vm11, %v4576_v60, %v4840_v35  ;;  %2917 = vst.msk [vmem:[#allocation2 + $0xb8] sm:$0x1] %vm2106_vm2, %v2569_v32  ;;  %v865_v41 = vmul.f32 0.2, %v737_v63  ;;  %v2561_v44 = vrot.slane %v13465_v26, %v12364_v19  ;;  %v587_v11 = vpop.f32.mrf.mxu0 }
 0x1af   :  { %4247 = vst.msk [vmem:[#allocation2 + $0x2e0] sm:$0xfe] %vm2897_vm13, %v4159_v23  ;;  %v4842_v42 = vsel %vm2772_vm12, %v4580_v22, %v4841_v37  ;;  %v3237_v45 = vrot.slane %v13429_v0, %v12367_v20  ;;  %v1676_v34 = vrot.slane %v1662_v27, %v12360_v15  ;;  %v2565_v30 = vrot.slane %v13440_v1, %v12364_v19 }
 0x1b0   :  { %4911 = vst.msk [vmem:[#allocation2 + $0x400] sm:$0xff] %vm2104_vm3, %v4842_v42  ;;  %v1677_v46 = vcombine.high %v1669_v39, %v1669_v39  ;;  %v929_v47 = vsel %vm801_vm0, %v737_v63, %v865_v41  ;;  %v736_v5 = vadd.f32 %v13449_v16, %v577_v36  ;;  %v2541_v57 = vrot.slane %v1669_v39, %v12364_v19 }
 0x1b1   :  { %v1678_v51 = vcombine.high %v1676_v34, %v1676_v34  ;;  %v2549_v40 = vrot.slane %v1676_v34, %v12364_v19  ;;  %v3229_v38 = vrot.slane %v1676_v34, %v12367_v20  ;;  %v1713_v53 = vcombine.high %v929_v47, %v929_v47 }
 0x1b2   :  { %v2545_v58 = vrot.slane %v1677_v46, %v12364_v19  ;;  %v3221_v49 = vrot.slane %v1669_v39, %v12367_v20  ;;  %v3225_v59 = vrot.slane %v1677_v46, %v12367_v20  ;;  %v13503_v61 = vrot.slane %v929_v47, %v12360_v15 }
 0x1b3   :  { %v2553_v50 = vrot.slane %v1678_v51, %v12364_v19  ;;  %v3233_v52 = vrot.slane %v1678_v51, %v12367_v20  ;;  %v13506_v62 = vrot.slane %v1713_v53, %v12360_v15  ;;  %v3241_v0 = vrot.slane %v13465_v26, %v12367_v20 }
 0x1b4   :  { %v2822_v2 = vsel %vm2762_vm5, %v2545_v58, %v2541_v57  ;;  %v3506_v3 = vsel %vm3442_vm14, %v3225_v59, %v3221_v49  ;;  %v739_v56 = vadd.f32 %v13449_v16, %v11136_v54  ;;  %v864_v8 = vmul.f32 0.2, %v736_v5  ;;  %v5398_v54 = vld [vmem:[%s15691_s3 + $0x28] sm:$0xff] }
 0x1b5   :  { %v2823_v4 = vsel %vm2764_vm7, %v2549_v40, %v2822_v2  ;;  %v3507_v48 = vsel %vm2762_vm5, %v3229_v38, %v3506_v3  ;;  %v13517_v10 = vcombine.high %v13506_v62, %v13506_v62  ;;  %v3245_v60 = vrot.slane %v13440_v1, %v12367_v20 }
 0x1b6   :  { %v2824_v13 = vsel %vm2766_vm8, %v2553_v50, %v2823_v4  ;;  %v3508_v14 = vsel %vm2764_vm7, %v3233_v52, %v3507_v48  ;;  %vm800_vm1 = vcmp.gt.f32.partialorder %v736_v5, 0.0  ;;  %v13527_v18 = vcombine.high %v13503_v61, %v13503_v61 }
 0x1b7   :  { %v2825_v63 = vsel %vm2768_vm10, %v2557_v31, %v2824_v13  ;;  %v3509_v17 = vsel %vm2766_vm8, %v3237_v45, %v3508_v14  ;;  %v3939_v6 = vrot.slane %v13517_v10, %v12364_v19  ;;  %v5844_v7 = vld [vmem:[#allocation2 + $0x400] sm:$0xff]  ;;  %v3249_v1 = vrot.slane %v13456_v21, %v12367_v20  ;;  %v11139_v31 = vpop.f32.mrf.mxu0 }
 0x1b8   :  { %v2826_v22 = vsel %vm2770_vm11, %v2561_v44, %v2825_v63  ;;  %v3510_v24 = vsel %vm2768_vm10, %v3241_v0, %v3509_v17  ;;  %v3927_v25 = vrot.slane %v13503_v61, %v12364_v19  ;;  %11296 = vmatmul.mubr.msk.f32.gmra.mxu0 %vm2104_vm3, %v5844_v7  ;;  %v928_v29 = vsel %vm800_vm1, %v736_v5, %v864_v8  ;;  %v5170_v5 = vld [vmem:[%s15691_s3 + $0x10] sm:$0xff] }
 0x1b9   :  { %v2827_v26 = vsel %vm2772_vm12, %v2565_v30, %v2826_v22  ;;  %v3511_v28 = vsel %vm2770_vm11, %v3245_v60, %v3510_v24  ;;  %4250 = vst.msk [vmem:[#allocation2 + $0x2f8] sm:$0x1] %vm2106_vm2, %v3939_v6  ;;  %vm803_vm4 = vcmp.gt.f32.partialorder %v739_v56, 0.0  ;;  %v1696_v32 = vcombine.high %v928_v29, %v928_v29  ;;  %v597_v47 = vpop.f32.mrf.mxu0  ;;  %11197 = vmatprep.subr.mxu1 %v5170_v5 }
 0x1ba   :  { %2916 = vst.msk [vmem:[#allocation2 + $0xb0] sm:$0xfe] %vm2897_vm13, %v2827_v26  ;;  %v3512_v21 = vsel %vm2772_vm12, %v3249_v1, %v3511_v28  ;;  %v1703_v33 = vrot.slane %v928_v29, %v12360_v15  ;;  %v867_v35 = vmul.f32 0.2, %v739_v56  ;;  %v3931_v27 = vrot.slane %v13527_v18, %v12364_v19  ;;  %11198 = vmatpush3.msra.mxu1 %v5170_v5  ;;  %v6306_v1 = vld [vmem:[%s15691_s3 + $0x68] sm:$0xff] }
 0x1bb   :  { %3581 = vst.msk [vmem:[#allocation2 + $0x1d0] sm:$0xff] %vm2104_vm3, %v3512_v21  ;;  %v3935_v36 = vrot.slane %v13506_v62, %v12364_v19  ;;  %v4600_v23 = vrot.slane %v13503_v61, %v12367_v20  ;;  %v738_v37 = vadd.f32 %v13449_v16, %v587_v11  ;;  %v4604_v39 = vrot.slane %v13527_v18, %v12367_v20  ;;  %v11142_v3 = vpop.f32.mrf.mxu0 }
 0x1bc   :  { %v4608_v41 = vrot.slane %v13506_v62, %v12367_v20  ;;  %v1710_v42 = vrot.slane %v1696_v32, %v12360_v15  ;;  %v1711_v44 = vcombine.high %v1703_v33, %v1703_v33  ;;  %v3911_v45 = vrot.slane %v1703_v33, %v12364_v19  ;;  %11223 = vmatprep.subr.mxu1 %v5398_v54 }
 0x1bd   :  { %v4584_v34 = vrot.slane %v1703_v33, %v12367_v20  ;;  %v931_v30 = vsel %vm803_vm4, %v739_v56, %v867_v35  ;;  %v866_v46 = vmul.f32 0.2, %v738_v37  ;;  %vm802_vm6 = vcmp.gt.f32.partialorder %v738_v37, 0.0  ;;  %11335 = vmatprep.subr.mxu0 %v6306_v1 }
 0x1be   :  { %v1712_v51 = vcombine.high %v1710_v42, %v1710_v42  ;;  %v3915_v40 = vrot.slane %v1711_v44, %v12364_v19  ;;  %v3919_v38 = vrot.slane %v1710_v42, %v12364_v19  ;;  %v4588_v53 = vrot.slane %v1711_v44, %v12367_v20  ;;  %11336 = vmatpush3.msra.mxu0 %v6306_v1 }
 0x1bf   :  { %v4592_v55 = vrot.slane %v1710_v42, %v12367_v20  ;;  %v1747_v57 = vcombine.high %v931_v30, %v931_v30  ;;  %v13571_v58 = vrot.slane %v931_v30, %v12360_v15  ;;  %v741_v2 = vadd.f32 %v13449_v16, %v11139_v31  ;;  %v6305_v31 = vld [vmem:[%s15691_s3 + $0x60] sm:$0xff] }
 0x1c0   :  { %v3923_v49 = vrot.slane %v1712_v51, %v12364_v19  ;;  %v4160_v59 = vsel %vm2762_vm5, %v3915_v40, %v3911_v45  ;;  %v4596_v50 = vrot.slane %v1712_v51, %v12367_v20  ;;  %v4843_v52 = vsel %vm3442_vm14, %v4588_v53, %v4584_v34  ;;  %11337 = vmatprep.subr.mxu0 %v6305_v31 }
 0x1c1   :  { %v4161_v61 = vsel %vm2764_vm7, %v3919_v38, %v4160_v59  ;;  %v4844_v62 = vsel %vm2762_vm5, %v4592_v55, %v4843_v52  ;;  %v13580_v0 = vrot.slane %v1747_v57, %v12360_v15  ;;  %v4936_v56 = vld [vmem:[#allocation2 + $0xb0] sm:$0xff]  ;;  %v930_v8 = vsel %vm802_vm6, %v738_v37, %v866_v46  ;;  %11338 = vmatpush3.msra.mxu0 %v6305_v31  ;;  %v607_v55 = vpop.f32.mrf.mxu0 }
 0x1c2   :  { %v4162_v4 = vsel %vm2766_vm8, %v3923_v49, %v4161_v61  ;;  %v4845_v48 = vsel %vm2764_vm7, %v4596_v50, %v4844_v62  ;;  %v740_v11 = vadd.f32 %v13449_v16, %v597_v47  ;;  %11186 = vmatprep.mubr.msk.f32.mxu1 %vm2104_vm3, %v4936_v56  ;;  %v13591_v14 = vcombine.high %v13571_v58, %v13571_v58 }
 0x1c3   :  { %v4163_v60 = vsel %vm2768_vm10, %v3927_v25, %v4162_v4  ;;  %v4846_v13 = vsel %vm2766_vm8, %v4600_v23, %v4845_v48  ;;  %v13595_v63 = vcombine.high %v13580_v0, %v13580_v0  ;;  %v4612_v17 = vrot.slane %v13517_v10, %v12367_v20 }
 0x1c4   :  { %v4164_v18 = vsel %vm2770_vm11, %v3931_v27, %v4163_v60  ;;  %v4847_v6 = vsel %vm2768_vm10, %v4604_v39, %v4846_v13  ;;  %v13602_v7 = vadd.f32 %v13449_v16, %v11142_v3  ;;  %vm805_vm9 = vcmp.gt.f32.partialorder %v741_v2, 0.0 }
 0x1c5   :  { %v4165_v22 = vsel %vm2772_vm12, %v3935_v36, %v4164_v18  ;;  %v4848_v24 = vsel %vm2770_vm11, %v4608_v41, %v4847_v6  ;;  %v2601_v25 = vrot.slane %v13595_v63, %v12364_v19  ;;  %v2589_v26 = vrot.slane %v13571_v58, %v12364_v19 }
 0x1c6   :  { %4249 = vst.msk [vmem:[#allocation2 + $0x2f0] sm:$0xfe] %vm2897_vm13, %v4165_v22  ;;  %v4849_v10 = vsel %vm2772_vm12, %v4612_v17, %v4848_v24  ;;  %v1730_v28 = vcombine.high %v930_v8, %v930_v8  ;;  %v1737_v29 = vrot.slane %v930_v8, %v12360_v15  ;;  %v2593_v21 = vrot.slane %v13591_v14, %v12364_v19 }
 0x1c7   :  { %4912 = vst.msk [vmem:[#allocation2 + $0x410] sm:$0xff] %vm2104_vm3, %v4849_v10  ;;  %v3269_v32 = vrot.slane %v13571_v58, %v12367_v20  ;;  %v869_v33 = vmul.f32 0.2, %v741_v2  ;;  %v868_v35 = vmul.f32 0.2, %v740_v11  ;;  %v2597_v27 = vrot.slane %v13580_v0, %v12364_v19 }
 0x1c8   :  { %2919 = vst.msk [vmem:[#allocation2 + $0xc8] sm:$0x1] %vm2106_vm2, %v2601_v25  ;;  %v1744_v36 = vrot.slane %v1730_v28, %v12360_v15  ;;  %v1745_v23 = vcombine.high %v1737_v29, %v1737_v29  ;;  %vm804_vm15 = vcmp.gt.f32.partialorder %v740_v11, 0.0  ;;  %v3273_v37 = vrot.slane %v13591_v14, %v12367_v20 }
 0x1c9   :  { %v2573_v39 = vrot.slane %v1737_v29, %v12364_v19  ;;  %v3253_v41 = vrot.slane %v1737_v29, %v12367_v20  ;;  %v933_v42 = vsel %vm805_vm9, %v741_v2, %v869_v33  ;;  %v3277_v46 = vrot.slane %v13580_v0, %v12367_v20 }
 0x1ca   :  { %v1746_v44 = vcombine.high %v1744_v36, %v1744_v36  ;;  %v2577_v45 = vrot.slane %v1745_v23, %v12364_v19  ;;  %v2581_v34 = vrot.slane %v1744_v36, %v12364_v19  ;;  %v3257_v30 = vrot.slane %v1745_v23, %v12367_v20 }
 0x1cb   :  { %v3261_v47 = vrot.slane %v1744_v36, %v12367_v20  ;;  %v1781_v5 = vcombine.high %v933_v42, %v933_v42  ;;  %v932_v51 = vsel %vm804_vm15, %v740_v11, %v868_v35  ;;  %v13646_v49 = vrot.slane %v933_v42, %v12360_v15  ;;  %v11145_v35 = vpop.f32.mrf.mxu0 }
 0x1cc   :  { %v2585_v40 = vrot.slane %v1746_v44, %v12364_v19  ;;  %v2828_v38 = vsel %vm2762_vm5, %v2577_v45, %v2573_v39  ;;  %v3265_v53 = vrot.slane %v1746_v44, %v12367_v20  ;;  %v3513_v54 = vsel %vm3442_vm14, %v3257_v30, %v3253_v41 }
 0x1cd   :  { %v2829_v57 = vsel %vm2764_vm7, %v2581_v34, %v2828_v38  ;;  %v3514_v58 = vsel %vm2762_vm5, %v3261_v47, %v3513_v54  ;;  %v13649_v59 = vrot.slane %v1781_v5, %v12360_v15  ;;  %v1764_v61 = vcombine.high %v932_v51, %v932_v51 }
 0x1ce   :  { %v2830_v50 = vsel %vm2766_vm8, %v2585_v40, %v2829_v57  ;;  %v3515_v52 = vsel %vm2764_vm7, %v3265_v53, %v3514_v58  ;;  %v871_v62 = vmul.f32 0.2, %v13602_v7  ;;  %v5845_v0 = vld [vmem:[#allocation2 + $0x410] sm:$0xff]  ;;  %v742_v4 = vadd.f32 %v13449_v16, %v607_v55 }
 0x1cf   :  { %v2831_v2 = vsel %vm2768_vm10, %v2589_v26, %v2830_v50  ;;  %v3516_v3 = vsel %vm2766_vm8, %v3269_v32, %v3515_v52  ;;  %v13658_v56 = vcombine.high %v13649_v59, %v13649_v59  ;;  %11298 = vmatprep.mubr.msk.f32.mxu0 %vm2104_vm3, %v5845_v0  ;;  %v3281_v48 = vrot.slane %v13595_v63, %v12367_v20 }
 0x1d0   :  { %v2832_v8 = vsel %vm2770_vm11, %v2593_v21, %v2831_v2  ;;  %v3517_v11 = vsel %vm2768_vm10, %v3273_v37, %v3516_v3  ;;  %vm807_vm0 = vcmp.gt.f32.partialorder %v13602_v7, 0.0  ;;  %v1796_v14 = vcombine.high %v13646_v49, %v13646_v49 }
 0x1d1   :  { %v2833_v60 = vsel %vm2772_vm12, %v2597_v27, %v2832_v8  ;;  %v3518_v13 = vsel %vm2770_vm11, %v3277_v46, %v3517_v11  ;;  %v3971_v17 = vrot.slane %v13658_v56, %v12364_v19  ;;  %v3959_v18 = vrot.slane %v13646_v49, %v12364_v19 }
 0x1d2   :  { %2918 = vst.msk [vmem:[#allocation2 + $0xc0] sm:$0xfe] %vm2897_vm13, %v2833_v60  ;;  %v3519_v63 = vsel %vm2772_vm12, %v3281_v48, %v3518_v13  ;;  %v1771_v6 = vrot.slane %v932_v51, %v12360_v15  ;;  %v1778_v1 = vrot.slane %v1764_v61, %v12360_v15  ;;  %v4632_v22 = vrot.slane %v13646_v49, %v12367_v20 }
 0x1d3   :  { %3582 = vst.msk [vmem:[#allocation2 + $0x1e0] sm:$0xff] %vm2104_vm3, %v3519_v63  ;;  %v935_v24 = vsel %vm807_vm0, %v13602_v7, %v871_v62  ;;  %vm806_vm1 = vcmp.gt.f32.partialorder %v742_v4, 0.0  ;;  %v870_v25 = vmul.f32 0.2, %v742_v4  ;;  %v3963_v37 = vrot.slane %v1796_v14, %v12364_v19  ;;  %v617_v62 = vpop.f32.mrf.mxu0 }
 0x1d4   :  { %4252 = vst.msk [vmem:[#allocation2 + $0x308] sm:$0x1] %vm2106_vm2, %v3971_v17  ;;  %v1779_v10 = vcombine.high %v1771_v6, %v1771_v6  ;;  %v1780_v26 = vcombine.high %v1778_v1, %v1778_v1  ;;  %v3943_v28 = vrot.slane %v1771_v6, %v12364_v19  ;;  %v3951_v29 = vrot.slane %v1778_v1, %v12364_v19 }
 0x1d5   :  { %v4616_v31 = vrot.slane %v1771_v6, %v12367_v20  ;;  %v4624_v21 = vrot.slane %v1778_v1, %v12367_v20  ;;  %v1815_v32 = vcombine.high %v935_v24, %v935_v24  ;;  %v13689_v33 = vrot.slane %v935_v24, %v12360_v15 }
 0x1d6   :  { %v3947_v27 = vrot.slane %v1779_v10, %v12364_v19  ;;  %v3955_v7 = vrot.slane %v1780_v26, %v12364_v19  ;;  %v4620_v36 = vrot.slane %v1779_v10, %v12367_v20  ;;  %v4628_v23 = vrot.slane %v1780_v26, %v12367_v20 }
 0x1d7   :  { %v3967_v39 = vrot.slane %v13649_v59, %v12364_v19  ;;  %v4636_v41 = vrot.slane %v1796_v14, %v12367_v20  ;;  %v13700_v42 = vrot.slane %v1815_v32, %v12360_v15  ;;  %v4640_v44 = vrot.slane %v13649_v59, %v12367_v20 }
 0x1d8   :  { %v4166_v45 = vsel %vm2762_vm5, %v3947_v27, %v3943_v28  ;;  %v4850_v34 = vsel %vm3442_vm14, %v4620_v36, %v4616_v31  ;;  %v745_v30 = vadd.f32 %v13449_v16, %v11145_v35  ;;  %v934_v51 = vsel %vm806_vm1, %v742_v4, %v870_v25 }
 0x1d9   :  { %v4167_v46 = vsel %vm2764_vm7, %v3951_v29, %v4166_v45  ;;  %v4851_v47 = vsel %vm2762_vm5, %v4624_v21, %v4850_v34  ;;  %v13711_v5 = vcombine.high %v13700_v42, %v13700_v42  ;;  %v4937_v40 = vld [vmem:[#allocation2 + $0xc0] sm:$0xff]  ;;  %v4644_v38 = vrot.slane %v13658_v56, %v12367_v20 }
 0x1da   :  { %v4168_v53 = vsel %vm2766_vm8, %v3955_v7, %v4167_v46  ;;  %v4852_v54 = vsel %vm2764_vm7, %v4628_v23, %v4851_v47  ;;  %v13720_v55 = vcombine.high %v13689_v33, %v13689_v33  ;;  %11187 = vmatmul.mubr.msk.f32.gmra.mxu1 %vm2104_vm3, %v4937_v40  ;;  %v2621_v49 = vrot.slane %v13689_v33, %v12364_v19 }
 0x1db   :  { %v4169_v57 = vsel %vm2768_vm10, %v3959_v18, %v4168_v53  ;;  %v4853_v58 = vsel %vm2766_vm8, %v4632_v22, %v4852_v54  ;;  %v2633_v59 = vrot.slane %v13711_v5, %v12364_v19  ;;  %v1798_v61 = vcombine.high %v934_v51, %v934_v51  ;;  %v11148_v22 = vpop.f32.mrf.mxu0 }
 0x1dc   :  { %v4170_v50 = vsel %vm2770_vm11, %v3963_v37, %v4169_v57  ;;  %v4854_v52 = vsel %vm2768_vm10, %v4636_v41, %v4853_v58  ;;  %vm809_vm4 = vcmp.gt.f32.partialorder %v745_v30, 0.0  ;;  %v1805_v3 = vrot.slane %v934_v51, %v12360_v15  ;;  %v13774_v41 = vld [vmem:[%s15691_s3 + $0x88] sm:$0xff] }
 0x1dd   :  { %v4171_v0 = vsel %vm2772_vm12, %v3967_v39, %v4170_v50  ;;  %v4855_v2 = vsel %vm2770_vm11, %v4640_v44, %v4854_v52  ;;  %2921 = vst.msk [vmem:[#allocation2 + $0xd8] sm:$0x1] %vm2106_vm2, %v2633_v59  ;;  %v873_v56 = vmul.f32 0.2, %v745_v30  ;;  %v2625_v48 = vrot.slane %v13720_v55, %v12364_v19  ;;  %v627_v39 = vpop.f32.mrf.mxu0  ;;  %11391 = vmatprep.subr.mxu0 %v13774_v41 }
 0x1de   :  { %4251 = vst.msk [vmem:[#allocation2 + $0x300] sm:$0xfe] %vm2897_vm13, %v4171_v0  ;;  %v4856_v4 = vsel %vm2772_vm12, %v4644_v38, %v4855_v2  ;;  %v3301_v8 = vrot.slane %v13689_v33, %v12367_v20  ;;  %v1812_v11 = vrot.slane %v1798_v61, %v12360_v15  ;;  %v2629_v60 = vrot.slane %v13700_v42, %v12364_v19 }
 0x1df   :  { %4913 = vst.msk [vmem:[#allocation2 + $0x420] sm:$0xff] %vm2104_vm3, %v4856_v4  ;;  %v1813_v13 = vcombine.high %v1805_v3, %v1805_v3  ;;  %v937_v14 = vsel %vm809_vm4, %v745_v30, %v873_v56  ;;  %v744_v17 = vadd.f32 %v13449_v16, %v617_v62  ;;  %v2605_v24 = vrot.slane %v1805_v3, %v12364_v19 }
 0x1e0   :  { %v1814_v63 = vcombine.high %v1812_v11, %v1812_v11  ;;  %v2613_v18 = vrot.slane %v1812_v11, %v12364_v19  ;;  %v3293_v6 = vrot.slane %v1812_v11, %v12367_v20  ;;  %v1849_v1 = vcombine.high %v937_v14, %v937_v14 }
 0x1e1   :  { %v2609_v25 = vrot.slane %v1813_v13, %v12364_v19  ;;  %v3285_v10 = vrot.slane %v1805_v3, %v12367_v20  ;;  %v3289_v26 = vrot.slane %v1813_v13, %v12367_v20  ;;  %v13755_v31 = vrot.slane %v937_v14, %v12360_v15 }
 0x1e2   :  { %v2617_v28 = vrot.slane %v1814_v63, %v12364_v19  ;;  %v3297_v29 = vrot.slane %v1814_v63, %v12367_v20  ;;  %v13758_v21 = vrot.slane %v1849_v1, %v12360_v15  ;;  %v3305_v32 = vrot.slane %v13720_v55, %v12367_v20 }
 0x1e3   :  { %v2834_v33 = vsel %vm2762_vm5, %v2609_v25, %v2605_v24  ;;  %v3520_v35 = vsel %vm3442_vm14, %v3289_v26, %v3285_v10  ;;  %v747_v27 = vadd.f32 %v13449_v16, %v11148_v22  ;;  %v872_v37 = vmul.f32 0.2, %v744_v17 }
 0x1e4   :  { %v2835_v7 = vsel %vm2764_vm7, %v2613_v18, %v2834_v33  ;;  %v3521_v36 = vsel %vm2762_vm5, %v3293_v6, %v3520_v35  ;;  %v13769_v23 = vcombine.high %v13758_v21, %v13758_v21  ;;  %v3309_v44 = vrot.slane %v13700_v42, %v12367_v20 }
 0x1e5   :  { %v2836_v45 = vsel %vm2766_vm8, %v2617_v28, %v2835_v7  ;;  %v3522_v34 = vsel %vm2764_vm7, %v3297_v29, %v3521_v36  ;;  %vm808_vm6 = vcmp.gt.f32.partialorder %v744_v17, 0.0  ;;  %v13785_v47 = vcombine.high %v13755_v31, %v13755_v31 }
 0x1e6   :  { %v2837_v30 = vsel %vm2768_vm10, %v2621_v49, %v2836_v45  ;;  %v3523_v46 = vsel %vm2766_vm8, %v3301_v8, %v3522_v34  ;;  %v4003_v51 = vrot.slane %v13769_v23, %v12364_v19  ;;  %v5846_v40 = vld [vmem:[#allocation2 + $0x420] sm:$0xff]  ;;  %v3313_v42 = vrot.slane %v13711_v5, %v12367_v20  ;;  %v11151_v49 = vpop.f32.mrf.mxu0 }
 0x1e7   :  { %v2838_v38 = vsel %vm2770_vm11, %v2625_v48, %v2837_v30  ;;  %v3524_v53 = vsel %vm2768_vm10, %v3305_v32, %v3523_v46  ;;  %v3991_v54 = vrot.slane %v13755_v31, %v12364_v19  ;;  %11299 = vmatmul.mubr.msk.f32.gmra.mxu0 %vm2104_vm3, %v5846_v40  ;;  %v936_v58 = vsel %vm808_vm6, %v744_v17, %v872_v37 }
 0x1e8   :  { %v2839_v55 = vsel %vm2772_vm12, %v2629_v60, %v2838_v38  ;;  %v3525_v57 = vsel %vm2770_vm11, %v3309_v44, %v3524_v53  ;;  %4254 = vst.msk [vmem:[#allocation2 + $0x318] sm:$0x1] %vm2106_vm2, %v4003_v51  ;;  %vm811_vm9 = vcmp.gt.f32.partialorder %v747_v27, 0.0  ;;  %v1832_v59 = vcombine.high %v936_v58, %v936_v58  ;;  %v637_v14 = vpop.f32.mrf.mxu0 }
 0x1e9   :  { %2920 = vst.msk [vmem:[#allocation2 + $0xd0] sm:$0xfe] %vm2897_vm13, %v2839_v55  ;;  %v3526_v5 = vsel %vm2772_vm12, %v3313_v42, %v3525_v57  ;;  %v1839_v50 = vrot.slane %v936_v58, %v12360_v15  ;;  %v875_v52 = vmul.f32 0.2, %v747_v27  ;;  %v3995_v61 = vrot.slane %v13785_v47, %v12364_v19 }
 0x1ea   :  { %3583 = vst.msk [vmem:[#allocation2 + $0x1f0] sm:$0xff] %vm2104_vm3, %v3526_v5  ;;  %v3999_v62 = vrot.slane %v13758_v21, %v12364_v19  ;;  %v4664_v0 = vrot.slane %v13755_v31, %v12367_v20  ;;  %v746_v2 = vadd.f32 %v13449_v16, %v627_v39  ;;  %v4668_v3 = vrot.slane %v13785_v47, %v12367_v20  ;;  %v11154_v33 = vpop.f32.mrf.mxu0 }
 0x1eb   :  { %v4672_v56 = vrot.slane %v13758_v21, %v12367_v20  ;;  %v1846_v4 = vrot.slane %v1832_v59, %v12360_v15  ;;  %v1847_v48 = vcombine.high %v1839_v50, %v1839_v50  ;;  %v3975_v8 = vrot.slane %v1839_v50, %v12364_v19 }
 0x1ec   :  { %v4648_v11 = vrot.slane %v1839_v50, %v12367_v20  ;;  %v939_v60 = vsel %vm811_vm9, %v747_v27, %v875_v52  ;;  %v874_v13 = vmul.f32 0.2, %v746_v2  ;;  %vm810_vm15 = vcmp.gt.f32.partialorder %v746_v2, 0.0 }
 0x1ed   :  { %v1848_v17 = vcombine.high %v1846_v4, %v1846_v4  ;;  %v3979_v63 = vrot.slane %v1847_v48, %v12364_v19  ;;  %v3983_v18 = vrot.slane %v1846_v4, %v12364_v19  ;;  %v4652_v6 = vrot.slane %v1847_v48, %v12367_v20 }
 0x1ee   :  { %v4656_v1 = vrot.slane %v1846_v4, %v12367_v20  ;;  %v1883_v22 = vcombine.high %v939_v60, %v939_v60  ;;  %v13823_v24 = vrot.slane %v939_v60, %v12360_v15  ;;  %v749_v32 = vadd.f32 %v13449_v16, %v11151_v49 }
 0x1ef   :  { %v3987_v25 = vrot.slane %v1848_v17, %v12364_v19  ;;  %v4172_v10 = vsel %vm2762_vm5, %v3979_v63, %v3975_v8  ;;  %v4660_v26 = vrot.slane %v1848_v17, %v12367_v20  ;;  %v4857_v28 = vsel %vm3442_vm14, %v4652_v6, %v4648_v11  ;;  %v647_v6 = vpop.f32.mrf.mxu0 }
 0x1f0   :  { %v4173_v29 = vsel %vm2764_vm7, %v3983_v18, %v4172_v10  ;;  %v4858_v31 = vsel %vm2762_vm5, %v4656_v1, %v4857_v28  ;;  %v13832_v21 = vrot.slane %v1883_v22, %v12360_v15  ;;  %v13835_v35 = vld [vmem:[#allocation2 + $0xd0] sm:$0xff]  ;;  %v938_v36 = vsel %vm810_vm15, %v746_v2, %v874_v13 }
 0x1f1   :  { %v4174_v27 = vsel %vm2766_vm8, %v3987_v25, %v4173_v29  ;;  %v4859_v7 = vsel %vm2764_vm7, %v4660_v26, %v4858_v31  ;;  %v748_v37 = vadd.f32 %v13449_v16, %v637_v14  ;;  %11189 = vmatprep.mubr.msk.f32.mxu1 %vm2104_vm3, %v13835_v35  ;;  %v1898_v45 = vcombine.high %v13823_v24, %v13823_v24 }
 0x1f2   :  { %v4175_v39 = vsel %vm2768_vm10, %v3991_v54, %v4174_v27  ;;  %v4860_v44 = vsel %vm2766_vm8, %v4664_v0, %v4859_v7  ;;  %v13848_v34 = vcombine.high %v13832_v21, %v13832_v21  ;;  %v4676_v30 = vrot.slane %v13769_v23, %v12367_v20 }
 0x1f3   :  { %v4176_v46 = vsel %vm2770_vm11, %v3995_v61, %v4175_v39  ;;  %v4861_v47 = vsel %vm2768_vm10, %v4668_v3, %v4860_v44  ;;  %v13855_v51 = vadd.f32 %v13449_v16, %v11154_v33  ;;  %vm813_vm0 = vcmp.gt.f32.partialorder %v749_v32, 0.0 }
 0x1f4   :  { %v4177_v40 = vsel %vm2772_vm12, %v3999_v62, %v4176_v46  ;;  %v4862_v42 = vsel %vm2770_vm11, %v4672_v56, %v4861_v47  ;;  %v2665_v38 = vrot.slane %v13848_v34, %v12364_v19  ;;  %v2653_v23 = vrot.slane %v13823_v24, %v12364_v19 }
 0x1f5   :  { %4253 = vst.msk [vmem:[#allocation2 + $0x310] sm:$0xfe] %vm2897_vm13, %v4177_v40  ;;  %v4863_v53 = vsel %vm2772_vm12, %v4676_v30, %v4862_v42  ;;  %v1866_v54 = vcombine.high %v938_v36, %v938_v36  ;;  %v1873_v55 = vrot.slane %v938_v36, %v12360_v15  ;;  %v2657_v57 = vrot.slane %v1898_v45, %v12364_v19 }
 0x1f6   :  { %4914 = vst.msk [vmem:[#allocation2 + $0x430] sm:$0xff] %vm2104_vm3, %v4863_v53  ;;  %v3333_v58 = vrot.slane %v13823_v24, %v12367_v20  ;;  %v877_v49 = vmul.f32 0.2, %v749_v32  ;;  %v876_v5 = vmul.f32 0.2, %v748_v37  ;;  %v2661_v59 = vrot.slane %v13832_v21, %v12364_v19 }
 0x1f7   :  { %2923 = vst.msk [vmem:[#allocation2 + $0xe8] sm:$0x1] %vm2106_vm2, %v2665_v38  ;;  %v1880_v50 = vrot.slane %v1866_v54, %v12360_v15  ;;  %v1881_v52 = vcombine.high %v1873_v55, %v1873_v55  ;;  %vm812_vm1 = vcmp.gt.f32.partialorder %v748_v37, 0.0  ;;  %v3337_v61 = vrot.slane %v1898_v45, %v12367_v20 }
 0x1f8   :  { %v2637_v62 = vrot.slane %v1873_v55, %v12364_v19  ;;  %v3317_v0 = vrot.slane %v1873_v55, %v12367_v20  ;;  %v941_v2 = vsel %vm813_vm0, %v749_v32, %v877_v49  ;;  %v3341_v8 = vrot.slane %v13832_v21, %v12367_v20 }
 0x1f9   :  { %v1882_v3 = vcombine.high %v1880_v50, %v1880_v50  ;;  %v2641_v56 = vrot.slane %v1881_v52, %v12364_v19  ;;  %v2645_v4 = vrot.slane %v1880_v50, %v12364_v19  ;;  %v3321_v48 = vrot.slane %v1881_v52, %v12367_v20 }
 0x1fa   :  { %v3325_v11 = vrot.slane %v1880_v50, %v12367_v20  ;;  %v1917_v60 = vcombine.high %v941_v2, %v941_v2  ;;  %v940_v13 = vsel %vm812_vm1, %v748_v37, %v876_v5  ;;  %v13891_v24 = vrot.slane %v941_v2, %v12360_v15  ;;  %v11157_v50 = vpop.f32.mrf.mxu0 }
 0x1fb   :  { %v2649_v14 = vrot.slane %v1882_v3, %v12364_v19  ;;  %v2840_v17 = vsel %vm2762_vm5, %v2641_v56, %v2637_v62  ;;  %v3329_v63 = vrot.slane %v1882_v3, %v12367_v20  ;;  %v3527_v18 = vsel %vm3442_vm14, %v3321_v48, %v3317_v0 }
 0x1fc   :  { %v2841_v1 = vsel %vm2764_vm7, %v2645_v4, %v2840_v17  ;;  %v3528_v22 = vsel %vm2762_vm5, %v3325_v11, %v3527_v18  ;;  %v13894_v25 = vrot.slane %v1917_v60, %v12360_v15  ;;  %v1900_v28 = vcombine.high %v940_v13, %v940_v13 }
 0x1fd   :  { %v2842_v10 = vsel %vm2766_vm8, %v2649_v14, %v2841_v1  ;;  %v3529_v26 = vsel %vm2764_vm7, %v3329_v63, %v3528_v22  ;;  %v879_v29 = vmul.f32 0.2, %v13855_v51  ;;  %v5847_v31 = vld [vmem:[#allocation2 + $0x430] sm:$0xff]  ;;  %v750_v27 = vadd.f32 %v13449_v16, %v647_v6 }
 0x1fe   :  { %v2843_v21 = vsel %vm2768_vm10, %v2653_v23, %v2842_v10  ;;  %v3530_v32 = vsel %vm2766_vm8, %v3333_v58, %v3529_v26  ;;  %v13903_v33 = vcombine.high %v13894_v25, %v13894_v25  ;;  %11301 = vmatprep.mubr.msk.f32.mxu0 %vm2104_vm3, %v5847_v31  ;;  %v3345_v7 = vrot.slane %v13848_v34, %v12367_v20 }
 0x1ff   :  { %v2844_v36 = vsel %vm2770_vm11, %v2657_v57, %v2843_v21  ;;  %v3531_v37 = vsel %vm2768_vm10, %v3337_v61, %v3530_v32  ;;  %vm815_vm4 = vcmp.gt.f32.partialorder %v13855_v51, 0.0  ;;  %v1932_v45 = vcombine.high %v13891_v24, %v13891_v24  ;;  %v657_v21 = vpop.f32.mrf.mxu0 }
 0x200   :  { %v2845_v39 = vsel %vm2772_vm12, %v2661_v59, %v2844_v36  ;;  %v3532_v44 = vsel %vm2770_vm11, %v3341_v8, %v3531_v37  ;;  %v4035_v30 = vrot.slane %v13903_v33, %v12364_v19  ;;  %v4023_v46 = vrot.slane %v13891_v24, %v12364_v19 }
 0x201   :  { %2922 = vst.msk [vmem:[#allocation2 + $0xe0] sm:$0xfe] %vm2897_vm13, %v2845_v39  ;;  %v3533_v34 = vsel %vm2772_vm12, %v3345_v7, %v3532_v44  ;;  %v1907_v47 = vrot.slane %v940_v13, %v12360_v15  ;;  %v1914_v40 = vrot.slane %v1900_v28, %v12360_v15  ;;  %v4696_v42 = vrot.slane %v13891_v24, %v12367_v20 }
 0x202   :  { %3584 = vst.msk [vmem:[#allocation2 + $0x200] sm:$0xff] %vm2104_vm3, %v3533_v34  ;;  %v943_v38 = vsel %vm815_vm4, %v13855_v51, %v879_v29  ;;  %vm814_vm6 = vcmp.gt.f32.partialorder %v750_v27, 0.0  ;;  %v878_v53 = vmul.f32 0.2, %v750_v27  ;;  %v4027_v0 = vrot.slane %v1932_v45, %v12364_v19 }
 0x203   :  { %4256 = vst.msk [vmem:[#allocation2 + $0x328] sm:$0x1] %vm2106_vm2, %v4035_v30  ;;  %v1915_v23 = vcombine.high %v1907_v47, %v1907_v47  ;;  %v1916_v54 = vcombine.high %v1914_v40, %v1914_v40  ;;  %v4007_v55 = vrot.slane %v1907_v47, %v12364_v19  ;;  %v4015_v57 = vrot.slane %v1914_v40, %v12364_v19 }
 0x204   :  { %v4680_v58 = vrot.slane %v1907_v47, %v12367_v20  ;;  %v4688_v49 = vrot.slane %v1914_v40, %v12367_v20  ;;  %v1951_v5 = vcombine.high %v943_v38, %v943_v38  ;;  %v13934_v59 = vrot.slane %v943_v38, %v12360_v15 }
 0x205   :  { %v4011_v52 = vrot.slane %v1915_v23, %v12364_v19  ;;  %v4019_v51 = vrot.slane %v1916_v54, %v12364_v19  ;;  %v4684_v61 = vrot.slane %v1915_v23, %v12367_v20  ;;  %v4692_v62 = vrot.slane %v1916_v54, %v12367_v20 }
 0x206   :  { %v4031_v2 = vrot.slane %v13894_v25, %v12364_v19  ;;  %v4700_v3 = vrot.slane %v1932_v45, %v12367_v20  ;;  %v13945_v56 = vrot.slane %v1951_v5, %v12360_v15  ;;  %v4704_v4 = vrot.slane %v13894_v25, %v12367_v20 }
 0x207   :  { %v4178_v48 = vsel %vm2762_vm5, %v4011_v52, %v4007_v55  ;;  %v4864_v8 = vsel %vm3442_vm14, %v4684_v61, %v4680_v58  ;;  %v753_v11 = vadd.f32 %v13449_v16, %v11157_v50  ;;  %v942_v17 = vsel %vm814_vm6, %v750_v27, %v878_v53  ;;  %v11160_v53 = vpop.f32.mrf.mxu0 }
 0x208   :  { %v4179_v60 = vsel %vm2764_vm7, %v4015_v57, %v4178_v48  ;;  %v4865_v13 = vsel %vm2762_vm5, %v4688_v49, %v4864_v8  ;;  %v13956_v14 = vcombine.high %v13945_v56, %v13945_v56  ;;  %v13959_v63 = vld [vmem:[#allocation2 + $0xe0] sm:$0xff]  ;;  %v4708_v18 = vrot.slane %v13903_v33, %v12367_v20 }
 0x209   :  { %v4180_v6 = vsel %vm2766_vm8, %v4019_v51, %v4179_v60  ;;  %v4866_v1 = vsel %vm2764_vm7, %v4692_v62, %v4865_v13  ;;  %v1966_v22 = vcombine.high %v13934_v59, %v13934_v59  ;;  %11190 = vmatmul.mubr.msk.f32.gmra.mxu1 %vm2104_vm3, %v13959_v63  ;;  %v2685_v10 = vrot.slane %v13934_v59, %v12364_v19 }
 0x20a   :  { %v4181_v24 = vsel %vm2768_vm10, %v4023_v46, %v4180_v6  ;;  %v4867_v25 = vsel %vm2766_vm8, %v4696_v42, %v4866_v1  ;;  %v2697_v26 = vrot.slane %v13956_v14, %v12364_v19  ;;  %v1934_v31 = vcombine.high %v942_v17, %v942_v17 }
 0x20b   :  { %v4182_v28 = vsel %vm2770_vm11, %v4027_v0, %v4181_v24  ;;  %v4868_v29 = vsel %vm2768_vm10, %v4700_v3, %v4867_v25  ;;  %vm817_vm9 = vcmp.gt.f32.partialorder %v753_v11, 0.0  ;;  %v1941_v27 = vrot.slane %v942_v17, %v12360_v15  ;;  %v667_v17 = vpop.f32.mrf.mxu0 }
 0x20c   :  { %v4183_v32 = vsel %vm2772_vm12, %v4031_v2, %v4182_v28  ;;  %v4869_v33 = vsel %vm2770_vm11, %v4704_v4, %v4868_v29  ;;  %2925 = vst.msk [vmem:[#allocation2 + $0xf8] sm:$0x1] %vm2106_vm2, %v2697_v26  ;;  %v881_v7 = vmul.f32 0.2, %v753_v11  ;;  %v2689_v37 = vrot.slane %v1966_v22, %v12364_v19 }
 0x20d   :  { %4255 = vst.msk [vmem:[#allocation2 + $0x320] sm:$0xfe] %vm2897_vm13, %v4183_v32  ;;  %v4870_v36 = vsel %vm2772_vm12, %v4708_v18, %v4869_v33  ;;  %v3365_v39 = vrot.slane %v13934_v59, %v12367_v20  ;;  %v1948_v44 = vrot.slane %v1934_v31, %v12360_v15  ;;  %v2693_v45 = vrot.slane %v13945_v56, %v12364_v19  ;;  %v14050_v33 = vld [vmem:[%s15692_s2] ss:$0 sm:$0xff] }
 0x20e   :  { %4915 = vst.msk [vmem:[#allocation2 + $0x440] sm:$0xff] %vm2104_vm3, %v4870_v36  ;;  %v1949_v30 = vcombine.high %v1941_v27, %v1941_v27  ;;  %v945_v34 = vsel %vm817_vm9, %v753_v11, %v881_v7  ;;  %v752_v46 = vadd.f32 %v13449_v16, %v657_v21  ;;  %v2669_v23 = vrot.slane %v1941_v27, %v12364_v19  ;;  %v11163_v7 = vpop.f32.mrf.mxu0 }
 0x20f   :  { %v1950_v47 = vcombine.high %v1948_v44, %v1948_v44  ;;  %v2677_v40 = vrot.slane %v1948_v44, %v12364_v19  ;;  %v3357_v42 = vrot.slane %v1948_v44, %v12367_v20  ;;  %v1985_v38 = vcombine.high %v945_v34, %v945_v34 }
 0x210   :  { %v2673_v54 = vrot.slane %v1949_v30, %v12364_v19  ;;  %v3349_v55 = vrot.slane %v1941_v27, %v12367_v20  ;;  %v3353_v57 = vrot.slane %v1949_v30, %v12367_v20  ;;  %v14000_v5 = vrot.slane %v945_v34, %v12360_v15 }
 0x211   :  { %v2681_v58 = vrot.slane %v1950_v47, %v12364_v19  ;;  %v3361_v49 = vrot.slane %v1950_v47, %v12367_v20  ;;  %v14003_v59 = vrot.slane %v1985_v38, %v12360_v15  ;;  %v3369_v50 = vrot.slane %v1966_v22, %v12367_v20 }
 0x212   :  { %v2846_v52 = vsel %vm2762_vm5, %v2673_v54, %v2669_v23  ;;  %v3534_v51 = vsel %vm3442_vm14, %v3353_v57, %v3349_v55  ;;  %v755_v61 = vadd.f32 %v13449_v16, %v11160_v53  ;;  %v880_v3 = vmul.f32 0.2, %v752_v46  ;;  %v677_v55 = vpop.f32.mrf.mxu0 }
 0x213   :  { %v2847_v62 = vsel %vm2764_vm7, %v2677_v40, %v2846_v52  ;;  %v3535_v0 = vsel %vm2762_vm5, %v3357_v42, %v3534_v51  ;;  %v14013_v2 = vcombine.high %v14003_v59, %v14003_v59  ;;  %v3373_v4 = vrot.slane %v13945_v56, %v12367_v20 }
 0x214   :  { %v2848_v48 = vsel %vm2766_vm8, %v2681_v58, %v2847_v62  ;;  %v3536_v8 = vsel %vm2764_vm7, %v3361_v49, %v3535_v0  ;;  %vm816_vm15 = vcmp.gt.f32.partialorder %v752_v46, 0.0  ;;  %v14023_v60 = vcombine.high %v14000_v5, %v14000_v5 }
 0x215   :  { %v2849_v11 = vsel %vm2768_vm10, %v2685_v10, %v2848_v48  ;;  %v3537_v16 = vsel %vm2766_vm8, %v3365_v39, %v3536_v8  ;;  %v4067_v13 = vrot.slane %v14013_v2, %v12364_v19  ;;  %v5848_v18 = vld [vmem:[#allocation2 + $0x440] sm:$0xff]  ;;  %v3377_v56 = vrot.slane %v13956_v14, %v12367_v20 }
 0x216   :  { %v2850_v6 = vsel %vm2770_vm11, %v2689_v37, %v2849_v11  ;;  %v3538_v1 = vsel %vm2768_vm10, %v3369_v50, %v3537_v16  ;;  %v4055_v22 = vrot.slane %v14000_v5, %v12364_v19  ;;  %11302 = vmatmul.mubr.msk.f32.gmra.mxu0 %vm2104_vm3, %v5848_v18  ;;  %v944_v10 = vsel %vm816_vm15, %v752_v46, %v880_v3 }
 0x217   :  { %v2851_v24 = vsel %vm2772_vm12, %v2693_v45, %v2850_v6  ;;  %v3539_v25 = vsel %vm2770_vm11, %v3373_v4, %v3538_v1  ;;  %4258 = vst.msk [vmem:[#allocation2 + $0x338] sm:$0x1] %vm2106_vm2, %v4067_v13  ;;  %vm819_vm0 = vcmp.gt.f32.partialorder %v755_v61, 0.0  ;;  %v1968_v26 = vcombine.high %v944_v10, %v944_v10 }
 0x218   :  { %2924 = vst.msk [vmem:[#allocation2 + $0xf0] sm:$0xfe] %vm2897_vm13, %v2851_v24  ;;  %v3540_v14 = vsel %vm2772_vm12, %v3377_v56, %v3539_v25  ;;  %v1975_v28 = vrot.slane %v944_v10, %v12360_v15  ;;  %v883_v29 = vmul.f32 0.2, %v755_v61  ;;  %v4059_v31 = vrot.slane %v14023_v60, %v12364_v19 }
 0x219   :  { %3585 = vst.msk [vmem:[#allocation2 + $0x210] sm:$0xff] %vm2104_vm3, %v3540_v14  ;;  %v4063_v21 = vrot.slane %v14003_v59, %v12364_v19  ;;  %v4728_v32 = vrot.slane %v14000_v5, %v12367_v20  ;;  %v754_v27 = vadd.f32 %v14050_v33, %v667_v17  ;;  %v4732_v36 = vrot.slane %v14023_v60, %v12367_v20  ;;  %v11166_v60 = vpop.f32.mrf.mxu0 }
 0x21a   :  { %v4736_v37 = vrot.slane %v14003_v59, %v12367_v20  ;;  %v1982_v39 = vrot.slane %v1968_v26, %v12360_v15  ;;  %v1983_v44 = vcombine.high %v1975_v28, %v1975_v28  ;;  %v4039_v45 = vrot.slane %v1975_v28, %v12364_v19 }
 0x21b   :  { %v4712_v30 = vrot.slane %v1975_v28, %v12367_v20  ;;  %v947_v34 = vsel %vm819_vm0, %v755_v61, %v883_v29  ;;  %v882_v46 = vmul.f32 0.2, %v754_v27  ;;  %vm818_vm1 = vcmp.gt.f32.partialorder %v754_v27, 0.0 }
 0x21c   :  { %v1984_v47 = vcombine.high %v1982_v39, %v1982_v39  ;;  %v4043_v40 = vrot.slane %v1983_v44, %v12364_v19  ;;  %v4047_v42 = vrot.slane %v1982_v39, %v12364_v19  ;;  %v4716_v38 = vrot.slane %v1983_v44, %v12367_v20 }
 0x21d   :  { %v4720_v53 = vrot.slane %v1982_v39, %v12367_v20  ;;  %v2019_v23 = vcombine.high %v947_v34, %v947_v34  ;;  %v14066_v54 = vrot.slane %v947_v34, %v12360_v15  ;;  %v757_v51 = vadd.f32 %v14050_v33, %v11163_v7 }
 0x21e   :  { %v4051_v57 = vrot.slane %v1984_v47, %v12364_v19  ;;  %v4184_v58 = vsel %vm2762_vm5, %v4043_v40, %v4039_v45  ;;  %v4724_v49 = vrot.slane %v1984_v47, %v12367_v20  ;;  %v4871_v5 = vsel %vm3442_vm14, %v4716_v38, %v4712_v30 }
 0x21f   :  { %v4185_v59 = vsel %vm2764_vm7, %v4047_v42, %v4184_v58  ;;  %v4872_v50 = vsel %vm2762_vm5, %v4720_v53, %v4871_v5  ;;  %v14075_v52 = vrot.slane %v2019_v23, %v12360_v15  ;;  %v14078_v61 = vld [vmem:[#allocation2 + $0xf0] sm:$0xff]  ;;  %v946_v3 = vsel %vm818_vm1, %v754_v27, %v882_v46  ;;  %v687_v42 = vpop.f32.mrf.mxu0 }
 0x220   :  { %v4186_v62 = vsel %vm2766_vm8, %v4051_v57, %v4185_v59  ;;  %v4873_v0 = vsel %vm2764_vm7, %v4724_v49, %v4872_v50  ;;  %v756_v4 = vadd.f32 %v14050_v33, %v677_v55  ;;  %11192 = vmatprep.mubr.msk.f32.mxu1 %vm2104_vm3, %v14078_v61  ;;  %v2034_v11 = vcombine.high %v14066_v54, %v14066_v54 }
 0x221   :  { %v4187_v48 = vsel %vm2768_vm10, %v4055_v22, %v4186_v62  ;;  %v4874_v8 = vsel %vm2766_vm8, %v4728_v32, %v4873_v0  ;;  %v14091_v16 = vcombine.high %v14075_v52, %v14075_v52  ;;  %v4740_v13 = vrot.slane %v14013_v2, %v12367_v20 }
 0x222   :  { %v4188_v17 = vsel %vm2770_vm11, %v4059_v31, %v4187_v48  ;;  %v4875_v18 = vsel %vm2768_vm10, %v4732_v36, %v4874_v8  ;;  %v14098_v56 = vadd.f32 %v14050_v33, %v11166_v60  ;;  %vm821_vm4 = vcmp.gt.f32.partialorder %v757_v51, 0.0 }
 0x223   :  { %v4189_v6 = vsel %vm2772_vm12, %v4063_v21, %v4188_v17  ;;  %v4876_v1 = vsel %vm2770_vm11, %v4736_v37, %v4875_v18  ;;  %v2729_v22 = vrot.slane %v14091_v16, %v12364_v19  ;;  %v2717_v2 = vrot.slane %v14066_v54, %v12364_v19 }
 0x224   :  { %4257 = vst.msk [vmem:[#allocation2 + $0x330] sm:$0xfe] %vm2897_vm13, %v4189_v6  ;;  %v4877_v24 = vsel %vm2772_vm12, %v4740_v13, %v4876_v1  ;;  %v2002_v25 = vcombine.high %v946_v3, %v946_v3  ;;  %v2009_v10 = vrot.slane %v946_v3, %v12360_v15  ;;  %v2721_v14 = vrot.slane %v2034_v11, %v12364_v19 }
 0x225   :  { %4916 = vst.msk [vmem:[#allocation2 + $0x450] sm:$0xff] %vm2104_vm3, %v4877_v24  ;;  %v3397_v26 = vrot.slane %v14066_v54, %v12367_v20  ;;  %v885_v28 = vmul.f32 0.2, %v757_v51  ;;  %v884_v29 = vmul.f32 0.2, %v756_v4  ;;  %v2725_v31 = vrot.slane %v14075_v52, %v12364_v19 }
 0x226   :  { %2927 = vst.msk [vmem:[#allocation2 + $0x108] sm:$0x1] %vm2106_vm2, %v2729_v22  ;;  %v2016_v21 = vrot.slane %v2002_v25, %v12360_v15  ;;  %v2017_v32 = vcombine.high %v2009_v10, %v2009_v10  ;;  %vm820_vm6 = vcmp.gt.f32.partialorder %v756_v4, 0.0  ;;  %v3401_v27 = vrot.slane %v2034_v11, %v12367_v20 }
 0x227   :  { %v2701_v7 = vrot.slane %v2009_v10, %v12364_v19  ;;  %v3381_v36 = vrot.slane %v2009_v10, %v12367_v20  ;;  %v949_v37 = vsel %vm821_vm4, %v757_v51, %v885_v28  ;;  %v3405_v34 = vrot.slane %v14075_v52, %v12367_v20 }
 0x228   :  { %v2018_v39 = vcombine.high %v2016_v21, %v2016_v21  ;;  %v2705_v44 = vrot.slane %v2017_v32, %v12364_v19  ;;  %v2709_v45 = vrot.slane %v2016_v21, %v12364_v19  ;;  %v3385_v30 = vrot.slane %v2017_v32, %v12367_v20 }
 0x229   :  { %v3389_v46 = vrot.slane %v2016_v21, %v12367_v20  ;;  %v2053_v47 = vcombine.high %v949_v37, %v949_v37  ;;  %v948_v40 = vsel %vm820_vm6, %v756_v4, %v884_v29  ;;  %v887_v49 = vmul.f32 0.2, %v14098_v56 }
 0x22a   :  { %v2713_v38 = vrot.slane %v2018_v39, %v12364_v19  ;;  %v2852_v53 = vsel %vm2762_vm5, %v2705_v44, %v2701_v7  ;;  %v3393_v23 = vrot.slane %v2018_v39, %v12367_v20  ;;  %v3541_v54 = vsel %vm3442_vm14, %v3385_v30, %v3381_v36 }
 0x22b   :  { %v2853_v55 = vsel %vm2764_vm7, %v2709_v45, %v2852_v53  ;;  %v3542_v57 = vsel %vm2762_vm5, %v3389_v46, %v3541_v54  ;;  %v14134_v58 = vrot.slane %v2053_v47, %v12360_v15  ;;  %v2036_v50 = vcombine.high %v948_v40, %v948_v40 }
 0x22c   :  { %v2854_v5 = vsel %vm2766_vm8, %v2713_v38, %v2853_v55  ;;  %v3543_v59 = vsel %vm2764_vm7, %v3393_v23, %v3542_v57  ;;  %v5849_v52 = vld [vmem:[#allocation2 + $0x450] sm:$0xff]  ;;  %v758_v51 = vadd.f32 %v14050_v33, %v687_v42  ;;  %v2060_v3 = vrot.slane %v949_v37, %v12360_v15 }
 0x22d   :  { %v2855_v62 = vsel %vm2768_vm10, %v2717_v2, %v2854_v5  ;;  %v3544_v0 = vsel %vm2766_vm8, %v3397_v26, %v3543_v59  ;;  %v14145_v4 = vcombine.high %v14134_v58, %v14134_v58  ;;  %11304 = vmatprep.mubr.msk.f32.mxu0 %vm2104_vm3, %v5849_v52  ;;  %v3409_v48 = vrot.slane %v14091_v16, %v12367_v20 }
 0x22e   :  { %v2856_v8 = vsel %vm2770_vm11, %v2721_v14, %v2855_v62  ;;  %v3545_v11 = vsel %vm2768_vm10, %v3401_v27, %v3544_v0  ;;  %vm823_vm9 = vcmp.gt.f32.partialorder %v14098_v56, 0.0  ;;  %v2043_v18 = vrot.slane %v948_v40, %v12360_v15  ;;  %v14210_v62 = vld [vmem:[#allocation2 + $0x130] sm:$0xff] }
 0x22f   :  { %v2857_v33 = vsel %vm2772_vm12, %v2725_v31, %v2856_v8  ;;  %v3546_v60 = vsel %vm2770_vm11, %v3405_v34, %v3545_v11  ;;  %v4099_v13 = vrot.slane %v14145_v4, %v12364_v19  ;;  %v2050_v16 = vrot.slane %v2036_v50, %v12360_v15  ;;  %v5154_v34 = vld [vmem:[#allocation2 + $0x120] sm:$0xff] }
 0x230   :  { %2926 = vst.msk [vmem:[#allocation2 + $0x100] sm:$0xfe] %vm2897_vm13, %v2857_v33  ;;  %v3547_v17 = vsel %vm2772_vm12, %v3409_v48, %v3546_v60  ;;  %v2068_v6 = vcombine.high %v2060_v3, %v2060_v3  ;;  %v4087_v1 = vrot.slane %v2060_v3, %v12364_v19  ;;  %v951_v22 = vsel %vm823_vm9, %v14098_v56, %v887_v49  ;;  %v14221_v48 = vld [vmem:[#allocation2 + $0x140] sm:$0xff]  ;;  %v11780_v33 = vld [vmem:[%s15691_s3 + $0x28] sm:$0xff] }
 0x231   :  { %3586 = vst.msk [vmem:[#allocation2 + $0x220] sm:$0xff] %vm2104_vm3, %v3547_v17  ;;  %vm822_vm15 = vcmp.gt.f32.partialorder %v758_v51, 0.0  ;;  %v2051_v24 = vcombine.high %v2043_v18, %v2043_v18  ;;  %v2052_v2 = vcombine.high %v2050_v16, %v2050_v16  ;;  %v4071_v25 = vrot.slane %v2043_v18, %v12364_v19 }
 0x232   :  { %4260 = vst.msk [vmem:[#allocation2 + $0x348] sm:$0x1] %vm2106_vm2, %v4099_v13  ;;  %v886_v10 = vmul.f32 0.2, %v758_v51  ;;  %v4079_v14 = vrot.slane %v2050_v16, %v12364_v19  ;;  %v4744_v26 = vrot.slane %v2043_v18, %v12367_v20  ;;  %v4752_v28 = vrot.slane %v2050_v16, %v12367_v20  ;;  %v14235_v18 = vld [vmem:[%s15691_s3 + $0x38] sm:$0xff] }
 0x233   :  { %v2087_v29 = vcombine.high %v951_v22, %v951_v22  ;;  %v4075_v31 = vrot.slane %v2051_v24, %v12364_v19  ;;  %v4083_v21 = vrot.slane %v2052_v2, %v12364_v19  ;;  %v4748_v32 = vrot.slane %v2051_v24, %v12367_v20 }
 0x234   :  { %v4756_v56 = vrot.slane %v2052_v2, %v12367_v20  ;;  %v4091_v27 = vrot.slane %v2068_v6, %v12364_v19  ;;  %v4095_v7 = vrot.slane %v14134_v58, %v12364_v19  ;;  %v4760_v36 = vrot.slane %v2060_v3, %v12367_v20  ;;  %v5397_v3 = vld [vmem:[%s15691_s3 + $0x20] sm:$0xff] }
 0x235   :  { %v14178_v37 = vrot.slane %v2087_v29, %v12360_v15  ;;  %v4764_v39 = vrot.slane %v2068_v6, %v12367_v20  ;;  %v4768_v44 = vrot.slane %v14134_v58, %v12367_v20  ;;  %v4190_v45 = vsel %vm2762_vm5, %v4075_v31, %v4071_v25 }
 0x236   :  { %v4878_v30 = vsel %vm3442_vm14, %v4748_v32, %v4744_v26  ;;  %v4191_v46 = vsel %vm2764_vm7, %v4079_v14, %v4190_v45  ;;  %v950_v38 = vsel %vm822_vm15, %v758_v51, %v886_v10  ;;  %v4772_v53 = vrot.slane %v14145_v4, %v12367_v20  ;;  %v14247_v14 = vld [vmem:[#allocation2 + $0x160] sm:$0xff] }
 0x237   :  { %v4879_v47 = vsel %vm2762_vm5, %v4752_v28, %v4878_v30  ;;  %v14187_v40 = vld [vmem:[#allocation2 + $0x100] sm:$0xff]  ;;  %v14191_v42 = vcombine.high %v14178_v37, %v14178_v37  ;;  %v4192_v23 = vsel %vm2766_vm8, %v4083_v21, %v4191_v46  ;;  %v2094_v55 = vrot.slane %v951_v22, %v12360_v15  ;;  %v14239_v22 = vld [vmem:[#allocation2 + $0x150] sm:$0xff] }
 0x238   :  { %v4880_v54 = vsel %vm2764_vm7, %v4756_v56, %v4879_v47  ;;  %11193 = vmatmul.mubr.msk.f32.gmra.mxu1 %vm2104_vm3, %v14187_v40  ;;  %v4193_v57 = vsel %vm2768_vm10, %v4087_v1, %v4192_v23  ;;  %v2070_v50 = vcombine.high %v950_v38, %v950_v38  ;;  %v2077_v0 = vrot.slane %v950_v38, %v12360_v15  ;;  %v14268_v30 = vld [vmem:[#allocation2 + $0x170] sm:$0xff] }
 0x239   :  { %v4881_v58 = vsel %vm2766_vm8, %v4760_v36, %v4880_v54  ;;  %11199 = vmatprep.mubr.msk.f32.mxu1 %vm2104_vm3, %v5154_v34  ;;  %v2761_v49 = vrot.slane %v14191_v42, %v12364_v19  ;;  %v4194_v5 = vsel %vm2770_vm11, %v4091_v27, %v4193_v57  ;;  %v2102_v8 = vcombine.high %v2094_v55, %v2094_v55  ;;  %v6289_v38 = vld [vmem:[#allocation2 + $0x10] sm:$0xff] }
 0x23a   :  { %v4882_v59 = vsel %vm2768_vm10, %v4764_v39, %v4881_v58  ;;  %v4195_v52 = vsel %vm2772_vm12, %v4095_v7, %v4194_v5  ;;  %v2084_v11 = vrot.slane %v2070_v50, %v12360_v15  ;;  %v2085_v60 = vcombine.high %v2077_v0, %v2077_v0  ;;  %v14286_v58 = vld [vmem:[#allocation2 + $0x190] sm:$0xff]  ;;  %v6759_v5 = vld [vmem:[%s15691_s3 + $0x80] sm:$0xff] }
 0x23b   :  { %v4883_v51 = vsel %vm2770_vm11, %v4768_v44, %v4882_v59  ;;  %2929 = vst.msk [vmem:[#allocation2 + $0x118] sm:$0x1] %vm2106_vm2, %v2761_v49  ;;  %v2733_v13 = vrot.slane %v2077_v0, %v12364_v19  ;;  %v3413_v17 = vrot.slane %v2077_v0, %v12367_v20  ;;  %v2749_v24 = vrot.slane %v2094_v55, %v12364_v19  ;;  %v6290_v49 = vld [vmem:[#allocation2 + $0x20] sm:$0xff]  ;;  %v6291_v59 = vld [vmem:[#allocation2 + $0x30] sm:$0xff] }
 0x23c   :  { %4259 = vst.msk [vmem:[#allocation2 + $0x340] sm:$0xfe] %vm2897_vm13, %v4195_v52  ;;  %v4884_v4 = vsel %vm2772_vm12, %v4772_v53, %v4883_v51  ;;  %11200 = vmatmul.mubr.msk.f32.vlgmr.msra.gmra.mxu1 %vm2104_vm3, %v14210_v62  ;;  %v2086_v16 = vcombine.high %v2084_v11, %v2084_v11  ;;  %v2741_v6 = vrot.slane %v2084_v11, %v12364_v19  ;;  %v14298_v50 = vld [vmem:[#allocation2 + $0x1c0] sm:$0xff]  ;;  %v14302_v51 = vld [vmem:[#allocation2 + $0x1d0] sm:$0xff]  ;;  %vm7306_vm2 = vcmask 258048  }
 0x23d   :  { %4917 = vst.msk [vmem:[#allocation2 + $0x460] sm:$0xff] %vm2104_vm3, %v4884_v4  ;;  %11224 = vmatpush3.msra.mxu1 %v11780_v33  ;;  %11202 = vmatprep.mubr.msk.f32.mxu1 %vm2104_vm3, %v14221_v48  ;;  %v3421_v1 = vrot.slane %v2084_v11, %v12367_v20  ;;  %v2737_v2 = vrot.slane %v2085_v60, %v12364_v19  ;;  %v6292_v52 = vld [vmem:[#allocation2 + $0x40] sm:$0xff]  ;;  %v6293_v0 = vld [vmem:[#allocation2 + $0x50] sm:$0xff]  ;;  %vm8057_vm0 = vcmask 261120  }
 0x23e   :  { %11225 = vmatprep.subr.mxu1 %v5397_v3  ;;  %v3417_v25 = vrot.slane %v2085_v60, %v12367_v20  ;;  %v3429_v10 = vrot.slane %v2094_v55, %v12367_v20  ;;  %v2745_v26 = vrot.slane %v2086_v16, %v12364_v19  ;;  %v3425_v28 = vrot.slane %v2086_v16, %v12367_v20  ;;  %v5162_v55 = vld [vmem:[#allocation2 + $0x1b0] sm:$0xff]  ;;  %v14318_v11 = vld [vmem:[#allocation2 + $0x200] sm:$0xff] }
 0x23f   :  { %11226 = vmatpush3.msra.mxu1 %v5397_v3  ;;  %v2753_v29 = vrot.slane %v2102_v8, %v12364_v19  ;;  %v3433_v31 = vrot.slane %v2102_v8, %v12367_v20  ;;  %v2858_v21 = vsel %vm2762_vm5, %v2737_v2, %v2733_v13  ;;  %v2757_v56 = vrot.slane %v14178_v37, %v12364_v19  ;;  %v14308_v3 = vld [vmem:[#allocation2 + $0x1e0] sm:$0xff]  ;;  %v14312_v4 = vld [vmem:[#allocation2 + $0x1f0] sm:$0xff] }
 0x240   :  { %11203 = vmatmul.mubr.msk.f32.gmra.mxu1 %vm2104_vm3, %v14239_v22  ;;  %11251 = vmatprep.subr.mxu1 %v14235_v18  ;;  %v3548_v32 = vsel %vm3442_vm14, %v3417_v25, %v3413_v17  ;;  %v3437_v27 = vrot.slane %v14178_v37, %v12367_v20  ;;  %v2859_v7 = vsel %vm2764_vm7, %v2741_v6, %v2858_v21  ;;  %v14274_v37 = vld [vmem:[#allocation2 + $0x180] sm:$0xff]  ;;  %v6295_v8 = vld [vmem:[#allocation2 + $0x70] sm:$0xff] }
 0x241   :  { %11205 = vmatprep.mubr.msk.f32.mxu1 %vm2104_vm3, %v14247_v14  ;;  %v3549_v36 = vsel %vm2762_vm5, %v3421_v1, %v3548_v32  ;;  %v3441_v39 = vrot.slane %v14191_v42, %v12367_v20  ;;  %v2860_v44 = vsel %vm2766_vm8, %v2745_v26, %v2859_v7  ;;  %v6296_v33 = vld [vmem:[#allocation2 + $0x80] sm:$0xff]  ;;  %v14322_v60 = vld [vmem:[#allocation2 + $0x210] sm:$0xff]  ;;  %7308 = vst.msk [vmem:[#allocation3 + $0x8] sm:$0x1f] %vm7306_vm2, %v15702_v43  ;;  %7318 = vst.msk [vmem:[#allocation3 + $0x58] sm:$0x1f] %vm7306_vm2, %v15702_v43 }
 0x242   :  { %v3550_v45 = vsel %vm2764_vm7, %v3425_v28, %v3549_v36  ;;  %v2861_v46 = vsel %vm2768_vm10, %v2749_v24, %v2860_v44  ;;  %v11781_v13 = vld [vmem:[#allocation2 + $0xa0] sm:$0xff]  ;;  %v11782_v6 = vld [vmem:[#allocation2 + $0xb0] sm:$0xff]  ;;  %v6079_v28 = vld [vmem:[%s15691_s3 + $0x58] sm:$0xff]  ;;  %7307 = vst.msk [vmem:[#allocation3] sm:$0x1f] %vm7306_vm2, %v15702_v43 }
 0x243   :  { %v3551_v47 = vsel %vm2766_vm8, %v3429_v10, %v3550_v45  ;;  %v2862_v42 = vsel %vm2770_vm11, %v2753_v29, %v2861_v46  ;;  %v5381_v17 = vld [vmem:[#allocation2 + $0x1] sm:$0xff]  ;;  %v5382_v24 = vld [vmem:[#allocation2 + $0x11] sm:$0xff]  ;;  %7309 = vst.msk [vmem:[#allocation3 + $0x10] sm:$0x1f] %vm7306_vm2, %v15702_v43  ;;  %7310 = vst.msk [vmem:[#allocation3 + $0x18] sm:$0x1f] %vm7306_vm2, %v15702_v43 }
 0x244   :  { %v5850_v34 = vld [vmem:[#allocation2 + $0x460] sm:$0xff]  ;;  %11206 = vmatmul.mubr.msk.f32.gmra.mxu1 %vm2104_vm3, %v14268_v30  ;;  %v3552_v53 = vsel %vm2768_vm10, %v3433_v31, %v3551_v47  ;;  %v2863_v23 = vsel %vm2772_vm12, %v2757_v56, %v2862_v42  ;;  %v5624_v2 = vld [vmem:[%s15691_s3 + $0x30] sm:$0xff]  ;;  %7311 = vst.msk [vmem:[#allocation3 + $0x20] sm:$0x1f] %vm7306_vm2, %v15702_v43  ;;  %7312 = vst.msk [vmem:[#allocation3 + $0x28] sm:$0x1f] %vm7306_vm2, %v15702_v43 }
 0x245   :  { %11305 = vmatmul.mubr.msk.f32.gmra.mxu0 %vm2104_vm3, %v5850_v34  ;;  %11208 = vmatprep.mubr.msk.f32.mxu1 %vm2104_vm3, %v14274_v37  ;;  %v3553_v54 = vsel %vm2770_vm11, %v3437_v27, %v3552_v53  ;;  %2928 = vst.msk [vmem:[#allocation2 + $0x110] sm:$0xfe] %vm2897_vm13, %v2863_v23  ;;  %v14328_v16 = vld [vmem:[#allocation2 + $0x220] sm:$0xff]  ;;  %v5384_v10 = vld [vmem:[#allocation2 + $0x31] sm:$0xff]  ;;  %vm7508_vm10 = vcmask 258049   ;;  %vm7678_vm11 = vcmask 257024  }
 0x246   :  { %11339 = vmatprep.mubr.msk.f32.mxu0 %vm2104_vm3, %v6289_v38  ;;  %v3554_v57 = vsel %vm2772_vm12, %v3441_v39, %v3553_v54  ;;  %v11783_v1 = vld [vmem:[#allocation2 + $0xc0] sm:$0xff]  ;;  %v5389_v29 = vld [vmem:[#allocation2 + $0x91] sm:$0xff]  ;;  %7313 = vst.msk [vmem:[#allocation3 + $0x30] sm:$0x1f] %vm7306_vm2, %v15702_v43  ;;  %7314 = vst.msk [vmem:[#allocation3 + $0x38] sm:$0x1f] %vm7306_vm2, %v15702_v43 }
 0x247   :  { %3587 = vst.msk [vmem:[#allocation2 + $0x230] sm:$0xff] %vm2104_vm3, %v3554_v57  ;;  %v5383_v25 = vld [vmem:[#allocation2 + $0x21] sm:$0xff]  ;;  %v5391_v31 = vld [vmem:[#allocation2 + $0xb1] sm:$0xff] }
 0x248   :  { %11209 = vmatmul.mubr.msk.f32.gmra.mxu1 %vm2104_vm3, %v14286_v58  ;;  %v5385_v26 = vld [vmem:[#allocation2 + $0x41] sm:$0xff]  ;;  %v5393_v32 = vld [vmem:[#allocation2 + $0xd1] sm:$0xff]  ;;  %7315 = vst.msk [vmem:[#allocation3 + $0x40] sm:$0x1f] %vm7306_vm2, %v15702_v43  ;;  %7316 = vst.msk [vmem:[#allocation3 + $0x48] sm:$0x1f] %vm7306_vm2, %v15702_v43 }
 0x249   :  { %11340 = vmatmul.mubr.msk.f32.vlgmr.msra.gmra.mxu0 %vm2104_vm3, %v6290_v49  ;;  %11211 = vmatprep.mubr.msk.f32.mxu1 %vm2104_vm3, %v5162_v55  ;;  %v5392_v21 = vld [vmem:[#allocation2 + $0xc1] sm:$0xff]  ;;  %v5395_v7 = vld [vmem:[#allocation2 + $0xf1] sm:$0xff]  ;;  %7317 = vst.msk [vmem:[#allocation3 + $0x50] sm:$0x1f] %vm7306_vm2, %v15702_v43  ;;  %7319 = vst.msk [vmem:[#allocation3 + $0x60] sm:$0x1f] %vm7306_vm2, %v15702_v43 }
 0x24a   :  { %11342 = vmatprep.mubr.msk.f32.mxu0 %vm2104_vm3, %v6291_v59  ;;  %11392 = vmatpush3.msra.mxu0 %v13774_v41  ;;  %v6294_v41 = vld [vmem:[#allocation2 + $0x60] sm:$0xff]  ;;  %v5609_v44 = vld [vmem:[#allocation2 + $0x250] sm:$0xff]  ;;  %v6533_v38 = vld [vmem:[%s15691_s3 + $0x78] sm:$0xff]  ;;  %7320 = vst.msk [vmem:[#allocation3 + $0x68] sm:$0x1f] %vm7306_vm2, %v15702_v43 }
 0x24b   :  { %11393 = vmatprep.subr.mxu0 %v6759_v5  ;;  %v5394_v56 = vld [vmem:[#allocation2 + $0xe1] sm:$0xff]  ;;  %v6078_v45 = vld [vmem:[%s15691_s3 + $0x50] sm:$0xff]  ;;  %7321 = vst.msk [vmem:[#allocation3 + $0x70] sm:$0x1f] %vm7306_vm2, %v15702_v43  ;;  %7322 = vst.msk [vmem:[#allocation3 + $0x78] sm:$0x1f] %vm7306_vm2, %v15702_v43 }
 0x24c   :  { %11212 = vmatmul.mubr.msk.f32.gmra.mxu1 %vm2104_vm3, %v14298_v50  ;;  %11394 = vmatpush3.msra.mxu0 %v6759_v5  ;;  %v6750_v27 = vld [vmem:[#allocation2 + $0x81] sm:$0xff]  ;;  %v5611_v46 = vld [vmem:[#allocation2 + $0x270] sm:$0xff]  ;;  %7323 = vst.msk [vmem:[#allocation3 + $0x80] sm:$0x1f] %vm7306_vm2, %v15702_v43  ;;  %7324 = vst.msk [vmem:[#allocation3 + $0x88] sm:$0x1f] %vm7306_vm2, %v15702_v43 }
 0x24d   :  { %11343 = vmatmul.mubr.msk.f32.gmra.mxu0 %vm2104_vm3, %v6292_v52  ;;  %11214 = vmatprep.mubr.msk.f32.mxu1 %vm2104_vm3, %v14302_v51  ;;  %v5396_v36 = vld [vmem:[#allocation2 + $0x101] sm:$0xff]  ;;  %v6758_v42 = vld [vmem:[#allocation2 + $0x111] sm:$0xff]  ;;  %7325 = vst.msk [vmem:[#allocation3 + $0x90] sm:$0x1f] %vm7306_vm2, %v15702_v43  ;;  %7326 = vst.msk [vmem:[#allocation3 + $0x98] sm:$0x1f] %vm7306_vm2, %v15702_v43 }
 0x24e   :  { %11345 = vmatprep.mubr.msk.f32.mxu0 %vm2104_vm3, %v6293_v0  ;;  %v5608_v39 = vld [vmem:[#allocation2 + $0x240] sm:$0xff]  ;;  %v5613_v53 = vld [vmem:[#allocation2 + $0x290] sm:$0xff]  ;;  %7327 = vst.msk [vmem:[#allocation3 + $0xa0] sm:$0x1f] %vm7306_vm2, %v15702_v43  ;;  %7328 = vst.msk [vmem:[#allocation3 + $0xa8] sm:$0x1f] %vm7306_vm2, %v15702_v43 }
 0x24f   :  { %v5610_v34 = vld [vmem:[#allocation2 + $0x260] sm:$0xff]  ;;  %v5615_v54 = vld [vmem:[#allocation2 + $0x2b0] sm:$0xff]  ;;  %7329 = vst.msk [vmem:[#allocation3 + $0xb0] sm:$0x1f] %vm7306_vm2, %v15702_v43  ;;  %7330 = vst.msk [vmem:[#allocation3 + $0xb8] sm:$0x1f] %vm7306_vm2, %v15702_v43 }
 0x250   :  { %11215 = vmatmul.mubr.msk.f32.gmra.mxu1 %vm2104_vm3, %v14308_v3  ;;  %v5612_v47 = vld [vmem:[#allocation2 + $0x280] sm:$0xff]  ;;  %v5616_v55 = vld [vmem:[#allocation2 + $0x2d0] sm:$0xff]  ;;  %7332 = vst.msk [vmem:[#allocation3 + $0xc8] sm:$0x1f] %vm7306_vm2, %v15702_v43  ;;  %7333 = vst.msk [vmem:[#allocation3 + $0xd0] sm:$0x1f] %vm7306_vm2, %v15702_v43 }
 0x251   :  { %11346 = vmatmul.mubr.msk.f32.gmra.mxu0 %vm2104_vm3, %v6294_v41  ;;  %11217 = vmatprep.mubr.msk.f32.mxu1 %vm2104_vm3, %v14312_v4  ;;  %v5614_v23 = vld [vmem:[#allocation2 + $0x2a0] sm:$0xff]  ;;  %v5618_v49 = vld [vmem:[#allocation2 + $0x2f0] sm:$0xff]  ;;  %7334 = vst.msk [vmem:[#allocation3 + $0xd8] sm:$0x1f] %vm7306_vm2, %v15702_v43  ;;  %7335 = vst.msk [vmem:[#allocation3 + $0xe0] sm:$0x1f] %vm7306_vm2, %v15702_v43 }
 0x252   :  { %11348 = vmatprep.mubr.msk.f32.mxu0 %vm2104_vm3, %v6295_v8  ;;  %v5617_v57 = vld [vmem:[#allocation2 + $0x2e0] sm:$0xff]  ;;  %v5620_v59 = vld [vmem:[#allocation2 + $0x310] sm:$0xff]  ;;  %7337 = vst.msk [vmem:[#allocation3 + $0xf0] sm:$0x1f] %vm7306_vm2, %v15702_v43  ;;  %7338 = vst.msk [vmem:[#allocation3 + $0xf8] sm:$0x1f] %vm7306_vm2, %v15702_v43 }
 0x253   :  { %v5619_v5 = vld [vmem:[#allocation2 + $0x300] sm:$0xff]  ;;  %v5622_v0 = vld [vmem:[#allocation2 + $0x330] sm:$0xff]  ;;  %7339 = vst.msk [vmem:[#allocation3 + $0x100] sm:$0x1f] %vm7306_vm2, %v15702_v43  ;;  %7340 = vst.msk [vmem:[#allocation3 + $0x108] sm:$0x1f] %vm7306_vm2, %v15702_v43 }
 0x254   :  { %11218 = vmatmul.mubr.msk.f32.gmra.mxu1 %vm2104_vm3, %v14318_v11  ;;  %v5621_v52 = vld [vmem:[#allocation2 + $0x320] sm:$0xff]  ;;  %7342 = vst.msk [vmem:[#allocation3 + $0x118] sm:$0x1f] %vm7306_vm2, %v15702_v43  ;;  %7343 = vst.msk [vmem:[#allocation3 + $0x120] sm:$0x1f] %vm7306_vm2, %v15702_v43 }
 0x255   :  { %11349 = vmatmul.mubr.msk.f32.gmra.mxu0 %vm2104_vm3, %v6296_v33  ;;  %11220 = vmatprep.mubr.msk.f32.mxu1 %vm2104_vm3, %v14322_v60  ;;  %v5623_v41 = vld [vmem:[#allocation2 + $0x340] sm:$0xff]  ;;  %v6063_v33 = vld [vmem:[#allocation2 + $0x251] sm:$0xff]  ;;  %7344 = vst.msk [vmem:[#allocation3 + $0x128] sm:$0x1f] %vm7306_vm2, %v15702_v43  ;;  %7345 = vst.msk [vmem:[#allocation3 + $0x130] sm:$0x1f] %vm7306_vm2, %v15702_v43 }
 0x256   :  { %11351 = vmatprep.mubr.msk.f32.mxu0 %vm2104_vm3, %v11781_v13  ;;  %v6062_v8 = vld [vmem:[#allocation2 + $0x241] sm:$0xff]  ;;  %v6532_v13 = vld [vmem:[%s15691_s3 + $0x70] sm:$0xff] }
 0x258   :  { %11221 = vmatmul.mubr.msk.f32.gmra.mxu1 %vm2104_vm3, %v14328_v16 }
 0x259   :  { %11352 = vmatmul.mubr.msk.f32.gmra.mxu0 %vm2104_vm3, %v11782_v6  ;;  %11227 = vmatprep.mubr.msk.f32.mxu1 %vm2104_vm3, %v5381_v17  ;;  %v6064_v17 = vld [vmem:[#allocation2 + $0x261] sm:$0xff]  ;;  %v6065_v6 = vld [vmem:[#allocation2 + $0x271] sm:$0xff] }
 0x25a   :  { %11354 = vmatprep.mubr.msk.f32.mxu0 %vm2104_vm3, %v11783_v1  ;;  %v6066_v1 = vld [vmem:[#allocation2 + $0x281] sm:$0xff] }
 0x25c   :  { %11228 = vmatmul.mubr.msk.f32.vlgmr.msra.gmra.mxu1 %vm2104_vm3, %v5382_v24 }
 0x25d   :  { %11355 = vmatmul.mubr.msk.f32.gmra.mxu0 %vm2104_vm3, %v13835_v35  ;;  %11252 = vmatpush3.msra.mxu1 %v14235_v18  ;;  %v6304_v35 = vld [vmem:[#allocation2 + $0x110] sm:$0xff]  ;;  %v5387_v18 = vld [vmem:[#allocation2 + $0x61] sm:$0xff] }
 0x25e   :  { %11357 = vmatprep.mubr.msk.f32.mxu0 %vm2104_vm3, %v13959_v63  ;;  %11230 = vmatprep.mubr.msk.f32.mxu1 %vm2104_vm3, %v5383_v25  ;;  %v5386_v63 = vld [vmem:[#allocation2 + $0x51] sm:$0xff] }
 0x25f   :  { %11253 = vmatprep.subr.mxu1 %v5624_v2 }
 0x260   :  { %11231 = vmatmul.mubr.msk.f32.gmra.mxu1 %vm2104_vm3, %v5384_v10 }
 0x261   :  { %11358 = vmatmul.mubr.msk.f32.gmra.mxu0 %vm2104_vm3, %v14078_v61  ;;  %11233 = vmatprep.mubr.msk.f32.mxu1 %vm2104_vm3, %v5385_v26  ;;  %v5388_v61 = vld [vmem:[#allocation2 + $0x71] sm:$0xff] }
 0x262   :  { %11360 = vmatprep.mubr.msk.f32.mxu0 %vm2104_vm3, %v14187_v40  ;;  %11254 = vmatpush3.msra.mxu1 %v5624_v2  ;;  %v5390_v40 = vld [vmem:[#allocation2 + $0xa1] sm:$0xff] }
 0x263   :  { %11307 = vmatprep.subr.mxu1 %v6079_v28  ;;  %v6068_v2 = vld [vmem:[#allocation2 + $0x2a1] sm:$0xff] }
 0x264   :  { %11234 = vmatmul.mubr.msk.f32.gmra.mxu1 %vm2104_vm3, %v5386_v63 }
 0x265   :  { %11361 = vmatmul.mubr.msk.f32.gmra.mxu0 %vm2104_vm3, %v6304_v35  ;;  %11236 = vmatprep.mubr.msk.f32.mxu1 %vm2104_vm3, %v5387_v18  ;;  %v6073_v35 = vld [vmem:[#allocation2 + $0x301] sm:$0xff] }
 0x266   :  { %11395 = vmatprep.mubr.msk.f32.mxu0 %vm2104_vm3, %v5382_v24  ;;  %v6067_v24 = vld [vmem:[#allocation2 + $0x291] sm:$0xff] }
 0x268   :  { %11237 = vmatmul.mubr.msk.f32.gmra.mxu1 %vm2104_vm3, %v5388_v61 }
 0x269   :  { %11396 = vmatmul.mubr.msk.f32.vlgmr.msra.gmra.mxu0 %vm2104_vm3, %v5383_v25  ;;  %11239 = vmatprep.mubr.msk.f32.mxu1 %vm2104_vm3, %v5389_v29  ;;  %v6069_v25 = vld [vmem:[#allocation2 + $0x2b1] sm:$0xff] }
 0x26a   :  { %11398 = vmatprep.mubr.msk.f32.mxu0 %vm2104_vm3, %v5384_v10  ;;  %v6070_v10 = vld [vmem:[#allocation2 + $0x2d1] sm:$0xff] }
 0x26b   :  { %v6076_v29 = vld [vmem:[#allocation2 + $0x331] sm:$0xff] }
 0x26c   :  { %11240 = vmatmul.mubr.msk.f32.gmra.mxu1 %vm2104_vm3, %v5390_v40 }
 0x26d   :  { %11399 = vmatmul.mubr.msk.f32.gmra.mxu0 %vm2104_vm3, %v5385_v26  ;;  %11242 = vmatprep.mubr.msk.f32.mxu1 %vm2104_vm3, %v5391_v31  ;;  %v6071_v26 = vld [vmem:[#allocation2 + $0x2e1] sm:$0xff] }
 0x26e   :  { %11401 = vmatprep.mubr.msk.f32.mxu0 %vm2104_vm3, %v5386_v63  ;;  %v6074_v63 = vld [vmem:[#allocation2 + $0x311] sm:$0xff] }
 0x270   :  { %11243 = vmatmul.mubr.msk.f32.gmra.mxu1 %vm2104_vm3, %v5392_v21 }
 0x271   :  { %11402 = vmatmul.mubr.msk.f32.gmra.mxu0 %vm2104_vm3, %v5387_v18  ;;  %11245 = vmatprep.mubr.msk.f32.mxu1 %vm2104_vm3, %v5393_v32  ;;  %v6075_v18 = vld [vmem:[#allocation2 + $0x321] sm:$0xff] }
 0x272   :  { %11404 = vmatprep.mubr.msk.f32.mxu0 %vm2104_vm3, %v5388_v61  ;;  %v6077_v61 = vld [vmem:[#allocation2 + $0x341] sm:$0xff] }
 0x274   :  { %11246 = vmatmul.mubr.msk.f32.gmra.mxu1 %vm2104_vm3, %v5394_v56 }
 0x275   :  { %11405 = vmatmul.mubr.msk.f32.gmra.mxu0 %vm2104_vm3, %v6750_v27  ;;  %11248 = vmatprep.mubr.msk.f32.mxu1 %vm2104_vm3, %v5395_v7 }
 0x276   :  { %11407 = vmatprep.mubr.msk.f32.mxu0 %vm2104_vm3, %v5390_v40  ;;  %v6523_v40 = vld [vmem:[#allocation2 + $0x1a0] sm:$0xff] }
 0x278   :  { %11249 = vmatmul.mubr.msk.f32.gmra.mxu1 %vm2104_vm3, %v5396_v36 }
 0x279   :  { %11408 = vmatmul.mubr.msk.f32.gmra.mxu0 %vm2104_vm3, %v5391_v31  ;;  %11255 = vmatprep.mubr.msk.f32.mxu1 %vm2104_vm3, %v5608_v39 }
 0x27a   :  { %11410 = vmatprep.mubr.msk.f32.mxu0 %vm2104_vm3, %v5392_v21 }
 0x27c   :  { %11256 = vmatmul.mubr.msk.f32.vlgmr.msra.gmra.mxu1 %vm2104_vm3, %v5609_v44 }
 0x27d   :  { %11411 = vmatmul.mubr.msk.f32.gmra.mxu0 %vm2104_vm3, %v5393_v32  ;;  %11308 = vmatpush3.msra.mxu1 %v6079_v28  ;;  %v6072_v28 = vld [vmem:[#allocation2 + $0x2f1] sm:$0xff]  ;;  %v14480_v32 = vld [vmem:[%s15693_s4] ss:$0 sm:$0xff] }
 0x27e   :  { %11413 = vmatprep.mubr.msk.f32.mxu0 %vm2104_vm3, %v5394_v56  ;;  %11258 = vmatprep.mubr.msk.f32.mxu1 %vm2104_vm3, %v5610_v34 }
 0x27f   :  { %11309 = vmatprep.subr.mxu1 %v6078_v45 }
 0x280   :  { %11259 = vmatmul.mubr.msk.f32.gmra.mxu1 %vm2104_vm3, %v5611_v46 }
 0x281   :  { %11414 = vmatmul.mubr.msk.f32.gmra.mxu0 %vm2104_vm3, %v5395_v7  ;;  %11261 = vmatprep.mubr.msk.f32.mxu1 %vm2104_vm3, %v5612_v47  ;;  %v14485_v7 = vpop.f32.mrf.mxu0 }
 0x282   :  { %11416 = vmatprep.mubr.msk.f32.mxu0 %vm2104_vm3, %v5396_v36  ;;  %11310 = vmatpush3.msra.mxu1 %v6078_v45 }
 0x283   :  { %11363 = vmatprep.subr.mxu1 %v6533_v38  ;;  %v14492_v34 = vpop.f32.mrf.mxu0 }
 0x284   :  { %11262 = vmatmul.mubr.msk.f32.gmra.mxu1 %vm2104_vm3, %v5613_v53  ;;  %v5137_v12 = vadd.f32 %v14480_v32, %v14492_v34 }
 0x285   :  { %11264 = vmatprep.mubr.msk.f32.mxu1 %vm2104_vm3, %v5614_v23  ;;  %11417 = vmatmul.mubr.msk.f32.gmra.mxu0 %vm2104_vm3, %v6758_v42  ;;  %v14499_v53 = vpop.f32.mrf.mxu0 }
 0x288   :  { %11265 = vmatmul.mubr.msk.f32.gmra.mxu1 %vm2104_vm3, %v5615_v54 }
 0x289   :  { %11267 = vmatprep.mubr.msk.f32.mxu1 %vm2104_vm3, %v5616_v55 }
 0x28c   :  { %11268 = vmatmul.mubr.msk.f32.gmra.mxu1 %vm2104_vm3, %v5617_v57 }
 0x28d   :  { %11270 = vmatprep.mubr.msk.f32.mxu1 %vm2104_vm3, %v5618_v49  ;;  %v14577_v49 = vpop.f32.mrf.mxu0 }
 0x290   :  { %11271 = vmatmul.mubr.msk.f32.gmra.mxu1 %vm2104_vm3, %v5619_v5 }
 0x291   :  { %11273 = vmatprep.mubr.msk.f32.mxu1 %vm2104_vm3, %v5620_v59 }
 0x294   :  { %11274 = vmatmul.mubr.msk.f32.gmra.mxu1 %vm2104_vm3, %v5621_v52  ;;  %v14579_v52 = vpop.f32.mrf.mxu0 }
 0x295   :  { %11276 = vmatprep.mubr.msk.f32.mxu1 %vm2104_vm3, %v5622_v0 }
 0x298   :  { %11277 = vmatmul.mubr.msk.f32.gmra.mxu1 %vm2104_vm3, %v5623_v41 }
 0x299   :  { %11311 = vmatprep.mubr.msk.f32.mxu1 %vm2104_vm3, %v6062_v8 }
 0x29c   :  { %11312 = vmatmul.mubr.msk.f32.vlgmr.msra.gmra.mxu1 %vm2104_vm3, %v6063_v33 }
 0x29d   :  { %11364 = vmatpush3.msra.mxu1 %v6533_v38  ;;  %11314 = vmatprep.mubr.msk.f32.mxu1 %vm2104_vm3, %v6064_v17 }
 0x29e   :  { %11365 = vmatprep.subr.mxu1 %v6532_v13 }
 0x29f   :  { %11366 = vmatpush3.msra.mxu1 %v6532_v13  ;;  %v14583_v13 = vpop.f32.mrf.mxu0 }
 0x2a0   :  { %11315 = vmatmul.mubr.msk.f32.gmra.mxu1 %vm2104_vm3, %v6065_v6 }
 0x2a1   :  { %11317 = vmatprep.mubr.msk.f32.mxu1 %vm2104_vm3, %v6066_v1  ;;  %v14587_v1 = vpop.f32.mrf.mxu0 }
 0x2a4   :  { %11318 = vmatmul.mubr.msk.f32.gmra.mxu1 %vm2104_vm3, %v6067_v24 }
 0x2a5   :  { %11320 = vmatprep.mubr.msk.f32.mxu1 %vm2104_vm3, %v6068_v2 }
 0x2a8   :  { %11321 = vmatmul.mubr.msk.f32.gmra.mxu1 %vm2104_vm3, %v6069_v25 }
 0x2a9   :  { %11323 = vmatprep.mubr.msk.f32.mxu1 %vm2104_vm3, %v6070_v10 }
 0x2ac   :  { %11324 = vmatmul.mubr.msk.f32.gmra.mxu1 %vm2104_vm3, %v6071_v26  ;;  %v14591_v26 = vpop.f32.mrf.mxu0 }
 0x2ad   :  { %11326 = vmatprep.mubr.msk.f32.mxu1 %vm2104_vm3, %v6072_v28 }
 0x2b0   :  { %11327 = vmatmul.mubr.msk.f32.gmra.mxu1 %vm2104_vm3, %v6073_v35  ;;  %v5138_v35 = vadd.f32 %v14485_v7, %v14480_v32 }
 0x2b1   :  { %11329 = vmatprep.mubr.msk.f32.mxu1 %vm2104_vm3, %v6074_v63 }
 0x2b4   :  { %11330 = vmatmul.mubr.msk.f32.gmra.mxu1 %vm2104_vm3, %v6075_v18  ;;  %v14595_v18 = vpop.f32.mrf.mxu0 }
 0x2b5   :  { %11332 = vmatprep.mubr.msk.f32.mxu1 %vm2104_vm3, %v6076_v29 }
 0x2b8   :  { %11333 = vmatmul.mubr.msk.f32.gmra.mxu1 %vm2104_vm3, %v6077_v61 }
 0x2b9   :  { %11367 = vmatprep.mubr.msk.f32.mxu1 %vm2104_vm3, %v14210_v62  ;;  %v11176_v62 = vpop.f32.mrf.mxu1 }
 0x2ba   :  { %v5140_v27 = vadd.f32 %v11176_v62, %v14480_v32 }
 0x2bc   :  { %11368 = vmatmul.mubr.msk.f32.vlgmr.msra.gmra.mxu1 %vm2104_vm3, %v14221_v48  ;;  %v6531_v48 = vld [vmem:[#allocation2 + $0x230] sm:$0xff] }
 0x2bd   :  { %11370 = vmatprep.mubr.msk.f32.mxu1 %vm2104_vm3, %v14239_v22  ;;  %v14452_v22 = vpop.f32.mrf.mxu1 }
 0x2c0   :  { %11371 = vmatmul.mubr.msk.f32.gmra.mxu1 %vm2104_vm3, %v14247_v14  ;;  %v11179_v14 = vpop.f32.mrf.mxu1 }
 0x2c1   :  { %11373 = vmatprep.mubr.msk.f32.mxu1 %vm2104_vm3, %v14268_v30  ;;  %v5142_v45 = vadd.f32 %v11179_v14, %v14480_v32 }
 0x2c2   :  { %v14455_v30 = vpop.f32.mrf.mxu1 }
 0x2c4   :  { %11374 = vmatmul.mubr.msk.f32.gmra.mxu1 %vm2104_vm3, %v14274_v37  ;;  %v11182_v37 = vpop.f32.mrf.mxu1 }
 0x2c5   :  { %11376 = vmatprep.mubr.msk.f32.mxu1 %vm2104_vm3, %v14286_v58  ;;  %v5144_v42 = vadd.f32 %v11182_v37, %v14480_v32  ;;  %v5139_v37 = vadd.f32 %v14480_v32, %v14452_v22 }
 0x2c6   :  { %v14457_v58 = vpop.f32.mrf.mxu1 }
 0x2c8   :  { %11377 = vmatmul.mubr.msk.f32.gmra.mxu1 %vm2104_vm3, %v6523_v40 }
 0x2c9   :  { %11379 = vmatprep.mubr.msk.f32.mxu1 %vm2104_vm3, %v14298_v50  ;;  %v14459_v50 = vpop.f32.mrf.mxu1 }
 0x2ca   :  { %v5146_v57 = vadd.f32 %v14459_v50, %v14480_v32 }
 0x2cc   :  { %11380 = vmatmul.mubr.msk.f32.gmra.mxu1 %vm2104_vm3, %v14302_v51  ;;  %v14461_v51 = vpop.f32.mrf.mxu1 }
 0x2cd   :  { %11382 = vmatprep.mubr.msk.f32.mxu1 %vm2104_vm3, %v14308_v3 }
 0x2ce   :  { %v14463_v3 = vpop.f32.mrf.mxu1 }
 0x2cf   :  { %v5148_v41 = vadd.f32 %v14463_v3, %v14480_v32 }
 0x2d0   :  { %11383 = vmatmul.mubr.msk.f32.gmra.mxu1 %vm2104_vm3, %v14312_v4  ;;  %v14465_v4 = vpop.f32.mrf.mxu1 }
 0x2d1   :  { %11385 = vmatprep.mubr.msk.f32.mxu1 %vm2104_vm3, %v14318_v11 }
 0x2d2   :  { %v14467_v11 = vpop.f32.mrf.mxu1 }
 0x2d3   :  { %v5150_v6 = vadd.f32 %v14467_v11, %v14480_v32 }
 0x2d4   :  { %11386 = vmatmul.mubr.msk.f32.gmra.mxu1 %vm2104_vm3, %v14322_v60  ;;  %v14469_v60 = vpop.f32.mrf.mxu1 }
 0x2d5   :  { %11388 = vmatprep.mubr.msk.f32.mxu1 %vm2104_vm3, %v14328_v16 }
 0x2d8   :  { %11389 = vmatmul.mubr.msk.f32.gmra.mxu1 %vm2104_vm3, %v6531_v48  ;;  %v14600_v48 = vpop.f32.mrf.mxu0 }
 0x2da   :  { %v14606_v50 = vpop.f32.mrf.mxu0 }
 0x2f8   :  { %v14471_v16 = vpop.f32.mrf.mxu1 }
 0x2f9   :  { %v5152_v10 = vadd.f32 %v14471_v16, %v14480_v32 }
 0x2fa   :  { %v14473_v31 = vpop.f32.mrf.mxu1 }
 0x2fc   :  { %v14475_v21 = vpop.f32.mrf.mxu1 }
 0x2fd   :  { %v5366_v61 = vadd.f32 %v14475_v21, %v5138_v35  ;;  %v5141_v21 = vadd.f32 %v14480_v32, %v14455_v30 }
 0x2fe   :  { %v14482_v56 = vpop.f32.mrf.mxu1 }
 0x300   :  { %v11204_v36 = vpop.f32.mrf.mxu1 }
 0x301   :  { %v14487_v39 = vadd.f32 %v11204_v36, %v5140_v27  ;;  %v14614_v36 = vpop.f32.mrf.mxu0 }
 0x302   :  { %v14489_v44 = vpop.f32.mrf.mxu1 }
 0x303   :  { %v5367_v11 = vadd.f32 %v14489_v44, %v5139_v37  ;;  %v5143_v44 = vadd.f32 %v14480_v32, %v14457_v58  ;;  %v5147_v58 = vadd.f32 %v14480_v32, %v14465_v4 }
 0x304   :  { %v11207_v46 = vpop.f32.mrf.mxu1 }
 0x305   :  { %v14494_v47 = vadd.f32 %v11207_v46, %v5142_v45 }
 0x306   :  { %v14496_v38 = vpop.f32.mrf.mxu1 }
 0x307   :  { %v5369_v46 = vadd.f32 %v14496_v38, %v5141_v21 }
 0x308   :  { %v11210_v23 = vpop.f32.mrf.mxu1 }
 0x309   :  { %v14501_v54 = vadd.f32 %v11210_v23, %v5144_v42  ;;  %v14618_v42 = vpop.f32.mrf.mxu0 }
 0x30a   :  { %v5316_v55 = vpop.f32.mrf.mxu1 }
 0x30b   :  { %v14623_v30 = vpop.f32.mrf.mxu0 }
 0x30c   :  { %v11213_v5 = vpop.f32.mrf.mxu1 }
 0x30d   :  { %v5374_v59 = vadd.f32 %v11213_v5, %v5146_v57  ;;  %v5371_v5 = vadd.f32 %v5316_v55, %v5143_v44 }
 0x30e   :  { %v5326_v0 = vpop.f32.mrf.mxu1 }
 0x310   :  { %v11216_v8 = vpop.f32.mrf.mxu1 }
 0x311   :  { %v5376_v33 = vadd.f32 %v11216_v8, %v5148_v41 }
 0x312   :  { %v5336_v17 = vpop.f32.mrf.mxu1 }
 0x314   :  { %v11219_v24 = vpop.f32.mrf.mxu1 }
 0x315   :  { %v5378_v2 = vadd.f32 %v11219_v24, %v5150_v6  ;;  %v5145_v6 = vadd.f32 %v14480_v32, %v14461_v51  ;;  %v14627_v24 = vpop.f32.mrf.mxu0  ;;  %v8044_v51 = vld [vmem:[%s15694_s5 + $0x18] sm:$0xff] }
 0x316   :  { %v5346_v25 = vpop.f32.mrf.mxu1  ;;  %11419 = vmatprep.subr.mxu1 %v8044_v51 }
 0x317   :  { %v14631_v55 = vpop.f32.mrf.mxu0  ;;  %11420 = vmatpush3.msra.mxu1 %v8044_v51 }
 0x318   :  { %v11222_v28 = vpop.f32.mrf.mxu1 }
 0x319   :  { %v5380_v63 = vadd.f32 %v11222_v28, %v5152_v10  ;;  %v5373_v10 = vadd.f32 %v5326_v0, %v5145_v6 }
 0x31a   :  { %v5356_v29 = vpop.f32.mrf.mxu1 }
 0x31c   :  { %v11229_v40 = vpop.f32.mrf.mxu1 }
 0x31d   :  { %v14598_v62 = vadd.f32 %v11229_v40, %v5366_v61  ;;  %v5375_v40 = vadd.f32 %v5336_v17, %v5147_v58 }
 0x31e   :  { %v14602_v14 = vpop.f32.mrf.mxu1 }
 0x320   :  { %v11232_v3 = vpop.f32.mrf.mxu1 }
 0x321   :  { %v14610_v16 = vadd.f32 %v11232_v3, %v14487_v39  ;;  %v14636_v3 = vpop.f32.mrf.mxu0 }
 0x322   :  { %v5523_v27 = vpop.f32.mrf.mxu1 }
 0x323   :  { %v5594_v7 = vadd.f32 %v5523_v27, %v5367_v11 }
 0x324   :  { %v11235_v45 = vpop.f32.mrf.mxu1 }
 0x325   :  { %v5597_v22 = vadd.f32 %v11235_v45, %v14494_v47  ;;  %v14640_v45 = vpop.f32.mrf.mxu0 }
 0x326   :  { %v5533_v23 = vpop.f32.mrf.mxu1 }
 0x327   :  { %v5596_v39 = vadd.f32 %v5533_v23, %v5369_v46 }
 0x328   :  { %v11238_v57 = vpop.f32.mrf.mxu1 }
 0x329   :  { %v5599_v41 = vadd.f32 %v11238_v57, %v14501_v54 }
 0x32a   :  { %v5543_v8 = vpop.f32.mrf.mxu1 }
 0x32b   :  { %v5598_v38 = vadd.f32 %v5543_v8, %v5371_v5  ;;  %v14644_v5 = vpop.f32.mrf.mxu0 }
 0x32c   :  { %v11241_v47 = vpop.f32.mrf.mxu1 }
 0x32d   :  { %v5601_v28 = vadd.f32 %v11241_v47, %v5374_v59  ;;  %v5149_v59 = vadd.f32 %v14480_v32, %v14469_v60  ;;  %v14648_v47 = vpop.f32.mrf.mxu0 }
 0x32e   :  { %v5553_v35 = vpop.f32.mrf.mxu1 }
 0x32f   :  { %v5600_v61 = vadd.f32 %v5553_v35, %v5373_v10  ;;  %v5377_v27 = vadd.f32 %v5346_v25, %v5149_v59  ;;  %v14654_v10 = vpop.f32.mrf.mxu0 }
 0x330   :  { %v11244_v54 = vpop.f32.mrf.mxu1 }
 0x331   :  { %v5603_v37 = vadd.f32 %v11244_v54, %v5376_v33  ;;  %v5151_v33 = vadd.f32 %v14480_v32, %v14473_v31  ;;  %v8043_v31 = vld [vmem:[%s15694_s5 + $0x10] sm:$0xff] }
 0x332   :  { %v5563_v11 = vpop.f32.mrf.mxu1  ;;  %11421 = vmatprep.subr.mxu1 %v8043_v31 }
 0x333   :  { %v5602_v0 = vadd.f32 %v5563_v11, %v5375_v40  ;;  %v5379_v44 = vadd.f32 %v5356_v29, %v5151_v33  ;;  %11422 = vmatpush3.msra.mxu1 %v8043_v31  ;;  %v14664_v40 = vpop.f32.mrf.mxu0 }
 0x334   :  { %v11247_v4 = vpop.f32.mrf.mxu1 }
 0x335   :  { %v5605_v21 = vadd.f32 %v11247_v4, %v5378_v2 }
 0x336   :  { %v5573_v17 = vpop.f32.mrf.mxu1 }
 0x337   :  { %v5604_v46 = vadd.f32 %v5573_v17, %v5377_v27  ;;  %v14670_v27 = vpop.f32.mrf.mxu0 }
 0x338   :  { %v11250_v23 = vpop.f32.mrf.mxu1 }
 0x339   :  { %v5607_v57 = vadd.f32 %v11250_v23, %v5380_v63 }
 0x33a   :  { %v5583_v8 = vpop.f32.mrf.mxu1 }
 0x33b   :  { %v5606_v6 = vadd.f32 %v5583_v8, %v5379_v44 }
 0x33c   :  { %v14646_v60 = vpop.f32.mrf.mxu1 }
 0x33e   :  { %v14650_v25 = vpop.f32.mrf.mxu1 }
 0x340   :  { %v14652_v2 = vpop.f32.mrf.mxu1 }
 0x342   :  { %v5750_v35 = vpop.f32.mrf.mxu1 }
 0x343   :  { %v5821_v63 = vadd.f32 %v5750_v35, %v5594_v7 }
 0x344   :  { %v11263_v29 = vpop.f32.mrf.mxu1 }
 0x345   :  { %v14659_v58 = vadd.f32 %v11263_v29, %v5597_v22  ;;  %v14662_v54 = vadd.f32 %v14583_v13, %v5821_v63  ;;  %v14676_v22 = vpop.f32.mrf.mxu0  ;;  %v8042_v63 = vld [vmem:[%s15694_s5 + $0x8] sm:$0xff] }
 0x346   :  { %v5760_v51 = vpop.f32.mrf.mxu1  ;;  %11423 = vmatprep.subr.mxu1 %v8042_v63 }
 0x347   :  { %v14666_v11 = vadd.f32 %v5760_v51, %v5596_v39  ;;  %v14680_v39 = vpop.f32.mrf.mxu0  ;;  %11424 = vmatpush3.msra.mxu1 %v8042_v63 }
 0x348   :  { %v11266_v59 = vpop.f32.mrf.mxu1 }
 0x349   :  { %v14668_v4 = vadd.f32 %v11266_v59, %v5599_v41 }
 0x34a   :  { %v5770_v17 = vpop.f32.mrf.mxu1 }
 0x34b   :  { %v14672_v7 = vadd.f32 %v5770_v17, %v5598_v38 }
 0x34c   :  { %v11269_v33 = vpop.f32.mrf.mxu1 }
 0x34d   :  { %v14674_v23 = vadd.f32 %v11269_v33, %v5601_v28  ;;  %v8041_v28 = vld [vmem:[%s15694_s5] sm:$0xff]  ;;  %v8528_v33 = vld [vmem:[%s15694_s5 + $0x88] sm:$0xff] }
 0x34e   :  { %v5780_v13 = vpop.f32.mrf.mxu1  ;;  %11425 = vmatprep.subr.mxu1 %v8041_v28 }
 0x34f   :  { %v14678_v44 = vadd.f32 %v5780_v13, %v5600_v61  ;;  %v8530_v61 = vld [vmem:[%s15694_s5 + $0x98] sm:$0xff]  ;;  %11426 = vmatpush3.msra.mxu1 %v8041_v28 }
 0x350   :  { %v11272_v8 = vpop.f32.mrf.mxu1  ;;  %11475 = vmatprep.subr.mxu0 %v8530_v61 }
 0x351   :  { %v5830_v35 = vadd.f32 %v11272_v8, %v5603_v37  ;;  %v14691_v37 = vpop.f32.mrf.mxu0  ;;  %11476 = vmatpush3.msra.mxu0 %v8530_v61 }
 0x352   :  { %v5790_v31 = vpop.f32.mrf.mxu1  ;;  %15717 = vst [vmem:[#allocation10_spill] sm:$0xff] %v14691_v37 }
 0x353   :  { %v5829_v41 = vadd.f32 %v5790_v31, %v5602_v0  ;;  %v14699_v13 = vpop.f32.mrf.mxu0 }
 0x354   :  { %v11275_v38 = vpop.f32.mrf.mxu1  ;;  %15718 = vst [vmem:[#allocation11_spill] sm:$0xff] %v14699_v13 }
 0x355   :  { %v5832_v29 = vadd.f32 %v11275_v38, %v5605_v21  ;;  %v8529_v21 = vld [vmem:[%s15694_s5 + $0x90] sm:$0xff]  ;;  %v14704_v38 = vpop.f32.mrf.mxu0 }
 0x356   :  { %v5800_v51 = vpop.f32.mrf.mxu1  ;;  %11477 = vmatprep.subr.mxu0 %v8529_v21  ;;  %15719 = vst [vmem:[#allocation12_spill] sm:$0xff] %v14704_v38 }
 0x357   :  { %v5831_v0 = vadd.f32 %v5800_v51, %v5604_v46  ;;  %11478 = vmatpush3.msra.mxu0 %v8529_v21  ;;  %v8527_v46 = vld [vmem:[%s15694_s5 + $0x80] sm:$0xff]  ;;  %v14706_v61 = vpop.f32.mrf.mxu0  ;;  %v14711_v21 = vld [vmem:[%s15694_s5 + $0x38] sm:$0xff] }
 0x358   :  { %v11278_v59 = vpop.f32.mrf.mxu1  ;;  %11479 = vmatprep.subr.mxu0 %v8528_v33  ;;  %15720 = vst [vmem:[#allocation13_spill] sm:$0xff] %v14706_v61  ;;  %15721 = vst [vmem:[#allocation14_spill] sm:$0xff] %v14711_v21  ;;  %11433 = vmatprep.subr.mxu1 %v14711_v21  ;;  %v5365_v21 = vadd.f32 %v14482_v56, %v5137_v12  ;;  %v6057_v61 = vadd.f32 %v14618_v42, %v5830_v35 }
 0x359   :  { %v5834_v17 = vadd.f32 %v11278_v59, %v5607_v57  ;;  %11480 = vmatpush3.msra.mxu0 %v8528_v33  ;;  %v14717_v59 = vld [vmem:[%s15694_s5 + $0xd8] sm:$0xff]  ;;  %v14719_v33 = vpop.f32.mrf.mxu0  ;;  %v5822_v12 = vadd.f32 %v14652_v2, %v14610_v16  ;;  %v6059_v42 = vadd.f32 %v14627_v24, %v5832_v29  ;;  %v6053_v24 = vadd.f32 %v14595_v18, %v14668_v4 }
 0x35a   :  { %v5810_v8 = vpop.f32.mrf.mxu1  ;;  %11481 = vmatprep.subr.mxu0 %v8527_v46  ;;  %15722 = vst [vmem:[#allocation15_spill] sm:$0xff] %v14717_v59  ;;  %15723 = vst [vmem:[#allocation16_spill] sm:$0xff] %v14719_v33  ;;  %v5592_v33 = vadd.f32 %v14602_v14, %v5365_v21 }
 0x35b   :  { %v5833_v31 = vadd.f32 %v5810_v8, %v5606_v6  ;;  %11482 = vmatpush3.msra.mxu0 %v8527_v46  ;;  %v14722_v9 = vpop.f32.mrf.mxu0  ;;  %v6061_v16 = vadd.f32 %v14636_v3, %v5834_v17 }
 0x35c   :  { %v11313_v63 = vpop.f32.mrf.mxu1  ;;  %11503 = vmatprep.subr.mxu0 %v14717_v59  ;;  %15724 = vst [vmem:[#allocation17_spill] sm:$0xff] %v14722_v9  ;;  %v5820_v59 = vadd.f32 %v14646_v60, %v14598_v62  ;;  %v6056_v9 = vadd.f32 %v14623_v30, %v5829_v41  ;;  %v5819_v32 = vadd.f32 %v14650_v25, %v5592_v33 }
 0x35d   :  { %v14727_v19 = vpop.f32.mrf.mxu0  ;;  %v6058_v62 = vadd.f32 %v14631_v55, %v5831_v0  ;;  %v6049_v25 = vadd.f32 %v14579_v52, %v5822_v12  ;;  %v6052_v55 = vadd.f32 %v14600_v48, %v14672_v7  ;;  %v6055_v52 = vadd.f32 %v14606_v50, %v14674_v23 }
 0x35e   :  { %v6194_v57 = vpop.f32.mrf.mxu1  ;;  %v6047_v14 = vadd.f32 %v14499_v53, %v5820_v59  ;;  %v6046_v30 = vadd.f32 %v14577_v49, %v5819_v32  ;;  %v6050_v53 = vadd.f32 %v14591_v26, %v14666_v11  ;;  %v6060_v3 = vadd.f32 %v14640_v45, %v5833_v31 }
 0x35f   :  { %v14734_v37 = vpop.f32.mrf.mxu0  ;;  %v6054_v26 = vadd.f32 %v14614_v36, %v14678_v44 }
 0x360   :  { %v11316_v28 = vpop.f32.mrf.mxu1  ;;  %v6273_v2 = vadd.f32 %v6194_v57, %v6046_v30 }
 0x361   :  { %v14742_v60 = vpop.f32.mrf.mxu0  ;;  %v6276_v17 = vadd.f32 %v11316_v28, %v6049_v25 }
 0x362   :  { %v6204_v51 = vpop.f32.mrf.mxu1  ;;  %v6500_v45 = vadd.f32 %v14648_v47, %v6273_v2  ;;  %v15726_v47 = vld [vmem:[#allocation11_spill] sm:$0xff] }
 0x363   :  { %v11397_v0 = vpop.f32.mrf.mxu0 }
 0x364   :  { %v11319_v6 = vpop.f32.mrf.mxu1 }
 0x365   :  { %v6875_v31 = vpop.f32.mrf.mxu0 }
 0x366   :  { %v6214_v8 = vpop.f32.mrf.mxu1 }
 0x367   :  { %v6277_v11 = vadd.f32 %v6214_v8, %v6050_v53  ;;  %v11400_v12 = vpop.f32.mrf.mxu0 }
 0x368   :  { %v11322_v46 = vpop.f32.mrf.mxu1 }
 0x369   :  { %v6280_v4 = vadd.f32 %v11322_v46, %v6053_v24  ;;  %v14767_v33 = vadd.f32 %v14676_v22, %v6277_v11 }
 0x36a   :  { %v6224_v43 = vpop.f32.mrf.mxu1 }
 0x36c   :  { %v11325_v20 = vpop.f32.mrf.mxu1 }
 0x36d   :  { %v6282_v57 = vadd.f32 %v11325_v20, %v6055_v52  ;;  %v15725_v20 = vld [vmem:[#allocation10_spill] sm:$0xff]  ;;  %v15732_v52 = vld [vmem:[#allocation8_spill] sm:$0xff] }
 0x36e   :  { %v6234_v15 = vpop.f32.mrf.mxu1 }
 0x36f   :  { %v6281_v50 = vadd.f32 %v6234_v15, %v6054_v26  ;;  %v14776_v8 = vadd.f32 %v15726_v47, %v6282_v57 }
 0x370   :  { %v11328_v38 = vpop.f32.mrf.mxu1 }
 0x371   :  { %v6284_v13 = vadd.f32 %v11328_v38, %v6057_v61  ;;  %v6274_v38 = vadd.f32 %v11313_v63, %v6047_v14  ;;  %v6279_v63 = vadd.f32 %v6224_v43, %v6052_v55  ;;  %v14770_v43 = vadd.f32 %v14680_v39, %v6280_v4  ;;  %v15730_v14 = vld [vmem:[#allocation17_spill] sm:$0xff] }
 0x372   :  { %v6244_v34 = vpop.f32.mrf.mxu1 }
 0x373   :  { %v6283_v56 = vadd.f32 %v6244_v34, %v6056_v9  ;;  %v6051_v9 = vadd.f32 %v14587_v1, %v14659_v58  ;;  %v6275_v1 = vadd.f32 %v6204_v51, %v14662_v54  ;;  %v6501_v7 = vadd.f32 %v14644_v5, %v6274_v38 }
 0x374   :  { %v11331_v35 = vpop.f32.mrf.mxu1  ;;  %v6503_v54 = vadd.f32 %v14654_v10, %v6276_v17  ;;  %v14773_v5 = vadd.f32 %v15725_v20, %v6279_v63  ;;  %v15727_v10 = vld [vmem:[#allocation12_spill] sm:$0xff] }
 0x375   :  { %v6286_v21 = vadd.f32 %v11331_v35, %v6059_v42  ;;  %v6278_v58 = vadd.f32 %v11319_v6, %v6051_v9  ;;  %v6502_v51 = vadd.f32 %v14664_v40, %v6275_v1  ;;  %v14779_v46 = vadd.f32 %v15727_v10, %v6281_v50  ;;  %v15728_v40 = vld [vmem:[#allocation13_spill] sm:$0xff]  ;;  %v15729_v42 = vld [vmem:[#allocation16_spill] sm:$0xff]  ;;  %v15731_v9 = vld [vmem:[#allocation7_spill] sm:$0xff] }
 0x376   :  { %v6254_v41 = vpop.f32.mrf.mxu1  ;;  %v14785_v35 = vadd.f32 %v15729_v42, %v6283_v56 }
 0x377   :  { %v6285_v61 = vadd.f32 %v6254_v41, %v6058_v62  ;;  %v6505_v36 = vadd.f32 %v14670_v27, %v6278_v58  ;;  %v14782_v27 = vadd.f32 %v15728_v40, %v6284_v13  ;;  %v14788_v62 = vadd.f32 %v15730_v14, %v6286_v21 }
 0x378   :  { %v11334_v49 = vpop.f32.mrf.mxu1 }
 0x379   :  { %v6288_v29 = vadd.f32 %v11334_v49, %v6061_v16  ;;  %v14791_v30 = vadd.f32 %v14727_v19, %v6285_v61  ;;  %v6885_v61 = vpop.f32.mrf.mxu0 }
 0x37a   :  { %v6264_v18 = vpop.f32.mrf.mxu1 }
 0x37b   :  { %v6287_v48 = vadd.f32 %v6264_v18, %v6060_v3  ;;  %v14794_v13 = vadd.f32 %v14734_v37, %v6288_v29  ;;  %v15733_v3 = vld [vmem:[#allocation9_spill] sm:$0xff] }
 0x37c   :  { %v11369_v23 = vpop.f32.mrf.mxu1 }
 0x37d   :  { %v6728_v59 = vadd.f32 %v11369_v23, %v6501_v7  ;;  %v14798_v56 = vadd.f32 %v14742_v60, %v6287_v48 }
 0x37e   :  { %v6648_v28 = vpop.f32.mrf.mxu1 }
 0x37f   :  { %v6955_v44 = vadd.f32 %v11397_v0, %v6728_v59  ;;  %v6727_v6 = vadd.f32 %v6648_v28, %v6500_v45 }
 0x380   :  { %v11372_v15 = vpop.f32.mrf.mxu1 }
 0x381   :  { %vm6971_vm3 = vcmp.gt.f32.partialorder %v6955_v44, 0.0  ;;  %v6987_v32 = vmul.f32 0.2, %v6955_v44  ;;  %v6954_v22 = vadd.f32 %v6875_v31, %v6727_v6  ;;  %v6730_v34 = vadd.f32 %v11372_v15, %v6503_v54 }
 0x382   :  { %v6658_v39 = vpop.f32.mrf.mxu1 }
 0x383   :  { %v7003_v41 = vsel %vm6971_vm3, %v6955_v44, %v6987_v32  ;;  %vm6970_vm12 = vcmp.gt.f32.partialorder %v6954_v22, 0.0  ;;  %v6986_v38 = vmul.f32 0.2, %v6954_v22  ;;  %v6957_v25 = vadd.f32 %v11400_v12, %v6730_v34 }
 0x384   :  { %v7051_v16 = vcombine.high %v7003_v41, %v7003_v41  ;;  %v7058_v53 = vrot.slane %v7003_v41, %v15731_v9  ;;  %v6729_v24 = vadd.f32 %v6658_v39, %v6502_v51  ;;  %v11375_v55 = vpop.f32.mrf.mxu1  ;;  %v11403_v41 = vpop.f32.mrf.mxu0 }
 0x385   :  { %v7002_v21 = vsel %vm6970_vm12, %v6954_v22, %v6986_v38  ;;  %vm6973_vm13 = vcmp.gt.f32.partialorder %v6957_v25, 0.0  ;;  %v6989_v49 = vmul.f32 0.2, %v6957_v25  ;;  %v6732_v19 = vadd.f32 %v11375_v55, %v6505_v36 }
 0x386   :  { %v7065_v37 = vrot.slane %v7051_v16, %v15731_v9  ;;  %v7066_v2 = vcombine.high %v7058_v53, %v7058_v53  ;;  %v7350_v29 = vrot.slane %v7058_v53, %v15732_v52  ;;  %v7520_v0 = vrot.slane %v7058_v53, %v15733_v3 }
 0x387   :  { %v7034_v17 = vcombine.high %v7002_v21, %v7002_v21  ;;  %v7041_v1 = vrot.slane %v7002_v21, %v15731_v9  ;;  %v7005_v58 = vsel %vm6973_vm13, %v6957_v25, %v6989_v49  ;;  %v6956_v26 = vadd.f32 %v6885_v61, %v6729_v24  ;;  %v6668_v61 = vpop.f32.mrf.mxu1 }
 0x388   :  { %v7067_v18 = vcombine.high %v7065_v37, %v7065_v37  ;;  %v7354_v60 = vrot.slane %v7066_v2, %v15732_v52  ;;  %v7358_v11 = vrot.slane %v7065_v37, %v15732_v52  ;;  %v7524_v4 = vrot.slane %v7066_v2, %v15733_v3 }
 0x389   :  { %v7528_v48 = vrot.slane %v7065_v37, %v15733_v3  ;;  %v7048_v7 = vrot.slane %v7034_v17, %v15731_v9  ;;  %v7049_v63 = vcombine.high %v7041_v1, %v7041_v1  ;;  %v7690_v57 = vrot.slane %v7041_v1, %v15732_v52 }
 0x38a   :  { %v7362_v50 = vrot.slane %v7067_v18, %v15732_v52  ;;  %v7475_v23 = vsel %vm2762_vm5, %v7354_v60, %v7350_v29  ;;  %v7532_v59 = vrot.slane %v7067_v18, %v15733_v3  ;;  %v7645_v45 = vsel %vm3442_vm14, %v7524_v4, %v7520_v0  ;;  %v6895_v4 = vpop.f32.mrf.mxu0 }
 0x38b   :  { %v7476_v31 = vsel %vm2764_vm7, %v7358_v11, %v7475_v23  ;;  %v7646_v28 = vsel %vm2762_vm5, %v7528_v48, %v7645_v45  ;;  %v7050_v54 = vcombine.high %v7048_v7, %v7048_v7  ;;  %v7694_v51 = vrot.slane %v7049_v63, %v15732_v52 }
 0x38c   :  { %v7477_v36 = vsel %vm2766_vm8, %v7362_v50, %v7476_v31  ;;  %v7647_v44 = vsel %vm2764_vm7, %v7532_v59, %v7646_v28  ;;  %v7698_v6 = vrot.slane %v7048_v7, %v15732_v52  ;;  %v7859_v15 = vrot.slane %v7041_v1, %v15733_v3  ;;  %v11378_v50 = vpop.f32.mrf.mxu1 }
 0x38d   :  { %7509 = vst.msk [vmem:[#allocation3 + $0x8] sm:$0x1e] %vm7508_vm10, %v7477_v36  ;;  %v7702_v20 = vrot.slane %v7050_v54, %v15732_v52  ;;  %v7815_v47 = vsel %vm2762_vm5, %v7694_v51, %v7690_v57  ;;  %v7863_v10 = vrot.slane %v7049_v63, %v15733_v3  ;;  %v7867_v40 = vrot.slane %v7048_v7, %v15733_v3 }
 0x38e   :  { %7679 = vst.msk [vmem:[#allocation3 + $0x58] sm:$0xf] %vm7678_vm11, %v7647_v44  ;;  %v7816_v32 = vsel %vm2764_vm7, %v7698_v6, %v7815_v47  ;;  %v7871_v22 = vrot.slane %v7050_v54, %v15733_v3  ;;  %v7085_v34 = vcombine.high %v7005_v58, %v7005_v58  ;;  %v7092_v12 = vrot.slane %v7005_v58, %v15731_v9  ;;  %v11406_v47 = vpop.f32.mrf.mxu0 }
 0x38f   :  { %v7817_v39 = vsel %vm2766_vm8, %v7702_v20, %v7816_v32  ;;  %v7984_v42 = vsel %vm3442_vm14, %v7863_v10, %v7859_v15  ;;  %vm6972_vm1 = vcmp.gt.f32.partialorder %v6956_v26, 0.0  ;;  %v6988_v14 = vmul.f32 0.2, %v6956_v26 }
 0x390   :  { %7848 = vst.msk [vmem:[#allocation3 + $0xa0] sm:$0x1e] %vm7508_vm10, %v7817_v39  ;;  %v7985_v38 = vsel %vm2762_vm5, %v7867_v40, %v7984_v42  ;;  %v7099_v25 = vrot.slane %v7085_v34, %v15731_v9  ;;  %v7100_v16 = vcombine.high %v7092_v12, %v7092_v12  ;;  %v7366_v53 = vrot.slane %v7092_v12, %v15732_v52  ;;  %v6678_v34 = vpop.f32.mrf.mxu1 }
 0x391   :  { %v7986_v24 = vsel %vm2764_vm7, %v7871_v22, %v7985_v38  ;;  %v7536_v55 = vrot.slane %v7092_v12, %v15733_v3  ;;  %v7004_v21 = vsel %vm6972_vm1, %v6956_v26, %v6988_v14  ;;  %v6959_v49 = vadd.f32 %v11403_v41, %v6732_v19 }
 0x392   :  { %8017 = vst.msk [vmem:[#allocation3 + $0xf0] sm:$0xf] %vm7678_vm11, %v7986_v24  ;;  %v7101_v37 = vcombine.high %v7099_v25, %v7099_v25  ;;  %v7370_v2 = vrot.slane %v7100_v16, %v15732_v52  ;;  %v7374_v29 = vrot.slane %v7099_v25, %v15732_v52  ;;  %v7540_v0 = vrot.slane %v7100_v16, %v15733_v3  ;;  %v6905_v24 = vpop.f32.mrf.mxu0 }
 0x393   :  { %v7544_v17 = vrot.slane %v7099_v25, %v15733_v3  ;;  %v7068_v1 = vcombine.high %v7004_v21, %v7004_v21  ;;  %v7075_v58 = vrot.slane %v7004_v21, %v15731_v9  ;;  %vm6975_vm4 = vcmp.gt.f32.partialorder %v6959_v49, 0.0 }
 0x394   :  { %v7378_v18 = vrot.slane %v7101_v37, %v15732_v52  ;;  %v7478_v19 = vsel %vm2762_vm5, %v7370_v2, %v7366_v53  ;;  %v7548_v26 = vrot.slane %v7101_v37, %v15733_v3  ;;  %v7648_v60 = vsel %vm3442_vm14, %v7540_v0, %v7536_v55  ;;  %v11723_v11 = vld [vmem:[#allocation3] ss:$8 sps:$4 sm:$0xff]  }
 0x395   :  { %v7479_v48 = vsel %vm2764_vm7, %v7374_v29, %v7478_v19  ;;  %v7649_v7 = vsel %vm2762_vm5, %v7544_v17, %v7648_v60  ;;  %v7082_v63 = vrot.slane %v7068_v1, %v15731_v9  ;;  %v7083_v57 = vcombine.high %v7075_v58, %v7075_v58  ;;  %11427 = vmatprep.mubr.msk.f32.mxu1 %vm8057_vm0, %v11723_v11 }
 0x396   :  { %v7480_v23 = vsel %vm2766_vm8, %v7378_v18, %v7479_v48  ;;  %v7650_v59 = vsel %vm2764_vm7, %v7548_v26, %v7649_v7  ;;  %v7706_v45 = vrot.slane %v7075_v58, %v15732_v52  ;;  %v7875_v31 = vrot.slane %v7075_v58, %v15733_v3 }
 0x397   :  { %7510 = vst.msk [vmem:[#allocation3 + $0x10] sm:$0x1e] %vm7508_vm10, %v7480_v23  ;;  %v7084_v28 = vcombine.high %v7082_v63, %v7082_v63  ;;  %v7710_v54 = vrot.slane %v7083_v57, %v15732_v52  ;;  %v7714_v51 = vrot.slane %v7082_v63, %v15732_v52  ;;  %v7879_v36 = vrot.slane %v7083_v57, %v15733_v3 }
 0x398   :  { %7680 = vst.msk [vmem:[#allocation3 + $0x60] sm:$0xf] %vm7678_vm11, %v7650_v59  ;;  %v7883_v44 = vrot.slane %v7082_v63, %v15733_v3  ;;  %v6991_v6 = vmul.f32 0.2, %v6959_v49  ;;  %v6731_v15 = vadd.f32 %v6668_v61, %v14767_v33  ;;  %v6734_v20 = vadd.f32 %v11378_v50, %v14770_v43 }
 0x399   :  { %v7718_v10 = vrot.slane %v7084_v28, %v15732_v52  ;;  %v7818_v40 = vsel %vm2762_vm5, %v7710_v54, %v7706_v45  ;;  %v7887_v32 = vrot.slane %v7084_v28, %v15733_v3  ;;  %v7987_v22 = vsel %vm3442_vm14, %v7879_v36, %v7875_v31  ;;  %v11381_v28 = vpop.f32.mrf.mxu1 }
 0x39a   :  { %v7819_v12 = vsel %vm2764_vm7, %v7714_v51, %v7818_v40  ;;  %v7988_v39 = vsel %vm2762_vm5, %v7883_v44, %v7987_v22  ;;  %v7007_v42 = vsel %vm6975_vm4, %v6959_v49, %v6991_v6  ;;  %v6958_v14 = vadd.f32 %v6895_v4, %v6731_v15 }
 0x39b   :  { %v7820_v33 = vsel %vm2766_vm8, %v7718_v10, %v7819_v12  ;;  %v7989_v43 = vsel %vm2764_vm7, %v7887_v32, %v7988_v39  ;;  %v7119_v41 = vcombine.high %v7007_v42, %v7007_v42  ;;  %v7126_v38 = vrot.slane %v7007_v42, %v15731_v9 }
 0x39c   :  { %7849 = vst.msk [vmem:[#allocation3 + $0xa8] sm:$0x1e] %vm7508_vm10, %v7820_v33  ;;  %vm6974_vm6 = vcmp.gt.f32.partialorder %v6958_v14, 0.0  ;;  %v6990_v25 = vmul.f32 0.2, %v6958_v14  ;;  %v6961_v16 = vadd.f32 %v11406_v47, %v6734_v20  ;;  %v6733_v53 = vadd.f32 %v6678_v34, %v14773_v5  ;;  %v11409_v34 = vpop.f32.mrf.mxu0  ;;  %v6688_v33 = vpop.f32.mrf.mxu1 }
 0x39d   :  { %8018 = vst.msk [vmem:[#allocation3 + $0xf8] sm:$0xf] %vm7678_vm11, %v7989_v43  ;;  %v7133_v55 = vrot.slane %v7119_v41, %v15731_v9  ;;  %v7134_v21 = vcombine.high %v7126_v38, %v7126_v38  ;;  %v7382_v49 = vrot.slane %v7126_v38, %v15732_v52  ;;  %v7552_v61 = vrot.slane %v7126_v38, %v15733_v3 }
 0x39e   :  { %v7006_v37 = vsel %vm6974_vm6, %v6958_v14, %v6990_v25  ;;  %vm6977_vm9 = vcmp.gt.f32.partialorder %v6961_v16, 0.0  ;;  %v6993_v2 = vmul.f32 0.2, %v6961_v16  ;;  %v14880_v29 = vadd.f32 %v6905_v24, %v6733_v53 }
 0x39f   :  { %v7135_v0 = vcombine.high %v7133_v55, %v7133_v55  ;;  %v7386_v17 = vrot.slane %v7134_v21, %v15732_v52  ;;  %v7390_v1 = vrot.slane %v7133_v55, %v15732_v52  ;;  %v7556_v5 = vrot.slane %v7134_v21, %v15733_v3 }
 0x3a0   :  { %v7560_v58 = vrot.slane %v7133_v55, %v15733_v3  ;;  %v7102_v18 = vcombine.high %v7006_v37, %v7006_v37  ;;  %v7109_v19 = vrot.slane %v7006_v37, %v15731_v9  ;;  %v7009_v26 = vsel %vm6977_vm9, %v6961_v16, %v6993_v2  ;;  %v6915_v2 = vpop.f32.mrf.mxu0 }
 0x3a1   :  { %v7394_v60 = vrot.slane %v7135_v0, %v15732_v52  ;;  %v7481_v11 = vsel %vm2762_vm5, %v7386_v17, %v7382_v49  ;;  %v7564_v4 = vrot.slane %v7135_v0, %v15733_v3  ;;  %v7651_v48 = vsel %vm3442_vm14, %v7556_v5, %v7552_v61 }
 0x3a2   :  { %v7482_v7 = vsel %vm2764_vm7, %v7390_v1, %v7481_v11  ;;  %v7652_v63 = vsel %vm2762_vm5, %v7560_v58, %v7651_v48  ;;  %v7116_v57 = vrot.slane %v7102_v18, %v15731_v9  ;;  %v7117_v50 = vcombine.high %v7109_v19, %v7109_v19  ;;  %v11384_v58 = vpop.f32.mrf.mxu1 }
 0x3a3   :  { %v7483_v23 = vsel %vm2766_vm8, %v7394_v60, %v7482_v7  ;;  %v7653_v59 = vsel %vm2764_vm7, %v7564_v4, %v7652_v63  ;;  %v7722_v45 = vrot.slane %v7109_v19, %v15732_v52  ;;  %v7891_v31 = vrot.slane %v7109_v19, %v15733_v3  ;;  %v8166_v60 = vld [vmem:[%s15694_s5 + $0x30] sm:$0xff] }
 0x3a4   :  { %v11724_v54 = vld [vmem:[#allocation3 + $0xf0] ss:$8 sps:$4 sm:$0xff]   ;;  %7511 = vst.msk [vmem:[#allocation3 + $0x18] sm:$0x1e] %vm7508_vm10, %v7483_v23  ;;  %v7118_v51 = vcombine.high %v7116_v57, %v7116_v57  ;;  %v7726_v36 = vrot.slane %v7117_v50, %v15732_v52  ;;  %v7730_v44 = vrot.slane %v7116_v57, %v15732_v52  ;;  %v7895_v6 = vrot.slane %v7117_v50, %v15733_v3  ;;  %v15734_v50 = vld [vmem:[#allocation14_spill] sm:$0xff] }
 0x3a5   :  { %7681 = vst.msk [vmem:[#allocation3 + $0x68] sm:$0xf] %vm7678_vm11, %v7653_v59  ;;  %v7899_v15 = vrot.slane %v7116_v57, %v15733_v3  ;;  %v7153_v20 = vcombine.high %v7009_v26, %v7009_v26  ;;  %v7160_v47 = vrot.slane %v7009_v26, %v15731_v9  ;;  %vm6976_vm15 = vcmp.gt.f32.partialorder %v14880_v29, 0.0  ;;  %11483 = vmatprep.mubr.msk.f32.mxu0 %vm8057_vm0, %v11724_v54  ;;  %v8165_v23 = vld [vmem:[%s15694_s5 + $0x28] sm:$0xff]  ;;  %v11412_v59 = vpop.f32.mrf.mxu0 }
 0x3a6   :  { %v7734_v10 = vrot.slane %v7118_v51, %v15732_v52  ;;  %v7821_v40 = vsel %vm2762_vm5, %v7726_v36, %v7722_v45  ;;  %v7903_v32 = vrot.slane %v7118_v51, %v15733_v3  ;;  %v7990_v22 = vsel %vm3442_vm14, %v7895_v6, %v7891_v31 }
 0x3a7   :  { %v7822_v12 = vsel %vm2764_vm7, %v7730_v44, %v7821_v40  ;;  %v7991_v39 = vsel %vm2762_vm5, %v7899_v15, %v7990_v22  ;;  %v7167_v42 = vrot.slane %v7153_v20, %v15731_v9  ;;  %v7168_v14 = vcombine.high %v7160_v47, %v7160_v47 }
 0x3a8   :  { %v7823_v43 = vsel %vm2766_vm8, %v7734_v10, %v7822_v12  ;;  %v7992_v41 = vsel %vm2764_vm7, %v7903_v32, %v7991_v39  ;;  %v7398_v38 = vrot.slane %v7160_v47, %v15732_v52  ;;  %v7568_v25 = vrot.slane %v7160_v47, %v15733_v3 }
 0x3a9   :  { %7850 = vst.msk [vmem:[#allocation3 + $0xb0] sm:$0x1e] %vm7508_vm10, %v7823_v43  ;;  %v7169_v16 = vcombine.high %v7167_v42, %v7167_v42  ;;  %v7402_v53 = vrot.slane %v7168_v14, %v15732_v52  ;;  %v7406_v24 = vrot.slane %v7167_v42, %v15732_v52  ;;  %v7572_v55 = vrot.slane %v7168_v14, %v15733_v3 }
 0x3aa   :  { %8019 = vst.msk [vmem:[#allocation3 + $0x100] sm:$0xf] %vm7678_vm11, %v7992_v41  ;;  %v7576_v21 = vrot.slane %v7167_v42, %v15733_v3  ;;  %v6992_v49 = vmul.f32 0.2, %v14880_v29  ;;  %v6736_v61 = vadd.f32 %v11381_v28, %v14776_v8  ;;  %v6735_v37 = vadd.f32 %v6688_v33, %v14779_v46 }
 0x3ab   :  { %v7410_v0 = vrot.slane %v7169_v16, %v15732_v52  ;;  %v7484_v17 = vsel %vm2762_vm5, %v7402_v53, %v7398_v38  ;;  %v7580_v1 = vrot.slane %v7169_v16, %v15733_v3  ;;  %v7654_v5 = vsel %vm3442_vm14, %v7572_v55, %v7568_v25  ;;  %v11725_v18 = vld [vmem:[#allocation3 + $0x10] ss:$8 sps:$4 sm:$0xff]   ;;  %v6698_v55 = vpop.f32.mrf.mxu1 }
 0x3ac   :  { %v7485_v19 = vsel %vm2764_vm7, %v7406_v24, %v7484_v17  ;;  %v7655_v26 = vsel %vm2762_vm5, %v7576_v21, %v7654_v5  ;;  %v7008_v8 = vsel %vm6976_vm15, %v14880_v29, %v6992_v49  ;;  %v6963_v46 = vadd.f32 %v11409_v34, %v6736_v61  ;;  %11428 = vmatmul.mubr.msk.f32.vlgmr.msra.gmra.mxu1 %vm8057_vm0, %v11725_v18  ;;  %v14966_v34 = vld [vmem:[%s15694_s5 + $0x58] sm:$0xff] }
 0x3ad   :  { %v7486_v11 = vsel %vm2766_vm8, %v7410_v0, %v7485_v19  ;;  %v7656_v4 = vsel %vm2764_vm7, %v7580_v1, %v7655_v26  ;;  %v7136_v48 = vcombine.high %v7008_v8, %v7008_v8  ;;  %v7143_v7 = vrot.slane %v7008_v8, %v15731_v9  ;;  %11434 = vmatpush3.msra.mxu1 %v15734_v50  ;;  %v6925_v19 = vpop.f32.mrf.mxu0 }
 0x3ae   :  { %7512 = vst.msk [vmem:[#allocation3 + $0x20] sm:$0x1e] %vm7508_vm10, %v7486_v11  ;;  %vm6979_vm2 = vcmp.gt.f32.partialorder %v6963_v46, 0.0  ;;  %v6995_v29 = vmul.f32 0.2, %v6963_v46  ;;  %v6962_v63 = vadd.f32 %v6915_v2, %v6735_v37  ;;  %v6738_v57 = vadd.f32 %v11384_v58, %v14782_v27  ;;  %11435 = vmatprep.subr.mxu1 %v8166_v60  ;;  %v8164_v27 = vld [vmem:[%s15694_s5 + $0x20] sm:$0xff]  ;;  %v11387_v11 = vpop.f32.mrf.mxu1 }
 0x3af   :  { %7682 = vst.msk [vmem:[#allocation3 + $0x70] sm:$0xf] %vm7678_vm11, %v7656_v4  ;;  %v7150_v45 = vrot.slane %v7136_v48, %v15731_v9  ;;  %v7151_v31 = vcombine.high %v7143_v7, %v7143_v7  ;;  %v7738_v28 = vrot.slane %v7143_v7, %v15732_v52  ;;  %v7907_v54 = vrot.slane %v7143_v7, %v15733_v3 }
 0x3b0   :  { %v7011_v51 = vsel %vm6979_vm2, %v6963_v46, %v6995_v29  ;;  %vm6978_vm3 = vcmp.gt.f32.partialorder %v6962_v63, 0.0  ;;  %v6994_v36 = vmul.f32 0.2, %v6962_v63  ;;  %v14953_v44 = vadd.f32 %v11412_v59, %v6738_v57  ;;  %11436 = vmatpush3.msra.mxu1 %v8166_v60 }
 0x3b1   :  { %v7152_v6 = vcombine.high %v7150_v45, %v7150_v45  ;;  %v7742_v15 = vrot.slane %v7151_v31, %v15732_v52  ;;  %v7746_v20 = vrot.slane %v7150_v45, %v15732_v52  ;;  %v7911_v47 = vrot.slane %v7151_v31, %v15733_v3  ;;  %11437 = vmatprep.subr.mxu1 %v8165_v23 }
 0x3b2   :  { %v7915_v10 = vrot.slane %v7150_v45, %v15733_v3  ;;  %v7187_v40 = vcombine.high %v7011_v51, %v7011_v51  ;;  %v7194_v32 = vrot.slane %v7011_v51, %v15731_v9  ;;  %v7010_v22 = vsel %vm6978_vm3, %v6962_v63, %v6994_v36  ;;  %11438 = vmatpush3.msra.mxu1 %v8165_v23 }
 0x3b3   :  { %v7750_v12 = vrot.slane %v7152_v6, %v15732_v52  ;;  %v7824_v39 = vsel %vm2762_vm5, %v7742_v15, %v7738_v28  ;;  %v7919_v42 = vrot.slane %v7152_v6, %v15733_v3  ;;  %v7993_v14 = vsel %vm3442_vm14, %v7911_v47, %v7907_v54  ;;  %11439 = vmatprep.subr.mxu1 %v8164_v27  ;;  %v11415_v54 = vpop.f32.mrf.mxu0  ;;  %v6708_v15 = vpop.f32.mrf.mxu1 }
 0x3b4   :  { %v7825_v33 = vsel %vm2764_vm7, %v7746_v20, %v7824_v39  ;;  %v7994_v43 = vsel %vm2762_vm5, %v7915_v10, %v7993_v14  ;;  %v7201_v41 = vrot.slane %v7187_v40, %v15731_v9  ;;  %v7202_v38 = vcombine.high %v7194_v32, %v7194_v32  ;;  %11440 = vmatpush3.msra.mxu1 %v8164_v27  ;;  %v8771_v40 = vld [vmem:[%s15694_s5 + $0xd0] sm:$0xff] }
 0x3b5   :  { %v7826_v25 = vsel %vm2766_vm8, %v7750_v12, %v7825_v33  ;;  %v7995_v16 = vsel %vm2764_vm7, %v7919_v42, %v7994_v43  ;;  %v7414_v53 = vrot.slane %v7194_v32, %v15732_v52  ;;  %v7584_v24 = vrot.slane %v7194_v32, %v15733_v3  ;;  %11447 = vmatprep.subr.mxu1 %v14966_v34  ;;  %v15735_v33 = vld [vmem:[#allocation15_spill] sm:$0xff] }
 0x3b6   :  { %7851 = vst.msk [vmem:[#allocation3 + $0xb8] sm:$0x1e] %vm7508_vm10, %v7826_v25  ;;  %v7203_v21 = vcombine.high %v7201_v41, %v7201_v41  ;;  %v7418_v49 = vrot.slane %v7202_v38, %v15732_v52  ;;  %v7422_v61 = vrot.slane %v7201_v41, %v15732_v52  ;;  %v7588_v37 = vrot.slane %v7202_v38, %v15733_v3  ;;  %v8770_v43 = vld [vmem:[%s15694_s5 + $0xc8] sm:$0xff] }
 0x3b7   :  { %8020 = vst.msk [vmem:[#allocation3 + $0x108] sm:$0xf] %vm7678_vm11, %v7995_v16  ;;  %v7592_v2 = vrot.slane %v7201_v41, %v15733_v3  ;;  %v7170_v0 = vcombine.high %v7010_v22, %v7010_v22  ;;  %v7177_v17 = vrot.slane %v7010_v22, %v15731_v9  ;;  %vm6981_vm12 = vcmp.gt.f32.partialorder %v14953_v44, 0.0  ;;  %v6935_v41 = vpop.f32.mrf.mxu0 }
 0x3b8   :  { %v7426_v1 = vrot.slane %v7203_v21, %v15732_v52  ;;  %v7487_v5 = vsel %vm2762_vm5, %v7418_v49, %v7414_v53  ;;  %v7596_v58 = vrot.slane %v7203_v21, %v15733_v3  ;;  %v7657_v18 = vsel %vm3442_vm14, %v7588_v37, %v7584_v24 }
 0x3b9   :  { %v7488_v26 = vsel %vm2764_vm7, %v7422_v61, %v7487_v5  ;;  %v7658_v8 = vsel %vm2762_vm5, %v7592_v2, %v7657_v18  ;;  %v7184_v46 = vrot.slane %v7170_v0, %v15731_v9  ;;  %v7185_v60 = vcombine.high %v7177_v17, %v7177_v17  ;;  %v8769_v0 = vld [vmem:[%s15694_s5 + $0xc0] sm:$0xff] }
 0x3ba   :  { %v7489_v4 = vsel %vm2766_vm8, %v7426_v1, %v7488_v26  ;;  %v7659_v48 = vsel %vm2764_vm7, %v7596_v58, %v7658_v8  ;;  %v7754_v7 = vrot.slane %v7177_v17, %v15732_v52  ;;  %v7923_v29 = vrot.slane %v7177_v17, %v15733_v3 }
 0x3bb   :  { %7513 = vst.msk [vmem:[#allocation3 + $0x30] sm:$0x1e] %vm7508_vm10, %v7489_v4  ;;  %v7186_v63 = vcombine.high %v7184_v46, %v7184_v46  ;;  %v7758_v57 = vrot.slane %v7185_v60, %v15732_v52  ;;  %v7762_v50 = vrot.slane %v7184_v46, %v15732_v52  ;;  %v7927_v23 = vrot.slane %v7185_v60, %v15733_v3 }
 0x3bc   :  { %7683 = vst.msk [vmem:[#allocation3 + $0x80] sm:$0xf] %vm7678_vm11, %v7659_v48  ;;  %v7931_v59 = vrot.slane %v7184_v46, %v15733_v3  ;;  %v6997_v45 = vmul.f32 0.2, %v14953_v44  ;;  %v6737_v31 = vadd.f32 %v6698_v55, %v14785_v35  ;;  %v6740_v28 = vadd.f32 %v11387_v11, %v14788_v62  ;;  %v15052_v46 = vld [vmem:[%s15694_s5 + $0x118] sm:$0xff] }
 0x3bd   :  { %v7766_v51 = vrot.slane %v7186_v63, %v15732_v52  ;;  %v7827_v36 = vsel %vm2762_vm5, %v7758_v57, %v7754_v7  ;;  %v7935_v27 = vrot.slane %v7186_v63, %v15733_v3  ;;  %v7996_v6 = vsel %vm3442_vm14, %v7927_v23, %v7923_v29 }
 0x3be   :  { %v11726_v20 = vld [vmem:[#allocation3 + $0x100] ss:$8 sps:$4 sm:$0xff]   ;;  %v7828_v47 = vsel %vm2764_vm7, %v7762_v50, %v7827_v36  ;;  %v7997_v10 = vsel %vm2762_vm5, %v7931_v59, %v7996_v6  ;;  %v7013_v35 = vsel %vm6981_vm12, %v14953_v44, %v6997_v45  ;;  %v6964_v62 = vadd.f32 %v6925_v19, %v6737_v31  ;;  %v11390_v50 = vpop.f32.mrf.mxu1 }
 0x3bf   :  { %v7829_v32 = vsel %vm2766_vm8, %v7766_v51, %v7828_v47  ;;  %v7998_v22 = vsel %vm2764_vm7, %v7935_v27, %v7997_v10  ;;  %v7221_v12 = vcombine.high %v7013_v35, %v7013_v35  ;;  %v7228_v39 = vrot.slane %v7013_v35, %v15731_v9  ;;  %11484 = vmatmul.mubr.msk.f32.vlgmr.msra.gmra.mxu0 %vm8057_vm0, %v11726_v20 }
 0x3c0   :  { %7852 = vst.msk [vmem:[#allocation3 + $0xc8] sm:$0x1e] %vm7508_vm10, %v7829_v32  ;;  %vm6980_vm13 = vcmp.gt.f32.partialorder %v6964_v62, 0.0  ;;  %v6996_v44 = vmul.f32 0.2, %v6964_v62  ;;  %v6967_v42 = vadd.f32 %v11415_v54, %v6740_v28  ;;  %v6739_v14 = vadd.f32 %v6708_v15, %v14791_v30  ;;  %11504 = vmatpush3.msra.mxu0 %v15735_v33 }
 0x3c1   :  { %8021 = vst.msk [vmem:[#allocation3 + $0x118] sm:$0xf] %vm7678_vm11, %v7998_v22  ;;  %v7235_v38 = vrot.slane %v7221_v12, %v15731_v9  ;;  %v7236_v25 = vcombine.high %v7228_v39, %v7228_v39  ;;  %v7430_v16 = vrot.slane %v7228_v39, %v15732_v52  ;;  %v7600_v53 = vrot.slane %v7228_v39, %v15733_v3  ;;  %v11418_v39 = vpop.f32.mrf.mxu0 }
 0x3c2   :  { %11505 = vmatprep.subr.mxu0 %v8771_v40  ;;  %v7012_v24 = vsel %vm6980_vm13, %v6964_v62, %v6996_v44  ;;  %vm6983_vm1 = vcmp.gt.f32.partialorder %v6967_v42, 0.0  ;;  %v6999_v55 = vmul.f32 0.2, %v6967_v42  ;;  %v15034_v21 = vadd.f32 %v6935_v41, %v6739_v14  ;;  %v11727_v2 = vld [vmem:[#allocation3 + $0x28] ss:$8 sps:$4 sm:$0xff]   ;;  %v6718_v62 = vpop.f32.mrf.mxu1 }
 0x3c3   :  { %11506 = vmatpush3.msra.mxu0 %v8771_v40  ;;  %v7237_v30 = vcombine.high %v7235_v38, %v7235_v38  ;;  %v7434_v49 = vrot.slane %v7236_v25, %v15732_v52  ;;  %v7438_v61 = vrot.slane %v7235_v38, %v15732_v52  ;;  %v7604_v37 = vrot.slane %v7236_v25, %v15733_v3 }
 0x3c4   :  { %11507 = vmatprep.subr.mxu0 %v8770_v43  ;;  %v7608_v17 = vrot.slane %v7235_v38, %v15733_v3  ;;  %v7204_v1 = vcombine.high %v7012_v24, %v7012_v24  ;;  %v7211_v5 = vrot.slane %v7012_v24, %v15731_v9  ;;  %v7015_v58 = vsel %vm6983_vm1, %v6967_v42, %v6999_v55 }
 0x3c5   :  { %11508 = vmatpush3.msra.mxu0 %v8770_v43  ;;  %v7442_v18 = vrot.slane %v7237_v30, %v15732_v52  ;;  %v7490_v19 = vsel %vm2762_vm5, %v7434_v49, %v7430_v16  ;;  %v7612_v26 = vrot.slane %v7237_v30, %v15733_v3  ;;  %v7660_v8 = vsel %vm3442_vm14, %v7604_v37, %v7600_v53 }
 0x3c6   :  { %11430 = vmatprep.mubr.msk.f32.mxu1 %vm8057_vm0, %v11727_v2  ;;  %v7491_v60 = vsel %vm2764_vm7, %v7438_v61, %v7490_v19  ;;  %v7661_v11 = vsel %vm2762_vm5, %v7608_v17, %v7660_v8  ;;  %v7218_v4 = vrot.slane %v7204_v1, %v15731_v9  ;;  %v7219_v48 = vcombine.high %v7211_v5, %v7211_v5 }
 0x3c7   :  { %11509 = vmatprep.subr.mxu0 %v8769_v0  ;;  %v7492_v7 = vsel %vm2766_vm8, %v7442_v18, %v7491_v60  ;;  %v7662_v29 = vsel %vm2764_vm7, %v7612_v26, %v7661_v11  ;;  %v7770_v63 = vrot.slane %v7211_v5, %v15732_v52  ;;  %v7939_v57 = vrot.slane %v7211_v5, %v15733_v3 }
 0x3c8   :  { %11510 = vmatpush3.msra.mxu0 %v8769_v0  ;;  %7514 = vst.msk [vmem:[#allocation3 + $0x38] sm:$0x1e] %vm7508_vm10, %v7492_v7  ;;  %v7220_v23 = vcombine.high %v7218_v4, %v7218_v4  ;;  %v7774_v59 = vrot.slane %v7219_v48, %v15732_v52  ;;  %v7778_v45 = vrot.slane %v7218_v4, %v15732_v52  ;;  %vm6982_vm4 = vcmp.gt.f32.partialorder %v15034_v21, 0.0 }
 0x3c9   :  { %7684 = vst.msk [vmem:[#allocation3 + $0x88] sm:$0xf] %vm7678_vm11, %v7662_v29  ;;  %v7943_v31 = vrot.slane %v7219_v48, %v15733_v3  ;;  %11531 = vmatprep.subr.mxu0 %v15052_v46  ;;  %v7947_v28 = vrot.slane %v7218_v4, %v15733_v3  ;;  %v7255_v54 = vcombine.high %v7015_v58, %v7015_v58  ;;  %v6998_v41 = vmul.f32 0.2, %v15034_v21 }
 0x3ca   :  { %v7262_v51 = vrot.slane %v7015_v58, %v15731_v9  ;;  %v7782_v36 = vrot.slane %v7220_v23, %v15732_v52  ;;  %v7830_v27 = vsel %vm2762_vm5, %v7774_v59, %v7770_v63  ;;  %v7951_v6 = vrot.slane %v7220_v23, %v15733_v3 }
 0x3cb   :  { %v7999_v15 = vsel %vm3442_vm14, %v7943_v31, %v7939_v57  ;;  %v7831_v20 = vsel %vm2764_vm7, %v7778_v45, %v7830_v27  ;;  %v7269_v10 = vrot.slane %v7255_v54, %v15731_v9  ;;  %v6742_v38 = vadd.f32 %v11390_v50, %v14794_v13  ;;  %v6945_v13 = vpop.f32.mrf.mxu0 }
 0x3cc   :  { %v8000_v47 = vsel %vm2762_vm5, %v7947_v28, %v7999_v15  ;;  %v7270_v35 = vcombine.high %v7262_v51, %v7262_v51  ;;  %v7832_v40 = vsel %vm2766_vm8, %v7782_v36, %v7831_v20  ;;  %v7446_v22 = vrot.slane %v7262_v51, %v15732_v52 }
 0x3cd   :  { %v8001_v32 = vsel %vm2764_vm7, %v7951_v6, %v8000_v47  ;;  %v7616_v12 = vrot.slane %v7262_v51, %v15733_v3  ;;  %7853 = vst.msk [vmem:[#allocation3 + $0xd0] sm:$0x1e] %vm7508_vm10, %v7832_v40  ;;  %v7271_v44 = vcombine.high %v7269_v10, %v7269_v10  ;;  %v7454_v14 = vrot.slane %v7269_v10, %v15732_v52 }
 0x3ce   :  { %8022 = vst.msk [vmem:[#allocation3 + $0x120] sm:$0xf] %vm7678_vm11, %v8001_v32  ;;  %v7450_v42 = vrot.slane %v7270_v35, %v15732_v52  ;;  %v7620_v33 = vrot.slane %v7270_v35, %v15733_v3  ;;  %v7624_v43 = vrot.slane %v7269_v10, %v15733_v3  ;;  %v6741_v25 = vadd.f32 %v6718_v62, %v14798_v56  ;;  %v11730_v32 = vld [vmem:[#allocation3 + $0x50] ss:$8 sps:$4 sm:$0xff]  }
 0x3cf   :  { %v7458_v16 = vrot.slane %v7271_v44, %v15732_v52  ;;  %v7628_v24 = vrot.slane %v7271_v44, %v15733_v3  ;;  %v7014_v61 = vsel %vm6982_vm4, %v15034_v21, %v6998_v41  ;;  %v6969_v37 = vadd.f32 %v11418_v39, %v6742_v38 }
 0x3d0   :  { %v7493_v53 = vsel %vm2762_vm5, %v7450_v42, %v7446_v22  ;;  %v7663_v55 = vsel %vm3442_vm14, %v7620_v33, %v7616_v12  ;;  %v7238_v0 = vcombine.high %v7014_v61, %v7014_v61  ;;  %v7245_v17 = vrot.slane %v7014_v61, %v15731_v9  ;;  %v8287_v61 = vld [vmem:[%s15694_s5 + $0x50] sm:$0xff] }
 0x3d1   :  { %v7494_v30 = vsel %vm2764_vm7, %v7454_v14, %v7493_v53  ;;  %v7664_v49 = vsel %vm2762_vm5, %v7624_v43, %v7663_v55  ;;  %vm6985_vm6 = vcmp.gt.f32.partialorder %v6969_v37, 0.0  ;;  %v7001_v1 = vmul.f32 0.2, %v6969_v37 }
 0x3d2   :  { %v7495_v56 = vsel %vm2766_vm8, %v7458_v16, %v7494_v30  ;;  %v7665_v2 = vsel %vm2764_vm7, %v7628_v24, %v7664_v49  ;;  %v6968_v5 = vadd.f32 %v6945_v13, %v6741_v25  ;;  %v7252_v58 = vrot.slane %v7238_v0, %v15731_v9  ;;  %v11731_v16 = vld [vmem:[#allocation3 + $0x60] ss:$8 sps:$4 sm:$0xff]  }
 0x3d3   :  { %7515 = vst.msk [vmem:[#allocation3 + $0x40] sm:$0x1e] %vm7508_vm10, %v7495_v56  ;;  %v7253_v18 = vcombine.high %v7245_v17, %v7245_v17  ;;  %v7786_v21 = vrot.slane %v7245_v17, %v15732_v52  ;;  %v7955_v19 = vrot.slane %v7245_v17, %v15733_v3  ;;  %v7017_v26 = vsel %vm6985_vm6, %v6969_v37, %v7001_v1  ;;  %v11732_v49 = vld [vmem:[#allocation3 + $0x78] ss:$8 sps:$4 sm:$0xff]   ;;  %v8286_v17 = vld [vmem:[%s15694_s5 + $0x48] sm:$0xff] }
 0x3d4   :  { %7685 = vst.msk [vmem:[#allocation3 + $0x90] sm:$0xf] %vm7678_vm11, %v7665_v2  ;;  %vm6984_vm9 = vcmp.gt.f32.partialorder %v6968_v5, 0.0  ;;  %v7000_v8 = vmul.f32 0.2, %v6968_v5  ;;  %v7254_v60 = vcombine.high %v7252_v58, %v7252_v58  ;;  %v7794_v4 = vrot.slane %v7252_v58, %v15732_v52 }
 0x3d5   :  { %v7790_v11 = vrot.slane %v7253_v18, %v15732_v52  ;;  %v7959_v48 = vrot.slane %v7253_v18, %v15733_v3  ;;  %v11728_v7 = vld [vmem:[#allocation3 + $0x118] ss:$8 sps:$4 sm:$0xff]   ;;  %v7963_v29 = vrot.slane %v7252_v58, %v15733_v3  ;;  %v7289_v63 = vcombine.high %v7017_v26, %v7017_v26 }
 0x3d6   :  { %v7296_v57 = vrot.slane %v7017_v26, %v15731_v9  ;;  %v7016_v50 = vsel %vm6984_vm9, %v6968_v5, %v7000_v8  ;;  %v7798_v23 = vrot.slane %v7254_v60, %v15732_v52  ;;  %v7967_v45 = vrot.slane %v7254_v60, %v15733_v3  ;;  %11486 = vmatprep.mubr.msk.f32.mxu0 %vm8057_vm0, %v11728_v7  ;;  %v8285_v26 = vld [vmem:[%s15694_s5 + $0x40] sm:$0xff]  ;;  %v8408_v7 = vld [vmem:[%s15694_s5 + $0x70] sm:$0xff] }
 0x3d7   :  { %v7833_v59 = vsel %vm2762_vm5, %v7790_v11, %v7786_v21  ;;  %v8002_v31 = vsel %vm3442_vm14, %v7959_v48, %v7955_v19  ;;  %v7303_v51 = vrot.slane %v7289_v63, %v15731_v9  ;;  %v7272_v12 = vcombine.high %v7016_v50, %v7016_v50  ;;  %v11736_v8 = vld [vmem:[#allocation3 + $0x1] ss:$8 sps:$4 sm:$0xff]   ;;  %v11739_v48 = vld [vmem:[#allocation3 + $0x11] ss:$8 sps:$4 sm:$0xff]  }
 0x3d8   :  { %v7834_v28 = vsel %vm2764_vm7, %v7794_v4, %v7833_v59  ;;  %v8003_v54 = vsel %vm2762_vm5, %v7963_v29, %v8002_v31  ;;  %v7304_v36 = vcombine.high %v7296_v57, %v7296_v57  ;;  %v7462_v15 = vrot.slane %v7296_v57, %v15732_v52  ;;  %v8409_v4 = vld [vmem:[%s15694_s5 + $0x78] sm:$0xff]  ;;  %v11740_v29 = vld [vmem:[#allocation3 + $0x29] ss:$8 sps:$4 sm:$0xff]  }
 0x3d9   :  { %v7835_v27 = vsel %vm2766_vm8, %v7798_v23, %v7834_v28  ;;  %v8004_v6 = vsel %vm2764_vm7, %v7967_v45, %v8003_v54  ;;  %v7632_v20 = vrot.slane %v7296_v57, %v15733_v3  ;;  %v7305_v10 = vcombine.high %v7303_v51, %v7303_v51  ;;  %v8407_v63 = vld [vmem:[%s15694_s5 + $0x68] sm:$0xff]  ;;  %v8651_v31 = vld [vmem:[%s15694_s5 + $0xb8] sm:$0xff] }
 0x3da   :  { %v11729_v47 = vld [vmem:[#allocation3 + $0x38] ss:$8 sps:$4 sm:$0xff]   ;;  %7854 = vst.msk [vmem:[#allocation3 + $0xd8] sm:$0x1e] %vm7508_vm10, %v7835_v27  ;;  %v7466_v35 = vrot.slane %v7304_v36, %v15732_v52  ;;  %v7470_v62 = vrot.slane %v7303_v51, %v15732_v52  ;;  %v7636_v40 = vrot.slane %v7304_v36, %v15733_v3  ;;  %v7640_v22 = vrot.slane %v7303_v51, %v15733_v3  ;;  %v11734_v45 = vld [vmem:[#allocation3 + $0x8] ss:$8 sps:$4 sm:$0xff]  }
 0x3db   :  { %8023 = vst.msk [vmem:[#allocation3 + $0x128] sm:$0xf] %vm7678_vm11, %v8004_v6  ;;  %v7279_v39 = vrot.slane %v7016_v50, %v15731_v9  ;;  %11431 = vmatmul.mubr.msk.f32.gmra.mxu1 %vm8057_vm0, %v11729_v47  ;;  %v7474_v44 = vrot.slane %v7305_v10, %v15732_v52  ;;  %v7644_v14 = vrot.slane %v7305_v10, %v15733_v3  ;;  %v11735_v1 = vld [vmem:[#allocation3 + $0x88] ss:$8 sps:$4 sm:$0xff]   ;;  %v11743_v57 = vld [vmem:[#allocation3 + $0x39] ss:$8 sps:$4 sm:$0xff]  }
 0x3dc   :  { %v7496_v42 = vsel %vm2762_vm5, %v7466_v35, %v7462_v15  ;;  %v7666_v33 = vsel %vm3442_vm14, %v7636_v40, %v7632_v20  ;;  %11441 = vmatprep.mubr.msk.f32.mxu1 %vm8057_vm0, %v11730_v32  ;;  %v7286_v38 = vrot.slane %v7272_v12, %v15731_v9  ;;  %v8406_v50 = vld [vmem:[%s15694_s5 + $0x60] sm:$0xff]  ;;  %v11747_v28 = vld [vmem:[#allocation3 + $0xb0] ss:$8 sps:$4 sm:$0xff]   ;;  %v8649_v15 = vld [vmem:[%s15694_s5 + $0xa8] sm:$0xff]  ;;  %vm9320_vm15 = vcmask 517120  }
 0x3dd   :  { %v7497_v43 = vsel %vm2764_vm7, %v7470_v62, %v7496_v42  ;;  %v7667_v41 = vsel %vm2762_vm5, %v7640_v22, %v7666_v33  ;;  %v7287_v25 = vcombine.high %v7279_v39, %v7279_v39  ;;  %v7802_v55 = vrot.slane %v7279_v39, %v15732_v52  ;;  %v11744_v23 = vld [vmem:[#allocation3 + $0xa0] ss:$8 sps:$4 sm:$0xff]   ;;  %v8650_v51 = vld [vmem:[%s15694_s5 + $0xb0] sm:$0xff]  ;;  %v8893_v12 = vld [vmem:[%s15694_s5 + $0xf8] sm:$0xff] }
 0x3de   :  { %v7498_v53 = vsel %vm2766_vm8, %v7474_v44, %v7497_v43  ;;  %v7668_v24 = vsel %vm2764_vm7, %v7644_v14, %v7667_v41  ;;  %v7971_v30 = vrot.slane %v7279_v39, %v15733_v3  ;;  %v7288_v37 = vcombine.high %v7286_v38, %v7286_v38  ;;  %v11748_v54 = vld [vmem:[#allocation3 + $0xc8] ss:$8 sps:$4 sm:$0xff]   ;;  %v11737_v36 = vld [vmem:[#allocation3 + $0x18] ss:$8 sps:$4 sm:$0xff]  }
 0x3df   :  { %7516 = vst.msk [vmem:[#allocation3 + $0x48] sm:$0x1e] %vm7508_vm10, %v7498_v53  ;;  %v7806_v13 = vrot.slane %v7287_v25, %v15732_v52  ;;  %v7810_v56 = vrot.slane %v7286_v38, %v15732_v52  ;;  %v7975_v2 = vrot.slane %v7287_v25, %v15733_v3  ;;  %11442 = vmatmul.mubr.msk.f32.vlgmr.msra.gmra.mxu1 %vm8057_vm0, %v11731_v16  ;;  %v11738_v27 = vld [vmem:[#allocation3 + $0x30] ss:$8 sps:$4 sm:$0xff]   ;;  %v9012_v20 = vld [vmem:[%s15694_s5 + $0x108] sm:$0xff]  ;;  %v9011_v35 = vld [vmem:[%s15694_s5 + $0x100] sm:$0xff] }
 0x3e0   :  { %7686 = vst.msk [vmem:[#allocation3 + $0x98] sm:$0xf] %vm7678_vm11, %v7668_v24  ;;  %v7979_v0 = vrot.slane %v7286_v38, %v15733_v3  ;;  %11448 = vmatpush3.msra.mxu1 %v14966_v34  ;;  %11444 = vmatprep.mubr.msk.f32.mxu1 %vm8057_vm0, %v11732_v49  ;;  %v7814_v5 = vrot.slane %v7288_v37, %v15732_v52  ;;  %v9013_v6 = vld [vmem:[%s15694_s5 + $0x110] sm:$0xff]  ;;  %v11745_v40 = vld [vmem:[#allocation3 + $0x19] ss:$8 sps:$4 sm:$0xff]   ;;  %v15736_v14 = vmov 0.0  }
 0x3e1   :  { %v7836_v58 = vsel %vm2762_vm5, %v7806_v13, %v7802_v55  ;;  %v7983_v18 = vrot.slane %v7288_v37, %v15733_v3  ;;  %v8005_v21 = vsel %vm3442_vm14, %v7975_v2, %v7971_v30  ;;  %11449 = vmatprep.subr.mxu1 %v8287_v61  ;;  %v11742_v10 = vld [vmem:[#allocation3 + $0x9] ss:$8 sps:$4 sm:$0xff]   ;;  %v8890_v38 = vld [vmem:[%s15694_s5 + $0xe0] sm:$0xff]  ;;  %v9434_v55 = vld [vmem:[%s15695_s7 + $0x38] sm:$0xff]  ;;  %vm9456_vm12 = vcmask 523264  }
 0x3e2   :  { %v7837_v19 = vsel %vm2764_vm7, %v7810_v56, %v7836_v58  ;;  %v8006_v34 = vsel %vm2762_vm5, %v7979_v0, %v8005_v21  ;;  %11450 = vmatpush3.msra.mxu1 %v8287_v61  ;;  %v11746_v32 = vld [vmem:[#allocation3 + $0x31] ss:$8 sps:$4 sm:$0xff]   ;;  %v11751_v22 = vld [vmem:[#allocation3 + $0xa1] ss:$8 sps:$4 sm:$0xff]   ;;  %vm10388_vm13 = vcmask 1043456   ;;  %vm10409_vm1 = vcmask 25600  }
 0x3e3   :  { %v7838_v60 = vsel %vm2766_vm8, %v7814_v5, %v7837_v19  ;;  %v8007_v11 = vsel %vm2764_vm7, %v7983_v18, %v8006_v34  ;;  %11451 = vmatprep.subr.mxu1 %v8286_v17  ;;  %11445 = vmatmul.mubr.msk.f32.gmra.mxu1 %vm8057_vm0, %v11735_v1  ;;  %v11752_v39 = vld [vmem:[#allocation3 + $0xb1] ss:$8 sps:$4 sm:$0xff]   ;;  %v8891_v43 = vld [vmem:[%s15694_s5 + $0xe8] sm:$0xff]  ;;  %vm9208_vm7 = vcmask 518144   ;;  %v9431_v56 = vld [vmem:[%s15695_s7 + $0x20] sm:$0xff]  ;;  %vm11804_vm8 = vmmov 0  }
 0x3e4   :  { %7855 = vst.msk [vmem:[#allocation3 + $0xe0] sm:$0x1e] %vm7508_vm10, %v7838_v60  ;;  %11452 = vmatpush3.msra.mxu1 %v8286_v17  ;;  %11455 = vmatprep.mubr.msk.f32.mxu1 %vm8057_vm0, %v11736_v8  ;;  %v8892_v42 = vld [vmem:[%s15694_s5 + $0xf0] sm:$0xff]  ;;  %v11755_v25 = vld [vmem:[#allocation3 + $0x58] ss:$8 sps:$4 sm:$0xff]   ;;  %v9432_v37 = vld [vmem:[%s15695_s7 + $0x28] sm:$0xff] }
 0x3e5   :  { %8024 = vst.msk [vmem:[#allocation3 + $0x130] sm:$0xf] %vm7678_vm11, %v8007_v11  ;;  %11453 = vmatprep.subr.mxu1 %v8285_v26  ;;  %v11753_v33 = vld [vmem:[#allocation3 + $0xc9] ss:$8 sps:$4 sm:$0xff]   ;;  %v9542_v30 = vld [vmem:[%s15695_s7 + $0x78] sm:$0xff]  ;;  %v9539_v2 = vld [vmem:[%s15695_s7 + $0x60] sm:$0xff] }
 0x3e6   :  { %11454 = vmatpush3.msra.mxu1 %v8285_v26  ;;  %v11741_v47 = vld [vmem:[#allocation3 + $0x40] ss:$8 sps:$4 sm:$0xff]   ;;  %9211 = vst.msk [vmem:[#allocation4 + $0x8] sm:$0x7] %vm9208_vm7, %v15736_v14  ;;  %9217 = vst.msk [vmem:[#allocation4 + $0x20] sm:$0x7] %vm9208_vm7, %v15736_v14 }
 0x3e7   :  { %11461 = vmatprep.subr.mxu1 %v8409_v4  ;;  %11456 = vmatmul.mubr.msk.f32.vlgmr.msra.gmra.mxu1 %vm8057_vm0, %v11739_v48  ;;  %v11749_v44 = vld [vmem:[#allocation3 + $0x41] ss:$8 sps:$4 sm:$0xff]   ;;  %v11758_v24 = vld [vmem:[#allocation3 + $0x90] ss:$8 sps:$4 sm:$0xff]   ;;  %9222 = vst.msk [vmem:[#allocation4 + $0x34] sm:$0x7] %vm9208_vm7, %v15736_v14 }
 0x3e8   :  { %11462 = vmatpush3.msra.mxu1 %v8409_v4  ;;  %11458 = vmatprep.mubr.msk.f32.mxu1 %vm8057_vm0, %v11740_v29  ;;  %v11756_v16 = vld [vmem:[#allocation3 + $0x68] ss:$8 sps:$4 sm:$0xff]   ;;  %9228 = vst.msk [vmem:[#allocation4 + $0x4c] sm:$0x7] %vm9208_vm7, %v15736_v14  ;;  %9209 = vst.msk [vmem:[#allocation4] sm:$0x7] %vm9208_vm7, %v15736_v14 }
 0x3e9   :  { %11463 = vmatprep.subr.mxu1 %v8408_v7  ;;  %v11757_v53 = vld [vmem:[#allocation3 + $0x80] ss:$8 sps:$4 sm:$0xff]   ;;  %9210 = vst.msk [vmem:[#allocation4 + $0x4] sm:$0x7] %vm9208_vm7, %v15736_v14  ;;  %9212 = vst.msk [vmem:[#allocation4 + $0xc] sm:$0x7] %vm9208_vm7, %v15736_v14 }
 0x3ea   :  { %11464 = vmatpush3.msra.mxu1 %v8408_v7  ;;  %9213 = vst.msk [vmem:[#allocation4 + $0x10] sm:$0x7] %vm9208_vm7, %v15736_v14  ;;  %9214 = vst.msk [vmem:[#allocation4 + $0x14] sm:$0x7] %vm9208_vm7, %v15736_v14  ;;  %v9433_v49 = vld [vmem:[%s15695_s7 + $0x30] sm:$0xff]  ;;  %v9540_v13 = vld [vmem:[%s15695_s7 + $0x68] sm:$0xff] }
 0x3eb   :  { %11465 = vmatprep.subr.mxu1 %v8407_v63  ;;  %11459 = vmatmul.mubr.msk.f32.gmra.mxu1 %vm8057_vm0, %v11743_v57  ;;  %v11750_v62 = vld [vmem:[#allocation3 + $0xd8] ss:$8 sps:$4 sm:$0xff]   ;;  %9215 = vst.msk [vmem:[#allocation4 + $0x18] sm:$0x7] %vm9208_vm7, %v15736_v14  ;;  %9216 = vst.msk [vmem:[#allocation4 + $0x1c] sm:$0x7] %vm9208_vm7, %v15736_v14 }
 0x3ec   :  { %v11733_v59 = vld [vmem:[#allocation3 + $0x128] ss:$8 sps:$4 sm:$0xff]   ;;  %11466 = vmatpush3.msra.mxu1 %v8407_v63  ;;  %11469 = vmatprep.mubr.msk.f32.mxu1 %vm8057_vm0, %v11744_v23  ;;  %v11754_v41 = vld [vmem:[#allocation3 + $0xd9] ss:$8 sps:$4 sm:$0xff]   ;;  %9218 = vst.msk [vmem:[#allocation4 + $0x24] sm:$0x7] %vm9208_vm7, %v15736_v14 }
 0x3ed   :  { %11487 = vmatmul.mubr.msk.f32.gmra.mxu0 %vm8057_vm0, %v11733_v59  ;;  %11467 = vmatprep.subr.mxu1 %v8406_v50  ;;  %9219 = vst.msk [vmem:[#allocation4 + $0x28] sm:$0x7] %vm9208_vm7, %v15736_v14  ;;  %9220 = vst.msk [vmem:[#allocation4 + $0x2c] sm:$0x7] %vm9208_vm7, %v15736_v14  ;;  %v9541_v61 = vld [vmem:[%s15695_s7 + $0x70] sm:$0xff]  ;;  %v9430_v0 = vld [vmem:[%s15695_s7 + $0x18] sm:$0xff] }
 0x3ee   :  { %11511 = vmatprep.mubr.msk.f32.mxu0 %vm8057_vm0, %v11734_v45  ;;  %11468 = vmatpush3.msra.mxu1 %v8406_v50  ;;  %9221 = vst.msk [vmem:[#allocation4 + $0x30] sm:$0x7] %vm9208_vm7, %v15736_v14  ;;  %9224 = vst.msk [vmem:[#allocation4 + $0x3c] sm:$0x7] %vm9208_vm7, %v15736_v14  ;;  %v9538_v17 = vld [vmem:[%s15695_s7 + $0x58] sm:$0xff]  ;;  %v9429_v1 = vld [vmem:[%s15695_s7 + $0x10] sm:$0xff] }
 0x3ef   :  { %11489 = vmatprep.subr.mxu1 %v8651_v31  ;;  %11470 = vmatmul.mubr.msk.f32.vlgmr.msra.gmra.mxu1 %vm8057_vm0, %v11747_v28  ;;  %9225 = vst.msk [vmem:[#allocation4 + $0x40] sm:$0x7] %vm9208_vm7, %v15736_v14  ;;  %9227 = vst.msk [vmem:[#allocation4 + $0x48] sm:$0x7] %vm9208_vm7, %v15736_v14  ;;  %v9537_v5 = vld [vmem:[%s15695_s7 + $0x50] sm:$0xff]  ;;  %v9428_v58 = vld [vmem:[%s15695_s7 + $0x8] sm:$0xff] }
 0x3f0   :  { %11490 = vmatpush3.msra.mxu1 %v8651_v31  ;;  %11472 = vmatprep.mubr.msk.f32.mxu1 %vm8057_vm0, %v11748_v54  ;;  %9230 = vst.msk [vmem:[#allocation4 + $0x54] sm:$0x7] %vm9208_vm7, %v15736_v14  ;;  %9231 = vst.msk [vmem:[#allocation4 + $0x58] sm:$0x7] %vm9208_vm7, %v15736_v14  ;;  %v9536_v18 = vld [vmem:[%s15695_s7 + $0x48] sm:$0xff]  ;;  %v9427_v21 = vld [vmem:[%s15695_s7] sm:$0xff] }
 0x3f1   :  { %11512 = vmatmul.mubr.msk.f32.vlgmr.msra.gmra.mxu0 %vm8057_vm0, %v11737_v36  ;;  %11491 = vmatprep.subr.mxu1 %v8650_v51  ;;  %v9535_v19 = vld [vmem:[%s15695_s7 + $0x40] sm:$0xff]  ;;  %vm10421_vm4 = vcmask 1024  }
 0x3f2   :  { %11514 = vmatprep.mubr.msk.f32.mxu0 %vm8057_vm0, %v11738_v27  ;;  %11532 = vmatpush3.msra.mxu0 %v15052_v46  ;;  %v8648_v46 = vld [vmem:[%s15694_s5 + $0xa0] sm:$0xff] }
 0x3f3   :  { %11533 = vmatprep.subr.mxu0 %v9013_v6  ;;  %11492 = vmatpush3.msra.mxu1 %v8650_v51  ;;  %v10638_v54 = vld [vmem:[%s15696_s6] ss:$0 sm:$0xff] }
 0x3f4   :  { %11534 = vmatpush3.msra.mxu0 %v9013_v6  ;;  %11493 = vmatprep.subr.mxu1 %v8649_v15 }
 0x3f5   :  { %11515 = vmatmul.mubr.msk.f32.gmra.mxu0 %vm8057_vm0, %v11741_v47  ;;  %11535 = vmatprep.subr.mxu0 %v9012_v20 }
 0x3f6   :  { %11536 = vmatpush3.msra.mxu0 %v9012_v20  ;;  %11539 = vmatprep.mubr.msk.f32.mxu0 %vm8057_vm0, %v11742_v10 }
 0x3f7   :  { %11537 = vmatprep.subr.mxu0 %v9011_v35  ;;  %11473 = vmatmul.mubr.msk.f32.gmra.mxu1 %vm8057_vm0, %v11750_v62 }
 0x3f8   :  { %11538 = vmatpush3.msra.mxu0 %v9011_v35  ;;  %11494 = vmatpush3.msra.mxu1 %v8649_v15 }
 0x3f9   :  { %11540 = vmatmul.mubr.msk.f32.vlgmr.msra.gmra.mxu0 %vm8057_vm0, %v11745_v40  ;;  %11495 = vmatprep.subr.mxu1 %v8648_v46 }
 0x3fa   :  { %11542 = vmatprep.mubr.msk.f32.mxu0 %vm8057_vm0, %v11746_v32  ;;  %11497 = vmatprep.mubr.msk.f32.mxu1 %vm8057_vm0, %v11751_v22 }
 0x3fb   :  { %11496 = vmatpush3.msra.mxu1 %v8648_v46  ;;  %11564 = vmatprep.subr.mxu0 %v15736_v14 }
 0x3fc   :  { %11517 = vmatprep.subr.mxu1 %v8893_v12  ;;  %11498 = vmatmul.mubr.msk.f32.vlgmr.msra.gmra.mxu1 %vm8057_vm0, %v11752_v39 }
 0x3fd   :  { %11543 = vmatmul.mubr.msk.f32.gmra.mxu0 %vm8057_vm0, %v11749_v44  ;;  %11518 = vmatpush3.msra.mxu1 %v8893_v12 }
 0x3fe   :  { %11500 = vmatprep.mubr.msk.f32.mxu1 %vm8057_vm0, %v11753_v33  ;;  %11519 = vmatprep.subr.mxu1 %v8892_v42 }
 0x3ff   :  { %11520 = vmatpush3.msra.mxu1 %v8892_v42  ;;  %11565 = vmatpush3.msra.mxu0 %v9542_v30 }
 0x400   :  { %11521 = vmatprep.subr.mxu1 %v8891_v43  ;;  %11501 = vmatmul.mubr.msk.f32.gmra.mxu1 %vm8057_vm0, %v11754_v41 }
 0x401   :  { %11522 = vmatpush3.msra.mxu1 %v8891_v43  ;;  %11525 = vmatprep.mubr.msk.f32.mxu1 %vm8057_vm0, %v11755_v25 }
 0x402   :  { %11523 = vmatprep.subr.mxu1 %v8890_v38  ;;  %11566 = vmatprep.subr.mxu0 %v15736_v14 }
 0x403   :  { %11524 = vmatpush3.msra.mxu1 %v8890_v38  ;;  %11567 = vmatpush3.msra.mxu0 %v9541_v61 }
 0x404   :  { %11526 = vmatmul.mubr.msk.f32.vlgmr.msra.gmra.mxu1 %vm8057_vm0, %v11756_v16  ;;  %11545 = vmatprep.subr.mxu1 %v15736_v14 }
 0x405   :  { %11528 = vmatprep.mubr.msk.f32.mxu1 %vm8057_vm0, %v11757_v53  ;;  %11546 = vmatpush3.msra.mxu1 %v9434_v55 }
 0x406   :  { %11547 = vmatprep.subr.mxu1 %v15736_v14  ;;  %11568 = vmatprep.subr.mxu0 %v15736_v14 }
 0x407   :  { %11548 = vmatpush3.msra.mxu1 %v9433_v49  ;;  %11569 = vmatpush3.msra.mxu0 %v9540_v13 }
 0x408   :  { %11529 = vmatmul.mubr.msk.f32.gmra.mxu1 %vm8057_vm0, %v11758_v24  ;;  %11549 = vmatprep.subr.mxu1 %v15736_v14  ;;  %vm9274_vm0 = vcmask 518145  }
 0x409   :  { %11550 = vmatpush3.msra.mxu1 %v9432_v37  ;;  %11570 = vmatprep.subr.mxu0 %v15736_v14 }
 0x40a   :  { %11551 = vmatprep.subr.mxu1 %v15736_v14  ;;  %11571 = vmatpush3.msra.mxu0 %v9539_v2 }
 0x40b   :  { %11552 = vmatpush3.msra.mxu1 %v9431_v56  ;;  %11572 = vmatprep.subr.mxu0 %v15736_v14 }
 0x40c   :  { %11553 = vmatprep.subr.mxu1 %v15736_v14  ;;  %11573 = vmatpush3.msra.mxu0 %v9538_v17 }
 0x40d   :  { %11554 = vmatpush3.msra.mxu1 %v9430_v0  ;;  %11574 = vmatprep.subr.mxu0 %v15736_v14 }
 0x40e   :  { %11555 = vmatprep.subr.mxu1 %v15736_v14  ;;  %11575 = vmatpush3.msra.mxu0 %v9537_v5 }
 0x40f   :  { %11556 = vmatpush3.msra.mxu1 %v9429_v1  ;;  %11576 = vmatprep.subr.mxu0 %v15736_v14 }
 0x410   :  { %11557 = vmatprep.subr.mxu1 %v15736_v14  ;;  %11577 = vmatpush3.msra.mxu0 %v9536_v18 }
 0x411   :  { %11558 = vmatpush3.msra.mxu1 %v9428_v58  ;;  %11578 = vmatprep.subr.mxu0 %v15736_v14 }
 0x412   :  { %11559 = vmatprep.subr.mxu1 %v15736_v14  ;;  %11579 = vmatpush3.msra.mxu0 %v9535_v19 }
 0x413   :  { %11560 = vmatpush3.msra.mxu1 %v9427_v21  ;;  %11561 = vmatprep.mubr.msk.f32.mxu1 %vm11804_vm8, %v15736_v14 }
 0x414   :  { %11580 = vmatprep.mubr.msk.f32.mxu0 %vm11804_vm8, %v15736_v14  ;;  %11583 = vmatprep.subr.mxu1 %v15736_v14 }
 0x415   :  { %11602 = vmatprep.subr.mxu0 %v15736_v14 }
 0x46c   :  { %v11429_v34 = vpop.f32.mrf.mxu1 }
 0x46d   :  { %v8152_v36 = vadd.f32 %v11429_v34, %v10638_v54 }
 0x46e   :  { %v8132_v26 = vpop.f32.mrf.mxu1 }
 0x46f   :  { %v8151_v6 = vadd.f32 %v10638_v54, %v8132_v26 }
 0x47f   :  { %v11485_v29 = vpop.f32.mrf.mxu0 }
 0x481   :  { %v8617_v50 = vpop.f32.mrf.mxu0 }
 0x49b   :  { %v11432_v8 = vpop.f32.mrf.mxu1 }
 0x49c   :  { %v8154_v47 = vadd.f32 %v11432_v8, %v10638_v54 }
 0x49d   :  { %v8142_v60 = vpop.f32.mrf.mxu1 }
 0x49e   :  { %v8153_v12 = vadd.f32 %v10638_v54, %v8142_v60 }
 0x49f   :  { %v11443_v11 = vpop.f32.mrf.mxu1 }
 0x4a0   :  { %v8274_v15 = vadd.f32 %v11443_v11, %v8152_v36 }
 0x4a1   :  { %v8254_v4 = vpop.f32.mrf.mxu1 }
 0x4a2   :  { %v8273_v10 = vadd.f32 %v8254_v4, %v8151_v6 }
 0x4a3   :  { %v11446_v48 = vpop.f32.mrf.mxu1 }
 0x4a4   :  { %v8276_v46 = vadd.f32 %v11446_v48, %v8154_v47 }
 0x4a5   :  { %v8264_v7 = vpop.f32.mrf.mxu1 }
 0x4a6   :  { %v8275_v33 = vadd.f32 %v8264_v7, %v8153_v12 }
 0x4a7   :  { %v11457_v63 = vpop.f32.mrf.mxu1 }
 0x4a8   :  { %v8395_v35 = vadd.f32 %v11457_v63, %v8274_v15 }
 0x4a9   :  { %v8375_v57 = vpop.f32.mrf.mxu1 }
 0x4aa   :  { %v8394_v40 = vadd.f32 %v8375_v57, %v8273_v10 }
 0x4ab   :  { %v11460_v23 = vpop.f32.mrf.mxu1 }
 0x4ac   :  { %v8397_v44 = vadd.f32 %v11460_v23, %v8276_v46 }
 0x4ad   :  { %v11488_v59 = vpop.f32.mrf.mxu0  ;;  %v8385_v45 = vpop.f32.mrf.mxu1 }
 0x4ae   :  { %v8396_v16 = vadd.f32 %v8385_v45, %v8275_v33 }
 0x4af   :  { %v8627_v31 = vpop.f32.mrf.mxu0  ;;  %v11471_v28 = vpop.f32.mrf.mxu1 }
 0x4b0   :  { %v8516_v32 = vadd.f32 %v11471_v28, %v8395_v35 }
 0x4b1   :  { %v11513_v51 = vpop.f32.mrf.mxu0  ;;  %v8496_v27 = vpop.f32.mrf.mxu1 }
 0x4b2   :  { %v8515_v42 = vadd.f32 %v8496_v27, %v8394_v40  ;;  %v8637_v38 = vadd.f32 %v11485_v29, %v8516_v32 }
 0x4b3   :  { %v8859_v20 = vpop.f32.mrf.mxu0 }
 0x4b4   :  { %v8636_v55 = vadd.f32 %v8617_v50, %v8515_v42 }
 0x4b5   :  { %v11516_v39 = vpop.f32.mrf.mxu0 }
 0x4b7   :  { %v11474_v62 = vpop.f32.mrf.mxu1  ;;  %v8869_v25 = vpop.f32.mrf.mxu0 }
 0x4b8   :  { %v8518_v41 = vadd.f32 %v11474_v62, %v8397_v44 }
 0x4b9   :  { %v8506_v22 = vpop.f32.mrf.mxu1  ;;  %v11541_v13 = vpop.f32.mrf.mxu0 }
 0x4ba   :  { %v8517_v30 = vadd.f32 %v8506_v22, %v8396_v16  ;;  %v8639_v37 = vadd.f32 %v11488_v59, %v8518_v41 }
 0x4bb   :  { %v9101_v18 = vpop.f32.mrf.mxu0 }
 0x4bc   :  { %v11499_v43 = vpop.f32.mrf.mxu1  ;;  %v8638_v17 = vadd.f32 %v8627_v31, %v8517_v30 }
 0x4bd   :  { %v8758_v24 = vadd.f32 %v11499_v43, %v8637_v38  ;;  %v11544_v7 = vpop.f32.mrf.mxu0 }
 0x4be   :  { %v8738_v53 = vpop.f32.mrf.mxu1 }
 0x4bf   :  { %v8757_v61 = vadd.f32 %v8738_v53, %v8636_v55  ;;  %v8879_v0 = vadd.f32 %v11513_v51, %v8758_v24  ;;  %v9111_v51 = vpop.f32.mrf.mxu0 }
 0x4c0   :  { %v11502_v49 = vpop.f32.mrf.mxu1 }
 0x4c1   :  { %v8760_v2 = vadd.f32 %v11502_v49, %v8639_v37  ;;  %v8878_v58 = vadd.f32 %v8859_v20, %v8757_v61 }
 0x4c2   :  { %v8748_v56 = vpop.f32.mrf.mxu1 }
 0x4c3   :  { %v8759_v21 = vadd.f32 %v8748_v56, %v8638_v17  ;;  %v8881_v8 = vadd.f32 %v11516_v39, %v8760_v2 }
 0x4c4   :  { %v11527_v1 = vpop.f32.mrf.mxu1 }
 0x4c5   :  { %v9000_v5 = vadd.f32 %v11527_v1, %v8879_v0  ;;  %v8880_v29 = vadd.f32 %v8869_v25, %v8759_v21 }
 0x4c6   :  { %v8980_v19 = vpop.f32.mrf.mxu1 }
 0x4c7   :  { %v9121_v34 = vadd.f32 %v11541_v13, %v9000_v5  ;;  %v8999_v26 = vadd.f32 %v8980_v19, %v8878_v58 }
 0x4c8   :  { %v11530_v60 = vpop.f32.mrf.mxu1 }
 0x4c9   :  { %vm9125_vm10 = vcmp.gt.f32.partialorder %v9121_v34, 0.0  ;;  %v9129_v11 = vmul.f32 0.2, %v9121_v34  ;;  %v9120_v4 = vadd.f32 %v9101_v18, %v8999_v26  ;;  %v9002_v48 = vadd.f32 %v11530_v60, %v8881_v8 }
 0x4ca   :  { %v8990_v63 = vpop.f32.mrf.mxu1 }
 0x4cb   :  { %v9133_v57 = vsel %vm9125_vm10, %v9121_v34, %v9129_v11  ;;  %vm9124_vm11 = vcmp.gt.f32.partialorder %v9120_v4, 0.0  ;;  %v9128_v50 = vmul.f32 0.2, %v9120_v4  ;;  %v9123_v23 = vadd.f32 %v11544_v7, %v9002_v48 }
 0x4cc   :  { %v9157_v59 = vcombine.high %v9133_v57, %v9133_v57  ;;  %v9164_v45 = vrot.slane %v9133_v57, %v15731_v9  ;;  %v9001_v31 = vadd.f32 %v8990_v63, %v8880_v29 }
 0x4cd   :  { %v9132_v28 = vsel %vm9124_vm11, %v9120_v4, %v9128_v50  ;;  %vm9127_vm2 = vcmp.gt.f32.partialorder %v9123_v23, 0.0  ;;  %v9131_v54 = vmul.f32 0.2, %v9123_v23 }
 0x4ce   :  { %v9171_v36 = vrot.slane %v9157_v59, %v15731_v9  ;;  %v9172_v27 = vcombine.high %v9164_v45, %v9164_v45  ;;  %v9336_v6 = vrot.slane %v9164_v45, %v15732_v52  ;;  %v9381_v15 = vrot.slane %v9164_v45, %v15733_v3 }
 0x4cf   :  { %v9140_v20 = vcombine.high %v9132_v28, %v9132_v28  ;;  %v9147_v47 = vrot.slane %v9132_v28, %v15731_v9  ;;  %v9135_v10 = vsel %vm9127_vm2, %v9123_v23, %v9131_v54  ;;  %v9122_v35 = vadd.f32 %v9111_v51, %v9001_v31 }
 0x4d0   :  { %v9173_v62 = vcombine.high %v9171_v36, %v9171_v36  ;;  %v9244_v46 = vrot.slane %v9171_v36, %v15732_v52  ;;  %v9290_v40 = vrot.slane %v9171_v36, %v15733_v3  ;;  %v9340_v32 = vrot.slane %v9172_v27, %v15732_v52 }
 0x4d1   :  { %v9385_v22 = vrot.slane %v9172_v27, %v15733_v3  ;;  %v9154_v12 = vrot.slane %v9140_v20, %v15731_v9  ;;  %v9155_v39 = vcombine.high %v9147_v47, %v9147_v47  ;;  %v9328_v44 = vrot.slane %v9147_v47, %v15732_v52 }
 0x4d2   :  { %v9248_v42 = vrot.slane %v9173_v62, %v15732_v52  ;;  %v9294_v33 = vrot.slane %v9173_v62, %v15733_v3  ;;  %v9358_v43 = vsel %vm2762_vm5, %v9340_v32, %v9336_v6  ;;  %v9373_v41 = vrot.slane %v9147_v47, %v15733_v3 }
 0x4d3   :  { %9367 = vst.msk [vmem:[#allocation4 + $0x34] sm:$0x6] %vm9274_vm0, %v9358_v43  ;;  %v9403_v38 = vsel %vm3442_vm14, %v9385_v22, %v9381_v15  ;;  %v9156_v25 = vcombine.high %v9154_v12, %v9154_v12  ;;  %v9236_v16 = vrot.slane %v9154_v12, %v15732_v52  ;;  %v9282_v53 = vrot.slane %v9154_v12, %v15733_v3  ;;  %v9648_v22 = vld [vmem:[%s15695_s7 + $0xb8] sm:$0xff]  ;;  %v9752_v43 = vld [vmem:[%s15695_s7 + $0xe8] sm:$0xff] }
 0x4d4   :  { %v9266_v24 = vsel %vm2762_vm5, %v9248_v42, %v9244_v46  ;;  %v9312_v55 = vsel %vm3442_vm14, %v9294_v33, %v9290_v40  ;;  %9412 = vst.msk [vmem:[#allocation4 + $0x4c] sm:$0x3] %vm9320_vm15, %v9403_v38  ;;  %v9332_v30 = vrot.slane %v9155_v39, %v15732_v52  ;;  %v9377_v49 = vrot.slane %v9155_v39, %v15733_v3  ;;  %v9754_v39 = vld [vmem:[%s15695_s7 + $0xf8] sm:$0xff]  ;;  %v9753_v42 = vld [vmem:[%s15695_s7 + $0xf0] sm:$0xff]  ;;  %v9646_v33 = vld [vmem:[%s15695_s7 + $0xa8] sm:$0xff] }
 0x4d5   :  { %9276 = vst.msk [vmem:[#allocation4 + $0x8] sm:$0x6] %vm9274_vm0, %v9266_v24  ;;  %v9240_v61 = vrot.slane %v9156_v25, %v15732_v52  ;;  %v9286_v37 = vrot.slane %v9156_v25, %v15733_v3  ;;  %v9191_v13 = vcombine.high %v9135_v10, %v9135_v10  ;;  %v9198_v56 = vrot.slane %v9135_v10, %v15731_v9  ;;  %v9751_v38 = vld [vmem:[%s15695_s7 + $0xe0] sm:$0xff]  ;;  %v9644_v25 = vld [vmem:[%s15695_s7 + $0x98] sm:$0xff]  ;;  %v9643_v24 = vld [vmem:[%s15695_s7 + $0x90] sm:$0xff] }
 0x4d6   :  { %9322 = vst.msk [vmem:[#allocation4 + $0x20] sm:$0x3] %vm9320_vm15, %v9312_v55  ;;  %v9357_v2 = vsel %vm2762_vm5, %v9332_v30, %v9328_v44  ;;  %v9402_v0 = vsel %vm3442_vm14, %v9377_v49, %v9373_v41  ;;  %vm9126_vm3 = vcmp.gt.f32.partialorder %v9122_v35, 0.0  ;;  %v9130_v17 = vmul.f32 0.2, %v9122_v35  ;;  %v9647_v44 = vld [vmem:[%s15695_s7 + $0xb0] sm:$0xff] }
 0x4d7   :  { %v9265_v1 = vsel %vm2762_vm5, %v9240_v61, %v9236_v16  ;;  %v9311_v5 = vsel %vm3442_vm14, %v9286_v37, %v9282_v53  ;;  %9366 = vst.msk [vmem:[#allocation4 + $0x30] sm:$0x6] %vm9274_vm0, %v9357_v2  ;;  %v9205_v58 = vrot.slane %v9191_v13, %v15731_v9  ;;  %v9206_v18 = vcombine.high %v9198_v56, %v9198_v56  ;;  %v9645_v41 = vld [vmem:[%s15695_s7 + $0xa0] sm:$0xff]  ;;  %v9750_v16 = vld [vmem:[%s15695_s7 + $0xd8] sm:$0xff]  ;;  %v9749_v30 = vld [vmem:[%s15695_s7 + $0xd0] sm:$0xff] }
 0x4d8   :  { %9411 = vst.msk [vmem:[#allocation4 + $0x48] sm:$0x3] %vm9320_vm15, %v9402_v0  ;;  %9321 = vst.msk [vmem:[#allocation4 + $0x1c] sm:$0x3] %vm9320_vm15, %v9311_v5  ;;  %v9134_v21 = vsel %vm9126_vm3, %v9122_v35, %v9130_v17  ;;  %v9352_v34 = vrot.slane %v9198_v56, %v15732_v52  ;;  %v9397_v8 = vrot.slane %v9198_v56, %v15733_v3  ;;  %v9642_v61 = vld [vmem:[%s15695_s7 + $0x88] sm:$0xff]  ;;  %v9641_v56 = vld [vmem:[%s15695_s7 + $0x80] sm:$0xff] }
 0x4d9   :  { %9275 = vst.msk [vmem:[#allocation4 + $0x4] sm:$0x6] %vm9274_vm0, %v9265_v1  ;;  %v9207_v19 = vcombine.high %v9205_v58, %v9205_v58  ;;  %v9356_v26 = vrot.slane %v9206_v18, %v15732_v52  ;;  %v9260_v60 = vrot.slane %v9205_v58, %v15732_v52  ;;  %v9401_v11 = vrot.slane %v9206_v18, %v15733_v3  ;;  %v9748_v13 = vld [vmem:[%s15695_s7 + $0xc8] sm:$0xff]  ;;  %v9747_v2 = vld [vmem:[%s15695_s7 + $0xc0] sm:$0xff]  ;;  %v9860_v1 = vld [vmem:[%s15695_s7 + $0x138] sm:$0xff] }
 0x4da   :  { %v9174_v4 = vcombine.high %v9134_v21, %v9134_v21  ;;  %v9181_v48 = vrot.slane %v9134_v21, %v15731_v9  ;;  %v9306_v29 = vrot.slane %v9205_v58, %v15733_v3  ;;  %v9966_v5 = vld [vmem:[%s15695_s7 + $0x178] sm:$0xff]  ;;  %v9859_v58 = vld [vmem:[%s15695_s7 + $0x130] sm:$0xff]  ;;  %v9858_v21 = vld [vmem:[%s15695_s7 + $0x128] sm:$0xff] }
 0x4db   :  { %v9264_v7 = vrot.slane %v9207_v19, %v15732_v52  ;;  %v9310_v63 = vrot.slane %v9207_v19, %v15733_v3  ;;  %v9360_v57 = vsel %vm2762_vm5, %v9356_v26, %v9352_v34  ;;  %v9405_v50 = vsel %vm3442_vm14, %v9401_v11, %v9397_v8  ;;  %v9965_v18 = vld [vmem:[%s15695_s7 + $0x170] sm:$0xff]  ;;  %v9964_v19 = vld [vmem:[%s15695_s7 + $0x168] sm:$0xff]  ;;  %v9857_v34 = vld [vmem:[%s15695_s7 + $0x120] sm:$0xff] }
 0x4dc   :  { %9369 = vst.msk [vmem:[#allocation4 + $0x40] sm:$0x6] %vm9274_vm0, %v9360_v57  ;;  %v9188_v23 = vrot.slane %v9174_v4, %v15731_v9  ;;  %v9189_v59 = vcombine.high %v9181_v48, %v9181_v48  ;;  %v9344_v54 = vrot.slane %v9181_v48, %v15732_v52  ;;  %v9389_v9 = vrot.slane %v9181_v48, %v15733_v3  ;;  %v9963_v26 = vld [vmem:[%s15695_s7 + $0x160] sm:$0xff]  ;;  %v9856_v8 = vld [vmem:[%s15695_s7 + $0x118] sm:$0xff]  ;;  %v9855_v4 = vld [vmem:[%s15695_s7 + $0x110] sm:$0xff] }
 0x4dd   :  { %v9268_v45 = vsel %vm2762_vm5, %v9264_v7, %v9260_v60  ;;  %v9314_v31 = vsel %vm3442_vm14, %v9310_v63, %v9306_v29  ;;  %9414 = vst.msk [vmem:[#allocation4 + $0x58] sm:$0x3] %vm9320_vm15, %v9405_v50  ;;  %v9962_v60 = vld [vmem:[%s15695_s7 + $0x158] sm:$0xff]  ;;  %v9961_v7 = vld [vmem:[%s15695_s7 + $0x150] sm:$0xff]  ;;  %v9854_v63 = vld [vmem:[%s15695_s7 + $0x108] sm:$0xff] }
 0x4de   :  { %9278 = vst.msk [vmem:[#allocation4 + $0x14] sm:$0x6] %vm9274_vm0, %v9268_v45  ;;  %v9190_v28 = vcombine.high %v9188_v23, %v9188_v23  ;;  %v9348_v51 = vrot.slane %v9189_v59, %v15732_v52  ;;  %v9252_v36 = vrot.slane %v9188_v23, %v15732_v52  ;;  %v9393_v27 = vrot.slane %v9189_v59, %v15733_v3  ;;  %v11791_v37 = vld.sshfl [vmem:[#allocation4 + $0x30] sm:$0xf pattern:$0x76325410] }
 0x4df   :  { %9324 = vst.msk [vmem:[#allocation4 + $0x2c] sm:$0x3] %vm9320_vm15, %v9314_v31  ;;  %v9298_v15 = vrot.slane %v9188_v23, %v15733_v3  ;;  %v11786_v46 = vld.sshfl [vmem:[#allocation4 + $0x18] sm:$0xf pattern:$0x76325410] }
 0x4e0   :  { %v9256_v6 = vrot.slane %v9190_v28, %v15732_v52  ;;  %v9302_v20 = vrot.slane %v9190_v28, %v15733_v3  ;;  %v9359_v47 = vsel %vm2762_vm5, %v9348_v51, %v9344_v54  ;;  %v9404_v10 = vsel %vm3442_vm14, %v9393_v27, %v9389_v9  ;;  %v11784_v52 = vld.sshfl [vmem:[#allocation4] sm:$0xf pattern:$0x76325410]  ;;  %v9960_v50 = vld [vmem:[%s15695_s7 + $0x148] sm:$0xff]  ;;  %v10072_v28 = vld [vmem:[%s15695_s7 + $0x1b8] sm:$0xff] }
 0x4e1   :  { %9368 = vst.msk [vmem:[#allocation4 + $0x3c] sm:$0x6] %vm9274_vm0, %v9359_v47  ;;  %v11790_v49 = vld.sshfl [vmem:[#allocation4 + $0x1] sm:$0xf pattern:$0x76325410] }
 0x4e2   :  { %v9267_v35 = vsel %vm2762_vm5, %v9256_v6, %v9252_v36  ;;  %v9313_v62 = vsel %vm3442_vm14, %v9302_v20, %v9298_v15  ;;  %9413 = vst.msk [vmem:[#allocation4 + $0x54] sm:$0x3] %vm9320_vm15, %v9404_v10  ;;  %v11794_v29 = vld.sshfl [vmem:[#allocation4 + $0x48] sm:$0xf pattern:$0x76325410] }
 0x4e3   :  { %9277 = vst.msk [vmem:[#allocation4 + $0x10] sm:$0x6] %vm9274_vm0, %v9267_v35  ;;  %v11795_v57 = vld.sshfl [vmem:[#allocation4 + $0x31] sm:$0xf pattern:$0x76325410] }
 0x4e4   :  { %9323 = vst.msk [vmem:[#allocation4 + $0x28] sm:$0x3] %vm9320_vm15, %v9313_v62  ;;  %v9853_v23 = vld [vmem:[%s15695_s7 + $0x100] sm:$0xff]  ;;  %v10178_v54 = vld [vmem:[%s15695_s7 + $0x1f8] sm:$0xff]  ;;  %v10071_v51 = vld [vmem:[%s15695_s7 + $0x1b0] sm:$0xff] }
 0x4e5   :  { %v9959_v59 = vld [vmem:[%s15695_s7 + $0x140] sm:$0xff]  ;;  %v10177_v36 = vld [vmem:[%s15695_s7 + $0x1f0] sm:$0xff]  ;;  %v10070_v9 = vld [vmem:[%s15695_s7 + $0x1a8] sm:$0xff] }
 0x4e6   :  { %v10176_v27 = vld [vmem:[%s15695_s7 + $0x1e8] sm:$0xff]  ;;  %v10069_v6 = vld [vmem:[%s15695_s7 + $0x1a0] sm:$0xff]  ;;  %v10068_v20 = vld [vmem:[%s15695_s7 + $0x198] sm:$0xff] }
 0x4e7   :  { %v10175_v15 = vld [vmem:[%s15695_s7 + $0x1e0] sm:$0xff]  ;;  %v10174_v47 = vld [vmem:[%s15695_s7 + $0x1d8] sm:$0xff]  ;;  %v10067_v35 = vld [vmem:[%s15695_s7 + $0x190] sm:$0xff] }
 0x4e8   :  { %v11789_v55 = vld.sshfl [vmem:[#allocation4 + $0x3c] sm:$0xf pattern:$0x76325410] }
 0x4e9   :  { %v9775_v17 = vcombine.low %v11791_v37, %v11789_v55  ;;  %v11792_v11 = vld.sshfl [vmem:[#allocation4 + $0x54] sm:$0xf pattern:$0x76325410]  ;;  %v10277_v55 = vld [vmem:[%s15695_s7 + $0x200] sm:$0xff] }
 0x4ea   :  { %v11785_v40 = vld.sshfl [vmem:[#allocation4 + $0xc] sm:$0xf pattern:$0x76325410]  ;;  %v9881_v45 = vcombine.low %v11794_v29, %v11792_v11 }
 0x4eb   :  { %v11787_v3 = vld.sshfl [vmem:[#allocation4 + $0x24] sm:$0xf pattern:$0x76325410]  ;;  %v9455_v32 = vcombine.low %v11784_v52, %v11785_v40  ;;  %v10173_v52 = vld [vmem:[%s15695_s7 + $0x1d0] sm:$0xff] }
 0x4ec   :  { %v9563_v12 = vcombine.low %v11786_v46, %v11787_v3  ;;  %v11788_v53 = vld.sshfl [vmem:[#allocation4 + $0xd] sm:$0xf pattern:$0x76325410] }
 0x4ed   :  { %11562 = vmatmul.mubr.msk.f32.vlgmr.msra.gmra.mxu1 %vm9456_vm12, %v9455_v32  ;;  %v9669_v0 = vcombine.low %v11790_v49, %v11788_v53  ;;  %v11793_v48 = vld.sshfl [vmem:[#allocation4 + $0x3d] sm:$0xf pattern:$0x76325410]  ;;  %v10066_v40 = vld [vmem:[%s15695_s7 + $0x188] sm:$0xff] }
 0x4ee   :  { %11581 = vmatmul.mubr.msk.f32.vlgmr.msra.gmra.mxu0 %vm9456_vm12, %v9563_v12  ;;  %11584 = vmatpush3.msra.mxu1 %v9648_v22  ;;  %v9987_v31 = vcombine.low %v11795_v57, %v11793_v48  ;;  %v11796_v10 = vld.sshfl [vmem:[#allocation4 + $0x10] sm:$0xf pattern:$0x76325410]  ;;  %v10172_v32 = vld [vmem:[%s15695_s7 + $0x1c8] sm:$0xff]  ;;  %v10065_v22 = vld [vmem:[%s15695_s7 + $0x180] sm:$0xff] }
 0x4ef   :  { %11603 = vmatpush3.msra.mxu0 %v9754_v39  ;;  %11585 = vmatprep.subr.mxu1 %v15736_v14  ;;  %v11797_v62 = vld.sshfl [vmem:[#allocation4 + $0x28] sm:$0xf pattern:$0x76325410]  ;;  %v10171_v12 = vld [vmem:[%s15695_s7 + $0x1c0] sm:$0xff] }
 0x4f0   :  { %11604 = vmatprep.subr.mxu0 %v15736_v14  ;;  %11586 = vmatpush3.msra.mxu1 %v9647_v44  ;;  %v11798_v46 = vld.sshfl [vmem:[#allocation4 + $0x4] sm:$0xf pattern:$0x76325410] }
 0x4f1   :  { %11605 = vmatpush3.msra.mxu0 %v9753_v42  ;;  %11587 = vmatprep.subr.mxu1 %v15736_v14  ;;  %v11799_v3 = vld.sshfl [vmem:[#allocation4 + $0x1c] sm:$0xf pattern:$0x76325410]  ;;  %v10093_v39 = vcombine.low %v11798_v46, %v11796_v10 }
 0x4f2   :  { %11606 = vmatprep.subr.mxu0 %v15736_v14  ;;  %11588 = vmatpush3.msra.mxu1 %v9646_v33  ;;  %v10199_v44 = vcombine.low %v11799_v3, %v11797_v62  ;;  %v10284_v42 = vld [vmem:[%s15695_s7 + $0x238] sm:$0xff]  ;;  %v10283_v33 = vld [vmem:[%s15695_s7 + $0x230] sm:$0xff]  ;;  %v11801_v53 = vld.sshfl [vmem:[#allocation4 + $0x5] sm:$0xf pattern:$0x76325410] }
 0x4f3   :  { %11607 = vmatpush3.msra.mxu0 %v9752_v43  ;;  %11589 = vmatprep.subr.mxu1 %v15736_v14  ;;  %v10282_v43 = vld [vmem:[%s15695_s7 + $0x228] sm:$0xff] }
 0x4f4   :  { %11608 = vmatprep.subr.mxu0 %v15736_v14  ;;  %11590 = vmatpush3.msra.mxu1 %v9645_v41  ;;  %v10281_v41 = vld [vmem:[%s15695_s7 + $0x220] sm:$0xff] }
 0x4f5   :  { %11609 = vmatpush3.msra.mxu0 %v9751_v38  ;;  %11591 = vmatprep.subr.mxu1 %v15736_v14  ;;  %v10280_v38 = vld [vmem:[%s15695_s7 + $0x218] sm:$0xff] }
 0x4f6   :  { %11610 = vmatprep.subr.mxu0 %v15736_v14  ;;  %11592 = vmatpush3.msra.mxu1 %v9644_v25  ;;  %v11800_v25 = vld.sshfl [vmem:[#allocation4 + $0x11] sm:$0xf pattern:$0x76325410] }
 0x4f7   :  { %11611 = vmatpush3.msra.mxu0 %v9750_v16  ;;  %11593 = vmatprep.subr.mxu1 %v15736_v14  ;;  %v10279_v16 = vld [vmem:[%s15695_s7 + $0x210] sm:$0xff] }
 0x4f8   :  { %11612 = vmatprep.subr.mxu0 %v15736_v14  ;;  %11594 = vmatpush3.msra.mxu1 %v9643_v24  ;;  %v10278_v24 = vld [vmem:[%s15695_s7 + $0x208] sm:$0xff] }
 0x4f9   :  { %11613 = vmatpush3.msra.mxu0 %v9749_v30  ;;  %11595 = vmatprep.subr.mxu1 %v15736_v14  ;;  %v10305_v30 = vcombine.low %v11801_v53, %v11800_v25 }
 0x4fa   :  { %11614 = vmatprep.subr.mxu0 %v15736_v14  ;;  %11596 = vmatpush3.msra.mxu1 %v9642_v61 }
 0x4fb   :  { %11615 = vmatpush3.msra.mxu0 %v9748_v13  ;;  %11597 = vmatprep.subr.mxu1 %v15736_v14 }
 0x4fc   :  { %11616 = vmatprep.subr.mxu0 %v15736_v14  ;;  %11598 = vmatpush3.msra.mxu1 %v9641_v56 }
 0x4fd   :  { %11599 = vmatprep.mubr.msk.f32.mxu1 %vm11804_vm8, %v15736_v14  ;;  %11617 = vmatpush3.msra.mxu0 %v9747_v2 }
 0x4fe   :  { %11618 = vmatprep.mubr.msk.f32.mxu0 %vm11804_vm8, %v15736_v14  ;;  %11600 = vmatmul.mubr.msk.f32.vlgmr.msra.gmra.mxu1 %vm9456_vm12, %v9669_v0 }
 0x4ff   :  { %11619 = vmatmul.mubr.msk.f32.vlgmr.msra.gmra.mxu0 %vm9456_vm12, %v9775_v17  ;;  %11621 = vmatprep.subr.mxu1 %v15736_v14 }
 0x500   :  { %11640 = vmatprep.subr.mxu0 %v15736_v14  ;;  %11622 = vmatpush3.msra.mxu1 %v9860_v1 }
 0x501   :  { %11641 = vmatpush3.msra.mxu0 %v9966_v5  ;;  %11623 = vmatprep.subr.mxu1 %v15736_v14 }
 0x502   :  { %11642 = vmatprep.subr.mxu0 %v15736_v14  ;;  %11624 = vmatpush3.msra.mxu1 %v9859_v58 }
 0x503   :  { %11643 = vmatpush3.msra.mxu0 %v9965_v18  ;;  %11625 = vmatprep.subr.mxu1 %v15736_v14 }
 0x504   :  { %11644 = vmatprep.subr.mxu0 %v15736_v14  ;;  %11626 = vmatpush3.msra.mxu1 %v9858_v21 }
 0x505   :  { %11645 = vmatpush3.msra.mxu0 %v9964_v19  ;;  %11627 = vmatprep.subr.mxu1 %v15736_v14 }
 0x506   :  { %11646 = vmatprep.subr.mxu0 %v15736_v14  ;;  %11628 = vmatpush3.msra.mxu1 %v9857_v34 }
 0x507   :  { %11647 = vmatpush3.msra.mxu0 %v9963_v26  ;;  %11629 = vmatprep.subr.mxu1 %v15736_v14 }
 0x508   :  { %11648 = vmatprep.subr.mxu0 %v15736_v14  ;;  %11630 = vmatpush3.msra.mxu1 %v9856_v8 }
 0x509   :  { %11649 = vmatpush3.msra.mxu0 %v9962_v60  ;;  %11631 = vmatprep.subr.mxu1 %v15736_v14 }
 0x50a   :  { %11650 = vmatprep.subr.mxu0 %v15736_v14  ;;  %11632 = vmatpush3.msra.mxu1 %v9855_v4 }
 0x50b   :  { %11651 = vmatpush3.msra.mxu0 %v9961_v7  ;;  %11633 = vmatprep.subr.mxu1 %v15736_v14 }
 0x50c   :  { %11652 = vmatprep.subr.mxu0 %v15736_v14  ;;  %11634 = vmatpush3.msra.mxu1 %v9854_v63 }
 0x50d   :  { %11653 = vmatpush3.msra.mxu0 %v9960_v50  ;;  %11635 = vmatprep.subr.mxu1 %v15736_v14 }
 0x50e   :  { %11654 = vmatprep.subr.mxu0 %v15736_v14  ;;  %11636 = vmatpush3.msra.mxu1 %v9853_v23 }
 0x50f   :  { %11637 = vmatprep.mubr.msk.f32.mxu1 %vm11804_vm8, %v15736_v14  ;;  %11655 = vmatpush3.msra.mxu0 %v9959_v59 }
 0x510   :  { %11656 = vmatprep.mubr.msk.f32.mxu0 %vm11804_vm8, %v15736_v14  ;;  %11638 = vmatmul.mubr.msk.f32.vlgmr.msra.gmra.mxu1 %vm9456_vm12, %v9881_v45  ;;  %v10385_v45 = vld [vmem:[%s15698_s9] sm:$0xf] }
 0x511   :  { %11657 = vmatmul.mubr.msk.f32.vlgmr.msra.gmra.mxu0 %vm9456_vm12, %v9987_v31  ;;  %11659 = vmatprep.subr.mxu1 %v15736_v14 }
 0x512   :  { %11678 = vmatprep.subr.mxu0 %v15736_v14  ;;  %11660 = vmatpush3.msra.mxu1 %v10072_v28 }
 0x513   :  { %11679 = vmatpush3.msra.mxu0 %v10178_v54  ;;  %11661 = vmatprep.subr.mxu1 %v15736_v14 }
 0x514   :  { %11680 = vmatprep.subr.mxu0 %v15736_v14  ;;  %11662 = vmatpush3.msra.mxu1 %v10071_v51 }
 0x515   :  { %11681 = vmatpush3.msra.mxu0 %v10177_v36  ;;  %11663 = vmatprep.subr.mxu1 %v15736_v14 }
 0x516   :  { %11682 = vmatprep.subr.mxu0 %v15736_v14  ;;  %11664 = vmatpush3.msra.mxu1 %v10070_v9 }
 0x517   :  { %11683 = vmatpush3.msra.mxu0 %v10176_v27  ;;  %11665 = vmatprep.subr.mxu1 %v15736_v14  ;;  %v16_v27 = vstv %s15699_s10 }
 0x518   :  { %11684 = vmatprep.subr.mxu0 %v15736_v14  ;;  %11666 = vmatpush3.msra.mxu1 %v10069_v6  ;;  %17 = vst [vmem:[#allocation5] sm:$0x1] %v16_v27  ;;  %v15737_v6 = vlaneseq }
 0x519   :  { %11685 = vmatpush3.msra.mxu0 %v10175_v15  ;;  %11667 = vmatprep.subr.mxu1 %v15736_v14 }
 0x51a   :  { %11686 = vmatprep.subr.mxu0 %v15736_v14  ;;  %11668 = vmatpush3.msra.mxu1 %v10068_v20  ;;  %v10398_v15 = vand.u32 127, %v15737_v6 }
 0x51b   :  { %11687 = vmatpush3.msra.mxu0 %v10174_v47  ;;  %11669 = vmatprep.subr.mxu1 %v15736_v14  ;;  %v15738_v47 = vld [vmem:[#allocation6_spill] sm:$0xff] }
 0x51c   :  { %11688 = vmatprep.subr.mxu0 %v15736_v14  ;;  %11670 = vmatpush3.msra.mxu1 %v10067_v35  ;;  %v10401_v10 = vsub.s32 %v10398_v15, %v15738_v47 }
 0x51d   :  { %11689 = vmatpush3.msra.mxu0 %v10173_v52  ;;  %11671 = vmatprep.subr.mxu1 %v15736_v14 }
 0x51e   :  { %11690 = vmatprep.subr.mxu0 %v15736_v14  ;;  %11672 = vmatpush3.msra.mxu1 %v10066_v40 }
 0x51f   :  { %11691 = vmatpush3.msra.mxu0 %v10172_v32  ;;  %11673 = vmatprep.subr.mxu1 %v15736_v14  ;;  %v10685_v3 = vld [vmem:[#allocation5] ss:$0 sm:$0xff] }
 0x520   :  { %11692 = vmatprep.subr.mxu0 %v15736_v14  ;;  %11674 = vmatpush3.msra.mxu1 %v10065_v22 }
 0x521   :  { %11675 = vmatprep.mubr.msk.f32.mxu1 %vm11804_vm8, %v15736_v14  ;;  %11693 = vmatpush3.msra.mxu0 %v10171_v12 }
 0x522   :  { %11694 = vmatprep.mubr.msk.f32.mxu0 %vm11804_vm8, %v15736_v14  ;;  %11676 = vmatmul.mubr.msk.f32.vlgmr.msra.gmra.mxu1 %vm9456_vm12, %v10093_v39 }
 0x523   :  { %11695 = vmatmul.mubr.msk.f32.vlgmr.msra.gmra.mxu0 %vm9456_vm12, %v10199_v44  ;;  %11697 = vmatprep.subr.mxu1 %v15736_v14 }
 0x524   :  { %11698 = vmatpush3.msra.mxu1 %v10284_v42  ;;  %11713 = vmatprep.mubr.msk.f32.mxu1 %vm11804_vm8, %v15736_v14 }
 0x525   :  { %11699 = vmatprep.subr.mxu1 %v15736_v14 }
 0x526   :  { %11700 = vmatpush3.msra.mxu1 %v10283_v33 }
 0x527   :  { %11701 = vmatprep.subr.mxu1 %v15736_v14 }
 0x528   :  { %11702 = vmatpush3.msra.mxu1 %v10282_v43 }
 0x529   :  { %11703 = vmatprep.subr.mxu1 %v15736_v14 }
 0x52a   :  { %11704 = vmatpush3.msra.mxu1 %v10281_v41 }
 0x52b   :  { %11705 = vmatprep.subr.mxu1 %v15736_v14 }
 0x52c   :  { %11706 = vmatpush3.msra.mxu1 %v10280_v38 }
 0x52d   :  { %11707 = vmatprep.subr.mxu1 %v15736_v14 }
 0x52e   :  { %11708 = vmatpush3.msra.mxu1 %v10279_v16 }
 0x52f   :  { %11709 = vmatprep.subr.mxu1 %v15736_v14 }
 0x530   :  { %11710 = vmatpush3.msra.mxu1 %v10278_v24 }
 0x531   :  { %11711 = vmatprep.subr.mxu1 %v15736_v14  ;;  %v10675_v14 = vld [vmem:[%s15697_s8] ss:$0 sm:$0xff] }
 0x532   :  { %11712 = vmatpush3.msra.mxu1 %v10277_v55 }
 0x533   :  { %11714 = vmatmul.mubr.msk.f32.vlgmr.msra.gmra.mxu1 %vm9456_vm12, %v10305_v30 }
 0x5ad   :  { %v9525_v49 = vpop.f32.mrf.mxu1 }
 0x5ae   :  { %v9632_v61 = vpop.f32.mrf.mxu0  ;;  %v9529_v21 = vadd.f32 %v10675_v14, %v9525_v49 }
 0x5af   :  { %v11563_v37 = vpop.f32.mrf.mxu1 }
 0x5b0   :  { %v11582_v13 = vpop.f32.mrf.mxu0  ;;  %v9636_v19 = vadd.f32 %v9632_v61, %v9529_v21 }
 0x5be   :  { %v9738_v56 = vpop.f32.mrf.mxu1 }
 0x5bf   :  { %v9844_v2 = vpop.f32.mrf.mxu0  ;;  %v9742_v34 = vadd.f32 %v9738_v56, %v9636_v19 }
 0x5c0   :  { %v11601_v0 = vpop.f32.mrf.mxu1 }
 0x5c1   :  { %v11620_v17 = vpop.f32.mrf.mxu0  ;;  %v9848_v4 = vadd.f32 %v9844_v2, %v9742_v34 }
 0x5d0   :  { %v9950_v1 = vpop.f32.mrf.mxu1 }
 0x5d1   :  { %v10056_v5 = vpop.f32.mrf.mxu0  ;;  %v9954_v48 = vadd.f32 %v9950_v1, %v9848_v4 }
 0x5d2   :  { %v11639_v58 = vpop.f32.mrf.mxu1 }
 0x5d3   :  { %v11658_v18 = vpop.f32.mrf.mxu0  ;;  %v10060_v7 = vadd.f32 %v10056_v5, %v9954_v48 }
 0x5e2   :  { %v10162_v26 = vpop.f32.mrf.mxu1 }
 0x5e3   :  { %v10268_v8 = vpop.f32.mrf.mxu0  ;;  %v10166_v29 = vadd.f32 %v10162_v26, %v10060_v7 }
 0x5e4   :  { %v11677_v60 = vpop.f32.mrf.mxu1 }
 0x5e5   :  { %v11696_v11 = vpop.f32.mrf.mxu0  ;;  %v10272_v63 = vadd.f32 %v10268_v8, %v10166_v29 }
 0x5f3   :  { %v10374_v57 = vpop.f32.mrf.mxu1 }
 0x5f4   :  { %v10378_v50 = vadd.f32 %v10374_v57, %v10272_v63 }
 0x5f5   :  { %v11715_v23 = vpop.f32.mrf.mxu1 }
 0x5f6   :  { %v10380_v59 = vmul.f32 0.2, %v10378_v50  ;;  %vm10379_vm5 = vcmp.gt.f32.partialorder %v10378_v50, 0.0 }
 0x5f8   :  { %v10381_v31 = vsel %vm10379_vm5, %v10378_v50, %v10380_v59 }
 0x5f9   :  { %v10386_v28 = vmul.f32 %v10385_v45, %v10381_v31  ;;  %v10383_v54 = vcombine.high %v10381_v31, %v10381_v31 }
 0x5fb   :  { %v10389_v51 = vsel %vm10388_vm13, %v10386_v28, 0.0  ;;  %v10387_v36 = vmul.f32 %v10385_v45, %v10383_v54 }
 0x5fc   :  { %10390 = vadd.xlane.f32.xlu0 %v10389_v51 }
 0x5fd   :  { %v10392_v9 = vsel %vm10388_vm13, %v10387_v36, 0.0 }
 0x600   :  { %10393 = vadd.xlane.f32.xlu0 %v10392_v9 }
 0x685   :  { %v10391_v20 = vpop.xlane.xlu0 %10390 }
 0x686   :  { %v10402_v62 = vrot.slane %v10391_v20, %v10401_v10 }
 0x689   :  { %v10394_v35 = vpop.xlane.xlu0 %10393 }
 0x68a   :  { %v10406_v52 = vrot.slane %v10394_v35, %v10401_v10 }
 0x68c   :  { %v10407_v46 = vsel %vm3442_vm14, %v10406_v52, %v10402_v62 }
 0x68d   :  { %v10410_v40 = vsel %vm10409_vm1, %v10407_v46, 0.0 }
 0x68e   :  { %10411 = vadd.xlane.f32.xlu1 %v10410_v40 }
 0x717   :  { %v10412_v32 = vpop.xlane.xlu1 %10411 }
 0x718   :  { %v10420_v22 = vadd.f32 %v10685_v3, %v10412_v32 }
 0x71a   :  { %10422 = vst.msk [vmem:[%s15700_s11] sm:$0x3] %vm10421_vm4, %v10420_v22 }

</bundles_post_ra>
